<compile_context>
chip_gen: v6e
topology: v6e:2x2x1
jax: 0.10.0
libtpu: 0.0.40
codegen_flags: <defaults>
</compile_context>

<pallas_src>
import functools

import jax
import jax.numpy as jnp
from jax.experimental import pallas as pl
from jax.experimental.pallas import tpu as pltpu

_LANE = 128


def _round_up(x, m):
    return (x + m - 1) // m * m


def _vmem_limit_bytes():
    # Generation-aware VMEM budget (v5e/v6e: 128 MiB physical, v7x: 64 MiB).
    try:
        return int(pltpu.get_tpu_info().vmem_capacity_bytes * 0.7)
    except Exception:
        return 48 * 1024 * 1024


def _pick_row_tile(rows, target=1024):
    """Largest row tile <= target that divides `rows` and is a multiple of 8."""
    if rows <= target:
        return rows
    t = (target // 8) * 8
    while t >= 8:
        if rows % t == 0:
            return t
        t -= 8
    return rows  # fallback: single block


def _pick_depth_tile(depth, max_td=8):
    for t in range(min(depth, max_td), 0, -1):
        if depth % t == 0:
            return t
    return 1


# ---------------------------------------------------------------------------
# Kernel 1: conv1 (1x1x1) + bn1 + relu  ==  row-tiled fused matmul + epilogue
# ---------------------------------------------------------------------------
def _mm_bn_relu_kernel(x_ref, w_ref, s_ref, b_ref, o_ref):
    acc = jnp.dot(x_ref[...], w_ref[...], preferred_element_type=jnp.float32)
    o_ref[...] = jnp.maximum(acc * s_ref[...] + b_ref[...], 0.0).astype(o_ref.dtype)


def fused_matmul_bn_relu(x, w, scale, bias, *, tile_n):
    """relu((x @ w) * scale + bias). x:(N,K) bf16, w:(K,C) bf16, scale/bias:(1,C) f32."""
    N, K = x.shape
    _, C = w.shape
    assert N % tile_n == 0
    return pl.pallas_call(
        _mm_bn_relu_kernel,
        out_shape=jax.ShapeDtypeStruct((N, C), jnp.bfloat16),
        grid=(N // tile_n,),
        in_specs=[
            pl.BlockSpec((tile_n, K), lambda i: (i, 0)),
            pl.BlockSpec((K, C), lambda i: (0, 0)),   # resident weight
            pl.BlockSpec((1, C), lambda i: (0, 0)),
            pl.BlockSpec((1, C), lambda i: (0, 0)),
        ],
        out_specs=pl.BlockSpec((tile_n, C), lambda i: (i, 0)),
        compiler_params=pltpu.CompilerParams(
            dimension_semantics=("parallel",),
            vmem_limit_bytes=_vmem_limit_bytes()),
    )(x, w, scale, bias)


# ---------------------------------------------------------------------------
# Kernel 2: conv2 (3x3x3, pad=1) + bn2 + relu + conv3 (1x1x1) + bn3 + residual + relu
# Depth-blocked, zero-halo shift-trick im2col, cross-step f32 VMEM accumulator.
# ---------------------------------------------------------------------------
def _conv2_conv3_kernel(y1_ref, w2_ref, s2_ref, b2_ref, w3_ref, s3_ref, b3_ref,
                        res_ref, out_ref, pad_ref, acc_ref, y2d_ref,
                        *, H, W, D, Td):
    Wp2 = W + 2
    Lr = acc_ref.shape[1]
    Pp = acc_ref.shape[2]
    Dwin = Td + 2

    g = pl.program_id(1)
    j = pl.program_id(2)
    dorig = g * Td + j - 1                                   # original depth of slice
    valid = jnp.logical_and(dorig >= 0, dorig <= D - 1)      # depth halo == skip

    @pl.when(j == 0)
    def _init():
        acc_ref[...] = jnp.zeros_like(acc_ref)

    @pl.when(valid)
    def _accumulate():
        # Scatter the dense (HW, Pp) slice into the zero-halo, width-padded,
        # flattened (H+2)*(W+2)-row slab held in VMEM (done once per fetched slice).
        pad_ref[...] = jnp.zeros_like(pad_ref)
        slab = y1_ref[0, 0]                                  # (HW, Pp) bf16
        for h in range(H):
            pad_ref[pl.ds((h + 1) * Wp2 + 1, W), :] = slab[h * W:(h + 1) * W, :]

        # This depth slice is the kd-th tap for output (local) depth dd = j - kd.
        for kd in range(3):
            dd = j - kd

            @pl.when(jnp.logical_and(dd >= 0, dd < Td))
            def _contrib(kd=kd, dd=dd):
                part = jnp.zeros((Lr, Pp), jnp.float32)
                for kh in range(3):
                    for kw in range(3):
                        off = kh * Wp2 + kw
                        tap = pad_ref[pl.ds(off, Lr), :]     # zero-halo shift trick
                        part = part + jnp.dot(
                            tap, w2_ref[kd * 9 + kh * 3 + kw],
                            preferred_element_type=jnp.float32)
                ddc = jnp.clip(dd, 0, Td - 1)
                acc_ref[ddc] = acc_ref[ddc] + part

    @pl.when(j == Dwin - 1)
    def _finalize():
        for dd in range(Td):                                  # static loop
            y2 = jnp.maximum(acc_ref[dd] * s2_ref[...] + b2_ref[...], 0.0)
            y2 = y2.astype(jnp.bfloat16)
            # Compact valid rows (p = h*(W+2) + w, w < W) into dense (H*W, Pp).
            for h in range(H):
                y2d_ref[pl.ds(h * W, W), :] = y2[h * Wp2:h * Wp2 + W, :]
            y3 = jnp.dot(y2d_ref[...], w3_ref[...],
                         preferred_element_type=jnp.float32)
            y3 = y3 * s3_ref[...] + b3_ref[...] + res_ref[0, dd].astype(jnp.float32)
            out_ref[0, dd] = jnp.maximum(y3, 0.0).astype(out_ref.dtype)


def fused_conv2_conv3(y1, res, w2, s2, b2, w3, s3, b3, *, H, W, Td):
    """y1: (B, D, H*W, Pp) bf16 dense conv1 output; res: (B, D, H*W, C3p) bf16.
    w2: (27, Pp, Pp) bf16 in (kd,kh,kw) order; w3: (Pp, C3p) bf16.
    Returns (B, D, H*W, C3p) bf16."""
    B, D, HW, Pp = y1.shape
    C3p = w3.shape[1]
    assert D % Td == 0
    G = D // Td
    Dwin = Td + 2
    Wp2 = W + 2
    L = (H - 1) * Wp2 + W
    Lr = _round_up(L, 8)
    pad_rows = _round_up(2 * Wp2 + 2 + Lr, 8)

    kernel = functools.partial(_conv2_conv3_kernel, H=H, W=W, D=D, Td=Td)

    def y1_map(b, g, j):
        return (b, jnp.clip(g * Td + j - 1, 0, D - 1), 0, 0)

    return pl.pallas_call(
        kernel,
        out_shape=jax.ShapeDtypeStruct((B, D, HW, C3p), jnp.bfloat16),
        grid=(B, G, Dwin),
        in_specs=[
            pl.BlockSpec((1, 1, HW, Pp), y1_map),                       # one slice/step
            pl.BlockSpec((27, Pp, Pp), lambda b, g, j: (0, 0, 0)),      # resident w2
            pl.BlockSpec((1, Pp), lambda b, g, j: (0, 0)),
            pl.BlockSpec((1, Pp), lambda b, g, j: (0, 0)),
            pl.BlockSpec((Pp, C3p), lambda b, g, j: (0, 0)),            # resident w3
            pl.BlockSpec((1, C3p), lambda b, g, j: (0, 0)),
            pl.BlockSpec((1, C3p), lambda b, g, j: (0, 0)),
            pl.BlockSpec((1, Td, HW, C3p), lambda b, g, j: (b, g, 0, 0)),
        ],
        out_specs=pl.BlockSpec((1, Td, HW, C3p), lambda b, g, j: (b, g, 0, 0)),
        scratch_shapes=[
            pltpu.VMEM((pad_rows, Pp), jnp.bfloat16),   # zero-halo padded slab
            pltpu.VMEM((Td, Lr, Pp), jnp.float32),      # conv2 accumulator
            pltpu.VMEM((HW, Pp), jnp.bfloat16),         # compacted y2
        ],
        compiler_params=pltpu.CompilerParams(
            dimension_semantics=("parallel", "parallel", "arbitrary"),
            vmem_limit_bytes=_vmem_limit_bytes()),
    )(y1, w2, s2, b2, w3, s3, b3, res)


# ---------------------------------------------------------------------------
# Glue: BN folding, parameter setup, full Bottleneck forward
# ---------------------------------------------------------------------------
def fold_bn(gamma, beta, mean, var, eps=1e-5):
    scale = gamma / jnp.sqrt(var + eps)
    bias = beta - mean * scale
    return scale.astype(jnp.float32), bias.astype(jnp.float32)


def make_params(key, inplanes, planes):
    """Deterministic synthetic parameters with PyTorch shapes."""
    exp = 4
    ks = jax.random.split(key, 15)
    p = {}
    p["w1"] = 0.05 * jax.random.normal(ks[0], (planes, inplanes, 1, 1, 1), jnp.float32)
    p["w2"] = 0.05 * jax.random.normal(ks[1], (planes, planes, 3, 3, 3), jnp.float32)
    p["w3"] = 0.05 * jax.random.normal(ks[2], (planes * exp, planes, 1, 1, 1), jnp.float32)
    ki = 3
    for i, c in zip((1, 2, 3), (planes, planes, planes * exp)):
        p[f"bn{i}_g"] = 1.0 + 0.1 * jax.random.normal(ks[ki], (c,), jnp.float32); ki += 1
        p[f"bn{i}_b"] = 0.1 * jax.random.normal(ks[ki], (c,), jnp.float32); ki += 1
        p[f"bn{i}_m"] = 0.1 * jax.random.normal(ks[ki], (c,), jnp.float32); ki += 1
        p[f"bn{i}_v"] = 0.9 + 0.2 * jax.random.uniform(ks[ki], (c,), jnp.float32); ki += 1
    return p


@jax.jit
def bottleneck_forward(x_ncdhw, params):
    """Forward of Bottleneck (stride=1, downsample=None, use_cbam=False)."""
    B, Cin, D, H, W = x_ncdhw.shape
    planes = params["w1"].shape[0]
    Cout = planes * 4
    assert Cin == Cout, "identity residual requires inplanes == 4*planes"
    # TODO(synk): downsample branch (stride>1) and CBAM are not implemented.

    Kp = _round_up(Cin, _LANE)
    Pp = _round_up(planes, _LANE)
    C3p = Kp                                    # Cin == Cout  =>  same lane padding

    R = B * D * H * W
    HW = H * W

    # Single layout pass: NCDHW -> channels-last rows, lane-pad, cast to bf16.
    # This array feeds kernel 1 AND is reused untouched as the residual in kernel 2.
    x_cl = jnp.transpose(x_ncdhw, (0, 2, 3, 4, 1)).reshape(R, Cin)
    xm = jnp.pad(x_cl, ((0, 0), (0, Kp - Cin))).astype(jnp.bfloat16)      # (R, Kp)

    # ---- conv1 (1x1x1) + bn1 + relu --------------------------------------
    w1 = params["w1"].reshape(planes, Cin).T                              # (Cin, planes)
    w1 = jnp.pad(w1, ((0, Kp - Cin), (0, Pp - planes))).astype(jnp.bfloat16)
    s1, b1 = fold_bn(params["bn1_g"], params["bn1_b"], params["bn1_m"], params["bn1_v"])
    s1 = jnp.pad(s1, (0, Pp - planes)).reshape(1, Pp)
    b1 = jnp.pad(b1, (0, Pp - planes)).reshape(1, Pp)

    tile_n = _pick_row_tile(R)
    y1 = fused_matmul_bn_relu(xm, w1, s1, b1, tile_n=tile_n)              # (R, Pp) bf16
    y1 = y1.reshape(B, D, HW, Pp)                                         # free view

    # ---- conv2 + bn2 + relu + conv3 + bn3 + residual + relu (one kernel) --
    w2 = jnp.pad(params["w2"],
                 ((0, Pp - planes), (0, Pp - planes), (0, 0), (0, 0), (0, 0)))
    w2 = jnp.transpose(w2, (2, 3, 4, 1, 0)).reshape(27, Pp, Pp).astype(jnp.bfloat16)
    s2, b2 = fold_bn(params["bn2_g"], params["bn2_b"], params["bn2_m"], params["bn2_v"])
    s2 = jnp.pad(s2, (0, Pp - planes)).reshape(1, Pp)
    b2 = jnp.pad(b2, (0, Pp - planes)).reshape(1, Pp)

    w3 = params["w3"].reshape(Cout, planes).T                             # (planes, Cout)
    w3 = jnp.pad(w3, ((0, Pp - planes), (0, C3p - Cout))).astype(jnp.bfloat16)
    s3, b3 = fold_bn(params["bn3_g"], params["bn3_b"], params["bn3_m"], params["bn3_v"])
    s3 = jnp.pad(s3, (0, C3p - Cout)).reshape(1, C3p)
    b3 = jnp.pad(b3, (0, C3p - Cout)).reshape(1, C3p)

    res = xm.reshape(B, D, HW, C3p)              # residual reuses the padded bf16 input

    Td = _pick_depth_tile(D)
    out = fused_conv2_conv3(y1, res, w2, s2, b2, w3, s3, b3, H=H, W=W, Td=Td)

    out = out.reshape(B, D, H, W, C3p)[..., :Cout]
    return jnp.transpose(out, (0, 4, 1, 2, 3)).astype(x_ncdhw.dtype)


# ---------------------------------------------------------------------------
# Pure-JAX reference (correctness check only)
# ---------------------------------------------------------------------------
def reference_forward(x_ncdhw, params):
    dn = ("NDHWC", "DHWIO", "NDHWC")
    x = jnp.transpose(x_ncdhw, (0, 2, 3, 4, 1))

    def conv(inp, w_torch, pad):
        w = jnp.transpose(w_torch, (2, 3, 4, 1, 0))
        return jax.lax.conv_general_dilated(inp, w, (1, 1, 1), pad, dimension_numbers=dn)

    def bn(inp, i):
        s, b = fold_bn(params[f"bn{i}_g"], params[f"bn{i}_b"],
                       params[f"bn{i}_m"], params[f"bn{i}_v"])
        return inp * s + b

    out = jax.nn.relu(bn(conv(x, params["w1"], "VALID"), 1))
    out = jax.nn.relu(bn(conv(out, params["w2"], "SAME"), 2))
    out = bn(conv(out, params["w3"], "VALID"), 3)
    out = jax.nn.relu(out + x)
    return jnp.transpose(out, (0, 4, 1, 2, 3))


if __name__ == "__main__":
    key = jax.random.PRNGKey(0)
    kx, kp = jax.random.split(key)

    B, planes = 2, 8
    inplanes = planes * 4            # identity residual requires inplanes == 4*planes
    D, H, W = 4, 8, 8                # B*D*H*W = 512 rows

    x = jax.random.normal(kx, (B, inplanes, D, H, W), jnp.float32)
    params = make_params(kp, inplanes, planes)

    out = jax.block_until_ready(bottleneck_forward(x, params))
    ref = reference_forward(x, params)

    assert out.shape == (B, planes * 4, D, H, W)
    max_err = float(jnp.max(jnp.abs(out - ref)))
    assert jnp.allclose(out, ref, rtol=3e-2, atol=3e-2), max_err

    print("KERNEL_OK")
</pallas_src>

<mosaic_0001>
module attributes {stable_mosaic.version = 11 : i64} {
  func.func @_mm_bn_relu_kernel(%arg0: i32, %arg1: memref<512x128xbf16, #tpu.memory_space<vmem>>, %arg2: memref<128x128xbf16, #tpu.memory_space<vmem>>, %arg3: memref<1x128xf32, #tpu.memory_space<vmem>>, %arg4: memref<1x128xf32, #tpu.memory_space<vmem>>, %arg5: memref<512x128xbf16, #tpu.memory_space<vmem>>) attributes {dimension_semantics = [#tpu.dimension_semantics<parallel>], iteration_bounds = array<i64: 1>, scalar_prefetch = 0 : i64, scratch_operands = 0 : i64, tpu.core_type = #tpu.core_type<tc>, window_params = [{transform_indices = @transform_0, window_bounds = array<i64: 512, 128>}, {pipeline_mode = #tpu.pipeline_mode<synchronous>, transform_indices = @transform_1, window_bounds = array<i64: 128, 128>}, {pipeline_mode = #tpu.pipeline_mode<synchronous>, transform_indices = @transform_2, window_bounds = array<i64: 1, 128>}, {pipeline_mode = #tpu.pipeline_mode<synchronous>, transform_indices = @transform_3, window_bounds = array<i64: 1, 128>}, {transform_indices = @transform_4, window_bounds = array<i64: 512, 128>}]} {
    %c0 = arith.constant 0 : index
    %c0_0 = arith.constant 0 : index
    %0 = vector.load %arg1[%c0, %c0_0] : memref<512x128xbf16, #tpu.memory_space<vmem>>, vector<512x128xbf16>
    %c0_1 = arith.constant 0 : index
    %c0_2 = arith.constant 0 : index
    %1 = vector.load %arg2[%c0_1, %c0_2] : memref<128x128xbf16, #tpu.memory_space<vmem>>, vector<128x128xbf16>
    %cst = arith.constant dense<0.000000e+00> : vector<512x128xf32>
    %2 = tpu.matmul %0, %1, %cst {dimension_numbers = #tpu.dot_dimension_numbers<[1], [0], [0], [1], [0, 0, 1, 1], [], []>} : vector<512x128xbf16>, vector<128x128xbf16>, vector<512x128xf32> -> vector<512x128xf32>
    %c0_3 = arith.constant 0 : index
    %c0_4 = arith.constant 0 : index
    %3 = vector.load %arg3[%c0_3, %c0_4] : memref<1x128xf32, #tpu.memory_space<vmem>>, vector<1x128xf32>
    %4 = vector.broadcast %3 : vector<1x128xf32> to vector<512x128xf32>
    %5 = arith.mulf %2, %4 : vector<512x128xf32>
    %c0_5 = arith.constant 0 : index
    %c0_6 = arith.constant 0 : index
    %6 = vector.load %arg4[%c0_5, %c0_6] : memref<1x128xf32, #tpu.memory_space<vmem>>, vector<1x128xf32>
    %7 = vector.broadcast %6 : vector<1x128xf32> to vector<512x128xf32>
    %8 = arith.addf %5, %7 : vector<512x128xf32>
    %cst_7 = arith.constant 0.000000e+00 : f32
    %9 = vector.broadcast %cst_7 : f32 to vector<512x128xf32>
    %10 = arith.maximumf %8, %9 : vector<512x128xf32>
    %11 = arith.truncf %10 : vector<512x128xf32> to vector<512x128xbf16>
    %c0_8 = arith.constant 0 : index
    %c0_9 = arith.constant 0 : index
    %12 = vector.load %arg5[%c0_8, %c0_9] : memref<512x128xbf16, #tpu.memory_space<vmem>>, vector<512x128xbf16>
    tpu.vector_store %arg5[%c0_8, %c0_9], %11 {strides = array<i32>} : memref<512x128xbf16, #tpu.memory_space<vmem>>, vector<512x128xbf16>,
    return
  }
  func.func @transform_0(%arg0: i32) -> (i32, i32) {
    %c0_i32 = arith.constant 0 : i32
    %c0_i32_0 = arith.constant 0 : i32
    return %arg0, %c0_i32 : i32, i32
  }
  func.func @transform_1(%arg0: i32) -> (i32, i32) {
    %c0_i32 = arith.constant 0 : i32
    %c0_i32_0 = arith.constant 0 : i32
    %c0_i32_1 = arith.constant 0 : i32
    return %c0_i32, %c0_i32_0 : i32, i32
  }
  func.func @transform_2(%arg0: i32) -> (i32, i32) {
    %c0_i32 = arith.constant 0 : i32
    %c0_i32_0 = arith.constant 0 : i32
    %c0_i32_1 = arith.constant 0 : i32
    return %c0_i32, %c0_i32_0 : i32, i32
  }
  func.func @transform_3(%arg0: i32) -> (i32, i32) {
    %c0_i32 = arith.constant 0 : i32
    %c0_i32_0 = arith.constant 0 : i32
    %c0_i32_1 = arith.constant 0 : i32
    return %c0_i32, %c0_i32_0 : i32, i32
  }
  func.func @transform_4(%arg0: i32) -> (i32, i32) {
    %c0_i32 = arith.constant 0 : i32
    %c0_i32_0 = arith.constant 0 : i32
    return %arg0, %c0_i32 : i32, i32
  }
}

module attributes {stable_mosaic.version = 11 : i64} {
  func.func @_conv2_conv3_kernel(%arg0: i32, %arg1: i32, %arg2: i32, %arg3: memref<1x1x64x128xbf16, #tpu.memory_space<vmem>>, %arg4: memref<27x128x128xbf16, #tpu.memory_space<vmem>>, %arg5: memref<1x128xf32, #tpu.memory_space<vmem>>, %arg6: memref<1x128xf32, #tpu.memory_space<vmem>>, %arg7: memref<128x128xbf16, #tpu.memory_space<vmem>>, %arg8: memref<1x128xf32, #tpu.memory_space<vmem>>, %arg9: memref<1x128xf32, #tpu.memory_space<vmem>>, %arg10: memref<1x4x64x128xbf16, #tpu.memory_space<vmem>>, %arg11: memref<1x4x64x128xbf16, #tpu.memory_space<vmem>>, %arg12: memref<104x128xbf16, #tpu.memory_space<vmem>>, %arg13: memref<4x80x128xf32, #tpu.memory_space<vmem>>, %arg14: memref<64x128xbf16, #tpu.memory_space<vmem>>) attributes {dimension_semantics = [#tpu.dimension_semantics<parallel>, #tpu.dimension_semantics<parallel>, #tpu.dimension_semantics<arbitrary>], iteration_bounds = array<i64: 2, 1, 6>, scalar_prefetch = 0 : i64, scratch_operands = 3 : i64, tpu.core_type = #tpu.core_type<tc>, window_params = [{transform_indices = @transform_0, window_bounds = array<i64: 1, 1, 64, 128>}, {pipeline_mode = #tpu.pipeline_mode<synchronous>, transform_indices = @transform_1, window_bounds = array<i64: 27, 128, 128>}, {pipeline_mode = #tpu.pipeline_mode<synchronous>, transform_indices = @transform_2, window_bounds = array<i64: 1, 128>}, {pipeline_mode = #tpu.pipeline_mode<synchronous>, transform_indices = @transform_3, window_bounds = array<i64: 1, 128>}, {pipeline_mode = #tpu.pipeline_mode<synchronous>, transform_indices = @transform_4, window_bounds = array<i64: 128, 128>}, {pipeline_mode = #tpu.pipeline_mode<synchronous>, transform_indices = @transform_5, window_bounds = array<i64: 1, 128>}, {pipeline_mode = #tpu.pipeline_mode<synchronous>, transform_indices = @transform_6, window_bounds = array<i64: 1, 128>}, {transform_indices = @transform_7, window_bounds = array<i64: 1, 4, 64, 128>}, {transform_indices = @transform_8, window_bounds = array<i64: 1, 4, 64, 128>}]} {
    %c4_i32 = arith.constant 4 : i32
    %0 = arith.muli %arg1, %c4_i32 : i32
    %1 = arith.addi %0, %arg2 : i32
    %c1_i32 = arith.constant 1 : i32
    %2 = arith.subi %1, %c1_i32 : i32
    %c0_i32 = arith.constant 0 : i32
    %3 = arith.cmpi sge, %2, %c0_i32 : i32
    %c3_i32 = arith.constant 3 : i32
    %4 = arith.cmpi sle, %2, %c3_i32 : i32
    %5 = arith.andi %3, %4 : i1
    %c0_i32_0 = arith.constant 0 : i32
    %6 = arith.cmpi eq, %arg2, %c0_i32_0 : i32
    %7 = arith.extui %6 : i1 to i32
    %c0_i32_1 = arith.constant 0 : i32
    %8 = arith.cmpi ne, %7, %c0_i32_1 : i32
    scf.if %8 {
      %cst = arith.constant 0.000000e+00 : f32
      %14 = vector.broadcast %cst : f32 to vector<4x80x128xf32>
      %c0 = arith.constant 0 : index
      %c0_4 = arith.constant 0 : index
      %c0_5 = arith.constant 0 : index
      %15 = vector.load %arg13[%c0, %c0_4, %c0_5] : memref<4x80x128xf32, #tpu.memory_space<vmem>>, vector<4x80x128xf32>
      tpu.vector_store %arg13[%c0, %c0_4, %c0_5], %14 {strides = array<i32>} : memref<4x80x128xf32, #tpu.memory_space<vmem>>, vector<4x80x128xf32>,
    } else {
    }
    %9 = arith.extui %5 : i1 to i32
    %c0_i32_2 = arith.constant 0 : i32
    %10 = arith.cmpi ne, %9, %c0_i32_2 : i32
    scf.if %10 {
      %cst = arith.constant 0.000000e+00 : bf16
      %14 = vector.broadcast %cst : bf16 to vector<104x128xbf16>
      %c0 = arith.constant 0 : index
      %c0_4 = arith.constant 0 : index
      %15 = vector.load %arg12[%c0, %c0_4] : memref<104x128xbf16, #tpu.memory_space<vmem>>, vector<104x128xbf16>
      tpu.vector_store %arg12[%c0, %c0_4], %14 {strides = array<i32>} : memref<104x128xbf16, #tpu.memory_space<vmem>>, vector<104x128xbf16>,
      %c0_5 = arith.constant 0 : index
      %c0_6 = arith.constant 0 : index
      %c0_7 = arith.constant 0 : index
      %c0_8 = arith.constant 0 : index
      %16 = vector.load %arg3[%c0_5, %c0_6, %c0_7, %c0_8] : memref<1x1x64x128xbf16, #tpu.memory_space<vmem>>, vector<1x1x64x128xbf16>
      %17 = vector.shape_cast %16 : vector<1x1x64x128xbf16> to vector<64x128xbf16>
      %18 = vector.extract_strided_slice %17 {offsets = [0, 0], sizes = [8, 128], strides = [1, 1]} : vector<64x128xbf16> to vector<8x128xbf16>
      %c11 = arith.constant 11 : index
      %c0_9 = arith.constant 0 : index
      %19 = vector.load %arg12[%c11, %c0_9] : memref<104x128xbf16, #tpu.memory_space<vmem>>, vector<8x128xbf16>
      tpu.vector_store %arg12[%c11, %c0_9], %18 {strides = array<i32>} : memref<104x128xbf16, #tpu.memory_space<vmem>>, vector<8x128xbf16>,
      %20 = vector.extract_strided_slice %17 {offsets = [8, 0], sizes = [8, 128], strides = [1, 1]} : vector<64x128xbf16> to vector<8x128xbf16>
      %c21 = arith.constant 21 : index
      %c0_10 = arith.constant 0 : index
      %21 = vector.load %arg12[%c21, %c0_10] : memref<104x128xbf16, #tpu.memory_space<vmem>>, vector<8x128xbf16>
      tpu.vector_store %arg12[%c21, %c0_10], %20 {strides = array<i32>} : memref<104x128xbf16, #tpu.memory_space<vmem>>, vector<8x128xbf16>,
      %22 = vector.extract_strided_slice %17 {offsets = [16, 0], sizes = [8, 128], strides = [1, 1]} : vector<64x128xbf16> to vector<8x128xbf16>
      %c31 = arith.constant 31 : index
      %c0_11 = arith.constant 0 : index
      %23 = vector.load %arg12[%c31, %c0_11] : memref<104x128xbf16, #tpu.memory_space<vmem>>, vector<8x128xbf16>
      tpu.vector_store %arg12[%c31, %c0_11], %22 {strides = array<i32>} : memref<104x128xbf16, #tpu.memory_space<vmem>>, vector<8x128xbf16>,
      %24 = vector.extract_strided_slice %17 {offsets = [24, 0], sizes = [8, 128], strides = [1, 1]} : vector<64x128xbf16> to vector<8x128xbf16>
      %c41 = arith.constant 41 : index
      %c0_12 = arith.constant 0 : index
      %25 = vector.load %arg12[%c41, %c0_12] : memref<104x128xbf16, #tpu.memory_space<vmem>>, vector<8x128xbf16>
      tpu.vector_store %arg12[%c41, %c0_12], %24 {strides = array<i32>} : memref<104x128xbf16, #tpu.memory_space<vmem>>, vector<8x128xbf16>,
      %26 = vector.extract_strided_slice %17 {offsets = [32, 0], sizes = [8, 128], strides = [1, 1]} : vector<64x128xbf16> to vector<8x128xbf16>
      %c51 = arith.constant 51 : index
      %c0_13 = arith.constant 0 : index
      %27 = vector.load %arg12[%c51, %c0_13] : memref<104x128xbf16, #tpu.memory_space<vmem>>, vector<8x128xbf16>
      tpu.vector_store %arg12[%c51, %c0_13], %26 {strides = array<i32>} : memref<104x128xbf16, #tpu.memory_space<vmem>>, vector<8x128xbf16>,
      %28 = vector.extract_strided_slice %17 {offsets = [40, 0], sizes = [8, 128], strides = [1, 1]} : vector<64x128xbf16> to vector<8x128xbf16>
      %c61 = arith.constant 61 : index
      %c0_14 = arith.constant 0 : index
      %29 = vector.load %arg12[%c61, %c0_14] : memref<104x128xbf16, #tpu.memory_space<vmem>>, vector<8x128xbf16>
      tpu.vector_store %arg12[%c61, %c0_14], %28 {strides = array<i32>} : memref<104x128xbf16, #tpu.memory_space<vmem>>, vector<8x128xbf16>,
      %30 = vector.extract_strided_slice %17 {offsets = [48, 0], sizes = [8, 128], strides = [1, 1]} : vector<64x128xbf16> to vector<8x128xbf16>
      %c71 = arith.constant 71 : index
      %c0_15 = arith.constant 0 : index
      %31 = vector.load %arg12[%c71, %c0_15] : memref<104x128xbf16, #tpu.memory_space<vmem>>, vector<8x128xbf16>
      tpu.vector_store %arg12[%c71, %c0_15], %30 {strides = array<i32>} : memref<104x128xbf16, #tpu.memory_space<vmem>>, vector<8x128xbf16>,
      %32 = vector.extract_strided_slice %17 {offsets = [56, 0], sizes = [8, 128], strides = [1, 1]} : vector<64x128xbf16> to vector<8x128xbf16>
      %c81 = arith.constant 81 : index
      %c0_16 = arith.constant 0 : index
      %33 = vector.load %arg12[%c81, %c0_16] : memref<104x128xbf16, #tpu.memory_space<vmem>>, vector<8x128xbf16>
      tpu.vector_store %arg12[%c81, %c0_16], %32 {strides = array<i32>} : memref<104x128xbf16, #tpu.memory_space<vmem>>, vector<8x128xbf16>,
      %c0_i32_17 = arith.constant 0 : i32
      %34 = arith.subi %arg2, %c0_i32_17 : i32
      %c0_i32_18 = arith.constant 0 : i32
      %35 = arith.cmpi sge, %34, %c0_i32_18 : i32
      %c4_i32_19 = arith.constant 4 : i32
      %36 = arith.cmpi slt, %34, %c4_i32_19 : i32
      %37 = arith.andi %35, %36 : i1
      %38 = arith.extui %37 : i1 to i32
      %c0_i32_20 = arith.constant 0 : i32
      %39 = arith.cmpi ne, %38, %c0_i32_20 : i32
      scf.if %39 {
        %cst_28 = arith.constant 0.000000e+00 : f32
        %52 = vector.broadcast %cst_28 : f32 to vector<80x128xf32>
        %c0_29 = arith.constant 0 : index
        %c0_30 = arith.constant 0 : index
        %53 = vector.load %arg12[%c0_29, %c0_30] : memref<104x128xbf16, #tpu.memory_space<vmem>>, vector<80x128xbf16>
        %c0_31 = arith.constant 0 : index
        %c0_32 = arith.constant 0 : index
        %c0_33 = arith.constant 0 : index
        %54 = vector.load %arg4[%c0_31, %c0_32, %c0_33] : memref<27x128x128xbf16, #tpu.memory_space<vmem>>, vector<1x128x128xbf16>
        %55 = vector.shape_cast %54 : vector<1x128x128xbf16> to vector<128x128xbf16>
        %cst_34 = arith.constant dense<0.000000e+00> : vector<80x128xf32>
        %56 = tpu.matmul %53, %55, %cst_34 {dimension_numbers = #tpu.dot_dimension_numbers<[1], [0], [0], [1], [0, 0, 1, 1], [], []>} : vector<80x128xbf16>, vector<128x128xbf16>, vector<80x128xf32> -> vector<80x128xf32>
        %57 = arith.addf %52, %56 : vector<80x128xf32>
        %c1 = arith.constant 1 : index
        %c0_35 = arith.constant 0 : index
        %58 = vector.load %arg12[%c1, %c0_35] : memref<104x128xbf16, #tpu.memory_space<vmem>>, vector<80x128xbf16>
        %c1_36 = arith.constant 1 : index
        %c0_37 = arith.constant 0 : index
        %c0_38 = arith.constant 0 : index
        %59 = vector.load %arg4[%c1_36, %c0_37, %c0_38] : memref<27x128x128xbf16, #tpu.memory_space<vmem>>, vector<1x128x128xbf16>
        %60 = vector.shape_cast %59 : vector<1x128x128xbf16> to vector<128x128xbf16>
        %cst_39 = arith.constant dense<0.000000e+00> : vector<80x128xf32>
        %61 = tpu.matmul %58, %60, %cst_39 {dimension_numbers = #tpu.dot_dimension_numbers<[1], [0], [0], [1], [0, 0, 1, 1], [], []>} : vector<80x128xbf16>, vector<128x128xbf16>, vector<80x128xf32> -> vector<80x128xf32>
        %62 = arith.addf %57, %61 : vector<80x128xf32>
        %c2 = arith.constant 2 : index
        %c0_40 = arith.constant 0 : index
        %63 = vector.load %arg12[%c2, %c0_40] : memref<104x128xbf16, #tpu.memory_space<vmem>>, vector<80x128xbf16>
        %c2_41 = arith.constant 2 : index
        %c0_42 = arith.constant 0 : index
        %c0_43 = arith.constant 0 : index
        %64 = vector.load %arg4[%c2_41, %c0_42, %c0_43] : memref<27x128x128xbf16, #tpu.memory_space<vmem>>, vector<1x128x128xbf16>
        %65 = vector.shape_cast %64 : vector<1x128x128xbf16> to vector<128x128xbf16>
        %cst_44 = arith.constant dense<0.000000e+00> : vector<80x128xf32>
        %66 = tpu.matmul %63, %65, %cst_44 {dimension_numbers = #tpu.dot_dimension_numbers<[1], [0], [0], [1], [0, 0, 1, 1], [], []>} : vector<80x128xbf16>, vector<128x128xbf16>, vector<80x128xf32> -> vector<80x128xf32>
        %67 = arith.addf %62, %66 : vector<80x128xf32>
        %c10 = arith.constant 10 : index
        %c0_45 = arith.constant 0 : index
        %68 = vector.load %arg12[%c10, %c0_45] : memref<104x128xbf16, #tpu.memory_space<vmem>>, vector<80x128xbf16>
        %c3 = arith.constant 3 : index
        %c0_46 = arith.constant 0 : index
        %c0_47 = arith.constant 0 : index
        %69 = vector.load %arg4[%c3, %c0_46, %c0_47] : memref<27x128x128xbf16, #tpu.memory_space<vmem>>, vector<1x128x128xbf16>
        %70 = vector.shape_cast %69 : vector<1x128x128xbf16> to vector<128x128xbf16>
        %cst_48 = arith.constant dense<0.000000e+00> : vector<80x128xf32>
        %71 = tpu.matmul %68, %70, %cst_48 {dimension_numbers = #tpu.dot_dimension_numbers<[1], [0], [0], [1], [0, 0, 1, 1], [], []>} : vector<80x128xbf16>, vector<128x128xbf16>, vector<80x128xf32> -> vector<80x128xf32>
        %72 = arith.addf %67, %71 : vector<80x128xf32>
        %c11_49 = arith.constant 11 : index
        %c0_50 = arith.constant 0 : index
        %73 = vector.load %arg12[%c11_49, %c0_50] : memref<104x128xbf16, #tpu.memory_space<vmem>>, vector<80x128xbf16>
        %c4 = arith.constant 4 : index
        %c0_51 = arith.constant 0 : index
        %c0_52 = arith.constant 0 : index
        %74 = vector.load %arg4[%c4, %c0_51, %c0_52] : memref<27x128x128xbf16, #tpu.memory_space<vmem>>, vector<1x128x128xbf16>
        %75 = vector.shape_cast %74 : vector<1x128x128xbf16> to vector<128x128xbf16>
        %cst_53 = arith.constant dense<0.000000e+00> : vector<80x128xf32>
        %76 = tpu.matmul %73, %75, %cst_53 {dimension_numbers = #tpu.dot_dimension_numbers<[1], [0], [0], [1], [0, 0, 1, 1], [], []>} : vector<80x128xbf16>, vector<128x128xbf16>, vector<80x128xf32> -> vector<80x128xf32>
        %77 = arith.addf %72, %76 : vector<80x128xf32>
        %c12 = arith.constant 12 : index
        %c0_54 = arith.constant 0 : index
        %78 = vector.load %arg12[%c12, %c0_54] : memref<104x128xbf16, #tpu.memory_space<vmem>>, vector<80x128xbf16>
        %c5 = arith.constant 5 : index
        %c0_55 = arith.constant 0 : index
        %c0_56 = arith.constant 0 : index
        %79 = vector.load %arg4[%c5, %c0_55, %c0_56] : memref<27x128x128xbf16, #tpu.memory_space<vmem>>, vector<1x128x128xbf16>
        %80 = vector.shape_cast %79 : vector<1x128x128xbf16> to vector<128x128xbf16>
        %cst_57 = arith.constant dense<0.000000e+00> : vector<80x128xf32>
        %81 = tpu.matmul %78, %80, %cst_57 {dimension_numbers = #tpu.dot_dimension_numbers<[1], [0], [0], [1], [0, 0, 1, 1], [], []>} : vector<80x128xbf16>, vector<128x128xbf16>, vector<80x128xf32> -> vector<80x128xf32>
        %82 = arith.addf %77, %81 : vector<80x128xf32>
        %c20 = arith.constant 20 : index
        %c0_58 = arith.constant 0 : index
        %83 = vector.load %arg12[%c20, %c0_58] : memref<104x128xbf16, #tpu.memory_space<vmem>>, vector<80x128xbf16>
        %c6 = arith.constant 6 : index
        %c0_59 = arith.constant 0 : index
        %c0_60 = arith.constant 0 : index
        %84 = vector.load %arg4[%c6, %c0_59, %c0_60] : memref<27x128x128xbf16, #tpu.memory_space<vmem>>, vector<1x128x128xbf16>
        %85 = vector.shape_cast %84 : vector<1x128x128xbf16> to vector<128x128xbf16>
        %cst_61 = arith.constant dense<0.000000e+00> : vector<80x128xf32>
        %86 = tpu.matmul %83, %85, %cst_61 {dimension_numbers = #tpu.dot_dimension_numbers<[1], [0], [0], [1], [0, 0, 1, 1], [], []>} : vector<80x128xbf16>, vector<128x128xbf16>, vector<80x128xf32> -> vector<80x128xf32>
        %87 = arith.addf %82, %86 : vector<80x128xf32>
        %c21_62 = arith.constant 21 : index
        %c0_63 = arith.constant 0 : index
        %88 = vector.load %arg12[%c21_62, %c0_63] : memref<104x128xbf16, #tpu.memory_space<vmem>>, vector<80x128xbf16>
        %c7 = arith.constant 7 : index
        %c0_64 = arith.constant 0 : index
        %c0_65 = arith.constant 0 : index
        %89 = vector.load %arg4[%c7, %c0_64, %c0_65] : memref<27x128x128xbf16, #tpu.memory_space<vmem>>, vector<1x128x128xbf16>
        %90 = vector.shape_cast %89 : vector<1x128x128xbf16> to vector<128x128xbf16>
        %cst_66 = arith.constant dense<0.000000e+00> : vector<80x128xf32>
        %91 = tpu.matmul %88, %90, %cst_66 {dimension_numbers = #tpu.dot_dimension_numbers<[1], [0], [0], [1], [0, 0, 1, 1], [], []>} : vector<80x128xbf16>, vector<128x128xbf16>, vector<80x128xf32> -> vector<80x128xf32>
        %92 = arith.addf %87, %91 : vector<80x128xf32>
        %c22 = arith.constant 22 : index
        %c0_67 = arith.constant 0 : index
        %93 = vector.load %arg12[%c22, %c0_67] : memref<104x128xbf16, #tpu.memory_space<vmem>>, vector<80x128xbf16>
        %c8 = arith.constant 8 : index
        %c0_68 = arith.constant 0 : index
        %c0_69 = arith.constant 0 : index
        %94 = vector.load %arg4[%c8, %c0_68, %c0_69] : memref<27x128x128xbf16, #tpu.memory_space<vmem>>, vector<1x128x128xbf16>
        %95 = vector.shape_cast %94 : vector<1x128x128xbf16> to vector<128x128xbf16>
        %cst_70 = arith.constant dense<0.000000e+00> : vector<80x128xf32>
        %96 = tpu.matmul %93, %95, %cst_70 {dimension_numbers = #tpu.dot_dimension_numbers<[1], [0], [0], [1], [0, 0, 1, 1], [], []>} : vector<80x128xbf16>, vector<128x128xbf16>, vector<80x128xf32> -> vector<80x128xf32>
        %97 = arith.addf %92, %96 : vector<80x128xf32>
        %c0_i32_71 = arith.constant 0 : i32
        %c3_i32_72 = arith.constant 3 : i32
        %98 = arith.maxsi %c0_i32_71, %34 : i32
        %99 = arith.minsi %c3_i32_72, %98 : i32
        %100 = arith.index_cast %99 : i32 to index
        %c0_73 = arith.constant 0 : index
        %c0_74 = arith.constant 0 : index
        %101 = vector.load %arg13[%100, %c0_73, %c0_74] : memref<4x80x128xf32, #tpu.memory_space<vmem>>, vector<1x80x128xf32>
        %102 = vector.shape_cast %101 : vector<1x80x128xf32> to vector<80x128xf32>
        %103 = arith.addf %102, %97 : vector<80x128xf32>
        %104 = arith.index_cast %99 : i32 to index
        %c0_75 = arith.constant 0 : index
        %c0_76 = arith.constant 0 : index
        %105 = vector.load %arg13[%104, %c0_75, %c0_76] : memref<4x80x128xf32, #tpu.memory_space<vmem>>, vector<1x80x128xf32>
        %106 = vector.shape_cast %105 : vector<1x80x128xf32> to vector<80x128xf32>
        %107 = vector.shape_cast %103 : vector<80x128xf32> to vector<1x80x128xf32>
        tpu.vector_store %arg13[%104, %c0_75, %c0_76], %107 {strides = array<i32>} : memref<4x80x128xf32, #tpu.memory_space<vmem>>, vector<1x80x128xf32>,
      } else {
      }
      %c1_i32_21 = arith.constant 1 : i32
      %40 = arith.subi %arg2, %c1_i32_21 : i32
      %c0_i32_22 = arith.constant 0 : i32
      %41 = arith.cmpi sge, %40, %c0_i32_22 : i32
      %c4_i32_23 = arith.constant 4 : i32
      %42 = arith.cmpi slt, %40, %c4_i32_23 : i32
      %43 = arith.andi %41, %42 : i1
      %44 = arith.extui %43 : i1 to i32
      %c0_i32_24 = arith.constant 0 : i32
      %45 = arith.cmpi ne, %44, %c0_i32_24 : i32
      scf.if %45 {
        %cst_28 = arith.constant 0.000000e+00 : f32
        %52 = vector.broadcast %cst_28 : f32 to vector<80x128xf32>
        %c0_29 = arith.constant 0 : index
        %c0_30 = arith.constant 0 : index
        %53 = vector.load %arg12[%c0_29, %c0_30] : memref<104x128xbf16, #tpu.memory_space<vmem>>, vector<80x128xbf16>
        %c9 = arith.constant 9 : index
        %c0_31 = arith.constant 0 : index
        %c0_32 = arith.constant 0 : index
        %54 = vector.load %arg4[%c9, %c0_31, %c0_32] : memref<27x128x128xbf16, #tpu.memory_space<vmem>>, vector<1x128x128xbf16>
        %55 = vector.shape_cast %54 : vector<1x128x128xbf16> to vector<128x128xbf16>
        %cst_33 = arith.constant dense<0.000000e+00> : vector<80x128xf32>
        %56 = tpu.matmul %53, %55, %cst_33 {dimension_numbers = #tpu.dot_dimension_numbers<[1], [0], [0], [1], [0, 0, 1, 1], [], []>} : vector<80x128xbf16>, vector<128x128xbf16>, vector<80x128xf32> -> vector<80x128xf32>
        %57 = arith.addf %52, %56 : vector<80x128xf32>
        %c1 = arith.constant 1 : index
        %c0_34 = arith.constant 0 : index
        %58 = vector.load %arg12[%c1, %c0_34] : memref<104x128xbf16, #tpu.memory_space<vmem>>, vector<80x128xbf16>
        %c10 = arith.constant 10 : index
        %c0_35 = arith.constant 0 : index
        %c0_36 = arith.constant 0 : index
        %59 = vector.load %arg4[%c10, %c0_35, %c0_36] : memref<27x128x128xbf16, #tpu.memory_space<vmem>>, vector<1x128x128xbf16>
        %60 = vector.shape_cast %59 : vector<1x128x128xbf16> to vector<128x128xbf16>
        %cst_37 = arith.constant dense<0.000000e+00> : vector<80x128xf32>
        %61 = tpu.matmul %58, %60, %cst_37 {dimension_numbers = #tpu.dot_dimension_numbers<[1], [0], [0], [1], [0, 0, 1, 1], [], []>} : vector<80x128xbf16>, vector<128x128xbf16>, vector<80x128xf32> -> vector<80x128xf32>
        %62 = arith.addf %57, %61 : vector<80x128xf32>
        %c2 = arith.constant 2 : index
        %c0_38 = arith.constant 0 : index
        %63 = vector.load %arg12[%c2, %c0_38] : memref<104x128xbf16, #tpu.memory_space<vmem>>, vector<80x128xbf16>
        %c11_39 = arith.constant 11 : index
        %c0_40 = arith.constant 0 : index
        %c0_41 = arith.constant 0 : index
        %64 = vector.load %arg4[%c11_39, %c0_40, %c0_41] : memref<27x128x128xbf16, #tpu.memory_space<vmem>>, vector<1x128x128xbf16>
        %65 = vector.shape_cast %64 : vector<1x128x128xbf16> to vector<128x128xbf16>
        %cst_42 = arith.constant dense<0.000000e+00> : vector<80x128xf32>
        %66 = tpu.matmul %63, %65, %cst_42 {dimension_numbers = #tpu.dot_dimension_numbers<[1], [0], [0], [1], [0, 0, 1, 1], [], []>} : vector<80x128xbf16>, vector<128x128xbf16>, vector<80x128xf32> -> vector<80x128xf32>
        %67 = arith.addf %62, %66 : vector<80x128xf32>
        %c10_43 = arith.constant 10 : index
        %c0_44 = arith.constant 0 : index
        %68 = vector.load %arg12[%c10_43, %c0_44] : memref<104x128xbf16, #tpu.memory_space<vmem>>, vector<80x128xbf16>
        %c12 = arith.constant 12 : index
        %c0_45 = arith.constant 0 : index
        %c0_46 = arith.constant 0 : index
        %69 = vector.load %arg4[%c12, %c0_45, %c0_46] : memref<27x128x128xbf16, #tpu.memory_space<vmem>>, vector<1x128x128xbf16>
        %70 = vector.shape_cast %69 : vector<1x128x128xbf16> to vector<128x128xbf16>
        %cst_47 = arith.constant dense<0.000000e+00> : vector<80x128xf32>
        %71 = tpu.matmul %68, %70, %cst_47 {dimension_numbers = #tpu.dot_dimension_numbers<[1], [0], [0], [1], [0, 0, 1, 1], [], []>} : vector<80x128xbf16>, vector<128x128xbf16>, vector<80x128xf32> -> vector<80x128xf32>
        %72 = arith.addf %67, %71 : vector<80x128xf32>
        %c11_48 = arith.constant 11 : index
        %c0_49 = arith.constant 0 : index
        %73 = vector.load %arg12[%c11_48, %c0_49] : memref<104x128xbf16, #tpu.memory_space<vmem>>, vector<80x128xbf16>
        %c13 = arith.constant 13 : index
        %c0_50 = arith.constant 0 : index
        %c0_51 = arith.constant 0 : index
        %74 = vector.load %arg4[%c13, %c0_50, %c0_51] : memref<27x128x128xbf16, #tpu.memory_space<vmem>>, vector<1x128x128xbf16>
        %75 = vector.shape_cast %74 : vector<1x128x128xbf16> to vector<128x128xbf16>
        %cst_52 = arith.constant dense<0.000000e+00> : vector<80x128xf32>
        %76 = tpu.matmul %73, %75, %cst_52 {dimension_numbers = #tpu.dot_dimension_numbers<[1], [0], [0], [1], [0, 0, 1, 1], [], []>} : vector<80x128xbf16>, vector<128x128xbf16>, vector<80x128xf32> -> vector<80x128xf32>
        %77 = arith.addf %72, %76 : vector<80x128xf32>
        %c12_53 = arith.constant 12 : index
        %c0_54 = arith.constant 0 : index
        %78 = vector.load %arg12[%c12_53, %c0_54] : memref<104x128xbf16, #tpu.memory_space<vmem>>, vector<80x128xbf16>
        %c14 = arith.constant 14 : index
        %c0_55 = arith.constant 0 : index
        %c0_56 = arith.constant 0 : index
        %79 = vector.load %arg4[%c14, %c0_55, %c0_56] : memref<27x128x128xbf16, #tpu.memory_space<vmem>>, vector<1x128x128xbf16>
        %80 = vector.shape_cast %79 : vector<1x128x128xbf16> to vector<128x128xbf16>
        %cst_57 = arith.constant dense<0.000000e+00> : vector<80x128xf32>
        %81 = tpu.matmul %78, %80, %cst_57 {dimension_numbers = #tpu.dot_dimension_numbers<[1], [0], [0], [1], [0, 0, 1, 1], [], []>} : vector<80x128xbf16>, vector<128x128xbf16>, vector<80x128xf32> -> vector<80x128xf32>
        %82 = arith.addf %77, %81 : vector<80x128xf32>
        %c20 = arith.constant 20 : index
        %c0_58 = arith.constant 0 : index
        %83 = vector.load %arg12[%c20, %c0_58] : memref<104x128xbf16, #tpu.memory_space<vmem>>, vector<80x128xbf16>
        %c15 = arith.constant 15 : index
        %c0_59 = arith.constant 0 : index
        %c0_60 = arith.constant 0 : index
        %84 = vector.load %arg4[%c15, %c0_59, %c0_60] : memref<27x128x128xbf16, #tpu.memory_space<vmem>>, vector<1x128x128xbf16>
        %85 = vector.shape_cast %84 : vector<1x128x128xbf16> to vector<128x128xbf16>
        %cst_61 = arith.constant dense<0.000000e+00> : vector<80x128xf32>
        %86 = tpu.matmul %83, %85, %cst_61 {dimension_numbers = #tpu.dot_dimension_numbers<[1], [0], [0], [1], [0, 0, 1, 1], [], []>} : vector<80x128xbf16>, vector<128x128xbf16>, vector<80x128xf32> -> vector<80x128xf32>
        %87 = arith.addf %82, %86 : vector<80x128xf32>
        %c21_62 = arith.constant 21 : index
        %c0_63 = arith.constant 0 : index
        %88 = vector.load %arg12[%c21_62, %c0_63] : memref<104x128xbf16, #tpu.memory_space<vmem>>, vector<80x128xbf16>
        %c16 = arith.constant 16 : index
        %c0_64 = arith.constant 0 : index
        %c0_65 = arith.constant 0 : index
        %89 = vector.load %arg4[%c16, %c0_64, %c0_65] : memref<27x128x128xbf16, #tpu.memory_space<vmem>>, vector<1x128x128xbf16>
        %90 = vector.shape_cast %89 : vector<1x128x128xbf16> to vector<128x128xbf16>
        %cst_66 = arith.constant dense<0.000000e+00> : vector<80x128xf32>
        %91 = tpu.matmul %88, %90, %cst_66 {dimension_numbers = #tpu.dot_dimension_numbers<[1], [0], [0], [1], [0, 0, 1, 1], [], []>} : vector<80x128xbf16>, vector<128x128xbf16>, vector<80x128xf32> -> vector<80x128xf32>
        %92 = arith.addf %87, %91 : vector<80x128xf32>
        %c22 = arith.constant 22 : index
        %c0_67 = arith.constant 0 : index
        %93 = vector.load %arg12[%c22, %c0_67] : memref<104x128xbf16, #tpu.memory_space<vmem>>, vector<80x128xbf16>
        %c17 = arith.constant 17 : index
        %c0_68 = arith.constant 0 : index
        %c0_69 = arith.constant 0 : index
        %94 = vector.load %arg4[%c17, %c0_68, %c0_69] : memref<27x128x128xbf16, #tpu.memory_space<vmem>>, vector<1x128x128xbf16>
        %95 = vector.shape_cast %94 : vector<1x128x128xbf16> to vector<128x128xbf16>
        %cst_70 = arith.constant dense<0.000000e+00> : vector<80x128xf32>
        %96 = tpu.matmul %93, %95, %cst_70 {dimension_numbers = #tpu.dot_dimension_numbers<[1], [0], [0], [1], [0, 0, 1, 1], [], []>} : vector<80x128xbf16>, vector<128x128xbf16>, vector<80x128xf32> -> vector<80x128xf32>
        %97 = arith.addf %92, %96 : vector<80x128xf32>
        %c0_i32_71 = arith.constant 0 : i32
        %c3_i32_72 = arith.constant 3 : i32
        %98 = arith.maxsi %c0_i32_71, %40 : i32
        %99 = arith.minsi %c3_i32_72, %98 : i32
        %100 = arith.index_cast %99 : i32 to index
        %c0_73 = arith.constant 0 : index
        %c0_74 = arith.constant 0 : index
        %101 = vector.load %arg13[%100, %c0_73, %c0_74] : memref<4x80x128xf32, #tpu.memory_space<vmem>>, vector<1x80x128xf32>
        %102 = vector.shape_cast %101 : vector<1x80x128xf32> to vector<80x128xf32>
        %103 = arith.addf %102, %97 : vector<80x128xf32>
        %104 = arith.index_cast %99 : i32 to index
        %c0_75 = arith.constant 0 : index
        %c0_76 = arith.constant 0 : index
        %105 = vector.load %arg13[%104, %c0_75, %c0_76] : memref<4x80x128xf32, #tpu.memory_space<vmem>>, vector<1x80x128xf32>
        %106 = vector.shape_cast %105 : vector<1x80x128xf32> to vector<80x128xf32>
        %107 = vector.shape_cast %103 : vector<80x128xf32> to vector<1x80x128xf32>
        tpu.vector_store %arg13[%104, %c0_75, %c0_76], %107 {strides = array<i32>} : memref<4x80x128xf32, #tpu.memory_space<vmem>>, vector<1x80x128xf32>,
      } else {
      }
      %c2_i32 = arith.constant 2 : i32
      %46 = arith.subi %arg2, %c2_i32 : i32
      %c0_i32_25 = arith.constant 0 : i32
      %47 = arith.cmpi sge, %46, %c0_i32_25 : i32
      %c4_i32_26 = arith.constant 4 : i32
      %48 = arith.cmpi slt, %46, %c4_i32_26 : i32
      %49 = arith.andi %47, %48 : i1
      %50 = arith.extui %49 : i1 to i32
      %c0_i32_27 = arith.constant 0 : i32
      %51 = arith.cmpi ne, %50, %c0_i32_27 : i32
      scf.if %51 {
        %cst_28 = arith.constant 0.000000e+00 : f32
        %52 = vector.broadcast %cst_28 : f32 to vector<80x128xf32>
        %c0_29 = arith.constant 0 : index
        %c0_30 = arith.constant 0 : index
        %53 = vector.load %arg12[%c0_29, %c0_30] : memref<104x128xbf16, #tpu.memory_space<vmem>>, vector<80x128xbf16>
        %c18 = arith.constant 18 : index
        %c0_31 = arith.constant 0 : index
        %c0_32 = arith.constant 0 : index
        %54 = vector.load %arg4[%c18, %c0_31, %c0_32] : memref<27x128x128xbf16, #tpu.memory_space<vmem>>, vector<1x128x128xbf16>
        %55 = vector.shape_cast %54 : vector<1x128x128xbf16> to vector<128x128xbf16>
        %cst_33 = arith.constant dense<0.000000e+00> : vector<80x128xf32>
        %56 = tpu.matmul %53, %55, %cst_33 {dimension_numbers = #tpu.dot_dimension_numbers<[1], [0], [0], [1], [0, 0, 1, 1], [], []>} : vector<80x128xbf16>, vector<128x128xbf16>, vector<80x128xf32> -> vector<80x128xf32>
        %57 = arith.addf %52, %56 : vector<80x128xf32>
        %c1 = arith.constant 1 : index
        %c0_34 = arith.constant 0 : index
        %58 = vector.load %arg12[%c1, %c0_34] : memref<104x128xbf16, #tpu.memory_space<vmem>>, vector<80x128xbf16>
        %c19 = arith.constant 19 : index
        %c0_35 = arith.constant 0 : index
        %c0_36 = arith.constant 0 : index
        %59 = vector.load %arg4[%c19, %c0_35, %c0_36] : memref<27x128x128xbf16, #tpu.memory_space<vmem>>, vector<1x128x128xbf16>
        %60 = vector.shape_cast %59 : vector<1x128x128xbf16> to vector<128x128xbf16>
        %cst_37 = arith.constant dense<0.000000e+00> : vector<80x128xf32>
        %61 = tpu.matmul %58, %60, %cst_37 {dimension_numbers = #tpu.dot_dimension_numbers<[1], [0], [0], [1], [0, 0, 1, 1], [], []>} : vector<80x128xbf16>, vector<128x128xbf16>, vector<80x128xf32> -> vector<80x128xf32>
        %62 = arith.addf %57, %61 : vector<80x128xf32>
        %c2 = arith.constant 2 : index
        %c0_38 = arith.constant 0 : index
        %63 = vector.load %arg12[%c2, %c0_38] : memref<104x128xbf16, #tpu.memory_space<vmem>>, vector<80x128xbf16>
        %c20 = arith.constant 20 : index
        %c0_39 = arith.constant 0 : index
        %c0_40 = arith.constant 0 : index
        %64 = vector.load %arg4[%c20, %c0_39, %c0_40] : memref<27x128x128xbf16, #tpu.memory_space<vmem>>, vector<1x128x128xbf16>
        %65 = vector.shape_cast %64 : vector<1x128x128xbf16> to vector<128x128xbf16>
        %cst_41 = arith.constant dense<0.000000e+00> : vector<80x128xf32>
        %66 = tpu.matmul %63, %65, %cst_41 {dimension_numbers = #tpu.dot_dimension_numbers<[1], [0], [0], [1], [0, 0, 1, 1], [], []>} : vector<80x128xbf16>, vector<128x128xbf16>, vector<80x128xf32> -> vector<80x128xf32>
        %67 = arith.addf %62, %66 : vector<80x128xf32>
        %c10 = arith.constant 10 : index
        %c0_42 = arith.constant 0 : index
        %68 = vector.load %arg12[%c10, %c0_42] : memref<104x128xbf16, #tpu.memory_space<vmem>>, vector<80x128xbf16>
        %c21_43 = arith.constant 21 : index
        %c0_44 = arith.constant 0 : index
        %c0_45 = arith.constant 0 : index
        %69 = vector.load %arg4[%c21_43, %c0_44, %c0_45] : memref<27x128x128xbf16, #tpu.memory_space<vmem>>, vector<1x128x128xbf16>
        %70 = vector.shape_cast %69 : vector<1x128x128xbf16> to vector<128x128xbf16>
        %cst_46 = arith.constant dense<0.000000e+00> : vector<80x128xf32>
        %71 = tpu.matmul %68, %70, %cst_46 {dimension_numbers = #tpu.dot_dimension_numbers<[1], [0], [0], [1], [0, 0, 1, 1], [], []>} : vector<80x128xbf16>, vector<128x128xbf16>, vector<80x128xf32> -> vector<80x128xf32>
        %72 = arith.addf %67, %71 : vector<80x128xf32>
        %c11_47 = arith.constant 11 : index
        %c0_48 = arith.constant 0 : index
        %73 = vector.load %arg12[%c11_47, %c0_48] : memref<104x128xbf16, #tpu.memory_space<vmem>>, vector<80x128xbf16>
        %c22 = arith.constant 22 : index
        %c0_49 = arith.constant 0 : index
        %c0_50 = arith.constant 0 : index
        %74 = vector.load %arg4[%c22, %c0_49, %c0_50] : memref<27x128x128xbf16, #tpu.memory_space<vmem>>, vector<1x128x128xbf16>
        %75 = vector.shape_cast %74 : vector<1x128x128xbf16> to vector<128x128xbf16>
        %cst_51 = arith.constant dense<0.000000e+00> : vector<80x128xf32>
        %76 = tpu.matmul %73, %75, %cst_51 {dimension_numbers = #tpu.dot_dimension_numbers<[1], [0], [0], [1], [0, 0, 1, 1], [], []>} : vector<80x128xbf16>, vector<128x128xbf16>, vector<80x128xf32> -> vector<80x128xf32>
        %77 = arith.addf %72, %76 : vector<80x128xf32>
        %c12 = arith.constant 12 : index
        %c0_52 = arith.constant 0 : index
        %78 = vector.load %arg12[%c12, %c0_52] : memref<104x128xbf16, #tpu.memory_space<vmem>>, vector<80x128xbf16>
        %c23 = arith.constant 23 : index
        %c0_53 = arith.constant 0 : index
        %c0_54 = arith.constant 0 : index
        %79 = vector.load %arg4[%c23, %c0_53, %c0_54] : memref<27x128x128xbf16, #tpu.memory_space<vmem>>, vector<1x128x128xbf16>
        %80 = vector.shape_cast %79 : vector<1x128x128xbf16> to vector<128x128xbf16>
        %cst_55 = arith.constant dense<0.000000e+00> : vector<80x128xf32>
        %81 = tpu.matmul %78, %80, %cst_55 {dimension_numbers = #tpu.dot_dimension_numbers<[1], [0], [0], [1], [0, 0, 1, 1], [], []>} : vector<80x128xbf16>, vector<128x128xbf16>, vector<80x128xf32> -> vector<80x128xf32>
        %82 = arith.addf %77, %81 : vector<80x128xf32>
        %c20_56 = arith.constant 20 : index
        %c0_57 = arith.constant 0 : index
        %83 = vector.load %arg12[%c20_56, %c0_57] : memref<104x128xbf16, #tpu.memory_space<vmem>>, vector<80x128xbf16>
        %c24 = arith.constant 24 : index
        %c0_58 = arith.constant 0 : index
        %c0_59 = arith.constant 0 : index
        %84 = vector.load %arg4[%c24, %c0_58, %c0_59] : memref<27x128x128xbf16, #tpu.memory_space<vmem>>, vector<1x128x128xbf16>
        %85 = vector.shape_cast %84 : vector<1x128x128xbf16> to vector<128x128xbf16>
        %cst_60 = arith.constant dense<0.000000e+00> : vector<80x128xf32>
        %86 = tpu.matmul %83, %85, %cst_60 {dimension_numbers = #tpu.dot_dimension_numbers<[1], [0], [0], [1], [0, 0, 1, 1], [], []>} : vector<80x128xbf16>, vector<128x128xbf16>, vector<80x128xf32> -> vector<80x128xf32>
        %87 = arith.addf %82, %86 : vector<80x128xf32>
        %c21_61 = arith.constant 21 : index
        %c0_62 = arith.constant 0 : index
        %88 = vector.load %arg12[%c21_61, %c0_62] : memref<104x128xbf16, #tpu.memory_space<vmem>>, vector<80x128xbf16>
        %c25 = arith.constant 25 : index
        %c0_63 = arith.constant 0 : index
        %c0_64 = arith.constant 0 : index
        %89 = vector.load %arg4[%c25, %c0_63, %c0_64] : memref<27x128x128xbf16, #tpu.memory_space<vmem>>, vector<1x128x128xbf16>
        %90 = vector.shape_cast %89 : vector<1x128x128xbf16> to vector<128x128xbf16>
        %cst_65 = arith.constant dense<0.000000e+00> : vector<80x128xf32>
        %91 = tpu.matmul %88, %90, %cst_65 {dimension_numbers = #tpu.dot_dimension_numbers<[1], [0], [0], [1], [0, 0, 1, 1], [], []>} : vector<80x128xbf16>, vector<128x128xbf16>, vector<80x128xf32> -> vector<80x128xf32>
        %92 = arith.addf %87, %91 : vector<80x128xf32>
        %c22_66 = arith.constant 22 : index
        %c0_67 = arith.constant 0 : index
        %93 = vector.load %arg12[%c22_66, %c0_67] : memref<104x128xbf16, #tpu.memory_space<vmem>>, vector<80x128xbf16>
        %c26 = arith.constant 26 : index
        %c0_68 = arith.constant 0 : index
        %c0_69 = arith.constant 0 : index
        %94 = vector.load %arg4[%c26, %c0_68, %c0_69] : memref<27x128x128xbf16, #tpu.memory_space<vmem>>, vector<1x128x128xbf16>
        %95 = vector.shape_cast %94 : vector<1x128x128xbf16> to vector<128x128xbf16>
        %cst_70 = arith.constant dense<0.000000e+00> : vector<80x128xf32>
        %96 = tpu.matmul %93, %95, %cst_70 {dimension_numbers = #tpu.dot_dimension_numbers<[1], [0], [0], [1], [0, 0, 1, 1], [], []>} : vector<80x128xbf16>, vector<128x128xbf16>, vector<80x128xf32> -> vector<80x128xf32>
        %97 = arith.addf %92, %96 : vector<80x128xf32>
        %c0_i32_71 = arith.constant 0 : i32
        %c3_i32_72 = arith.constant 3 : i32
        %98 = arith.maxsi %c0_i32_71, %46 : i32
        %99 = arith.minsi %c3_i32_72, %98 : i32
        %100 = arith.index_cast %99 : i32 to index
        %c0_73 = arith.constant 0 : index
        %c0_74 = arith.constant 0 : index
        %101 = vector.load %arg13[%100, %c0_73, %c0_74] : memref<4x80x128xf32, #tpu.memory_space<vmem>>, vector<1x80x128xf32>
        %102 = vector.shape_cast %101 : vector<1x80x128xf32> to vector<80x128xf32>
        %103 = arith.addf %102, %97 : vector<80x128xf32>
        %104 = arith.index_cast %99 : i32 to index
        %c0_75 = arith.constant 0 : index
        %c0_76 = arith.constant 0 : index
        %105 = vector.load %arg13[%104, %c0_75, %c0_76] : memref<4x80x128xf32, #tpu.memory_space<vmem>>, vector<1x80x128xf32>
        %106 = vector.shape_cast %105 : vector<1x80x128xf32> to vector<80x128xf32>
        %107 = vector.shape_cast %103 : vector<80x128xf32> to vector<1x80x128xf32>
        tpu.vector_store %arg13[%104, %c0_75, %c0_76], %107 {strides = array<i32>} : memref<4x80x128xf32, #tpu.memory_space<vmem>>, vector<1x80x128xf32>,
      } else {
      }
    } else {
    }
    %c5_i32 = arith.constant 5 : i32
    %11 = arith.cmpi eq, %arg2, %c5_i32 : i32
    %12 = arith.extui %11 : i1 to i32
    %c0_i32_3 = arith.constant 0 : i32
    %13 = arith.cmpi ne, %12, %c0_i32_3 : i32
    scf.if %13 {
      %c0 = arith.constant 0 : index
      %c0_4 = arith.constant 0 : index
      %c0_5 = arith.constant 0 : index
      %14 = vector.load %arg13[%c0, %c0_4, %c0_5] : memref<4x80x128xf32, #tpu.memory_space<vmem>>, vector<1x80x128xf32>
      %15 = vector.shape_cast %14 : vector<1x80x128xf32> to vector<80x128xf32>
      %c0_6 = arith.constant 0 : index
      %c0_7 = arith.constant 0 : index
      %16 = vector.load %arg5[%c0_6, %c0_7] : memref<1x128xf32, #tpu.memory_space<vmem>>, vector<1x128xf32>
      %17 = vector.broadcast %16 : vector<1x128xf32> to vector<80x128xf32>
      %18 = arith.mulf %15, %17 : vector<80x128xf32>
      %c0_8 = arith.constant 0 : index
      %c0_9 = arith.constant 0 : index
      %19 = vector.load %arg6[%c0_8, %c0_9] : memref<1x128xf32, #tpu.memory_space<vmem>>, vector<1x128xf32>
      %20 = vector.broadcast %19 : vector<1x128xf32> to vector<80x128xf32>
      %21 = arith.addf %18, %20 : vector<80x128xf32>
      %cst = arith.constant 0.000000e+00 : f32
      %22 = vector.broadcast %cst : f32 to vector<80x128xf32>
      %23 = arith.maximumf %21, %22 : vector<80x128xf32>
      %24 = arith.truncf %23 : vector<80x128xf32> to vector<80x128xbf16>
      %25 = vector.extract_strided_slice %24 {offsets = [0, 0], sizes = [8, 128], strides = [1, 1]} : vector<80x128xbf16> to vector<8x128xbf16>
      %c0_10 = arith.constant 0 : index
      %c0_11 = arith.constant 0 : index
      %26 = vector.load %arg14[%c0_10, %c0_11] : memref<64x128xbf16, #tpu.memory_space<vmem>>, vector<8x128xbf16>
      tpu.vector_store %arg14[%c0_10, %c0_11], %25 {strides = array<i32>} : memref<64x128xbf16, #tpu.memory_space<vmem>>, vector<8x128xbf16>,
      %27 = vector.extract_strided_slice %24 {offsets = [10, 0], sizes = [8, 128], strides = [1, 1]} : vector<80x128xbf16> to vector<8x128xbf16>
      %c8 = arith.constant 8 : index
      %c0_12 = arith.constant 0 : index
      %28 = vector.load %arg14[%c8, %c0_12] : memref<64x128xbf16, #tpu.memory_space<vmem>>, vector<8x128xbf16>
      tpu.vector_store %arg14[%c8, %c0_12], %27 {strides = array<i32>} : memref<64x128xbf16, #tpu.memory_space<vmem>>, vector<8x128xbf16>,
      %29 = vector.extract_strided_slice %24 {offsets = [20, 0], sizes = [8, 128], strides = [1, 1]} : vector<80x128xbf16> to vector<8x128xbf16>
      %c16 = arith.constant 16 : index
      %c0_13 = arith.constant 0 : index
      %30 = vector.load %arg14[%c16, %c0_13] : memref<64x128xbf16, #tpu.memory_space<vmem>>, vector<8x128xbf16>
      tpu.vector_store %arg14[%c16, %c0_13], %29 {strides = array<i32>} : memref<64x128xbf16, #tpu.memory_space<vmem>>, vector<8x128xbf16>,
      %31 = vector.extract_strided_slice %24 {offsets = [30, 0], sizes = [8, 128], strides = [1, 1]} : vector<80x128xbf16> to vector<8x128xbf16>
      %c24 = arith.constant 24 : index
      %c0_14 = arith.constant 0 : index
      %32 = vector.load %arg14[%c24, %c0_14] : memref<64x128xbf16, #tpu.memory_space<vmem>>, vector<8x128xbf16>
      tpu.vector_store %arg14[%c24, %c0_14], %31 {strides = array<i32>} : memref<64x128xbf16, #tpu.memory_space<vmem>>, vector<8x128xbf16>,
      %33 = vector.extract_strided_slice %24 {offsets = [40, 0], sizes = [8, 128], strides = [1, 1]} : vector<80x128xbf16> to vector<8x128xbf16>
      %c32 = arith.constant 32 : index
      %c0_15 = arith.constant 0 : index
      %34 = vector.load %arg14[%c32, %c0_15] : memref<64x128xbf16, #tpu.memory_space<vmem>>, vector<8x128xbf16>
      tpu.vector_store %arg14[%c32, %c0_15], %33 {strides = array<i32>} : memref<64x128xbf16, #tpu.memory_space<vmem>>, vector<8x128xbf16>,
      %35 = vector.extract_strided_slice %24 {offsets = [50, 0], sizes = [8, 128], strides = [1, 1]} : vector<80x128xbf16> to vector<8x128xbf16>
      %c40 = arith.constant 40 : index
      %c0_16 = arith.constant 0 : index
      %36 = vector.load %arg14[%c40, %c0_16] : memref<64x128xbf16, #tpu.memory_space<vmem>>, vector<8x128xbf16>
      tpu.vector_store %arg14[%c40, %c0_16], %35 {strides = array<i32>} : memref<64x128xbf16, #tpu.memory_space<vmem>>, vector<8x128xbf16>,
      %37 = vector.extract_strided_slice %24 {offsets = [60, 0], sizes = [8, 128], strides = [1, 1]} : vector<80x128xbf16> to vector<8x128xbf16>
      %c48 = arith.constant 48 : index
      %c0_17 = arith.constant 0 : index
      %38 = vector.load %arg14[%c48, %c0_17] : memref<64x128xbf16, #tpu.memory_space<vmem>>, vector<8x128xbf16>
      tpu.vector_store %arg14[%c48, %c0_17], %37 {strides = array<i32>} : memref<64x128xbf16, #tpu.memory_space<vmem>>, vector<8x128xbf16>,
      %39 = vector.extract_strided_slice %24 {offsets = [70, 0], sizes = [8, 128], strides = [1, 1]} : vector<80x128xbf16> to vector<8x128xbf16>
      %c56 = arith.constant 56 : index
      %c0_18 = arith.constant 0 : index
      %40 = vector.load %arg14[%c56, %c0_18] : memref<64x128xbf16, #tpu.memory_space<vmem>>, vector<8x128xbf16>
      tpu.vector_store %arg14[%c56, %c0_18], %39 {strides = array<i32>} : memref<64x128xbf16, #tpu.memory_space<vmem>>, vector<8x128xbf16>,
      %c0_19 = arith.constant 0 : index
      %c0_20 = arith.constant 0 : index
      %41 = vector.load %arg14[%c0_19, %c0_20] : memref<64x128xbf16, #tpu.memory_space<vmem>>, vector<64x128xbf16>
      %c0_21 = arith.constant 0 : index
      %c0_22 = arith.constant 0 : index
      %42 = vector.load %arg7[%c0_21, %c0_22] : memref<128x128xbf16, #tpu.memory_space<vmem>>, vector<128x128xbf16>
      %cst_23 = arith.constant dense<0.000000e+00> : vector<64x128xf32>
      %43 = tpu.matmul %41, %42, %cst_23 {dimension_numbers = #tpu.dot_dimension_numbers<[1], [0], [0], [1], [0, 0, 1, 1], [], []>} : vector<64x128xbf16>, vector<128x128xbf16>, vector<64x128xf32> -> vector<64x128xf32>
      %c0_24 = arith.constant 0 : index
      %c0_25 = arith.constant 0 : index
      %44 = vector.load %arg8[%c0_24, %c0_25] : memref<1x128xf32, #tpu.memory_space<vmem>>, vector<1x128xf32>
      %45 = vector.broadcast %44 : vector<1x128xf32> to vector<64x128xf32>
      %46 = arith.mulf %43, %45 : vector<64x128xf32>
      %c0_26 = arith.constant 0 : index
      %c0_27 = arith.constant 0 : index
      %47 = vector.load %arg9[%c0_26, %c0_27] : memref<1x128xf32, #tpu.memory_space<vmem>>, vector<1x128xf32>
      %48 = vector.broadcast %47 : vector<1x128xf32> to vector<64x128xf32>
      %49 = arith.addf %46, %48 : vector<64x128xf32>
      %c0_28 = arith.constant 0 : index
      %c0_29 = arith.constant 0 : index
      %c0_30 = arith.constant 0 : index
      %c0_31 = arith.constant 0 : index
      %50 = vector.load %arg10[%c0_28, %c0_29, %c0_30, %c0_31] : memref<1x4x64x128xbf16, #tpu.memory_space<vmem>>, vector<1x1x64x128xbf16>
      %51 = vector.shape_cast %50 : vector<1x1x64x128xbf16> to vector<64x128xbf16>
      %52 = arith.extf %51 : vector<64x128xbf16> to vector<64x128xf32>
      %53 = arith.addf %49, %52 : vector<64x128xf32>
      %cst_32 = arith.constant 0.000000e+00 : f32
      %54 = vector.broadcast %cst_32 : f32 to vector<64x128xf32>
      %55 = arith.maximumf %53, %54 : vector<64x128xf32>
      %56 = arith.truncf %55 : vector<64x128xf32> to vector<64x128xbf16>
      %c0_33 = arith.constant 0 : index
      %c0_34 = arith.constant 0 : index
      %c0_35 = arith.constant 0 : index
      %c0_36 = arith.constant 0 : index
      %57 = vector.load %arg11[%c0_33, %c0_34, %c0_35, %c0_36] : memref<1x4x64x128xbf16, #tpu.memory_space<vmem>>, vector<1x1x64x128xbf16>
      %58 = vector.shape_cast %57 : vector<1x1x64x128xbf16> to vector<64x128xbf16>
      %59 = vector.shape_cast %56 : vector<64x128xbf16> to vector<1x1x64x128xbf16>
      tpu.vector_store %arg11[%c0_33, %c0_34, %c0_35, %c0_36], %59 {strides = array<i32>} : memref<1x4x64x128xbf16, #tpu.memory_space<vmem>>, vector<1x1x64x128xbf16>,
      %c1 = arith.constant 1 : index
      %c0_37 = arith.constant 0 : index
      %c0_38 = arith.constant 0 : index
      %60 = vector.load %arg13[%c1, %c0_37, %c0_38] : memref<4x80x128xf32, #tpu.memory_space<vmem>>, vector<1x80x128xf32>
      %61 = vector.shape_cast %60 : vector<1x80x128xf32> to vector<80x128xf32>
      %c0_39 = arith.constant 0 : index
      %c0_40 = arith.constant 0 : index
      %62 = vector.load %arg5[%c0_39, %c0_40] : memref<1x128xf32, #tpu.memory_space<vmem>>, vector<1x128xf32>
      %63 = vector.broadcast %62 : vector<1x128xf32> to vector<80x128xf32>
      %64 = arith.mulf %61, %63 : vector<80x128xf32>
      %c0_41 = arith.constant 0 : index
      %c0_42 = arith.constant 0 : index
      %65 = vector.load %arg6[%c0_41, %c0_42] : memref<1x128xf32, #tpu.memory_space<vmem>>, vector<1x128xf32>
      %66 = vector.broadcast %65 : vector<1x128xf32> to vector<80x128xf32>
      %67 = arith.addf %64, %66 : vector<80x128xf32>
      %cst_43 = arith.constant 0.000000e+00 : f32
      %68 = vector.broadcast %cst_43 : f32 to vector<80x128xf32>
      %69 = arith.maximumf %67, %68 : vector<80x128xf32>
      %70 = arith.truncf %69 : vector<80x128xf32> to vector<80x128xbf16>
      %71 = vector.extract_strided_slice %70 {offsets = [0, 0], sizes = [8, 128], strides = [1, 1]} : vector<80x128xbf16> to vector<8x128xbf16>
      %c0_44 = arith.constant 0 : index
      %c0_45 = arith.constant 0 : index
      %72 = vector.load %arg14[%c0_44, %c0_45] : memref<64x128xbf16, #tpu.memory_space<vmem>>, vector<8x128xbf16>
      tpu.vector_store %arg14[%c0_44, %c0_45], %71 {strides = array<i32>} : memref<64x128xbf16, #tpu.memory_space<vmem>>, vector<8x128xbf16>,
      %73 = vector.extract_strided_slice %70 {offsets = [10, 0], sizes = [8, 128], strides = [1, 1]} : vector<80x128xbf16> to vector<8x128xbf16>
      %c8_46 = arith.constant 8 : index
      %c0_47 = arith.constant 0 : index
      %74 = vector.load %arg14[%c8_46, %c0_47] : memref<64x128xbf16, #tpu.memory_space<vmem>>, vector<8x128xbf16>
      tpu.vector_store %arg14[%c8_46, %c0_47], %73 {strides = array<i32>} : memref<64x128xbf16, #tpu.memory_space<vmem>>, vector<8x128xbf16>,
      %75 = vector.extract_strided_slice %70 {offsets = [20, 0], sizes = [8, 128], strides = [1, 1]} : vector<80x128xbf16> to vector<8x128xbf16>
      %c16_48 = arith.constant 16 : index
      %c0_49 = arith.constant 0 : index
      %76 = vector.load %arg14[%c16_48, %c0_49] : memref<64x128xbf16, #tpu.memory_space<vmem>>, vector<8x128xbf16>
      tpu.vector_store %arg14[%c16_48, %c0_49], %75 {strides = array<i32>} : memref<64x128xbf16, #tpu.memory_space<vmem>>, vector<8x128xbf16>,
      %77 = vector.extract_strided_slice %70 {offsets = [30, 0], sizes = [8, 128], strides = [1, 1]} : vector<80x128xbf16> to vector<8x128xbf16>
      %c24_50 = arith.constant 24 : index
      %c0_51 = arith.constant 0 : index
      %78 = vector.load %arg14[%c24_50, %c0_51] : memref<64x128xbf16, #tpu.memory_space<vmem>>, vector<8x128xbf16>
      tpu.vector_store %arg14[%c24_50, %c0_51], %77 {strides = array<i32>} : memref<64x128xbf16, #tpu.memory_space<vmem>>, vector<8x128xbf16>,
      %79 = vector.extract_strided_slice %70 {offsets = [40, 0], sizes = [8, 128], strides = [1, 1]} : vector<80x128xbf16> to vector<8x128xbf16>
      %c32_52 = arith.constant 32 : index
      %c0_53 = arith.constant 0 : index
      %80 = vector.load %arg14[%c32_52, %c0_53] : memref<64x128xbf16, #tpu.memory_space<vmem>>, vector<8x128xbf16>
      tpu.vector_store %arg14[%c32_52, %c0_53], %79 {strides = array<i32>} : memref<64x128xbf16, #tpu.memory_space<vmem>>, vector<8x128xbf16>,
      %81 = vector.extract_strided_slice %70 {offsets = [50, 0], sizes = [8, 128], strides = [1, 1]} : vector<80x128xbf16> to vector<8x128xbf16>
      %c40_54 = arith.constant 40 : index
      %c0_55 = arith.constant 0 : index
      %82 = vector.load %arg14[%c40_54, %c0_55] : memref<64x128xbf16, #tpu.memory_space<vmem>>, vector<8x128xbf16>
      tpu.vector_store %arg14[%c40_54, %c0_55], %81 {strides = array<i32>} : memref<64x128xbf16, #tpu.memory_space<vmem>>, vector<8x128xbf16>,
      %83 = vector.extract_strided_slice %70 {offsets = [60, 0], sizes = [8, 128], strides = [1, 1]} : vector<80x128xbf16> to vector<8x128xbf16>
      %c48_56 = arith.constant 48 : index
      %c0_57 = arith.constant 0 : index
      %84 = vector.load %arg14[%c48_56, %c0_57] : memref<64x128xbf16, #tpu.memory_space<vmem>>, vector<8x128xbf16>
      tpu.vector_store %arg14[%c48_56, %c0_57], %83 {strides = array<i32>} : memref<64x128xbf16, #tpu.memory_space<vmem>>, vector<8x128xbf16>,
      %85 = vector.extract_strided_slice %70 {offsets = [70, 0], sizes = [8, 128], strides = [1, 1]} : vector<80x128xbf16> to vector<8x128xbf16>
      %c56_58 = arith.constant 56 : index
      %c0_59 = arith.constant 0 : index
      %86 = vector.load %arg14[%c56_58, %c0_59] : memref<64x128xbf16, #tpu.memory_space<vmem>>, vector<8x128xbf16>
      tpu.vector_store %arg14[%c56_58, %c0_59], %85 {strides = array<i32>} : memref<64x128xbf16, #tpu.memory_space<vmem>>, vector<8x128xbf16>,
      %c0_60 = arith.constant 0 : index
      %c0_61 = arith.constant 0 : index
      %87 = vector.load %arg14[%c0_60, %c0_61] : memref<64x128xbf16, #tpu.memory_space<vmem>>, vector<64x128xbf16>
      %c0_62 = arith.constant 0 : index
      %c0_63 = arith.constant 0 : index
      %88 = vector.load %arg7[%c0_62, %c0_63] : memref<128x128xbf16, #tpu.memory_space<vmem>>, vector<128x128xbf16>
      %cst_64 = arith.constant dense<0.000000e+00> : vector<64x128xf32>
      %89 = tpu.matmul %87, %88, %cst_64 {dimension_numbers = #tpu.dot_dimension_numbers<[1], [0], [0], [1], [0, 0, 1, 1], [], []>} : vector<64x128xbf16>, vector<128x128xbf16>, vector<64x128xf32> -> vector<64x128xf32>
      %c0_65 = arith.constant 0 : index
      %c0_66 = arith.constant 0 : index
      %90 = vector.load %arg8[%c0_65, %c0_66] : memref<1x128xf32, #tpu.memory_space<vmem>>, vector<1x128xf32>
      %91 = vector.broadcast %90 : vector<1x128xf32> to vector<64x128xf32>
      %92 = arith.mulf %89, %91 : vector<64x128xf32>
      %c0_67 = arith.constant 0 : index
      %c0_68 = arith.constant 0 : index
      %93 = vector.load %arg9[%c0_67, %c0_68] : memref<1x128xf32, #tpu.memory_space<vmem>>, vector<1x128xf32>
      %94 = vector.broadcast %93 : vector<1x128xf32> to vector<64x128xf32>
      %95 = arith.addf %92, %94 : vector<64x128xf32>
      %c0_69 = arith.constant 0 : index
      %c1_70 = arith.constant 1 : index
      %c0_71 = arith.constant 0 : index
      %c0_72 = arith.constant 0 : index
      %96 = vector.load %arg10[%c0_69, %c1_70, %c0_71, %c0_72] : memref<1x4x64x128xbf16, #tpu.memory_space<vmem>>, vector<1x1x64x128xbf16>
      %97 = vector.shape_cast %96 : vector<1x1x64x128xbf16> to vector<64x128xbf16>
      %98 = arith.extf %97 : vector<64x128xbf16> to vector<64x128xf32>
      %99 = arith.addf %95, %98 : vector<64x128xf32>
      %cst_73 = arith.constant 0.000000e+00 : f32
      %100 = vector.broadcast %cst_73 : f32 to vector<64x128xf32>
      %101 = arith.maximumf %99, %100 : vector<64x128xf32>
      %102 = arith.truncf %101 : vector<64x128xf32> to vector<64x128xbf16>
      %c0_74 = arith.constant 0 : index
      %c1_75 = arith.constant 1 : index
      %c0_76 = arith.constant 0 : index
      %c0_77 = arith.constant 0 : index
      %103 = vector.load %arg11[%c0_74, %c1_75, %c0_76, %c0_77] : memref<1x4x64x128xbf16, #tpu.memory_space<vmem>>, vector<1x1x64x128xbf16>
      %104 = vector.shape_cast %103 : vector<1x1x64x128xbf16> to vector<64x128xbf16>
      %105 = vector.shape_cast %102 : vector<64x128xbf16> to vector<1x1x64x128xbf16>
      tpu.vector_store %arg11[%c0_74, %c1_75, %c0_76, %c0_77], %105 {strides = array<i32>} : memref<1x4x64x128xbf16, #tpu.memory_space<vmem>>, vector<1x1x64x128xbf16>,
      %c2 = arith.constant 2 : index
      %c0_78 = arith.constant 0 : index
      %c0_79 = arith.constant 0 : index
      %106 = vector.load %arg13[%c2, %c0_78, %c0_79] : memref<4x80x128xf32, #tpu.memory_space<vmem>>, vector<1x80x128xf32>
      %107 = vector.shape_cast %106 : vector<1x80x128xf32> to vector<80x128xf32>
      %c0_80 = arith.constant 0 : index
      %c0_81 = arith.constant 0 : index
      %108 = vector.load %arg5[%c0_80, %c0_81] : memref<1x128xf32, #tpu.memory_space<vmem>>, vector<1x128xf32>
      %109 = vector.broadcast %108 : vector<1x128xf32> to vector<80x128xf32>
      %110 = arith.mulf %107, %109 : vector<80x128xf32>
      %c0_82 = arith.constant 0 : index
      %c0_83 = arith.constant 0 : index
      %111 = vector.load %arg6[%c0_82, %c0_83] : memref<1x128xf32, #tpu.memory_space<vmem>>, vector<1x128xf32>
      %112 = vector.broadcast %111 : vector<1x128xf32> to vector<80x128xf32>
      %113 = arith.addf %110, %112 : vector<80x128xf32>
      %cst_84 = arith.constant 0.000000e+00 : f32
      %114 = vector.broadcast %cst_84 : f32 to vector<80x128xf32>
      %115 = arith.maximumf %113, %114 : vector<80x128xf32>
      %116 = arith.truncf %115 : vector<80x128xf32> to vector<80x128xbf16>
      %117 = vector.extract_strided_slice %116 {offsets = [0, 0], sizes = [8, 128], strides = [1, 1]} : vector<80x128xbf16> to vector<8x128xbf16>
      %c0_85 = arith.constant 0 : index
      %c0_86 = arith.constant 0 : index
      %118 = vector.load %arg14[%c0_85, %c0_86] : memref<64x128xbf16, #tpu.memory_space<vmem>>, vector<8x128xbf16>
      tpu.vector_store %arg14[%c0_85, %c0_86], %117 {strides = array<i32>} : memref<64x128xbf16, #tpu.memory_space<vmem>>, vector<8x128xbf16>,
      %119 = vector.extract_strided_slice %116 {offsets = [10, 0], sizes = [8, 128], strides = [1, 1]} : vector<80x128xbf16> to vector<8x128xbf16>
      %c8_87 = arith.constant 8 : index
      %c0_88 = arith.constant 0 : index
      %120 = vector.load %arg14[%c8_87, %c0_88] : memref<64x128xbf16, #tpu.memory_space<vmem>>, vector<8x128xbf16>
      tpu.vector_store %arg14[%c8_87, %c0_88], %119 {strides = array<i32>} : memref<64x128xbf16, #tpu.memory_space<vmem>>, vector<8x128xbf16>,
      %121 = vector.extract_strided_slice %116 {offsets = [20, 0], sizes = [8, 128], strides = [1, 1]} : vector<80x128xbf16> to vector<8x128xbf16>
      %c16_89 = arith.constant 16 : index
      %c0_90 = arith.constant 0 : index
      %122 = vector.load %arg14[%c16_89, %c0_90] : memref<64x128xbf16, #tpu.memory_space<vmem>>, vector<8x128xbf16>
      tpu.vector_store %arg14[%c16_89, %c0_90], %121 {strides = array<i32>} : memref<64x128xbf16, #tpu.memory_space<vmem>>, vector<8x128xbf16>,
      %123 = vector.extract_strided_slice %116 {offsets = [30, 0], sizes = [8, 128], strides = [1, 1]} : vector<80x128xbf16> to vector<8x128xbf16>
      %c24_91 = arith.constant 24 : index
      %c0_92 = arith.constant 0 : index
      %124 = vector.load %arg14[%c24_91, %c0_92] : memref<64x128xbf16, #tpu.memory_space<vmem>>, vector<8x128xbf16>
      tpu.vector_store %arg14[%c24_91, %c0_92], %123 {strides = array<i32>} : memref<64x128xbf16, #tpu.memory_space<vmem>>, vector<8x128xbf16>,
      %125 = vector.extract_strided_slice %116 {offsets = [40, 0], sizes = [8, 128], strides = [1, 1]} : vector<80x128xbf16> to vector<8x128xbf16>
      %c32_93 = arith.constant 32 : index
      %c0_94 = arith.constant 0 : index
      %126 = vector.load %arg14[%c32_93, %c0_94] : memref<64x128xbf16, #tpu.memory_space<vmem>>, vector<8x128xbf16>
      tpu.vector_store %arg14[%c32_93, %c0_94], %125 {strides = array<i32>} : memref<64x128xbf16, #tpu.memory_space<vmem>>, vector<8x128xbf16>,
      %127 = vector.extract_strided_slice %116 {offsets = [50, 0], sizes = [8, 128], strides = [1, 1]} : vector<80x128xbf16> to vector<8x128xbf16>
      %c40_95 = arith.constant 40 : index
      %c0_96 = arith.constant 0 : index
      %128 = vector.load %arg14[%c40_95, %c0_96] : memref<64x128xbf16, #tpu.memory_space<vmem>>, vector<8x128xbf16>
      tpu.vector_store %arg14[%c40_95, %c0_96], %127 {strides = array<i32>} : memref<64x128xbf16, #tpu.memory_space<vmem>>, vector<8x128xbf16>,
      %129 = vector.extract_strided_slice %116 {offsets = [60, 0], sizes = [8, 128], strides = [1, 1]} : vector<80x128xbf16> to vector<8x128xbf16>
      %c48_97 = arith.constant 48 : index
      %c0_98 = arith.constant 0 : index
      %130 = vector.load %arg14[%c48_97, %c0_98] : memref<64x128xbf16, #tpu.memory_space<vmem>>, vector<8x128xbf16>
      tpu.vector_store %arg14[%c48_97, %c0_98], %129 {strides = array<i32>} : memref<64x128xbf16, #tpu.memory_space<vmem>>, vector<8x128xbf16>,
      %131 = vector.extract_strided_slice %116 {offsets = [70, 0], sizes = [8, 128], strides = [1, 1]} : vector<80x128xbf16> to vector<8x128xbf16>
      %c56_99 = arith.constant 56 : index
      %c0_100 = arith.constant 0 : index
      %132 = vector.load %arg14[%c56_99, %c0_100] : memref<64x128xbf16, #tpu.memory_space<vmem>>, vector<8x128xbf16>
      tpu.vector_store %arg14[%c56_99, %c0_100], %131 {strides = array<i32>} : memref<64x128xbf16, #tpu.memory_space<vmem>>, vector<8x128xbf16>,
      %c0_101 = arith.constant 0 : index
      %c0_102 = arith.constant 0 : index
      %133 = vector.load %arg14[%c0_101, %c0_102] : memref<64x128xbf16, #tpu.memory_space<vmem>>, vector<64x128xbf16>
      %c0_103 = arith.constant 0 : index
      %c0_104 = arith.constant 0 : index
      %134 = vector.load %arg7[%c0_103, %c0_104] : memref<128x128xbf16, #tpu.memory_space<vmem>>, vector<128x128xbf16>
      %cst_105 = arith.constant dense<0.000000e+00> : vector<64x128xf32>
      %135 = tpu.matmul %133, %134, %cst_105 {dimension_numbers = #tpu.dot_dimension_numbers<[1], [0], [0], [1], [0, 0, 1, 1], [], []>} : vector<64x128xbf16>, vector<128x128xbf16>, vector<64x128xf32> -> vector<64x128xf32>
      %c0_106 = arith.constant 0 : index
      %c0_107 = arith.constant 0 : index
      %136 = vector.load %arg8[%c0_106, %c0_107] : memref<1x128xf32, #tpu.memory_space<vmem>>, vector<1x128xf32>
      %137 = vector.broadcast %136 : vector<1x128xf32> to vector<64x128xf32>
      %138 = arith.mulf %135, %137 : vector<64x128xf32>
      %c0_108 = arith.constant 0 : index
      %c0_109 = arith.constant 0 : index
      %139 = vector.load %arg9[%c0_108, %c0_109] : memref<1x128xf32, #tpu.memory_space<vmem>>, vector<1x128xf32>
      %140 = vector.broadcast %139 : vector<1x128xf32> to vector<64x128xf32>
      %141 = arith.addf %138, %140 : vector<64x128xf32>
      %c0_110 = arith.constant 0 : index
      %c2_111 = arith.constant 2 : index
      %c0_112 = arith.constant 0 : index
      %c0_113 = arith.constant 0 : index
      %142 = vector.load %arg10[%c0_110, %c2_111, %c0_112, %c0_113] : memref<1x4x64x128xbf16, #tpu.memory_space<vmem>>, vector<1x1x64x128xbf16>
      %143 = vector.shape_cast %142 : vector<1x1x64x128xbf16> to vector<64x128xbf16>
      %144 = arith.extf %143 : vector<64x128xbf16> to vector<64x128xf32>
      %145 = arith.addf %141, %144 : vector<64x128xf32>
      %cst_114 = arith.constant 0.000000e+00 : f32
      %146 = vector.broadcast %cst_114 : f32 to vector<64x128xf32>
      %147 = arith.maximumf %145, %146 : vector<64x128xf32>
      %148 = arith.truncf %147 : vector<64x128xf32> to vector<64x128xbf16>
      %c0_115 = arith.constant 0 : index
      %c2_116 = arith.constant 2 : index
      %c0_117 = arith.constant 0 : index
      %c0_118 = arith.constant 0 : index
      %149 = vector.load %arg11[%c0_115, %c2_116, %c0_117, %c0_118] : memref<1x4x64x128xbf16, #tpu.memory_space<vmem>>, vector<1x1x64x128xbf16>
      %150 = vector.shape_cast %149 : vector<1x1x64x128xbf16> to vector<64x128xbf16>
      %151 = vector.shape_cast %148 : vector<64x128xbf16> to vector<1x1x64x128xbf16>
      tpu.vector_store %arg11[%c0_115, %c2_116, %c0_117, %c0_118], %151 {strides = array<i32>} : memref<1x4x64x128xbf16, #tpu.memory_space<vmem>>, vector<1x1x64x128xbf16>,
      %c3 = arith.constant 3 : index
      %c0_119 = arith.constant 0 : index
      %c0_120 = arith.constant 0 : index
      %152 = vector.load %arg13[%c3, %c0_119, %c0_120] : memref<4x80x128xf32, #tpu.memory_space<vmem>>, vector<1x80x128xf32>
      %153 = vector.shape_cast %152 : vector<1x80x128xf32> to vector<80x128xf32>
      %c0_121 = arith.constant 0 : index
      %c0_122 = arith.constant 0 : index
      %154 = vector.load %arg5[%c0_121, %c0_122] : memref<1x128xf32, #tpu.memory_space<vmem>>, vector<1x128xf32>
      %155 = vector.broadcast %154 : vector<1x128xf32> to vector<80x128xf32>
      %156 = arith.mulf %153, %155 : vector<80x128xf32>
      %c0_123 = arith.constant 0 : index
      %c0_124 = arith.constant 0 : index
      %157 = vector.load %arg6[%c0_123, %c0_124] : memref<1x128xf32, #tpu.memory_space<vmem>>, vector<1x128xf32>
      %158 = vector.broadcast %157 : vector<1x128xf32> to vector<80x128xf32>
      %159 = arith.addf %156, %158 : vector<80x128xf32>
      %cst_125 = arith.constant 0.000000e+00 : f32
      %160 = vector.broadcast %cst_125 : f32 to vector<80x128xf32>
      %161 = arith.maximumf %159, %160 : vector<80x128xf32>
      %162 = arith.truncf %161 : vector<80x128xf32> to vector<80x128xbf16>
      %163 = vector.extract_strided_slice %162 {offsets = [0, 0], sizes = [8, 128], strides = [1, 1]} : vector<80x128xbf16> to vector<8x128xbf16>
      %c0_126 = arith.constant 0 : index
      %c0_127 = arith.constant 0 : index
      %164 = vector.load %arg14[%c0_126, %c0_127] : memref<64x128xbf16, #tpu.memory_space<vmem>>, vector<8x128xbf16>
      tpu.vector_store %arg14[%c0_126, %c0_127], %163 {strides = array<i32>} : memref<64x128xbf16, #tpu.memory_space<vmem>>, vector<8x128xbf16>,
      %165 = vector.extract_strided_slice %162 {offsets = [10, 0], sizes = [8, 128], strides = [1, 1]} : vector<80x128xbf16> to vector<8x128xbf16>
      %c8_128 = arith.constant 8 : index
      %c0_129 = arith.constant 0 : index
      %166 = vector.load %arg14[%c8_128, %c0_129] : memref<64x128xbf16, #tpu.memory_space<vmem>>, vector<8x128xbf16>
      tpu.vector_store %arg14[%c8_128, %c0_129], %165 {strides = array<i32>} : memref<64x128xbf16, #tpu.memory_space<vmem>>, vector<8x128xbf16>,
      %167 = vector.extract_strided_slice %162 {offsets = [20, 0], sizes = [8, 128], strides = [1, 1]} : vector<80x128xbf16> to vector<8x128xbf16>
      %c16_130 = arith.constant 16 : index
      %c0_131 = arith.constant 0 : index
      %168 = vector.load %arg14[%c16_130, %c0_131] : memref<64x128xbf16, #tpu.memory_space<vmem>>, vector<8x128xbf16>
      tpu.vector_store %arg14[%c16_130, %c0_131], %167 {strides = array<i32>} : memref<64x128xbf16, #tpu.memory_space<vmem>>, vector<8x128xbf16>,
      %169 = vector.extract_strided_slice %162 {offsets = [30, 0], sizes = [8, 128], strides = [1, 1]} : vector<80x128xbf16> to vector<8x128xbf16>
      %c24_132 = arith.constant 24 : index
      %c0_133 = arith.constant 0 : index
      %170 = vector.load %arg14[%c24_132, %c0_133] : memref<64x128xbf16, #tpu.memory_space<vmem>>, vector<8x128xbf16>
      tpu.vector_store %arg14[%c24_132, %c0_133], %169 {strides = array<i32>} : memref<64x128xbf16, #tpu.memory_space<vmem>>, vector<8x128xbf16>,
      %171 = vector.extract_strided_slice %162 {offsets = [40, 0], sizes = [8, 128], strides = [1, 1]} : vector<80x128xbf16> to vector<8x128xbf16>
      %c32_134 = arith.constant 32 : index
      %c0_135 = arith.constant 0 : index
      %172 = vector.load %arg14[%c32_134, %c0_135] : memref<64x128xbf16, #tpu.memory_space<vmem>>, vector<8x128xbf16>
      tpu.vector_store %arg14[%c32_134, %c0_135], %171 {strides = array<i32>} : memref<64x128xbf16, #tpu.memory_space<vmem>>, vector<8x128xbf16>,
      %173 = vector.extract_strided_slice %162 {offsets = [50, 0], sizes = [8, 128], strides = [1, 1]} : vector<80x128xbf16> to vector<8x128xbf16>
      %c40_136 = arith.constant 40 : index
      %c0_137 = arith.constant 0 : index
      %174 = vector.load %arg14[%c40_136, %c0_137] : memref<64x128xbf16, #tpu.memory_space<vmem>>, vector<8x128xbf16>
      tpu.vector_store %arg14[%c40_136, %c0_137], %173 {strides = array<i32>} : memref<64x128xbf16, #tpu.memory_space<vmem>>, vector<8x128xbf16>,
      %175 = vector.extract_strided_slice %162 {offsets = [60, 0], sizes = [8, 128], strides = [1, 1]} : vector<80x128xbf16> to vector<8x128xbf16>
      %c48_138 = arith.constant 48 : index
      %c0_139 = arith.constant 0 : index
      %176 = vector.load %arg14[%c48_138, %c0_139] : memref<64x128xbf16, #tpu.memory_space<vmem>>, vector<8x128xbf16>
      tpu.vector_store %arg14[%c48_138, %c0_139], %175 {strides = array<i32>} : memref<64x128xbf16, #tpu.memory_space<vmem>>, vector<8x128xbf16>,
      %177 = vector.extract_strided_slice %162 {offsets = [70, 0], sizes = [8, 128], strides = [1, 1]} : vector<80x128xbf16> to vector<8x128xbf16>
      %c56_140 = arith.constant 56 : index
      %c0_141 = arith.constant 0 : index
      %178 = vector.load %arg14[%c56_140, %c0_141] : memref<64x128xbf16, #tpu.memory_space<vmem>>, vector<8x128xbf16>
      tpu.vector_store %arg14[%c56_140, %c0_141], %177 {strides = array<i32>} : memref<64x128xbf16, #tpu.memory_space<vmem>>, vector<8x128xbf16>,
      %c0_142 = arith.constant 0 : index
      %c0_143 = arith.constant 0 : index
      %179 = vector.load %arg14[%c0_142, %c0_143] : memref<64x128xbf16, #tpu.memory_space<vmem>>, vector<64x128xbf16>
      %c0_144 = arith.constant 0 : index
      %c0_145 = arith.constant 0 : index
      %180 = vector.load %arg7[%c0_144, %c0_145] : memref<128x128xbf16, #tpu.memory_space<vmem>>, vector<128x128xbf16>
      %cst_146 = arith.constant dense<0.000000e+00> : vector<64x128xf32>
      %181 = tpu.matmul %179, %180, %cst_146 {dimension_numbers = #tpu.dot_dimension_numbers<[1], [0], [0], [1], [0, 0, 1, 1], [], []>} : vector<64x128xbf16>, vector<128x128xbf16>, vector<64x128xf32> -> vector<64x128xf32>
      %c0_147 = arith.constant 0 : index
      %c0_148 = arith.constant 0 : index
      %182 = vector.load %arg8[%c0_147, %c0_148] : memref<1x128xf32, #tpu.memory_space<vmem>>, vector<1x128xf32>
      %183 = vector.broadcast %182 : vector<1x128xf32> to vector<64x128xf32>
      %184 = arith.mulf %181, %183 : vector<64x128xf32>
      %c0_149 = arith.constant 0 : index
      %c0_150 = arith.constant 0 : index
      %185 = vector.load %arg9[%c0_149, %c0_150] : memref<1x128xf32, #tpu.memory_space<vmem>>, vector<1x128xf32>
      %186 = vector.broadcast %185 : vector<1x128xf32> to vector<64x128xf32>
      %187 = arith.addf %184, %186 : vector<64x128xf32>
      %c0_151 = arith.constant 0 : index
      %c3_152 = arith.constant 3 : index
      %c0_153 = arith.constant 0 : index
      %c0_154 = arith.constant 0 : index
      %188 = vector.load %arg10[%c0_151, %c3_152, %c0_153, %c0_154] : memref<1x4x64x128xbf16, #tpu.memory_space<vmem>>, vector<1x1x64x128xbf16>
      %189 = vector.shape_cast %188 : vector<1x1x64x128xbf16> to vector<64x128xbf16>
      %190 = arith.extf %189 : vector<64x128xbf16> to vector<64x128xf32>
      %191 = arith.addf %187, %190 : vector<64x128xf32>
      %cst_155 = arith.constant 0.000000e+00 : f32
      %192 = vector.broadcast %cst_155 : f32 to vector<64x128xf32>
      %193 = arith.maximumf %191, %192 : vector<64x128xf32>
      %194 = arith.truncf %193 : vector<64x128xf32> to vector<64x128xbf16>
      %c0_156 = arith.constant 0 : index
      %c3_157 = arith.constant 3 : index
      %c0_158 = arith.constant 0 : index
      %c0_159 = arith.constant 0 : index
      %195 = vector.load %arg11[%c0_156, %c3_157, %c0_158, %c0_159] : memref<1x4x64x128xbf16, #tpu.memory_space<vmem>>, vector<1x1x64x128xbf16>
      %196 = vector.shape_cast %195 : vector<1x1x64x128xbf16> to vector<64x128xbf16>
      %197 = vector.shape_cast %194 : vector<64x128xbf16> to vector<1x1x64x128xbf16>
      tpu.vector_store %arg11[%c0_156, %c3_157, %c0_158, %c0_159], %197 {strides = array<i32>} : memref<1x4x64x128xbf16, #tpu.memory_space<vmem>>, vector<1x1x64x128xbf16>,
    } else {
    }
    return
  }
  func.func @transform_0(%arg0: i32, %arg1: i32, %arg2: i32) -> (i32, i32, i32, i32) {
    %c4_i32 = arith.constant 4 : i32
    %0 = arith.muli %arg1, %c4_i32 : i32
    %1 = arith.addi %0, %arg2 : i32
    %c1_i32 = arith.constant 1 : i32
    %2 = arith.subi %1, %c1_i32 : i32
    %c0_i32 = arith.constant 0 : i32
    %c3_i32 = arith.constant 3 : i32
    %3 = arith.maxsi %c0_i32, %2 : i32
    %4 = arith.minsi %c3_i32, %3 : i32
    %c0_i32_0 = arith.constant 0 : i32
    %c0_i32_1 = arith.constant 0 : i32
    %c0_i32_2 = arith.constant 0 : i32
    return %arg0, %4, %c0_i32_0, %c0_i32_1 : i32, i32, i32, i32
  }
  func.func @transform_1(%arg0: i32, %arg1: i32, %arg2: i32) -> (i32, i32, i32) {
    %c0_i32 = arith.constant 0 : i32
    %c0_i32_0 = arith.constant 0 : i32
    %c0_i32_1 = arith.constant 0 : i32
    %c0_i32_2 = arith.constant 0 : i32
    return %c0_i32, %c0_i32_0, %c0_i32_1 : i32, i32, i32
  }
  func.func @transform_2(%arg0: i32, %arg1: i32, %arg2: i32) -> (i32, i32) {
    %c0_i32 = arith.constant 0 : i32
    %c0_i32_0 = arith.constant 0 : i32
    %c0_i32_1 = arith.constant 0 : i32
    return %c0_i32, %c0_i32_0 : i32, i32
  }
  func.func @transform_3(%arg0: i32, %arg1: i32, %arg2: i32) -> (i32, i32) {
    %c0_i32 = arith.constant 0 : i32
    %c0_i32_0 = arith.constant 0 : i32
    %c0_i32_1 = arith.constant 0 : i32
    return %c0_i32, %c0_i32_0 : i32, i32
  }
  func.func @transform_4(%arg0: i32, %arg1: i32, %arg2: i32) -> (i32, i32) {
    %c0_i32 = arith.constant 0 : i32
    %c0_i32_0 = arith.constant 0 : i32
    %c0_i32_1 = arith.constant 0 : i32
    return %c0_i32, %c0_i32_0 : i32, i32
  }
  func.func @transform_5(%arg0: i32, %arg1: i32, %arg2: i32) -> (i32, i32) {
    %c0_i32 = arith.constant 0 : i32
    %c0_i32_0 = arith.constant 0 : i32
    %c0_i32_1 = arith.constant 0 : i32
    return %c0_i32, %c0_i32_0 : i32, i32
  }
  func.func @transform_6(%arg0: i32, %arg1: i32, %arg2: i32) -> (i32, i32) {
    %c0_i32 = arith.constant 0 : i32
    %c0_i32_0 = arith.constant 0 : i32
    %c0_i32_1 = arith.constant 0 : i32
    return %c0_i32, %c0_i32_0 : i32, i32
  }
  func.func @transform_7(%arg0: i32, %arg1: i32, %arg2: i32) -> (i32, i32, i32, i32) {
    %c0_i32 = arith.constant 0 : i32
    %c0_i32_0 = arith.constant 0 : i32
    %c0_i32_1 = arith.constant 0 : i32
    return %arg0, %arg1, %c0_i32, %c0_i32_0 : i32, i32, i32, i32
  }
  func.func @transform_8(%arg0: i32, %arg1: i32, %arg2: i32) -> (i32, i32, i32, i32) {
    %c0_i32 = arith.constant 0 : i32
    %c0_i32_0 = arith.constant 0 : i32
    %c0_i32_1 = arith.constant 0 : i32
    return %arg0, %arg1, %c0_i32, %c0_i32_0 : i32, i32, i32, i32
  }
}

</mosaic_0001>

<bundles_post_ra>
// kernel: bottleneck_forward.2
= control target key start
LH: loop header
LB: loop body
LE: loop exit
PB: predicated region body
PF: predicated region fallthrough
CT: control target
= control target key end

     0   :  { %s2073_s1 = inlined_call_operand.vmem [shape: bf16[128,128], index: 1, kind: input, shape index: {}]   ;;  %s2074_s0 = inlined_call_operand.vmem [shape: bf16[512,128], index: 0, kind: input, shape index: {}]   ;;  %s2075_s2 = inlined_call_operand.vmem [shape: f32[1,128], index: 2, kind: input, shape index: {}]   ;;  %s2076_s3 = inlined_call_operand.vmem [shape: f32[1,128], index: 3, kind: input, shape index: {}]   ;;  %s2077_s4 = inlined_call_operand.vmem [shape: bf16[512,128], index: 4, kind: output, shape index: {}]  }
   0x1   :  { %v1654_v0 = vld [vmem:[%s2073_s1 + $0x38] sm:$0xff]   ;;  %v1655_v1 = vld [vmem:[%s2073_s1 + $0x30] sm:$0xff]   ;;  %v1656_v2 = vld [vmem:[%s2073_s1 + $0x28] sm:$0xff]  }
   0x2   :  { %1558 = vmatprep.subr.bf16.mxu0 %v1654_v0  ;;  %1638 = vmatprep.subr.bf16.mxu1 %v1654_v0  ;;  %v1657_v3 = vld [vmem:[%s2073_s1 + $0x20] sm:$0xff]   ;;  %v1658_v6 = vld [vmem:[%s2073_s1 + $0x18] sm:$0xff]   ;;  %v1659_v7 = vld [vmem:[%s2073_s1 + $0x10] sm:$0xff]  }
   0x3   :  { %1559 = vmatpush3.bf16.msra.mxu0 %v1654_v0  ;;  %1646 = vmatpush3.bf16.msra.mxu1 %v1654_v0  ;;  %v1662_v4 = vld [vmem:[%s2074_s0] sm:$0xff]   ;;  %v1660_v8 = vld [vmem:[%s2073_s1 + $0x8] sm:$0xff]   ;;  %v1666_v12 = vld [vmem:[%s2074_s0 + $0x10] sm:$0xff]  }
   0x4   :  { %1560 = vmatprep.subr.bf16.mxu0 %v1655_v1  ;;  %1639 = vmatprep.subr.bf16.mxu1 %v1655_v1  ;;  %v1663_v5 = vld [vmem:[%s2074_s0 + $0x80] sm:$0xff]   ;;  %v1664_v10 = vld [vmem:[%s2074_s0 + $0x8] sm:$0xff]   ;;  %v1667_v13 = vld [vmem:[%s2074_s0 + $0x90] sm:$0xff]  }
   0x5   :  { %1574 = vmatprep.mubr.bf16.mxu0 %v1662_v4  ;;  %1606 = vmatprep.mubr.bf16.mxu1 %v1663_v5  ;;  %v1661_v9 = vld [vmem:[%s2073_s1] sm:$0xff]   ;;  %v1665_v11 = vld [vmem:[%s2074_s0 + $0x88] sm:$0xff]   ;;  %v1668_v14 = vld [vmem:[%s2074_s0 + $0x18] sm:$0xff]  }
   0x6   :  { %v1669_v15 = vld [vmem:[%s2074_s0 + $0x98] sm:$0xff]   ;;  %v1670_v16 = vld [vmem:[%s2074_s0 + $0x20] sm:$0xff]   ;;  %v1672_v18 = vld [vmem:[%s2074_s0 + $0x28] sm:$0xff]  }
   0x7   :  { %1561 = vmatpush3.bf16.msra.mxu0 %v1655_v1  ;;  %1647 = vmatpush3.bf16.msra.mxu1 %v1655_v1  ;;  %v1671_v17 = vld [vmem:[%s2074_s0 + $0xa0] sm:$0xff]   ;;  %v1673_v19 = vld [vmem:[%s2074_s0 + $0xa8] sm:$0xff]   ;;  %v1674_v20 = vld [vmem:[%s2074_s0 + $0x30] sm:$0xff]  }
   0x8   :  { %1562 = vmatprep.subr.bf16.mxu0 %v1656_v2  ;;  %1640 = vmatprep.subr.bf16.mxu1 %v1656_v2  ;;  %v1675_v21 = vld [vmem:[%s2074_s0 + $0xb0] sm:$0xff]   ;;  %v1676_v22 = vld [vmem:[%s2074_s0 + $0x38] sm:$0xff]   ;;  %v1678_v24 = vld [vmem:[%s2074_s0 + $0x40] sm:$0xff]  }
   0x9   :  { %v1677_v23 = vld [vmem:[%s2074_s0 + $0xb8] sm:$0xff]   ;;  %v1679_v25 = vld [vmem:[%s2074_s0 + $0xc0] sm:$0xff]   ;;  %v1680_v26 = vld [vmem:[%s2074_s0 + $0x48] sm:$0xff]  }
   0xa   :  { %v1681_v27 = vld [vmem:[%s2074_s0 + $0xc8] sm:$0xff]   ;;  %v1682_v28 = vld [vmem:[%s2074_s0 + $0x50] sm:$0xff]   ;;  %v1684_v30 = vld [vmem:[%s2074_s0 + $0x58] sm:$0xff]  }
   0xb   :  { %1563 = vmatpush3.bf16.msra.mxu0 %v1656_v2  ;;  %1648 = vmatpush3.bf16.msra.mxu1 %v1656_v2  ;;  %v1683_v29 = vld [vmem:[%s2074_s0 + $0xd0] sm:$0xff]   ;;  %v1685_v31 = vld [vmem:[%s2074_s0 + $0xd8] sm:$0xff]   ;;  %v1686_v32 = vld [vmem:[%s2074_s0 + $0x60] sm:$0xff]  }
   0xc   :  { %1564 = vmatprep.subr.bf16.mxu0 %v1657_v3  ;;  %1641 = vmatprep.subr.bf16.mxu1 %v1657_v3  ;;  %v1687_v33 = vld [vmem:[%s2074_s0 + $0xe0] sm:$0xff]   ;;  %v1688_v34 = vld [vmem:[%s2074_s0 + $0x68] sm:$0xff]   ;;  %v1690_v36 = vld [vmem:[%s2074_s0 + $0x70] sm:$0xff]  }
   0xd   :  { %v1689_v35 = vld [vmem:[%s2074_s0 + $0xe8] sm:$0xff]   ;;  %v1691_v37 = vld [vmem:[%s2074_s0 + $0xf0] sm:$0xff]   ;;  %v1692_v38 = vld [vmem:[%s2074_s0 + $0x78] sm:$0xff]  }
   0xe   :  { %v1693_v39 = vld [vmem:[%s2074_s0 + $0xf8] sm:$0xff]   ;;  %v1842_v40 = vld [vmem:[%s2075_s2] ss:$0 sm:$0xff] }
   0xf   :  { %1565 = vmatpush3.bf16.msra.mxu0 %v1657_v3  ;;  %1649 = vmatpush3.bf16.msra.mxu1 %v1657_v3  ;;  %v1849_v45 = vld [vmem:[%s2076_s3] ss:$0 sm:$0xff] }
  0x10   :  { %1566 = vmatprep.subr.bf16.mxu0 %v1658_v6  ;;  %1642 = vmatprep.subr.bf16.mxu1 %v1658_v6 }
  0x13   :  { %1567 = vmatpush3.bf16.msra.mxu0 %v1658_v6  ;;  %1650 = vmatpush3.bf16.msra.mxu1 %v1658_v6 }
  0x14   :  { %1568 = vmatprep.subr.bf16.mxu0 %v1659_v7  ;;  %1643 = vmatprep.subr.bf16.mxu1 %v1659_v7 }
  0x17   :  { %1569 = vmatpush3.bf16.msra.mxu0 %v1659_v7  ;;  %1651 = vmatpush3.bf16.msra.mxu1 %v1659_v7 }
  0x18   :  { %1570 = vmatprep.subr.bf16.mxu0 %v1660_v8  ;;  %1644 = vmatprep.subr.bf16.mxu1 %v1660_v8 }
  0x1b   :  { %1571 = vmatpush3.bf16.msra.mxu0 %v1660_v8  ;;  %1652 = vmatpush3.bf16.msra.mxu1 %v1660_v8 }
  0x1c   :  { %1572 = vmatprep.subr.bf16.mxu0 %v1661_v9  ;;  %1645 = vmatprep.subr.bf16.mxu1 %v1661_v9 }
  0x1f   :  { %1573 = vmatpush3.bf16.msra.mxu0 %v1661_v9  ;;  %1653 = vmatpush3.bf16.msra.mxu1 %v1661_v9 }
  0x22   :  { %1575 = vmatmul.mubr.bf16.vlgmr.msra.gmra.mxu0 %v1664_v10  ;;  %1607 = vmatmul.mubr.bf16.vlgmr.msra.gmra.mxu1 %v1665_v11 }
  0x23   :  { %1578 = vmatprep.mubr.bf16.mxu0 %v1666_v12  ;;  %1610 = vmatprep.mubr.bf16.mxu1 %v1667_v13 }
  0x2a   :  { %1579 = vmatmul.mubr.bf16.gmra.mxu0 %v1668_v14  ;;  %1611 = vmatmul.mubr.bf16.gmra.mxu1 %v1669_v15 }
  0x2b   :  { %1582 = vmatprep.mubr.bf16.mxu0 %v1670_v16  ;;  %1614 = vmatprep.mubr.bf16.mxu1 %v1671_v17 }
  0x32   :  { %1583 = vmatmul.mubr.bf16.gmra.mxu0 %v1672_v18  ;;  %1615 = vmatmul.mubr.bf16.gmra.mxu1 %v1673_v19 }
  0x33   :  { %1586 = vmatprep.mubr.bf16.mxu0 %v1674_v20  ;;  %1618 = vmatprep.mubr.bf16.mxu1 %v1675_v21 }
  0x3a   :  { %1587 = vmatmul.mubr.bf16.gmra.mxu0 %v1676_v22  ;;  %1619 = vmatmul.mubr.bf16.gmra.mxu1 %v1677_v23 }
  0x3b   :  { %1590 = vmatprep.mubr.bf16.mxu0 %v1678_v24  ;;  %1622 = vmatprep.mubr.bf16.mxu1 %v1679_v25 }
  0x42   :  { %1591 = vmatmul.mubr.bf16.gmra.mxu0 %v1680_v26  ;;  %1623 = vmatmul.mubr.bf16.gmra.mxu1 %v1681_v27 }
  0x43   :  { %1594 = vmatprep.mubr.bf16.mxu0 %v1682_v28  ;;  %1626 = vmatprep.mubr.bf16.mxu1 %v1683_v29 }
  0x4a   :  { %1595 = vmatmul.mubr.bf16.gmra.mxu0 %v1684_v30  ;;  %1627 = vmatmul.mubr.bf16.gmra.mxu1 %v1685_v31 }
  0x4b   :  { %1598 = vmatprep.mubr.bf16.mxu0 %v1686_v32  ;;  %1630 = vmatprep.mubr.bf16.mxu1 %v1687_v33 }
  0x52   :  { %1599 = vmatmul.mubr.bf16.gmra.mxu0 %v1688_v34  ;;  %1631 = vmatmul.mubr.bf16.gmra.mxu1 %v1689_v35 }
  0x53   :  { %1602 = vmatprep.mubr.bf16.mxu0 %v1690_v36  ;;  %1634 = vmatprep.mubr.bf16.mxu1 %v1691_v37 }
  0x5a   :  { %1603 = vmatmul.mubr.bf16.gmra.mxu0 %v1692_v38  ;;  %1635 = vmatmul.mubr.bf16.gmra.mxu1 %v1693_v39 }
  0xe2   :  { %v1576_v41 = vpop.f32.mrf.mxu0  ;;  %v1608_v42 = vpop.f32.mrf.mxu1 }
  0xe3   :  { %v636_v43 = vmul.f32 %v1576_v41, %v1842_v40  ;;  %v668_v44 = vmul.f32 %v1608_v42, %v1842_v40 }
  0xe4   :  { %v372_v46 = vpop.f32.mrf.mxu0  ;;  %v500_v47 = vpop.f32.mrf.mxu1 }
  0xe5   :  { %v634_v48 = vmul.f32 %v1842_v40, %v372_v46  ;;  %v666_v49 = vmul.f32 %v1842_v40, %v500_v47  ;;  %v707_v52 = vadd.f32 %v1849_v45, %v636_v43  ;;  %v739_v53 = vadd.f32 %v1849_v45, %v668_v44 }
  0xe6   :  { %v1577_v50 = vpop.f32.mrf.mxu0  ;;  %v1609_v51 = vpop.f32.mrf.mxu1 }
  0xe7   :  { %v637_v54 = vmul.f32 %v1577_v50, %v1842_v40  ;;  %v669_v55 = vmul.f32 %v1609_v51, %v1842_v40  ;;  %v705_v58 = vadd.f32 %v1849_v45, %v634_v48  ;;  %v737_v59 = vadd.f32 %v1849_v45, %v666_v49 }
  0xe8   :  { %v375_v56 = vpop.f32.mrf.mxu0  ;;  %v503_v57 = vpop.f32.mrf.mxu1  ;;  %v771_v2 = vmax.f32 %v707_v52, 0.0  ;;  %v803_v3 = vmax.f32 %v739_v53, 0.0 }
  0xe9   :  { %v635_v60 = vmul.f32 %v1842_v40, %v375_v56  ;;  %v667_v61 = vmul.f32 %v1842_v40, %v503_v57  ;;  %v708_v62 = vadd.f32 %v1849_v45, %v637_v54  ;;  %v740_v63 = vadd.f32 %v1849_v45, %v669_v55 }
  0xea   :  { %v1580_v0 = vpop.f32.mrf.mxu0  ;;  %v1612_v1 = vpop.f32.mrf.mxu1  ;;  %v769_v12 = vmax.f32 %v705_v58, 0.0  ;;  %v801_v13 = vmax.f32 %v737_v59, 0.0 }
  0xeb   :  { %v706_v4 = vadd.f32 %v1849_v45, %v635_v60  ;;  %v738_v5 = vadd.f32 %v1849_v45, %v667_v61  ;;  %v772_v6 = vmax.f32 %v708_v62, 0.0  ;;  %v804_v7 = vmax.f32 %v740_v63, 0.0 }
  0xec   :  { %v640_v8 = vmul.f32 %v1580_v0, %v1842_v40  ;;  %v672_v9 = vmul.f32 %v1612_v1, %v1842_v40  ;;  %v388_v10 = vpop.f32.mrf.mxu0  ;;  %v516_v11 = vpop.f32.mrf.mxu1 }
  0xed   :  { %v770_v14 = vmax.f32 %v706_v4, 0.0  ;;  %v802_v15 = vmax.f32 %v738_v5, 0.0  ;;  %v1335_v16 = vpack.c.bf16 %v772_v6, %v771_v2  ;;  %v1415_v17 = vpack.c.bf16 %v804_v7, %v803_v3 }
  0xee   :  { %v638_v18 = vmul.f32 %v1842_v40, %v388_v10  ;;  %v670_v19 = vmul.f32 %v1842_v40, %v516_v11  ;;  %v1581_v20 = vpop.f32.mrf.mxu0  ;;  %v1613_v21 = vpop.f32.mrf.mxu1  ;;  %v711_v24 = vadd.f32 %v1849_v45, %v640_v8  ;;  %v743_v25 = vadd.f32 %v1849_v45, %v672_v9 }
  0xef   :  { %v1330_v22 = vpack.c.bf16 %v770_v14, %v769_v12  ;;  %v1410_v23 = vpack.c.bf16 %v802_v15, %v801_v13  ;;  %1487 = vst [vmem:[%s2077_s4 + $0x8] sm:$0xff] %v1335_v16   ;;  %1503 = vst [vmem:[%s2077_s4 + $0x88] sm:$0xff] %v1415_v17   ;;  %v641_v26 = vmul.f32 %v1581_v20, %v1842_v40 }
  0xf0   :  { %v673_v27 = vmul.f32 %v1613_v21, %v1842_v40  ;;  %v391_v28 = vpop.f32.mrf.mxu0  ;;  %v519_v29 = vpop.f32.mrf.mxu1  ;;  %v709_v30 = vadd.f32 %v1849_v45, %v638_v18  ;;  %v741_v31 = vadd.f32 %v1849_v45, %v670_v19  ;;  %v775_v43 = vmax.f32 %v711_v24, 0.0 }
  0xf1   :  { %1331 = vst [vmem:[%s2077_s4] sm:$0xff] %v1330_v22   ;;  %1502 = vst [vmem:[%s2077_s4 + $0x80] sm:$0xff] %v1410_v23   ;;  %v639_v32 = vmul.f32 %v1842_v40, %v391_v28  ;;  %v671_v33 = vmul.f32 %v1842_v40, %v519_v29  ;;  %v712_v34 = vadd.f32 %v1849_v45, %v641_v26  ;;  %v807_v44 = vmax.f32 %v743_v25, 0.0 }
  0xf2   :  { %v744_v35 = vadd.f32 %v1849_v45, %v673_v27  ;;  %v1584_v36 = vpop.f32.mrf.mxu0  ;;  %v1616_v37 = vpop.f32.mrf.mxu1  ;;  %v773_v50 = vmax.f32 %v709_v30, 0.0  ;;  %v805_v51 = vmax.f32 %v741_v31, 0.0 }
  0xf3   :  { %v710_v38 = vadd.f32 %v1849_v45, %v639_v32  ;;  %v742_v39 = vadd.f32 %v1849_v45, %v671_v33  ;;  %v644_v41 = vmul.f32 %v1584_v36, %v1842_v40  ;;  %v676_v42 = vmul.f32 %v1616_v37, %v1842_v40 }
  0xf4   :  { %v776_v46 = vmax.f32 %v712_v34, 0.0  ;;  %v808_v47 = vmax.f32 %v744_v35, 0.0  ;;  %v404_v48 = vpop.f32.mrf.mxu0  ;;  %v532_v49 = vpop.f32.mrf.mxu1 }
  0xf5   :  { %v774_v52 = vmax.f32 %v710_v38, 0.0  ;;  %v806_v53 = vmax.f32 %v742_v39, 0.0  ;;  %v642_v56 = vmul.f32 %v1842_v40, %v404_v48  ;;  %v674_v57 = vmul.f32 %v1842_v40, %v532_v49 }
  0xf6   :  { %v1345_v54 = vpack.c.bf16 %v776_v46, %v775_v43  ;;  %v1425_v55 = vpack.c.bf16 %v808_v47, %v807_v44  ;;  %v1585_v58 = vpop.f32.mrf.mxu0  ;;  %v1617_v59 = vpop.f32.mrf.mxu1  ;;  %v715_v62 = vadd.f32 %v1849_v45, %v644_v41  ;;  %v747_v63 = vadd.f32 %v1849_v45, %v676_v42 }
  0xf7   :  { %v1340_v60 = vpack.c.bf16 %v774_v52, %v773_v50  ;;  %v1420_v61 = vpack.c.bf16 %v806_v53, %v805_v51  ;;  %v645_v0 = vmul.f32 %v1585_v58, %v1842_v40  ;;  %v677_v1 = vmul.f32 %v1617_v59, %v1842_v40 }
  0xf8   :  { %1489 = vst [vmem:[%s2077_s4 + $0x18] sm:$0xff] %v1345_v54   ;;  %1505 = vst [vmem:[%s2077_s4 + $0x98] sm:$0xff] %v1425_v55   ;;  %v407_v2 = vpop.f32.mrf.mxu0  ;;  %v535_v3 = vpop.f32.mrf.mxu1  ;;  %v713_v4 = vadd.f32 %v1849_v45, %v642_v56  ;;  %v745_v5 = vadd.f32 %v1849_v45, %v674_v57  ;;  %v779_v12 = vmax.f32 %v715_v62, 0.0  ;;  %v811_v13 = vmax.f32 %v747_v63, 0.0 }
  0xf9   :  { %1488 = vst [vmem:[%s2077_s4 + $0x10] sm:$0xff] %v1340_v60   ;;  %1504 = vst [vmem:[%s2077_s4 + $0x90] sm:$0xff] %v1420_v61   ;;  %v643_v6 = vmul.f32 %v1842_v40, %v407_v2  ;;  %v675_v7 = vmul.f32 %v1842_v40, %v535_v3  ;;  %v716_v8 = vadd.f32 %v1849_v45, %v645_v0 }
  0xfa   :  { %v748_v9 = vadd.f32 %v1849_v45, %v677_v1  ;;  %v1588_v10 = vpop.f32.mrf.mxu0  ;;  %v1620_v11 = vpop.f32.mrf.mxu1  ;;  %v777_v22 = vmax.f32 %v713_v4, 0.0  ;;  %v809_v23 = vmax.f32 %v745_v5, 0.0 }
  0xfb   :  { %v714_v14 = vadd.f32 %v1849_v45, %v643_v6  ;;  %v746_v15 = vadd.f32 %v1849_v45, %v675_v7  ;;  %v780_v16 = vmax.f32 %v716_v8, 0.0  ;;  %v648_v18 = vmul.f32 %v1588_v10, %v1842_v40 }
  0xfc   :  { %v812_v17 = vmax.f32 %v748_v9, 0.0  ;;  %v680_v19 = vmul.f32 %v1620_v11, %v1842_v40  ;;  %v420_v20 = vpop.f32.mrf.mxu0  ;;  %v548_v21 = vpop.f32.mrf.mxu1 }
  0xfd   :  { %v778_v24 = vmax.f32 %v714_v14, 0.0  ;;  %v810_v25 = vmax.f32 %v746_v15, 0.0  ;;  %v1355_v26 = vpack.c.bf16 %v780_v16, %v779_v12  ;;  %v646_v28 = vmul.f32 %v1842_v40, %v420_v20 }
  0xfe   :  { %v1435_v27 = vpack.c.bf16 %v812_v17, %v811_v13  ;;  %v678_v29 = vmul.f32 %v1842_v40, %v548_v21  ;;  %v1589_v30 = vpop.f32.mrf.mxu0  ;;  %v1621_v31 = vpop.f32.mrf.mxu1  ;;  %v719_v34 = vadd.f32 %v1849_v45, %v648_v18  ;;  %v751_v35 = vadd.f32 %v1849_v45, %v680_v19 }
  0xff   :  { %v1350_v32 = vpack.c.bf16 %v778_v24, %v777_v22  ;;  %v1430_v33 = vpack.c.bf16 %v810_v25, %v809_v23  ;;  %1491 = vst [vmem:[%s2077_s4 + $0x28] sm:$0xff] %v1355_v26   ;;  %v649_v36 = vmul.f32 %v1589_v30, %v1842_v40  ;;  %v681_v37 = vmul.f32 %v1621_v31, %v1842_v40 }
 0x100   :  { %1507 = vst [vmem:[%s2077_s4 + $0xa8] sm:$0xff] %v1435_v27   ;;  %v423_v38 = vpop.f32.mrf.mxu0  ;;  %v551_v39 = vpop.f32.mrf.mxu1  ;;  %v717_v41 = vadd.f32 %v1849_v45, %v646_v28  ;;  %v749_v42 = vadd.f32 %v1849_v45, %v678_v29  ;;  %v783_v54 = vmax.f32 %v719_v34, 0.0  ;;  %v815_v55 = vmax.f32 %v751_v35, 0.0 }
 0x101   :  { %1490 = vst [vmem:[%s2077_s4 + $0x20] sm:$0xff] %v1350_v32   ;;  %1506 = vst [vmem:[%s2077_s4 + $0xa0] sm:$0xff] %v1430_v33   ;;  %v647_v43 = vmul.f32 %v1842_v40, %v423_v38  ;;  %v679_v44 = vmul.f32 %v1842_v40, %v551_v39  ;;  %v720_v46 = vadd.f32 %v1849_v45, %v649_v36 }
 0x102   :  { %v752_v47 = vadd.f32 %v1849_v45, %v681_v37  ;;  %v1592_v48 = vpop.f32.mrf.mxu0  ;;  %v1624_v49 = vpop.f32.mrf.mxu1  ;;  %v781_v60 = vmax.f32 %v717_v41, 0.0  ;;  %v813_v61 = vmax.f32 %v749_v42, 0.0 }
 0x103   :  { %v718_v50 = vadd.f32 %v1849_v45, %v647_v43  ;;  %v750_v51 = vadd.f32 %v1849_v45, %v679_v44  ;;  %v652_v52 = vmul.f32 %v1592_v48, %v1842_v40  ;;  %v684_v53 = vmul.f32 %v1624_v49, %v1842_v40 }
 0x104   :  { %v784_v56 = vmax.f32 %v720_v46, 0.0  ;;  %v816_v57 = vmax.f32 %v752_v47, 0.0  ;;  %v436_v58 = vpop.f32.mrf.mxu0  ;;  %v564_v59 = vpop.f32.mrf.mxu1 }
 0x105   :  { %v782_v62 = vmax.f32 %v718_v50, 0.0  ;;  %v814_v63 = vmax.f32 %v750_v51, 0.0  ;;  %v650_v2 = vmul.f32 %v1842_v40, %v436_v58  ;;  %v682_v3 = vmul.f32 %v1842_v40, %v564_v59 }
 0x106   :  { %v1365_v0 = vpack.c.bf16 %v784_v56, %v783_v54  ;;  %v1445_v1 = vpack.c.bf16 %v816_v57, %v815_v55  ;;  %v1593_v4 = vpop.f32.mrf.mxu0  ;;  %v1625_v5 = vpop.f32.mrf.mxu1  ;;  %v723_v8 = vadd.f32 %v1849_v45, %v652_v52  ;;  %v755_v9 = vadd.f32 %v1849_v45, %v684_v53 }
 0x107   :  { %v1360_v6 = vpack.c.bf16 %v782_v62, %v781_v60  ;;  %v1440_v7 = vpack.c.bf16 %v814_v63, %v813_v61  ;;  %v653_v10 = vmul.f32 %v1593_v4, %v1842_v40  ;;  %v685_v11 = vmul.f32 %v1625_v5, %v1842_v40 }
 0x108   :  { %1493 = vst [vmem:[%s2077_s4 + $0x38] sm:$0xff] %v1365_v0   ;;  %1509 = vst [vmem:[%s2077_s4 + $0xb8] sm:$0xff] %v1445_v1   ;;  %v439_v12 = vpop.f32.mrf.mxu0  ;;  %v567_v13 = vpop.f32.mrf.mxu1  ;;  %v721_v14 = vadd.f32 %v1849_v45, %v650_v2  ;;  %v753_v15 = vadd.f32 %v1849_v45, %v682_v3  ;;  %v787_v22 = vmax.f32 %v723_v8, 0.0  ;;  %v819_v23 = vmax.f32 %v755_v9, 0.0 }
 0x109   :  { %1492 = vst [vmem:[%s2077_s4 + $0x30] sm:$0xff] %v1360_v6   ;;  %1508 = vst [vmem:[%s2077_s4 + $0xb0] sm:$0xff] %v1440_v7   ;;  %v651_v16 = vmul.f32 %v1842_v40, %v439_v12  ;;  %v683_v17 = vmul.f32 %v1842_v40, %v567_v13  ;;  %v724_v18 = vadd.f32 %v1849_v45, %v653_v10 }
 0x10a   :  { %v756_v19 = vadd.f32 %v1849_v45, %v685_v11  ;;  %v1596_v20 = vpop.f32.mrf.mxu0  ;;  %v1628_v21 = vpop.f32.mrf.mxu1  ;;  %v785_v32 = vmax.f32 %v721_v14, 0.0  ;;  %v817_v33 = vmax.f32 %v753_v15, 0.0 }
 0x10b   :  { %v722_v24 = vadd.f32 %v1849_v45, %v651_v16  ;;  %v754_v25 = vadd.f32 %v1849_v45, %v683_v17  ;;  %v788_v26 = vmax.f32 %v724_v18, 0.0  ;;  %v656_v28 = vmul.f32 %v1596_v20, %v1842_v40 }
 0x10c   :  { %v820_v27 = vmax.f32 %v756_v19, 0.0  ;;  %v688_v29 = vmul.f32 %v1628_v21, %v1842_v40  ;;  %v452_v30 = vpop.f32.mrf.mxu0  ;;  %v580_v31 = vpop.f32.mrf.mxu1 }
 0x10d   :  { %v786_v34 = vmax.f32 %v722_v24, 0.0  ;;  %v818_v35 = vmax.f32 %v754_v25, 0.0  ;;  %v1375_v36 = vpack.c.bf16 %v788_v26, %v787_v22  ;;  %v654_v38 = vmul.f32 %v1842_v40, %v452_v30 }
 0x10e   :  { %v1455_v37 = vpack.c.bf16 %v820_v27, %v819_v23  ;;  %v686_v39 = vmul.f32 %v1842_v40, %v580_v31  ;;  %v1597_v41 = vpop.f32.mrf.mxu0  ;;  %v1629_v42 = vpop.f32.mrf.mxu1  ;;  %v727_v46 = vadd.f32 %v1849_v45, %v656_v28  ;;  %v759_v47 = vadd.f32 %v1849_v45, %v688_v29 }
 0x10f   :  { %v1370_v43 = vpack.c.bf16 %v786_v34, %v785_v32  ;;  %v1450_v44 = vpack.c.bf16 %v818_v35, %v817_v33  ;;  %1495 = vst [vmem:[%s2077_s4 + $0x48] sm:$0xff] %v1375_v36   ;;  %v657_v48 = vmul.f32 %v1597_v41, %v1842_v40  ;;  %v689_v49 = vmul.f32 %v1629_v42, %v1842_v40 }
 0x110   :  { %1511 = vst [vmem:[%s2077_s4 + $0xc8] sm:$0xff] %v1455_v37   ;;  %v455_v50 = vpop.f32.mrf.mxu0  ;;  %v583_v51 = vpop.f32.mrf.mxu1  ;;  %v725_v52 = vadd.f32 %v1849_v45, %v654_v38  ;;  %v757_v53 = vadd.f32 %v1849_v45, %v686_v39  ;;  %v791_v0 = vmax.f32 %v727_v46, 0.0  ;;  %v823_v1 = vmax.f32 %v759_v47, 0.0 }
 0x111   :  { %1494 = vst [vmem:[%s2077_s4 + $0x40] sm:$0xff] %v1370_v43   ;;  %1510 = vst [vmem:[%s2077_s4 + $0xc0] sm:$0xff] %v1450_v44   ;;  %v655_v54 = vmul.f32 %v1842_v40, %v455_v50  ;;  %v687_v55 = vmul.f32 %v1842_v40, %v583_v51  ;;  %v728_v56 = vadd.f32 %v1849_v45, %v657_v48 }
 0x112   :  { %v760_v57 = vadd.f32 %v1849_v45, %v689_v49  ;;  %v1600_v58 = vpop.f32.mrf.mxu0  ;;  %v1632_v59 = vpop.f32.mrf.mxu1  ;;  %v789_v6 = vmax.f32 %v725_v52, 0.0  ;;  %v821_v7 = vmax.f32 %v757_v53, 0.0 }
 0x113   :  { %v726_v60 = vadd.f32 %v1849_v45, %v655_v54  ;;  %v758_v61 = vadd.f32 %v1849_v45, %v687_v55  ;;  %v660_v62 = vmul.f32 %v1600_v58, %v1842_v40  ;;  %v692_v63 = vmul.f32 %v1632_v59, %v1842_v40 }
 0x114   :  { %v792_v2 = vmax.f32 %v728_v56, 0.0  ;;  %v824_v3 = vmax.f32 %v760_v57, 0.0  ;;  %v468_v4 = vpop.f32.mrf.mxu0  ;;  %v596_v5 = vpop.f32.mrf.mxu1 }
 0x115   :  { %v790_v8 = vmax.f32 %v726_v60, 0.0  ;;  %v822_v9 = vmax.f32 %v758_v61, 0.0  ;;  %v658_v12 = vmul.f32 %v1842_v40, %v468_v4  ;;  %v690_v13 = vmul.f32 %v1842_v40, %v596_v5 }
 0x116   :  { %v1385_v10 = vpack.c.bf16 %v792_v2, %v791_v0  ;;  %v1465_v11 = vpack.c.bf16 %v824_v3, %v823_v1  ;;  %v1601_v14 = vpop.f32.mrf.mxu0  ;;  %v1633_v15 = vpop.f32.mrf.mxu1  ;;  %v731_v18 = vadd.f32 %v1849_v45, %v660_v62  ;;  %v763_v19 = vadd.f32 %v1849_v45, %v692_v63 }
 0x117   :  { %v1380_v16 = vpack.c.bf16 %v790_v8, %v789_v6  ;;  %v1460_v17 = vpack.c.bf16 %v822_v9, %v821_v7  ;;  %v661_v20 = vmul.f32 %v1601_v14, %v1842_v40  ;;  %v693_v21 = vmul.f32 %v1633_v15, %v1842_v40 }
 0x118   :  { %1497 = vst [vmem:[%s2077_s4 + $0x58] sm:$0xff] %v1385_v10   ;;  %1513 = vst [vmem:[%s2077_s4 + $0xd8] sm:$0xff] %v1465_v11   ;;  %v471_v22 = vpop.f32.mrf.mxu0  ;;  %v599_v23 = vpop.f32.mrf.mxu1  ;;  %v729_v24 = vadd.f32 %v1849_v45, %v658_v12  ;;  %v761_v25 = vadd.f32 %v1849_v45, %v690_v13  ;;  %v795_v32 = vmax.f32 %v731_v18, 0.0  ;;  %v827_v33 = vmax.f32 %v763_v19, 0.0 }
 0x119   :  { %1496 = vst [vmem:[%s2077_s4 + $0x50] sm:$0xff] %v1380_v16   ;;  %1512 = vst [vmem:[%s2077_s4 + $0xd0] sm:$0xff] %v1460_v17   ;;  %v659_v26 = vmul.f32 %v1842_v40, %v471_v22  ;;  %v691_v27 = vmul.f32 %v1842_v40, %v599_v23  ;;  %v732_v28 = vadd.f32 %v1849_v45, %v661_v20 }
 0x11a   :  { %v764_v29 = vadd.f32 %v1849_v45, %v693_v21  ;;  %v1604_v30 = vpop.f32.mrf.mxu0  ;;  %v1636_v31 = vpop.f32.mrf.mxu1  ;;  %v793_v43 = vmax.f32 %v729_v24, 0.0  ;;  %v825_v44 = vmax.f32 %v761_v25, 0.0 }
 0x11b   :  { %v730_v34 = vadd.f32 %v1849_v45, %v659_v26  ;;  %v762_v35 = vadd.f32 %v1849_v45, %v691_v27  ;;  %v796_v36 = vmax.f32 %v732_v28, 0.0  ;;  %v664_v38 = vmul.f32 %v1604_v30, %v1842_v40 }
 0x11c   :  { %v828_v37 = vmax.f32 %v764_v29, 0.0  ;;  %v696_v39 = vmul.f32 %v1636_v31, %v1842_v40  ;;  %v484_v41 = vpop.f32.mrf.mxu0  ;;  %v612_v42 = vpop.f32.mrf.mxu1 }
 0x11d   :  { %v794_v46 = vmax.f32 %v730_v34, 0.0  ;;  %v826_v47 = vmax.f32 %v762_v35, 0.0  ;;  %v1395_v48 = vpack.c.bf16 %v796_v36, %v795_v32  ;;  %v662_v50 = vmul.f32 %v1842_v40, %v484_v41 }
 0x11e   :  { %v1475_v49 = vpack.c.bf16 %v828_v37, %v827_v33  ;;  %v694_v51 = vmul.f32 %v1842_v40, %v612_v42  ;;  %v1605_v52 = vpop.f32.mrf.mxu0  ;;  %v1637_v53 = vpop.f32.mrf.mxu1  ;;  %v735_v56 = vadd.f32 %v1849_v45, %v664_v38  ;;  %v767_v57 = vadd.f32 %v1849_v45, %v696_v39 }
 0x11f   :  { %v1390_v54 = vpack.c.bf16 %v794_v46, %v793_v43  ;;  %v1470_v55 = vpack.c.bf16 %v826_v47, %v825_v44  ;;  %1499 = vst [vmem:[%s2077_s4 + $0x68] sm:$0xff] %v1395_v48   ;;  %v665_v58 = vmul.f32 %v1605_v52, %v1842_v40  ;;  %v697_v59 = vmul.f32 %v1637_v53, %v1842_v40 }
 0x120   :  { %1515 = vst [vmem:[%s2077_s4 + $0xe8] sm:$0xff] %v1475_v49   ;;  %v487_v60 = vpop.f32.mrf.mxu0  ;;  %v615_v61 = vpop.f32.mrf.mxu1  ;;  %v733_v62 = vadd.f32 %v1849_v45, %v662_v50  ;;  %v765_v63 = vadd.f32 %v1849_v45, %v694_v51  ;;  %v799_v6 = vmax.f32 %v735_v56, 0.0  ;;  %v831_v7 = vmax.f32 %v767_v57, 0.0 }
 0x121   :  { %1498 = vst [vmem:[%s2077_s4 + $0x60] sm:$0xff] %v1390_v54   ;;  %1514 = vst [vmem:[%s2077_s4 + $0xe0] sm:$0xff] %v1470_v55   ;;  %v663_v0 = vmul.f32 %v1842_v40, %v487_v60  ;;  %v695_v1 = vmul.f32 %v1842_v40, %v615_v61  ;;  %v736_v2 = vadd.f32 %v1849_v45, %v665_v58 }
 0x122   :  { %v768_v3 = vadd.f32 %v1849_v45, %v697_v59  ;;  %v797_v10 = vmax.f32 %v733_v62, 0.0  ;;  %v829_v11 = vmax.f32 %v765_v63, 0.0 }
 0x123   :  { %v734_v4 = vadd.f32 %v1849_v45, %v663_v0  ;;  %v766_v5 = vadd.f32 %v1849_v45, %v695_v1  ;;  %v800_v8 = vmax.f32 %v736_v2, 0.0 }
 0x124   :  { %v832_v9 = vmax.f32 %v768_v3, 0.0 }
 0x125   :  { %v798_v12 = vmax.f32 %v734_v4, 0.0  ;;  %v830_v13 = vmax.f32 %v766_v5, 0.0  ;;  %v1405_v14 = vpack.c.bf16 %v800_v8, %v799_v6 }
 0x126   :  { %v1485_v15 = vpack.c.bf16 %v832_v9, %v831_v7 }
 0x127   :  { %v1400_v16 = vpack.c.bf16 %v798_v12, %v797_v10  ;;  %v1480_v40 = vpack.c.bf16 %v830_v13, %v829_v11  ;;  %1501 = vst [vmem:[%s2077_s4 + $0x78] sm:$0xff] %v1405_v14  }
 0x128   :  { %1517 = vst [vmem:[%s2077_s4 + $0xf8] sm:$0xff] %v1485_v15  }
 0x129   :  { %1500 = vst [vmem:[%s2077_s4 + $0x70] sm:$0xff] %v1400_v16   ;;  %1516 = vst [vmem:[%s2077_s4 + $0xf0] sm:$0xff] %v1480_v40  }

// kernel: bottleneck_forward.3
= control target key start
LH: loop header
LB: loop body
LE: loop exit
PB: predicated region body
PF: predicated region fallthrough
CT: control target
= control target key end

     0   :  { %s10803_s27 = smov 0   ;;  %s10805_s28 = smov 0   ;;  %s13291_s0 = inlined_call_operand.vmem [shape: bf16[2,4,64,128], index: 0, kind: input, shape index: {}]   ;;  %s13292_s1 = inlined_call_operand.vmem [shape: bf16[27,128,128], index: 1, kind: input, shape index: {}]   ;;  %s13293_s2 = inlined_call_operand.vmem [shape: f32[1,128], index: 2, kind: input, shape index: {}]   ;;  %s13294_s3 = inlined_call_operand.vmem [shape: f32[1,128], index: 3, kind: input, shape index: {}]   ;;  %s13295_s4 = inlined_call_operand.vmem [shape: bf16[128,128], index: 4, kind: input, shape index: {}]   ;;  %s13296_s5 = inlined_call_operand.vmem [shape: f32[1,128], index: 5, kind: input, shape index: {}]   ;;  %s13297_s6 = inlined_call_operand.vmem [shape: f32[1,128], index: 6, kind: input, shape index: {}]   ;;  %s13298_s7 = inlined_call_operand.vmem [shape: bf16[2,4,64,128], index: 7, kind: input, shape index: {}]   ;;  %s13299_s8 = inlined_call_operand.vmem [shape: bf16[2,4,64,128], index: 8, kind: output, shape index: {}]  }
   0x1   :  { %13300 = sst [smem:[#allocation5_spill]] %s13298_s7  ;;  %s10807_s29 = smov 0  }
   0x2   :  { %s10809_s30 = smov 0   ;;  %s10811_s9 = smov 0  }
   0x3 LB: > { %s30_s10 = sadd.s32 1, %s10740_s29  ;;  %s37_s11 = sadd.s32 1, %s10744_s30  ;;  %s10748_s9 = sphi %s10811_s9, %s18_s9   ;;  %s10744_s30 = sphi %s10809_s30, %s13329_s30   ;;  %s10740_s29 = sphi %s10807_s29, %s13328_s29   ;;  %s10736_s28 = sphi %s10805_s28, %s13327_s28   ;;  %s10732_s27 = sphi %s10803_s27, %s13326_s27  }
   0x4   : > { %p31_p0 = scmp.ge.s32.totalorder %s30_s10, 6  ;;  %p7617_p1 = scmp.ge.s32.totalorder %s10748_s9, 1 }
   0x5   : > { %p335_p2 = scmp.lt.s32.totalorder %s10748_s9, 13 }
   0x6   : > { %s13331_s10 = smov (%p31_p0, %s30_s10), 0  ;;  %s13333_s11 = smov (!%p31_p0, %s37_s11), %s10744_s30 }
   0x7   : > { %p336_p3 = pnand %p7617_p1, %p335_p2  ;;  %p39_p4 = scmp.ge.s32.totalorder %s13333_s11, 2 }
   0x8   : > { %s10836_s12 = sadd.s32 (!%p336_p3), 4294967295, %s10732_s27  ;;  %p402_p5 = scmp.lt.s32.totalorder (!%p336_p3), %s10736_s28, 1 }
   0x9   : > { %s13335_s11 = smov (%p39_p4, %s13333_s11), 0  ;;  %339 = sbr.rel (%p336_p3) target bundleno = 1641 (0x669), region = 52 }
   0xa   : > { %p398_p6 = scmp.gt.s32.totalorder (!%p336_p3), %s10836_s12, 0  ;;  %p7619_p7 = scmp.lt.s32.totalorder (!%p336_p3), %s10836_s12, 3 }
   0xb   : > { %s13301_s7 = sld [smem:[#allocation5_spill]] (!%p336_p3)  ;;  %p444_p9 = scmp.ge.s32.totalorder (!%p336_p3), %s10836_s12, 0 }
   0xc   : > { %p445_p10 = scmp.le.s32.totalorder (!%p336_p3), %s10836_s12, 3  ;;  %p7632_p12 = scmp.ne.s32.totalorder (!%p336_p3), %s10732_s27, 0 }
   0xe   : > { %s13337_s28 = smov (!%p402_p5, %s10736_s28), 1  ;;  %p10859_p11 = pnand %p445_p10, %p444_p9 }
   0xf   : > { %s399_s13 = scalar_select %p398_p6, %s10836_s12, 0 }
  0x10   : > { %s8564_s14 = sshll.u32 %s13337_s28, 7  ;;  %s7625_s21 = sshll.u32 %s13337_s28, 5 }
  0x11   : > { %s13339_s13 = smov (!%p7619_p7, %s399_s13), 3  ;;  %s10846_s17 = scalar_lea.vmem %s13301_s7, %s8564_s14 }
  0x12   : > { %s10851_s20 = scalar_lea.vmem %s13299_s8, %s8564_s14  ;;  %p404_p8 = scmp.lt.s32.totalorder %s13339_s13, 3 }
  0x14   : > { %s405_s22 = scalar_select %p404_p8, %s13339_s13, 3 }
  0x15   : > { %451 = sbr.rel (%p7632_p12) target bundleno = 47 (0x2f), region = 56 }
  0x16   : > { %s7624_s24 = sshll.u32 %s405_s22, 3 }
  0x17   : > { %s408_s25 = sadd.s32 %s7625_s21, %s7624_s24 }
  0x18   : > { %s7626_s26 = sshll.u32 %s408_s25, 2 }
  0x19   : > { %s10866_s7 = scalar_lea.vmem %s13291_s0, %s7626_s26 }
  0x1a   : > { %v10750_v0 = vmov 0.0  }
  0x1b   : > { %452 = vst [vmem:[#allocation3] sm:$0xff] %v10750_v0  ;;  %453 = vst [vmem:[#allocation3 + $0x8] sm:$0xff] %v10750_v0 }
  0x1c   : > { %454 = vst [vmem:[#allocation3 + $0x10] sm:$0xff] %v10750_v0  ;;  %455 = vst [vmem:[#allocation3 + $0x18] sm:$0xff] %v10750_v0 }
  0x1d   : > { %456 = vst [vmem:[#allocation3 + $0x20] sm:$0xff] %v10750_v0  ;;  %457 = vst [vmem:[#allocation3 + $0x28] sm:$0xff] %v10750_v0 }
  0x1e   : > { %458 = vst [vmem:[#allocation3 + $0x30] sm:$0xff] %v10750_v0  ;;  %459 = vst [vmem:[#allocation3 + $0x38] sm:$0xff] %v10750_v0 }
  0x1f   : > { %460 = vst [vmem:[#allocation3 + $0x40] sm:$0xff] %v10750_v0  ;;  %461 = vst [vmem:[#allocation3 + $0x48] sm:$0xff] %v10750_v0 }
  0x20   : > { %462 = vst [vmem:[#allocation3 + $0x50] sm:$0xff] %v10750_v0  ;;  %463 = vst [vmem:[#allocation3 + $0x58] sm:$0xff] %v10750_v0 }
  0x21   : > { %464 = vst [vmem:[#allocation3 + $0x60] sm:$0xff] %v10750_v0  ;;  %465 = vst [vmem:[#allocation3 + $0x68] sm:$0xff] %v10750_v0 }
  0x22   : > { %466 = vst [vmem:[#allocation3 + $0x70] sm:$0xff] %v10750_v0  ;;  %467 = vst [vmem:[#allocation3 + $0x78] sm:$0xff] %v10750_v0 }
  0x23   : > { %468 = vst [vmem:[#allocation3 + $0x80] sm:$0xff] %v10750_v0  ;;  %469 = vst [vmem:[#allocation3 + $0x88] sm:$0xff] %v10750_v0 }
  0x24   : > { %470 = vst [vmem:[#allocation3 + $0x90] sm:$0xff] %v10750_v0  ;;  %471 = vst [vmem:[#allocation3 + $0x98] sm:$0xff] %v10750_v0 }
  0x25   : > { %472 = vst [vmem:[#allocation3 + $0xa0] sm:$0xff] %v10750_v0  ;;  %473 = vst [vmem:[#allocation3 + $0xa8] sm:$0xff] %v10750_v0 }
  0x26   : > { %474 = vst [vmem:[#allocation3 + $0xb0] sm:$0xff] %v10750_v0  ;;  %475 = vst [vmem:[#allocation3 + $0xb8] sm:$0xff] %v10750_v0 }
  0x27   : > { %476 = vst [vmem:[#allocation3 + $0xc0] sm:$0xff] %v10750_v0  ;;  %477 = vst [vmem:[#allocation3 + $0xc8] sm:$0xff] %v10750_v0 }
  0x28   : > { %478 = vst [vmem:[#allocation3 + $0xd0] sm:$0xff] %v10750_v0  ;;  %479 = vst [vmem:[#allocation3 + $0xd8] sm:$0xff] %v10750_v0 }
  0x29   : > { %480 = vst [vmem:[#allocation3 + $0xe0] sm:$0xff] %v10750_v0  ;;  %481 = vst [vmem:[#allocation3 + $0xe8] sm:$0xff] %v10750_v0 }
  0x2a   : > { %482 = vst [vmem:[#allocation3 + $0xf0] sm:$0xff] %v10750_v0  ;;  %483 = vst [vmem:[#allocation3 + $0xf8] sm:$0xff] %v10750_v0 }
  0x2b   : > { %484 = vst [vmem:[#allocation3 + $0x100] sm:$0xff] %v10750_v0  ;;  %485 = vst [vmem:[#allocation3 + $0x108] sm:$0xff] %v10750_v0 }
  0x2c   : > { %486 = vst [vmem:[#allocation3 + $0x110] sm:$0xff] %v10750_v0  ;;  %487 = vst [vmem:[#allocation3 + $0x118] sm:$0xff] %v10750_v0 }
  0x2d   : > { %488 = vst [vmem:[#allocation3 + $0x120] sm:$0xff] %v10750_v0  ;;  %489 = vst [vmem:[#allocation3 + $0x128] sm:$0xff] %v10750_v0 }
  0x2e   : > { %490 = vst [vmem:[#allocation3 + $0x130] sm:$0xff] %v10750_v0  ;;  %491 = vst [vmem:[#allocation3 + $0x138] sm:$0xff] %v10750_v0 }
  0x2f PF: > { %493 = sbr.rel (%p10859_p11) target bundleno = 1337 (0x539), region = 60  ;;  %p672_p13 = scmp.ge.s32.totalorder (!%p10859_p11), %s10732_s27, 0 }
  0x30   : > { %p673_p0 = scmp.lt.s32.totalorder (!%p10859_p11), %s10732_s27, 4 }
  0x32   : > { %p10878_p1 = pnand (!%p10859_p11), %p673_p0, %p672_p13 }
  0x34   : > { %v507_v1 = vld [vmem:[%s10866_s7] sm:$0xf]  ;;  %vm526_vm0 = vcmask 1043457   ;;  %v10751_v2 = vmov 0   ;;  %vm527_vm1 = vsmask.f32 7942 }
  0x35   : > { %495 = vst [vmem:[#allocation2 + $0x4] sm:$0xf] %v10751_v2  ;;  %494 = vst [vmem:[#allocation2] sm:$0xf] %v10751_v2  ;;  %v516_v3 = vshrl.u32 %v507_v1, 16  ;;  %v519_v4 = vshll.u32 %v507_v1, 16 }
  0x36   : > { %496 = vst [vmem:[#allocation2 + $0x8] sm:$0xf] %v10751_v2  ;;  %497 = vst [vmem:[#allocation2 + $0xc] sm:$0xf] %v10751_v2  ;;  %vm532_vm2 = vcmask 1041408   ;;  %vm549_vm4 = vcmask 1043458  }
  0x37   : > { %498 = vst [vmem:[#allocation2 + $0x10] sm:$0xf] %v10751_v2  ;;  %499 = vst [vmem:[#allocation2 + $0x14] sm:$0xf] %v10751_v2  ;;  %vm533_vm3 = vsmask.f32 1280 }
  0x38   : > { %500 = vst [vmem:[#allocation2 + $0x18] sm:$0xf] %v10751_v2  ;;  %501 = vst [vmem:[#allocation2 + $0x1c] sm:$0xf] %v10751_v2  ;;  %v508_v5 = vld [vmem:[%s10866_s7 + $0x4] sm:$0xf] }
  0x39   : > { %502 = vst [vmem:[#allocation2 + $0x20] sm:$0xf] %v10751_v2  ;;  %503 = vst [vmem:[#allocation2 + $0x24] sm:$0xf] %v10751_v2  ;;  %vm555_vm5 = vcmask 1042432   ;;  %v518_v6 = vrot.slane %v516_v3, 6 }
  0x3a   : > { %504 = vst [vmem:[#allocation2 + $0x28] sm:$0xf] %v10751_v2  ;;  %505 = vst [vmem:[#allocation2 + $0x2c] sm:$0xf] %v10751_v2  ;;  %v521_v7 = vrot.slane %v519_v4, 7  ;;  %v539_v9 = vshrl.u32 %v508_v5, 16 }
  0x3b   : > { %506 = vst [vmem:[#allocation2 + $0x30] sm:$0xf] %v10751_v2  ;;  %vm10884_vm6 = vmand %vm526_vm0, %vm527_vm1  ;;  %v542_v10 = vshll.u32 %v508_v5, 16  ;;  %v509_v11 = vld [vmem:[%s10866_s7 + $0x8] sm:$0xf]  ;;  %vm572_vm11 = vcmask 1043459  }
  0x3c   : > { %vm10889_vm7 = vmand %vm532_vm2, %vm533_vm3  ;;  %vm550_vm8 = vsmask.f32 7946  ;;  %vm556_vm9 = vsmask.f32 2304  ;;  %v562_v13 = vshll.u32 %v509_v11, 16  ;;  %v565_v14 = vshrl.u32 %v509_v11, 16 }
  0x3d   : > { %v522_v15 = vor.u32 %v521_v7, %v518_v6  ;;  %v541_v16 = vrot.slane %v539_v9, 5  ;;  %v544_v17 = vrot.slane %v542_v10, 6  ;;  %vm10894_vm10 = vmand %vm549_vm4, %vm550_vm8  ;;  %v510_v19 = vld [vmem:[%s10866_s7 + $0xc] sm:$0xf]  ;;  %vm573_vm13 = vsmask.f32 7950 }
  0x3e   : > { %vm10900_vm12 = vmand %vm555_vm5, %vm556_vm9  ;;  %v564_v21 = vrot.slane %v562_v13, 5  ;;  %v567_v22 = vrot.slane %v565_v14, 4  ;;  %vm578_vm14 = vcmask 1043456   ;;  %vm579_vm0 = vsmask.f32 3328  ;;  %p2382_p2 = scmp.gt.s32.totalorder (!%p10878_p1), %s10732_s27, 0 }
  0x3f   : > { %v523_v23 = vrot.slane %v522_v15, 4  ;;  %v545_v24 = vor.u32 %v544_v17, %v541_v16  ;;  %vm10904_vm15 = vmand %vm572_vm11, %vm573_vm13  ;;  %v585_v26 = vshrl.u32 %v510_v19, 16  ;;  %v511_v27 = vld [vmem:[%s10866_s7 + $0x10] sm:$0xf]  ;;  %v529_v28 = vld [vmem:[#allocation2 + $0x4] sm:$0xe] }
  0x40   : > { %v535_v29 = vld [vmem:[#allocation2 + $0x8] sm:$0x3]  ;;  %v552_v30 = vld [vmem:[#allocation2 + $0x8] sm:$0xc]  ;;  %v568_v31 = vor.u32 %v567_v22, %v564_v21  ;;  %v530_v32 = vsel %vm10884_vm6, %v522_v15, %v529_v28  ;;  %v558_v36 = vld [vmem:[#allocation2 + $0xc] sm:$0x7] }
  0x41   : > { %v536_v33 = vsel %vm10889_vm7, %v523_v23, %v535_v29  ;;  %v553_v34 = vsel %vm10894_vm10, %v545_v24, %v552_v30  ;;  %v546_v35 = vrot.slane %v545_v24, 4  ;;  %v575_v37 = vld [vmem:[#allocation2 + $0xc] sm:$0x8]  ;;  %vm10916_vm1 = vmand %vm578_vm14, %vm579_vm0  ;;  %531 = vst [vmem:[#allocation2 + $0x4] sm:$0xe] %v530_v32  ;;  %v587_v42 = vrot.slane %v585_v26, 7 }
  0x42   : > { %537 = vst [vmem:[#allocation2 + $0x8] sm:$0x3] %v536_v33  ;;  %554 = vst [vmem:[#allocation2 + $0x8] sm:$0xc] %v553_v34  ;;  %v576_v39 = vsel %vm10904_vm15, %v564_v21, %v575_v37  ;;  %v569_v40 = vrot.slane %v568_v31, 4  ;;  %v588_v43 = vshll.u32 %v510_v19, 16 }
  0x43   : > { %v581_v41 = vld [vmem:[#allocation2 + $0x10] sm:$0xf]  ;;  %v559_v44 = vsel %vm10900_vm12, %v546_v35, %v558_v36  ;;  %577 = vst [vmem:[#allocation2 + $0xc] sm:$0x8] %v576_v39  ;;  %vm594_vm2 = vsmask.f32 7938 }
  0x44   : > { %v596_v45 = vld [vmem:[#allocation2 + $0x14] sm:$0xf]  ;;  %vm599_vm3 = vcmask 1040384   ;;  %v606_v46 = vshrl.u32 %v511_v27, 16  ;;  %560 = vst [vmem:[#allocation2 + $0xc] sm:$0x7] %v559_v44  ;;  %v582_v47 = vsel %vm10916_vm1, %v569_v40, %v581_v41  ;;  %v590_v48 = vor.u32 %v588_v43, %v587_v42  ;;  %vm10927_vm4 = vmand %vm578_vm14, %vm594_vm2 }
  0x45   : > { %v591_v50 = vrot.slane %v587_v42, 4  ;;  %vm600_vm5 = vsmask.f32 256  ;;  %v602_v51 = vld [vmem:[#allocation2 + $0x18] sm:$0x1]  ;;  %v609_v54 = vshll.u32 %v511_v27, 16 }
  0x46   : > { %583 = vst [vmem:[#allocation2 + $0x10] sm:$0xf] %v582_v47  ;;  %vm10931_vm8 = vmand %vm599_vm3, %vm600_vm5  ;;  %v608_v53 = vrot.slane %v606_v46, 6  ;;  %v597_v55 = vsel %vm10927_vm4, %v590_v48, %v596_v45  ;;  %v512_v57 = vld [vmem:[%s10866_s7 + $0x14] sm:$0xf]  ;;  %p7856_p3 = scmp.lt.s32.totalorder (!%p10878_p1), %s10732_s27, 3 }
  0x47   : > { %v603_v56 = vsel %vm10931_vm8, %v591_v50, %v602_v51  ;;  %598 = vst [vmem:[#allocation2 + $0x14] sm:$0xf] %v597_v55  ;;  %v611_v58 = vrot.slane %v609_v54, 7  ;;  %v623_v59 = vshrl.u32 %v512_v57, 16  ;;  %v626_v60 = vshll.u32 %v512_v57, 16 }
  0x48   : > { %604 = vst [vmem:[#allocation2 + $0x18] sm:$0x1] %v603_v56  ;;  %v513_v61 = vld [vmem:[%s10866_s7 + $0x18] sm:$0xf]  ;;  %v619_v63 = vld [vmem:[#allocation2 + $0x1c] sm:$0x3] }
  0x49   : > { %v616_v62 = vld [vmem:[#allocation2 + $0x18] sm:$0xe]  ;;  %v640_v0 = vshll.u32 %v513_v61, 16  ;;  %v643_v1 = vshrl.u32 %v513_v61, 16  ;;  %v612_v2 = vor.u32 %v611_v58, %v608_v53  ;;  %v625_v3 = vrot.slane %v623_v59, 5 }
  0x4a   : > { %v628_v4 = vrot.slane %v626_v60, 6  ;;  %v650_v5 = vld [vmem:[#allocation2 + $0x20] sm:$0x8]  ;;  %v514_v6 = vld [vmem:[%s10866_s7 + $0x1c] sm:$0xf] }
  0x4b   : > { %v633_v7 = vld [vmem:[#allocation2 + $0x1c] sm:$0xc]  ;;  %v642_v9 = vrot.slane %v640_v0, 5  ;;  %v645_v10 = vrot.slane %v643_v1, 4  ;;  %v657_v11 = vshrl.u32 %v514_v6, 16  ;;  %v660_v13 = vshll.u32 %v514_v6, 16 }
  0x4c   : > { %v617_v14 = vsel %vm10884_vm6, %v612_v2, %v616_v62  ;;  %v613_v15 = vrot.slane %v612_v2, 4  ;;  %v629_v16 = vor.u32 %v628_v4, %v625_v3  ;;  %v636_v17 = vld [vmem:[#allocation2 + $0x20] sm:$0x7]  ;;  %v653_v22 = vld [vmem:[#allocation2 + $0x24] sm:$0xf] }
  0x4d   : > { %618 = vst [vmem:[#allocation2 + $0x18] sm:$0xe] %v617_v14  ;;  %v651_v19 = vsel %vm10904_vm15, %v642_v9, %v650_v5  ;;  %v646_v21 = vor.u32 %v645_v10, %v642_v9  ;;  %v659_v23 = vrot.slane %v657_v11, 7  ;;  %v666_v8 = vld [vmem:[#allocation2 + $0x28] sm:$0xf] }
  0x4e   : > { %v620_v24 = vsel %vm10889_vm7, %v613_v15, %v619_v63  ;;  %v634_v26 = vsel %vm10894_vm10, %v629_v16, %v633_v7  ;;  %v630_v27 = vrot.slane %v629_v16, 4  ;;  %652 = vst [vmem:[#allocation2 + $0x20] sm:$0x8] %v651_v19  ;;  %v669_v28 = vld [vmem:[#allocation2 + $0x2c] sm:$0x1] }
  0x4f   : > { %621 = vst [vmem:[#allocation2 + $0x1c] sm:$0x3] %v620_v24  ;;  %635 = vst [vmem:[#allocation2 + $0x1c] sm:$0xc] %v634_v26  ;;  %v647_v29 = vrot.slane %v646_v21, 4  ;;  %v662_v30 = vor.u32 %v660_v13, %v659_v23  ;;  %v663_v31 = vrot.slane %v659_v23, 4 }
  0x50   : > { %v637_v25 = vsel %vm10900_vm12, %v630_v27, %v636_v17  ;;  %677 = sbr.rel (%p10878_p1) target bundleno = 496 (0x1f0), region = 64 }
  0x51   : > { %638 = vst [vmem:[#allocation2 + $0x20] sm:$0x7] %v637_v25  ;;  %v654_v12 = vsel %vm10916_vm1, %v647_v29, %v653_v22  ;;  %v667_v18 = vsel %vm10927_vm4, %v662_v30, %v666_v8  ;;  %v670_v32 = vsel %vm10931_vm8, %v663_v31, %v669_v28 }
  0x52   : > { %655 = vst [vmem:[#allocation2 + $0x24] sm:$0xf] %v654_v12  ;;  %668 = vst [vmem:[#allocation2 + $0x28] sm:$0xf] %v667_v18 }
  0x53   : > { %671 = vst [vmem:[#allocation2 + $0x2c] sm:$0x1] %v670_v32 }
  0x55   : > { %v10377_v20 = vld [vmem:[%s13292_s1 + $0x78] sm:$0xff]   ;;  %v10752_v33 = vmov 0.0   ;;  %v10379_v35 = vld [vmem:[%s13292_s1 + $0x70] sm:$0xff]   ;;  %vm10753_vm6 = vmmov 0   ;;  %v10381_v37 = vld [vmem:[%s13292_s1 + $0x68] sm:$0xff]   ;;  %vm1068_vm9 = vcmask 1046528  }
  0x56   : > { %9213 = vmatprep.subr.bf16.mxu0 %v10752_v33  ;;  %9249 = vmatprep.subr.bf16.mxu1 %v10752_v33  ;;  %v10378_v34 = vld [vmem:[%s13292_s1 + $0x38] sm:$0xff]   ;;  %v10380_v36 = vld [vmem:[%s13292_s1 + $0x30] sm:$0xff]   ;;  %v10382_v38 = vld [vmem:[%s13292_s1 + $0x28] sm:$0xff]   ;;  %vm750_vm7 = vsmask.f32 7424  ;;  %vm1651_vm11 = vcmask 1045504  }
  0x57   : > { %9214 = vmatpush3.bf16.msra.mxu0 %v10377_v20  ;;  %9229 = vmatprep.mubr.msk.bf16.mxu0 %vm10753_vm6, %v10752_v33  ;;  %v10383_v39 = vld [vmem:[%s13292_s1 + $0x60] sm:$0xff]   ;;  %v10385_v41 = vld [vmem:[%s13292_s1 + $0x58] sm:$0xff]   ;;  %v10387_v45 = vld [vmem:[%s13292_s1 + $0x50] sm:$0xff]   ;;  %vm1440_vm10 = vsmask.f32 6400  ;;  %vm2234_vm13 = vcmask 1044480  }
  0x58   : > { %9250 = vmatpush3.bf16.msra.mxu1 %v10378_v34  ;;  %9215 = vmatprep.subr.bf16.mxu0 %v10752_v33  ;;  %v10384_v40 = vld [vmem:[%s13292_s1 + $0x20] sm:$0xff]   ;;  %v10386_v42 = vld [vmem:[%s13292_s1 + $0x18] sm:$0xff]   ;;  %v11010_v47 = vld [vmem:[#allocation2 + $0x8] sm:$0xff]   ;;  %vm2023_vm12 = vsmask.f32 5376  ;;  %s2383_s14 = scalar_select %p2382_p2, %s10732_s27, 0 }
  0x59   : > { %9251 = vmatprep.subr.bf16.mxu1 %v10752_v33  ;;  %9265 = vmatprep.mubr.msk.bf16.mxu1 %vm10753_vm6, %v10752_v33  ;;  %v678_v43 = vld [vmem:[#allocation2] sm:$0xf]  ;;  %v11004_v44 = vld [vmem:[#allocation2 + $0x4] sm:$0xf]  ;;  %v10388_v48 = vld [vmem:[%s13292_s1 + $0x10] sm:$0xff]   ;;  %v759_v53 = vshll.u32 %v11010_v47, 16 }
  0x5a   : > { %v7649_v46 = vcombine.low %v678_v43, %v11004_v44  ;;  %v10389_v50 = vld [vmem:[%s13292_s1 + $0x48] sm:$0xff]   ;;  %v10391_v55 = vld [vmem:[%s13292_s1 + $0x40] sm:$0xff]   ;;  %v11032_v59 = vld [vmem:[#allocation2 + $0x10] sm:$0xff]   ;;  %v763_v62 = vshrl.u32 %v11010_v47, 16  ;;  %s13341_s14 = smov (!%p7856_p3, %s2383_s14), 3 }
  0x5b   : > { %9216 = vmatpush3.bf16.msra.mxu0 %v10379_v35  ;;  %v10390_v54 = vld [vmem:[%s13292_s1 + $0x8] sm:$0xff]   ;;  %v10392_v56 = vld [vmem:[%s13292_s1] sm:$0xff]   ;;  %v761_v58 = vrot.slane %v759_v53, 1  ;;  %v10395_v60 = vld [vmem:[%s13292_s1 + $0xb8] sm:$0xff]   ;;  %v767_v63 = vshll.u32 %v11032_v59, 16  ;;  %v771_v10 = vshrl.u32 %v11032_v59, 16 }
  0x5c   : > { %9252 = vmatpush3.bf16.msra.mxu1 %v10380_v36  ;;  %9217 = vmatprep.subr.bf16.mxu0 %v10752_v33  ;;  %v754_v49 = vshll.u32 %v7649_v46, 16  ;;  %v752_v51 = vshrl.u32 %v7649_v46, 16  ;;  %v10398_v0 = vld [vmem:[%s13292_s1 + $0xf8] sm:$0xff]   ;;  %v10396_v2 = vld [vmem:[%s13292_s1 + $0xb0] sm:$0xff]   ;;  %v10399_v9 = vld [vmem:[%s13292_s1 + $0xa8] sm:$0xff]   ;;  %v1072_v53 = vrot.slane %v11032_v59, 1 }
  0x5d   : > { %9253 = vmatprep.subr.bf16.mxu1 %v10752_v33  ;;  %v11047_v1 = vld [vmem:[#allocation2 + $0x18] sm:$0xff]   ;;  %v765_v3 = vor.u32 %v763_v62, %v761_v58  ;;  %v769_v4 = vrot.slane %v767_v63, 1  ;;  %v10400_v5 = vld [vmem:[%s13292_s1 + $0xf0] sm:$0xff]   ;;  %v10403_v11 = vld [vmem:[%s13292_s1 + $0xe8] sm:$0xff]   ;;  %s2386_s18 = smul.u32 80, %s13341_s14 }
  0x5e   : > { %v756_v52 = vrot.slane %v754_v49, 1  ;;  %v775_v6 = vshll.u32 %v11047_v1, 16  ;;  %v10402_v14 = vld [vmem:[%s13292_s1 + $0xa0] sm:$0xff]   ;;  %v10404_v19 = vld [vmem:[%s13292_s1 + $0x98] sm:$0xff]   ;;  %v779_v22 = vshrl.u32 %v11047_v1, 16  ;;  %v10408_v28 = vld [vmem:[%s13292_s1 + $0x90] sm:$0xff]  }
  0x5f   : > { %9218 = vmatpush3.bf16.msra.mxu0 %v10381_v37  ;;  %v770_v7 = vsel %vm750_vm7, %v765_v3, %v769_v4  ;;  %v11075_v15 = vld [vmem:[#allocation2 + $0x20] sm:$0xff]   ;;  %v773_v16 = vor.u32 %v771_v10, %v769_v4  ;;  %v10407_v24 = vld [vmem:[%s13292_s1 + $0xd8] sm:$0xff]   ;;  %v11097_v26 = vld [vmem:[#allocation2 + $0x28] ss:$0 sps:$4 sm:$0x11]   ;;  %s11532_s19 = scalar_lea.vmem [#allocation3], %s2386_s18 }
  0x60   : > { %9254 = vmatpush3.bf16.msra.mxu1 %v10382_v38  ;;  %9219 = vmatprep.subr.bf16.mxu0 %v10752_v33  ;;  %v757_v57 = vor.u32 %v756_v52, %v752_v51  ;;  %v777_v13 = vrot.slane %v775_v6, 1  ;;  %v10405_v17 = vld [vmem:[%s13292_s1 + $0xe0] sm:$0xff]   ;;  %v783_v23 = vshll.u32 %v11075_v15, 16  ;;  %v10409_v29 = vld [vmem:[%s13292_s1 + $0xd0] sm:$0xff]   ;;  %v787_v31 = vshrl.u32 %v11075_v15, 16  ;;  %v10410_v12 = vld [vmem:[%s13292_s1 + $0x88] sm:$0xff]  }
  0x61   : > { %9255 = vmatprep.subr.bf16.mxu1 %v10752_v33  ;;  %v791_v25 = vshll.u32 %v11097_v26, 16  ;;  %v10412_v18 = vld [vmem:[%s13292_s1 + $0xc8] sm:$0xff]   ;;  %v10413_v32 = vld [vmem:[%s13292_s1 + $0x80] sm:$0xff]   ;;  %v10418_v49 = vld [vmem:[%s13292_s1 + $0x138] sm:$0xff]   ;;  %v1076_v6 = vrot.slane %v11075_v15, 1 }
  0x62   : > { %v762_v61 = vsel %vm750_vm7, %v757_v57, %v761_v58  ;;  %v778_v21 = vsel %vm750_vm7, %v773_v16, %v777_v13  ;;  %v781_v27 = vor.u32 %v779_v22, %v777_v13  ;;  %v785_v8 = vrot.slane %v783_v23, 1  ;;  %v10414_v35 = vld [vmem:[%s13292_s1 + $0xc0] sm:$0xff]   ;;  %v11136_v38 = vld [vmem:[#allocation2 + $0x8] sm:$0xf]  ;;  %v11161_v51 = vld [vmem:[#allocation2 + $0x14] sm:$0xff]  }
  0x63   : > { %9220 = vmatpush3.bf16.msra.mxu0 %v10383_v39  ;;  %v793_v34 = vrot.slane %v791_v25, 1  ;;  %v1047_v36 = vld [vmem:[#allocation2] sm:$0xe]  ;;  %v1216_v37 = vld [vmem:[#allocation2 + $0x4] sm:$0xe]  ;;  %v10419_v52 = vld [vmem:[%s13292_s1 + $0x130] sm:$0xff]  }
  0x64   : > { %9256 = vmatpush3.bf16.msra.mxu1 %v10384_v40  ;;  %9221 = vmatprep.subr.bf16.mxu0 %v10752_v33  ;;  %v786_v30 = vsel %vm750_vm7, %v781_v27, %v785_v8  ;;  %v789_v20 = vor.u32 %v787_v31, %v785_v8  ;;  %v7687_v40 = vcombine.low %v1047_v36, %v11004_v44  ;;  %v1070_v44 = vrot.slane %v11010_v47, 1  ;;  %v10422_v57 = vld [vmem:[%s13292_s1 + $0x128] sm:$0xff]   ;;  %v10425_v62 = vld [vmem:[%s13292_s1 + $0x120] sm:$0xff]   ;;  %v10432_v10 = vld [vmem:[%s13292_s1 + $0x150] sm:$0xff]  }
  0x65   : > { %9257 = vmatprep.subr.bf16.mxu1 %v10752_v33  ;;  %v11212_v4 = vld [vmem:[#allocation2 + $0x24] sm:$0xff]   ;;  %v10434_v13 = vld [vmem:[#allocation2 + $0x2c] ss:$0 sps:$4 sm:$0x11]  }
  0x66   : > { %v794_v39 = vsel %vm750_vm7, %v789_v20, %v793_v34  ;;  %v1069_v43 = vrot.slane %v7687_v40, 1  ;;  %v10435_v16 = vld [vmem:[%s13292_s1 + $0x148] sm:$0xff]   ;;  %v10437_v27 = vld [vmem:[%s13292_s1 + $0x140] sm:$0xff]   ;;  %v1459_v34 = vshrl.u32 %v11161_v51, 16 }
  0x67   : > { %9222 = vmatpush3.bf16.msra.mxu0 %v10385_v41  ;;  %v11142_v41 = vcombine.low %v1216_v37, %v11136_v38  ;;  %v1630_v8 = vld [vmem:[#allocation2 + $0x4] sm:$0xc] }
  0x68   : > { %9258 = vmatpush3.bf16.msra.mxu1 %v10386_v42  ;;  %9223 = vmatprep.subr.bf16.mxu0 %v10752_v33  ;;  %v11144_v42 = vld [vmem:[#allocation2 + $0xc] sm:$0xff]   ;;  %v1461_v40 = vrot.slane %v1459_v34, 1 }
  0x69   : > { %9259 = vmatprep.subr.bf16.mxu1 %v10752_v33  ;;  %v1450_v22 = vshrl.u32 %v11144_v42, 16  ;;  %v1453_v23 = vshll.u32 %v11144_v42, 16  ;;  %v1653_v37 = vrot.slane %v11144_v42, 2 }
  0x6b   : > { %9224 = vmatpush3.bf16.msra.mxu0 %v10387_v45  ;;  %v1272_v45 = vrot.slane %v11142_v41, 1  ;;  %v1452_v31 = vrot.slane %v1450_v22, 1  ;;  %v1455_v25 = vrot.slane %v1453_v23, 2  ;;  %v11351_v23 = vld [vmem:[#allocation2 + $0x10] sm:$0xff]  }
  0x6c   : > { %9260 = vmatpush3.bf16.msra.mxu1 %v10388_v48  ;;  %9225 = vmatprep.subr.bf16.mxu0 %v10752_v33  ;;  %v1071_v48 = vsel %vm1068_vm9, %v1069_v43, %v1070_v44 }
  0x6d   : > { %9261 = vmatprep.subr.bf16.mxu1 %v10752_v33  ;;  %v1456_v20 = vor.u32 %v1455_v25, %v1452_v31  ;;  %v2036_v31 = vshll.u32 %v11351_v23, 16  ;;  %v10455_v25 = vld [vmem:[%s13292_s1 + $0x1c0] sm:$0xff]  }
  0x6f   : > { %9226 = vmatpush3.bf16.msra.mxu0 %v10389_v50 }
  0x70   : > { %9262 = vmatpush3.bf16.msra.mxu1 %v10390_v54  ;;  %9227 = vmatprep.subr.bf16.mxu0 %v10752_v33  ;;  %v1275_v54 = vrot.slane %v11161_v51, 1 }
  0x71   : > { %9263 = vmatprep.subr.bf16.mxu1 %v10752_v33 }
  0x73   : > { %9228 = vmatpush3.bf16.msra.mxu0 %v10391_v55  ;;  %v10423_v55 = vld [vmem:[%s13292_s1 + $0x170] sm:$0xff]  }
  0x74   : > { %9264 = vmatpush3.bf16.msra.mxu1 %v10392_v56  ;;  %9285 = vmatprep.subr.bf16.mxu0 %v10752_v33  ;;  %v1073_v56 = vsel %vm1068_vm9, %v1070_v44, %v1072_v53  ;;  %v10441_v44 = vld [vmem:[%s13292_s1 + $0x1f8] sm:$0xff]  }
  0x75   : > { %9321 = vmatprep.subr.bf16.mxu1 %v10752_v33 }
  0x76   : > { %9230 = vmatmul.mubr.bf16.vlgmr.msra.gmra.mxu0 %v762_v61  ;;  %v1074_v61 = vrot.slane %v11047_v1, 1 }
  0x77   : > { %9266 = vmatmul.mubr.bf16.vlgmr.msra.gmra.mxu1 %v7649_v46  ;;  %9286 = vmatpush3.bf16.msra.mxu0 %v10395_v60  ;;  %v1273_v46 = vrot.slane %v11144_v42, 1  ;;  %v10426_v60 = vld [vmem:[%s13292_s1 + $0x168] sm:$0xff]   ;;  %v10440_v42 = vld [vmem:[%s13292_s1 + $0x1b0] sm:$0xff]  }
  0x78   : > { %9287 = vmatprep.subr.bf16.mxu0 %v10752_v33  ;;  %9233 = vmatprep.mubr.msk.bf16.mxu0 %vm10753_vm6, %v10752_v33 }
  0x79   : > { %9269 = vmatprep.mubr.msk.bf16.mxu1 %vm10753_vm6, %v10752_v33  ;;  %9322 = vmatpush3.bf16.msra.mxu1 %v10398_v0  ;;  %v1274_v50 = vsel %vm1068_vm9, %v1272_v45, %v1273_v46  ;;  %v1276_v58 = vsel %vm1068_vm9, %v1273_v46, %v1275_v54  ;;  %v10428_v0 = vld [vmem:[%s13292_s1 + $0x160] sm:$0xff]  }
  0x7a   : > { %9323 = vmatprep.subr.bf16.mxu1 %v10752_v33 }
  0x7b   : > { %9288 = vmatpush3.bf16.msra.mxu0 %v10396_v2  ;;  %v10427_v2 = vld [vmem:[%s13292_s1 + $0x118] sm:$0xff]  }
  0x7c   : > { %9289 = vmatprep.subr.bf16.mxu0 %v10752_v33 }
  0x7d   : > { %9324 = vmatpush3.bf16.msra.mxu1 %v10400_v5  ;;  %v10430_v5 = vld [vmem:[%s13292_s1 + $0x158] sm:$0xff]  }
  0x7e   : > { %9234 = vmatmul.mubr.bf16.gmra.mxu0 %v770_v7  ;;  %9325 = vmatprep.subr.bf16.mxu1 %v10752_v33  ;;  %v10431_v7 = vld [vmem:[%s13292_s1 + $0x110] sm:$0xff]  }
  0x7f   : > { %9270 = vmatmul.mubr.bf16.gmra.mxu1 %v11010_v47  ;;  %9290 = vmatpush3.bf16.msra.mxu0 %v10399_v9  ;;  %v10421_v47 = vld [vmem:[%s13292_s1 + $0x178] sm:$0xff]   ;;  %v1279_v9 = vrot.slane %v11212_v4, 1 }
  0x80   : > { %9237 = vmatprep.mubr.msk.bf16.mxu0 %vm10753_vm6, %v10752_v33  ;;  %9273 = vmatprep.mubr.msk.bf16.mxu1 %vm10753_vm6, %v10752_v33 }
  0x81   : > { %9291 = vmatprep.subr.bf16.mxu0 %v10752_v33  ;;  %9326 = vmatpush3.bf16.msra.mxu1 %v10403_v11  ;;  %v1077_v11 = vsel %vm1068_vm9, %v1074_v61, %v1076_v6 }
  0x82   : > { %9327 = vmatprep.subr.bf16.mxu1 %v10752_v33 }
  0x83   : > { %9292 = vmatpush3.bf16.msra.mxu0 %v10402_v14 }
  0x84   : > { %9293 = vmatprep.subr.bf16.mxu0 %v10752_v33 }
  0x85   : > { %9328 = vmatpush3.bf16.msra.mxu1 %v10405_v17  ;;  %v1078_v17 = vrot.slane %v11097_v26, 1  ;;  %v10436_v26 = vld [vmem:[%s13292_s1 + $0x100] sm:$0xff]  }
  0x86   : > { %9238 = vmatmul.mubr.bf16.gmra.mxu0 %v778_v21  ;;  %9329 = vmatprep.subr.bf16.mxu1 %v10752_v33  ;;  %v1445_v21 = vshll.u32 %v11142_v41, 16 }
  0x87   : > { %9274 = vmatmul.mubr.bf16.gmra.mxu1 %v11032_v59  ;;  %9294 = vmatpush3.bf16.msra.mxu0 %v10404_v19  ;;  %v11186_v59 = vld [vmem:[#allocation2 + $0x1c] sm:$0xff]   ;;  %v1442_v19 = vshrl.u32 %v11142_v41, 16 }
  0x88   : > { %9241 = vmatprep.mubr.msk.bf16.mxu0 %vm10753_vm6, %v10752_v33  ;;  %9277 = vmatprep.mubr.msk.bf16.mxu1 %vm10753_vm6, %v10752_v33  ;;  %v1277_v63 = vrot.slane %v11186_v59, 1  ;;  %v1468_v46 = vshrl.u32 %v11186_v59, 16 }
  0x89   : > { %9295 = vmatprep.subr.bf16.mxu0 %v10752_v33  ;;  %9330 = vmatpush3.bf16.msra.mxu1 %v10407_v24  ;;  %v1281_v24 = vrot.slane %v10434_v13, 1  ;;  %v10450_v13 = vld [vmem:[%s13292_s1 + $0x1d0] sm:$0xff]  }
  0x8a   : > { %9331 = vmatprep.subr.bf16.mxu1 %v10752_v33  ;;  %v1278_v3 = vsel %vm1068_vm9, %v1275_v54, %v1277_v63  ;;  %v1280_v14 = vsel %vm1068_vm9, %v1277_v63, %v1279_v9 }
  0x8b   : > { %9296 = vmatpush3.bf16.msra.mxu0 %v10408_v28  ;;  %v1079_v28 = vsel %vm1068_vm9, %v1076_v6, %v1078_v17 }
  0x8c   : > { %9297 = vmatprep.subr.bf16.mxu0 %v10752_v33 }
  0x8d   : > { %9332 = vmatpush3.bf16.msra.mxu1 %v10409_v29  ;;  %v1444_v29 = vrot.slane %v1442_v19, 1 }
  0x8e   : > { %9242 = vmatmul.mubr.bf16.gmra.mxu0 %v786_v30  ;;  %9333 = vmatprep.subr.bf16.mxu1 %v10752_v33  ;;  %v1447_v30 = vrot.slane %v1445_v21, 2 }
  0x8f   : > { %9278 = vmatmul.mubr.bf16.gmra.mxu1 %v11047_v1  ;;  %9245 = vmatprep.mubr.msk.bf16.mxu0 %vm10753_vm6, %v10752_v33  ;;  %v1075_v1 = vsel %vm1068_vm9, %v1072_v53, %v1074_v61  ;;  %v1470_v53 = vrot.slane %v1468_v46, 1  ;;  %v1657_v61 = vrot.slane %v11186_v59, 2 }
  0x90   : > { %9281 = vmatprep.mubr.msk.bf16.mxu1 %vm10753_vm6, %v10752_v33  ;;  %9298 = vmatpush3.bf16.msra.mxu0 %v10410_v12  ;;  %v1282_v12 = vsel %vm1068_vm9, %v1279_v9, %v1281_v24  ;;  %v10453_v24 = vld [vmem:[%s13292_s1 + $0x1c8] sm:$0xff]  }
  0x91   : > { %9334 = vmatpush3.bf16.msra.mxu1 %v10412_v18  ;;  %9299 = vmatprep.subr.bf16.mxu0 %v10752_v33  ;;  %v7767_v18 = vcombine.low %v1630_v8, %v11136_v38  ;;  %v10454_v8 = vld [vmem:[%s13292_s1 + $0x180] sm:$0xff]  }
  0x92   : > { %9335 = vmatprep.subr.bf16.mxu1 %v10752_v33 }
  0x93   : > { %v1652_v36 = vrot.slane %v7767_v18, 2 }
  0x94   : > { %9300 = vmatpush3.bf16.msra.mxu0 %v10413_v32  ;;  %v1448_v32 = vor.u32 %v1447_v30, %v1444_v29  ;;  %v2033_v30 = vshrl.u32 %v11351_v23, 16 }
  0x95   : > { %9336 = vmatpush3.bf16.msra.mxu1 %v10414_v35  ;;  %9357 = vmatprep.subr.bf16.mxu0 %v10752_v33  ;;  %v1462_v35 = vshll.u32 %v11161_v51, 16  ;;  %v1654_v43 = vsel %vm1651_vm11, %v1652_v36, %v1653_v37  ;;  %v11373_v36 = vld [vmem:[#allocation2 + $0x18] sm:$0xff]  }
  0x96   : > { %9246 = vmatmul.mubr.bf16.gmra.mxu0 %v794_v39  ;;  %9393 = vmatprep.subr.bf16.mxu1 %v10752_v33  ;;  %v1457_v38 = vsel %vm1440_vm10, %v1448_v32, %v1456_v20  ;;  %v10439_v39 = vld [vmem:[%s13292_s1 + $0x1b8] sm:$0xff]   ;;  %v2035_v34 = vrot.slane %v2033_v30, 2 }
  0x97   : > { %9282 = vmatmul.mubr.bf16.gmra.mxu1 %v11075_v15  ;;  %9301 = vmatprep.mubr.msk.bf16.mxu0 %vm10753_vm6, %v10752_v33  ;;  %v10433_v15 = vld [vmem:[%s13292_s1 + $0x108] sm:$0xff]   ;;  %v1464_v41 = vrot.slane %v1462_v35, 2  ;;  %v2038_v35 = vrot.slane %v2036_v31, 3 }
  0x98   : > { %9337 = vmatprep.mubr.msk.bf16.mxu1 %vm10753_vm6, %v10752_v33 }
  0x99   : > { %v1465_v45 = vor.u32 %v1464_v41, %v1461_v40  ;;  %v2039_v40 = vor.u32 %v2038_v35, %v2035_v34  ;;  %v2042_v41 = vshrl.u32 %v11373_v36, 16 }
  0x9b   : > { %v2044_v46 = vrot.slane %v2042_v41, 2 }
  0x9e   : > { %9302 = vmatmul.mubr.bf16.vlgmr.msra.gmra.mxu0 %v1071_v48  ;;  %v1471_v48 = vshll.u32 %v11186_v59, 16 }
  0x9f   : > { %9338 = vmatmul.mubr.bf16.vlgmr.msra.gmra.mxu1 %v1274_v50  ;;  %9358 = vmatpush3.bf16.msra.mxu0 %v10418_v49  ;;  %v1655_v49 = vrot.slane %v11161_v51, 2  ;;  %v10443_v50 = vld [vmem:[%s13292_s1 + $0x1f0] sm:$0xff]  }
  0xa0   : > { %9359 = vmatprep.subr.bf16.mxu0 %v10752_v33  ;;  %9305 = vmatprep.mubr.msk.bf16.mxu0 %vm10753_vm6, %v10752_v33  ;;  %v1473_v54 = vrot.slane %v1471_v48, 2 }
  0xa1   : > { %9341 = vmatprep.mubr.msk.bf16.mxu1 %vm10753_vm6, %v10752_v33  ;;  %9394 = vmatpush3.bf16.msra.mxu1 %v10421_v47  ;;  %v1466_v47 = vsel %vm1440_vm10, %v1456_v20, %v1465_v45  ;;  %v1656_v51 = vsel %vm1651_vm11, %v1653_v37, %v1655_v49  ;;  %v1658_v59 = vsel %vm1651_vm11, %v1655_v49, %v1657_v61  ;;  %v11389_v49 = vld [vmem:[#allocation2 + $0x20] sm:$0xff]  }
  0xa2   : > { %9395 = vmatprep.subr.bf16.mxu1 %v10752_v33 }
  0xa3   : > { %9360 = vmatpush3.bf16.msra.mxu0 %v10419_v52  ;;  %v10442_v52 = vld [vmem:[%s13292_s1 + $0x1a8] sm:$0xff]  }
  0xa4   : > { %9361 = vmatprep.subr.bf16.mxu0 %v10752_v33 }
  0xa5   : > { %9396 = vmatpush3.bf16.msra.mxu1 %v10423_v55  ;;  %v10445_v55 = vld [vmem:[%s13292_s1 + $0x1e8] sm:$0xff]  }
  0xa6   : > { %9306 = vmatmul.mubr.bf16.gmra.mxu0 %v1073_v56  ;;  %9397 = vmatprep.subr.bf16.mxu1 %v10752_v33  ;;  %v1474_v56 = vor.u32 %v1473_v54, %v1470_v53  ;;  %v2051_v53 = vshrl.u32 %v11389_v49, 16  ;;  %v2054_v54 = vshll.u32 %v11389_v49, 16 }
  0xa7   : > { %9342 = vmatmul.mubr.bf16.gmra.mxu1 %v1276_v58  ;;  %9362 = vmatpush3.bf16.msra.mxu0 %v10422_v57  ;;  %v10444_v57 = vld [vmem:[%s13292_s1 + $0x1a0] sm:$0xff]   ;;  %v1477_v58 = vshrl.u32 %v11212_v4, 16 }
  0xa8   : > { %9309 = vmatprep.mubr.msk.bf16.mxu0 %vm10753_vm6, %v10752_v33  ;;  %9345 = vmatprep.mubr.msk.bf16.mxu1 %vm10753_vm6, %v10752_v33  ;;  %v1475_v63 = vsel %vm1440_vm10, %v1465_v45, %v1474_v56 }
  0xa9   : > { %9363 = vmatprep.subr.bf16.mxu0 %v10752_v33  ;;  %9398 = vmatpush3.bf16.msra.mxu1 %v10426_v60  ;;  %v1480_v60 = vshll.u32 %v11212_v4, 16 }
  0xaa   : > { %9399 = vmatprep.subr.bf16.mxu1 %v10752_v33 }
  0xab   : > { %9364 = vmatpush3.bf16.msra.mxu0 %v10425_v62  ;;  %v10447_v62 = vld [vmem:[%s13292_s1 + $0x1e0] sm:$0xff]  }
  0xac   : > { %9365 = vmatprep.subr.bf16.mxu0 %v10752_v33 }
  0xad   : > { %9400 = vmatpush3.bf16.msra.mxu1 %v10428_v0  ;;  %v10446_v0 = vld [vmem:[%s13292_s1 + $0x198] sm:$0xff]  }
  0xae   : > { %9310 = vmatmul.mubr.bf16.gmra.mxu0 %v1075_v1  ;;  %9401 = vmatprep.subr.bf16.mxu1 %v10752_v33  ;;  %v1479_v1 = vrot.slane %v1477_v58, 1  ;;  %v2056_v58 = vrot.slane %v2054_v54, 3 }
  0xaf   : > { %9346 = vmatmul.mubr.bf16.gmra.mxu1 %v1278_v3  ;;  %9366 = vmatpush3.bf16.msra.mxu0 %v10427_v2  ;;  %v1482_v2 = vrot.slane %v1480_v60, 2  ;;  %v10452_v3 = vld [vmem:[#allocation2 + $0x2c] ss:$0 sps:$4 sm:$0x33]  }
  0xb0   : > { %9313 = vmatprep.mubr.msk.bf16.mxu0 %vm10753_vm6, %v10752_v33  ;;  %9349 = vmatprep.mubr.msk.bf16.mxu1 %vm10753_vm6, %v10752_v33  ;;  %v1486_v9 = vshrl.u32 %v10452_v3, 16  ;;  %v11409_v60 = vld [vmem:[#allocation2 + $0x28] sm:$0xff]  }
  0xb1   : > { %9367 = vmatprep.subr.bf16.mxu0 %v10752_v33  ;;  %9402 = vmatpush3.bf16.msra.mxu1 %v10430_v5  ;;  %v10448_v5 = vld [vmem:[%s13292_s1 + $0x1d8] sm:$0xff]   ;;  %v1483_v6 = vor.u32 %v1482_v2, %v1479_v1  ;;  %v2063_v1 = vshll.u32 %v11409_v60, 16 }
  0xb2   : > { %9403 = vmatprep.subr.bf16.mxu1 %v10752_v33  ;;  %v1488_v17 = vrot.slane %v1486_v9, 1  ;;  %v1862_v9 = vrot.slane %v11409_v60, 2 }
  0xb3   : > { %9368 = vmatpush3.bf16.msra.mxu0 %v10431_v7  ;;  %v10449_v7 = vld [vmem:[%s13292_s1 + $0x190] sm:$0xff]  }
  0xb4   : > { %9369 = vmatprep.subr.bf16.mxu0 %v10752_v33 }
  0xb5   : > { %9404 = vmatpush3.bf16.msra.mxu1 %v10432_v10  ;;  %v1489_v10 = vshll.u32 %v10452_v3, 16 }
  0xb6   : > { %9314 = vmatmul.mubr.bf16.gmra.mxu0 %v1077_v11  ;;  %9405 = vmatprep.subr.bf16.mxu1 %v10752_v33  ;;  %v1659_v11 = vrot.slane %v11212_v4, 2  ;;  %v10451_v4 = vld [vmem:[%s13292_s1 + $0x188] sm:$0xff]  }
  0xb7   : > { %9350 = vmatmul.mubr.bf16.gmra.mxu1 %v1280_v14  ;;  %9317 = vmatprep.mubr.msk.bf16.mxu0 %vm10753_vm6, %v10752_v33  ;;  %v1799_v14 = vld [vmem:[#allocation2 + $0x8] sm:$0xc]  ;;  %v1491_v19 = vrot.slane %v1489_v10, 2  ;;  %v10466_v10 = vld [vmem:[%s13292_s1 + $0x210] sm:$0xff]  }
  0xb8   : > { %9353 = vmatprep.mubr.msk.bf16.mxu1 %vm10753_vm6, %v10752_v33  ;;  %9370 = vmatpush3.bf16.msra.mxu0 %v10433_v15  ;;  %v11341_v15 = vld [vmem:[#allocation2 + $0xc] sm:$0xf]  ;;  %v1660_v21 = vsel %vm1651_vm11, %v1657_v61, %v1659_v11  ;;  %v1860_v61 = vrot.slane %v11389_v49, 2 }
  0xb9   : > { %9406 = vmatpush3.bf16.msra.mxu1 %v10435_v16  ;;  %9371 = vmatprep.subr.bf16.mxu0 %v10752_v33  ;;  %v1484_v16 = vsel %vm1440_vm10, %v1474_v56, %v1483_v6  ;;  %v7792_v22 = vcombine.low %v1799_v14, %v11341_v15 }
  0xba   : > { %9407 = vmatprep.subr.bf16.mxu1 %v10752_v33 }
  0xbb   : > { %v2028_v29 = vshll.u32 %v7792_v22, 16  ;;  %v1855_v37 = vrot.slane %v7792_v22, 2 }
  0xbc   : > { %9372 = vmatpush3.bf16.msra.mxu0 %v10436_v26  ;;  %v1492_v26 = vor.u32 %v1491_v19, %v1488_v17  ;;  %v10468_v17 = vld [vmem:[#allocation2 + $0x30] ss:$0 sps:$4 sm:$0x33]  }
  0xbd   : > { %9408 = vmatpush3.bf16.msra.mxu1 %v10437_v27  ;;  %9429 = vmatprep.subr.bf16.mxu0 %v10752_v33  ;;  %v1661_v27 = vrot.slane %v10452_v3, 2  ;;  %v2030_v20 = vrot.slane %v2028_v29, 3  ;;  %v10464_v3 = vld [vmem:[%s13292_s1 + $0x218] sm:$0xff]  }
  0xbe   : > { %9318 = vmatmul.mubr.bf16.gmra.mxu0 %v1079_v28  ;;  %9465 = vmatprep.subr.bf16.mxu1 %v10752_v33  ;;  %v2025_v28 = vshrl.u32 %v7792_v22, 16 }
  0xbf   : > { %9354 = vmatmul.mubr.bf16.gmra.mxu1 %v1282_v12  ;;  %9373 = vmatprep.mubr.msk.bf16.mxu0 %vm10753_vm6, %v10752_v33  ;;  %v1493_v12 = vsel %vm1440_vm10, %v1483_v6, %v1492_v26  ;;  %v1662_v18 = vsel %vm1651_vm11, %v1659_v11, %v1661_v27  ;;  %v2065_v6 = vrot.slane %v2063_v1, 3  ;;  %v10470_v27 = vld [vmem:[%s13292_s1 + $0x200] sm:$0xff]  }
  0xc0   : > { %9409 = vmatprep.mubr.msk.bf16.mxu1 %vm10753_vm6, %v10752_v33  ;;  %v2027_v32 = vrot.slane %v2025_v28, 2 }
  0xc6   : > { %9374 = vmatmul.mubr.bf16.vlgmr.msra.gmra.mxu0 %v1457_v38  ;;  %v1856_v38 = vrot.slane %v11351_v23, 2 }
  0xc7   : > { %9410 = vmatmul.mubr.bf16.vlgmr.msra.gmra.mxu1 %v1654_v43  ;;  %9430 = vmatpush3.bf16.msra.mxu0 %v10439_v39  ;;  %v2031_v39 = vor.u32 %v2030_v20, %v2027_v32  ;;  %v2045_v43 = vshll.u32 %v11373_v36, 16  ;;  %v2238_v20 = vrot.slane %v11373_v36, 3 }
  0xc8   : > { %9431 = vmatprep.subr.bf16.mxu0 %v10752_v33  ;;  %9377 = vmatprep.mubr.msk.bf16.mxu0 %vm10753_vm6, %v10752_v33 }
  0xc9   : > { %9413 = vmatprep.mubr.msk.bf16.mxu1 %vm10753_vm6, %v10752_v33  ;;  %9466 = vmatpush3.bf16.msra.mxu1 %v10441_v44  ;;  %v1857_v44 = vsel %vm1651_vm11, %v1855_v37, %v1856_v38  ;;  %v2040_v45 = vsel %vm2023_vm12, %v2031_v39, %v2039_v40  ;;  %v2047_v48 = vrot.slane %v2045_v43, 3 }
  0xca   : > { %9467 = vmatprep.subr.bf16.mxu1 %v10752_v33 }
  0xcb   : > { %9432 = vmatpush3.bf16.msra.mxu0 %v10440_v42  ;;  %v10458_v42 = vld [vmem:[%s13292_s1 + $0x238] sm:$0xff]  }
  0xcc   : > { %9433 = vmatprep.subr.bf16.mxu0 %v10752_v33 }
  0xcd   : > { %9468 = vmatpush3.bf16.msra.mxu1 %v10443_v50  ;;  %v10459_v50 = vld [vmem:[%s13292_s1 + $0x230] sm:$0xff]  }
  0xce   : > { %9378 = vmatmul.mubr.bf16.gmra.mxu0 %v1466_v47  ;;  %9469 = vmatprep.subr.bf16.mxu1 %v10752_v33  ;;  %v1858_v47 = vrot.slane %v11373_v36, 2 }
  0xcf   : > { %9414 = vmatmul.mubr.bf16.gmra.mxu1 %v1656_v51  ;;  %9434 = vmatpush3.bf16.msra.mxu0 %v10442_v52  ;;  %v2048_v52 = vor.u32 %v2047_v48, %v2044_v46 }
  0xd0   : > { %9381 = vmatprep.mubr.msk.bf16.mxu0 %vm10753_vm6, %v10752_v33  ;;  %9417 = vmatprep.mubr.msk.bf16.mxu1 %vm10753_vm6, %v10752_v33  ;;  %v1859_v51 = vsel %vm1651_vm11, %v1856_v38, %v1858_v47  ;;  %v1861_v2 = vsel %vm1651_vm11, %v1858_v47, %v1860_v61 }
  0xd1   : > { %9435 = vmatprep.subr.bf16.mxu0 %v10752_v33  ;;  %9470 = vmatpush3.bf16.msra.mxu1 %v10445_v55  ;;  %v10461_v55 = vld [vmem:[%s13292_s1 + $0x228] sm:$0xff]   ;;  %v2049_v56 = vsel %vm2023_vm12, %v2039_v40, %v2048_v52 }
  0xd2   : > { %9471 = vmatprep.subr.bf16.mxu1 %v10752_v33 }
  0xd3   : > { %9436 = vmatpush3.bf16.msra.mxu0 %v10444_v57  ;;  %v2053_v57 = vrot.slane %v2051_v53, 2 }
  0xd4   : > { %9437 = vmatprep.subr.bf16.mxu0 %v10752_v33 }
  0xd5   : > { %9472 = vmatpush3.bf16.msra.mxu1 %v10447_v62  ;;  %v10463_v62 = vld [vmem:[%s13292_s1 + $0x220] sm:$0xff]  }
  0xd6   : > { %9382 = vmatmul.mubr.bf16.gmra.mxu0 %v1475_v63  ;;  %9473 = vmatprep.subr.bf16.mxu1 %v10752_v33  ;;  %v2057_v63 = vor.u32 %v2056_v58, %v2053_v57 }
  0xd7   : > { %9418 = vmatmul.mubr.bf16.gmra.mxu1 %v1658_v59  ;;  %9438 = vmatpush3.bf16.msra.mxu0 %v10446_v0  ;;  %v2060_v0 = vshrl.u32 %v11409_v60, 16 }
  0xd8   : > { %9385 = vmatprep.mubr.msk.bf16.mxu0 %vm10753_vm6, %v10752_v33  ;;  %9421 = vmatprep.mubr.msk.bf16.mxu1 %vm10753_vm6, %v10752_v33  ;;  %v2058_v59 = vsel %vm2023_vm12, %v2048_v52, %v2057_v63 }
  0xd9   : > { %9439 = vmatprep.subr.bf16.mxu0 %v10752_v33  ;;  %9474 = vmatpush3.bf16.msra.mxu1 %v10448_v5  ;;  %v2062_v5 = vrot.slane %v2060_v0, 2 }
  0xda   : > { %9475 = vmatprep.subr.bf16.mxu1 %v10752_v33 }
  0xdb   : > { %9440 = vmatpush3.bf16.msra.mxu0 %v10449_v7  ;;  %v11430_v7 = vld [vmem:[#allocation2 + $0x30] ss:$0 sps:$4 sm:$0x77]   ;;  %v2066_v11 = vor.u32 %v2065_v6, %v2062_v5 }
  0xdc   : > { %9441 = vmatprep.subr.bf16.mxu0 %v10752_v33  ;;  %v2072_v14 = vshll.u32 %v11430_v7, 16 }
  0xdd   : > { %9476 = vmatpush3.bf16.msra.mxu1 %v10450_v13  ;;  %v2069_v13 = vshrl.u32 %v11430_v7, 16  ;;  %v2067_v19 = vsel %vm2023_vm12, %v2057_v63, %v2066_v11 }
  0xde   : > { %9386 = vmatmul.mubr.bf16.gmra.mxu0 %v1484_v16  ;;  %9477 = vmatprep.subr.bf16.mxu1 %v10752_v33  ;;  %v1863_v16 = vsel %vm1651_vm11, %v1860_v61, %v1862_v9  ;;  %v2074_v22 = vrot.slane %v2072_v14, 3 }
  0xdf   : > { %9422 = vmatmul.mubr.bf16.gmra.mxu1 %v1660_v21  ;;  %9389 = vmatprep.mubr.msk.bf16.mxu0 %vm10753_vm6, %v10752_v33  ;;  %v10467_v21 = vld [vmem:[%s13292_s1 + $0x208] sm:$0xff]  }
  0xe0   : > { %9425 = vmatprep.mubr.msk.bf16.mxu1 %vm10753_vm6, %v10752_v33  ;;  %9442 = vmatpush3.bf16.msra.mxu0 %v10451_v4  ;;  %v2071_v4 = vrot.slane %v2069_v13, 2 }
  0xe1   : > { %9478 = vmatpush3.bf16.msra.mxu1 %v10453_v24  ;;  %9443 = vmatprep.subr.bf16.mxu0 %v10752_v33  ;;  %v1864_v24 = vrot.slane %v10468_v17, 2 }
  0xe2   : > { %9479 = vmatprep.subr.bf16.mxu1 %v10752_v33  ;;  %v2075_v26 = vor.u32 %v2074_v22, %v2071_v4 }
  0xe3   : > { %v1865_v28 = vsel %vm1651_vm11, %v1862_v9, %v1864_v24 }
  0xe4   : > { %9444 = vmatpush3.bf16.msra.mxu0 %v10454_v8  ;;  %v2213_v8 = vld [vmem:[#allocation2 + $0x8] sm:$0x8]  ;;  %v2076_v30 = vsel %vm2023_vm12, %v2066_v11, %v2075_v26 }
  0xe5   : > { %9480 = vmatpush3.bf16.msra.mxu1 %v10455_v25  ;;  %9501 = vmatprep.subr.bf16.mxu0 %v10752_v33  ;;  %v7847_v29 = vcombine.low %v2213_v8, %v11341_v15  ;;  %v2236_v25 = vrot.slane %v11351_v23, 3  ;;  %v2242_v15 = vrot.slane %v11409_v60, 3  ;;  %v2244_v23 = vrot.slane %v11430_v7, 3 }
  0xe6   : > { %9390 = vmatmul.mubr.bf16.gmra.mxu0 %v1493_v12  ;;  %10281 = vmatprep.subr.bf16.mxu1 %v10752_v33  ;;  %v2240_v12 = vrot.slane %v11389_v49, 3 }
  0xe7   : > { %9426 = vmatmul.mubr.bf16.gmra.mxu1 %v1662_v18  ;;  %9445 = vmatprep.mubr.msk.bf16.mxu0 %vm10753_vm6, %v10752_v33  ;;  %v2235_v31 = vrot.slane %v7847_v29, 3  ;;  %v2239_v34 = vsel %vm2234_vm13, %v2236_v25, %v2238_v20  ;;  %v2245_v35 = vsel %vm2234_vm13, %v2242_v15, %v2244_v23 }
  0xe8   : > { %9481 = vmatprep.mubr.msk.bf16.mxu1 %vm10753_vm6, %v10752_v33  ;;  %v2243_v32 = vsel %vm2234_vm13, %v2240_v12, %v2242_v15  ;;  %v2241_v37 = vsel %vm2234_vm13, %v2238_v20, %v2240_v12 }
  0xe9   : > { %v2237_v18 = vsel %vm2234_vm13, %v2235_v31, %v2236_v25 }
  0xee   : > { %9446 = vmatmul.mubr.bf16.vlgmr.msra.gmra.mxu0 %v1857_v44 }
  0xef   : > { %9482 = vmatmul.mubr.bf16.vlgmr.msra.gmra.mxu1 %v2040_v45  ;;  %9502 = vmatpush3.bf16.msra.mxu0 %v10458_v42 }
  0xf0   : > { %9503 = vmatprep.subr.bf16.mxu0 %v10752_v33  ;;  %9449 = vmatprep.mubr.msk.bf16.mxu0 %vm10753_vm6, %v10752_v33 }
  0xf1   : > { %9485 = vmatprep.mubr.msk.bf16.mxu1 %vm10753_vm6, %v10752_v33  ;;  %10289 = vmatpush3.bf16.msra.mxu1 %v10458_v42 }
  0xf2   : > { %10282 = vmatprep.subr.bf16.mxu1 %v10752_v33 }
  0xf3   : > { %9504 = vmatpush3.bf16.msra.mxu0 %v10459_v50 }
  0xf4   : > { %9505 = vmatprep.subr.bf16.mxu0 %v10752_v33 }
  0xf5   : > { %10290 = vmatpush3.bf16.msra.mxu1 %v10459_v50 }
  0xf6   : > { %9450 = vmatmul.mubr.bf16.gmra.mxu0 %v1859_v51  ;;  %10283 = vmatprep.subr.bf16.mxu1 %v10752_v33 }
  0xf7   : > { %9486 = vmatmul.mubr.bf16.gmra.mxu1 %v2049_v56  ;;  %9506 = vmatpush3.bf16.msra.mxu0 %v10461_v55 }
  0xf8   : > { %9453 = vmatprep.mubr.msk.bf16.mxu0 %vm10753_vm6, %v10752_v33  ;;  %9489 = vmatprep.mubr.msk.bf16.mxu1 %vm10753_vm6, %v10752_v33 }
  0xf9   : > { %9507 = vmatprep.subr.bf16.mxu0 %v10752_v33  ;;  %10291 = vmatpush3.bf16.msra.mxu1 %v10461_v55 }
  0xfa   : > { %10284 = vmatprep.subr.bf16.mxu1 %v10752_v33 }
  0xfb   : > { %9508 = vmatpush3.bf16.msra.mxu0 %v10463_v62 }
  0xfc   : > { %9509 = vmatprep.subr.bf16.mxu0 %v10752_v33 }
  0xfd   : > { %10292 = vmatpush3.bf16.msra.mxu1 %v10463_v62 }
  0xfe   : > { %9454 = vmatmul.mubr.bf16.gmra.mxu0 %v1861_v2  ;;  %10285 = vmatprep.subr.bf16.mxu1 %v10752_v33 }
  0xff   : > { %9490 = vmatmul.mubr.bf16.gmra.mxu1 %v2058_v59  ;;  %9510 = vmatpush3.bf16.msra.mxu0 %v10464_v3 }
 0x100   : > { %9457 = vmatprep.mubr.msk.bf16.mxu0 %vm10753_vm6, %v10752_v33  ;;  %9493 = vmatprep.mubr.msk.bf16.mxu1 %vm10753_vm6, %v10752_v33 }
 0x101   : > { %10293 = vmatpush3.bf16.msra.mxu1 %v10464_v3  ;;  %9511 = vmatprep.subr.bf16.mxu0 %v10752_v33 }
 0x102   : > { %10286 = vmatprep.subr.bf16.mxu1 %v10752_v33 }
 0x103   : > { %9512 = vmatpush3.bf16.msra.mxu0 %v10466_v10 }
 0x104   : > { %9513 = vmatprep.subr.bf16.mxu0 %v10752_v33 }
 0x105   : > { %10294 = vmatpush3.bf16.msra.mxu1 %v10466_v10 }
 0x106   : > { %9458 = vmatmul.mubr.bf16.gmra.mxu0 %v1863_v16  ;;  %10287 = vmatprep.subr.bf16.mxu1 %v10752_v33 }
 0x107   : > { %9494 = vmatmul.mubr.bf16.gmra.mxu1 %v2067_v19  ;;  %9461 = vmatprep.mubr.msk.bf16.mxu0 %vm10753_vm6, %v10752_v33 }
 0x108   : > { %9497 = vmatprep.mubr.msk.bf16.mxu1 %vm10753_vm6, %v10752_v33  ;;  %9514 = vmatpush3.bf16.msra.mxu0 %v10467_v21 }
 0x109   : > { %10295 = vmatpush3.bf16.msra.mxu1 %v10467_v21  ;;  %9515 = vmatprep.subr.bf16.mxu0 %v10752_v33 }
 0x10a   : > { %10288 = vmatprep.subr.bf16.mxu1 %v10752_v33 }
 0x10c   : > { %9516 = vmatpush3.bf16.msra.mxu0 %v10470_v27 }
 0x10d   : > { %10296 = vmatpush3.bf16.msra.mxu1 %v10470_v27 }
 0x10e   : > { %9462 = vmatmul.mubr.bf16.gmra.mxu0 %v1865_v28 }
 0x10f   : > { %9498 = vmatmul.mubr.bf16.gmra.mxu1 %v2076_v30  ;;  %9517 = vmatprep.mubr.msk.bf16.mxu0 %vm10753_vm6, %v10752_v33 }
 0x110   : > { %9529 = vmatprep.mubr.msk.bf16.mxu1 %vm10753_vm6, %v10752_v33 }
 0x116   : > { %9518 = vmatmul.mubr.bf16.vlgmr.msra.gmra.mxu0 %v2237_v18 }
 0x117   : > { %9530 = vmatmul.mubr.bf16.vlgmr.msra.gmra.mxu1 %v2243_v32  ;;  %9521 = vmatprep.mubr.msk.bf16.mxu0 %vm10753_vm6, %v10752_v33 }
 0x118   : > { %9533 = vmatprep.mubr.msk.bf16.mxu1 %vm10753_vm6, %v10752_v33 }
 0x11e   : > { %9522 = vmatmul.mubr.bf16.gmra.mxu0 %v2239_v34 }
 0x11f   : > { %9534 = vmatmul.mubr.bf16.gmra.mxu1 %v2245_v35  ;;  %9525 = vmatprep.mubr.msk.bf16.mxu0 %vm10753_vm6, %v10752_v33 }
 0x126   : > { %9526 = vmatmul.mubr.bf16.gmra.mxu0 %v2241_v37 }
 0x136   : > { %v882_v38 = vpop.f32.mrf.mxu0 }
 0x137   : > { %v1008_v39 = vpop.f32.mrf.mxu1 }
 0x138   : > { %v1009_v36 = vadd.f32 %v1008_v39, %v882_v38  ;;  %v9231_v40 = vpop.f32.mrf.mxu0 }
 0x139   : > { %v9267_v41 = vpop.f32.mrf.mxu1 }
 0x13a   : > { %v885_v43 = vpop.f32.mrf.mxu0 }
 0x13b   : > { %v1011_v44 = vpop.f32.mrf.mxu1 }
 0x13c   : > { %v1012_v42 = vadd.f32 %v1011_v44, %v885_v43  ;;  %v9232_v45 = vpop.f32.mrf.mxu0 }
 0x13d   : > { %v9268_v46 = vpop.f32.mrf.mxu1 }
 0x13e   : > { %v890_v48 = vpop.f32.mrf.mxu0 }
 0x13f   : > { %v1016_v49 = vpop.f32.mrf.mxu1 }
 0x140   : > { %v1017_v50 = vadd.f32 %v1016_v49, %v890_v48  ;;  %v9235_v47 = vpop.f32.mrf.mxu0 }
 0x141   : > { %v9271_v52 = vpop.f32.mrf.mxu1 }
 0x142   : > { %v893_v53 = vpop.f32.mrf.mxu0 }
 0x143   : > { %v1019_v33 = vpop.f32.mrf.mxu1 }
 0x144   : > { %v1020_v54 = vadd.f32 %v1019_v33, %v893_v53  ;;  %v9236_v51 = vpop.f32.mrf.mxu0 }
 0x145   : > { %v9272_v55 = vpop.f32.mrf.mxu1 }
 0x146   : > { %v898_v56 = vpop.f32.mrf.mxu0 }
 0x147   : > { %v1024_v57 = vpop.f32.mrf.mxu1 }
 0x148   : > { %v1025_v58 = vadd.f32 %v1024_v57, %v898_v56  ;;  %v9239_v60 = vpop.f32.mrf.mxu0 }
 0x149   : > { %v9275_v61 = vpop.f32.mrf.mxu1 }
 0x14a   : > { %v901_v62 = vpop.f32.mrf.mxu0 }
 0x14b   : > { %v1027_v63 = vpop.f32.mrf.mxu1 }
 0x14c   : > { %v1028_v0 = vadd.f32 %v1027_v63, %v901_v62  ;;  %v9240_v1 = vpop.f32.mrf.mxu0 }
 0x14d   : > { %v9276_v2 = vpop.f32.mrf.mxu1 }
 0x14e   : > { %v906_v3 = vpop.f32.mrf.mxu0 }
 0x14f   : > { %v1032_v59 = vpop.f32.mrf.mxu1 }
 0x150   : > { %v1033_v5 = vadd.f32 %v1032_v59, %v906_v3  ;;  %v9243_v6 = vpop.f32.mrf.mxu0 }
 0x151   : > { %v9279_v7 = vpop.f32.mrf.mxu1 }
 0x152   : > { %v909_v9 = vpop.f32.mrf.mxu0 }
 0x153   : > { %v1035_v10 = vpop.f32.mrf.mxu1 }
 0x154   : > { %v1036_v11 = vadd.f32 %v1035_v10, %v909_v9  ;;  %v9244_v13 = vpop.f32.mrf.mxu0 }
 0x155   : > { %v9280_v14 = vpop.f32.mrf.mxu1 }
 0x156   : > { %v914_v16 = vpop.f32.mrf.mxu0 }
 0x157   : > { %v1040_v17 = vpop.f32.mrf.mxu1 }
 0x158   : > { %v1041_v19 = vadd.f32 %v1040_v17, %v914_v16  ;;  %v9247_v21 = vpop.f32.mrf.mxu0 }
 0x159   : > { %v9283_v4 = vpop.f32.mrf.mxu1 }
 0x15a   : > { %v917_v22 = vpop.f32.mrf.mxu0 }
 0x15b   : > { %v1043_v24 = vpop.f32.mrf.mxu1 }
 0x15c   : > { %v1044_v26 = vadd.f32 %v1043_v24, %v917_v22  ;;  %v9248_v27 = vpop.f32.mrf.mxu0 }
 0x15d   : > { %v9284_v8 = vpop.f32.mrf.mxu1 }
 0x15e   : > { %v1167_v28 = vpop.f32.mrf.mxu0 }
 0x15f   : > { %v1206_v29 = vadd.f32 %v1167_v28, %v1009_v36  ;;  %v1370_v30 = vpop.f32.mrf.mxu1 }
 0x160   : > { %v9303_v31 = vpop.f32.mrf.mxu0 }
 0x161   : > { %v1409_v25 = vadd.f32 %v1370_v30, %v1206_v29  ;;  %v9339_v12 = vpop.f32.mrf.mxu1 }
 0x162   : > { %v1170_v15 = vpop.f32.mrf.mxu0 }
 0x163   : > { %v1207_v18 = vadd.f32 %v1170_v15, %v1012_v42  ;;  %v1373_v32 = vpop.f32.mrf.mxu1 }
 0x164   : > { %v9304_v20 = vpop.f32.mrf.mxu0 }
 0x165   : > { %v1410_v23 = vadd.f32 %v1373_v32, %v1207_v18  ;;  %v9340_v34 = vpop.f32.mrf.mxu1 }
 0x166   : > { %v1175_v35 = vpop.f32.mrf.mxu0 }
 0x167   : > { %v1208_v37 = vadd.f32 %v1175_v35, %v1017_v50  ;;  %v1378_v38 = vpop.f32.mrf.mxu1 }
 0x168   : > { %v9307_v39 = vpop.f32.mrf.mxu0 }
 0x169   : > { %v1411_v40 = vadd.f32 %v1378_v38, %v1208_v37  ;;  %v9343_v41 = vpop.f32.mrf.mxu1 }
 0x16a   : > { %v1178_v43 = vpop.f32.mrf.mxu0 }
 0x16b   : > { %v1209_v44 = vadd.f32 %v1178_v43, %v1020_v54  ;;  %v1381_v45 = vpop.f32.mrf.mxu1 }
 0x16c   : > { %v9308_v36 = vpop.f32.mrf.mxu0 }
 0x16d   : > { %v1412_v46 = vadd.f32 %v1381_v45, %v1209_v44  ;;  %v9344_v48 = vpop.f32.mrf.mxu1 }
 0x16e   : > { %v1183_v49 = vpop.f32.mrf.mxu0 }
 0x16f   : > { %v1210_v47 = vadd.f32 %v1183_v49, %v1025_v58  ;;  %v1386_v52 = vpop.f32.mrf.mxu1 }
 0x170   : > { %v9311_v42 = vpop.f32.mrf.mxu0 }
 0x171   : > { %v1413_v53 = vadd.f32 %v1386_v52, %v1210_v47  ;;  %v9347_v33 = vpop.f32.mrf.mxu1 }
 0x172   : > { %v1186_v51 = vpop.f32.mrf.mxu0 }
 0x173   : > { %v1211_v55 = vadd.f32 %v1186_v51, %v1028_v0  ;;  %v1389_v56 = vpop.f32.mrf.mxu1 }
 0x174   : > { %v9312_v50 = vpop.f32.mrf.mxu0 }
 0x175   : > { %v1414_v57 = vadd.f32 %v1389_v56, %v1211_v55  ;;  %v9348_v60 = vpop.f32.mrf.mxu1 }
 0x176   : > { %v1191_v61 = vpop.f32.mrf.mxu0 }
 0x177   : > { %v1212_v62 = vadd.f32 %v1191_v61, %v1033_v5  ;;  %v1394_v63 = vpop.f32.mrf.mxu1 }
 0x178   : > { %v9315_v54 = vpop.f32.mrf.mxu0 }
 0x179   : > { %v11484_v1 = vadd.f32 %v1394_v63, %v1212_v62  ;;  %v9351_v2 = vpop.f32.mrf.mxu1 }
 0x17a   : > { %v1194_v3 = vpop.f32.mrf.mxu0 }
 0x17b   : > { %v1213_v59 = vadd.f32 %v1194_v3, %v1036_v11  ;;  %v1397_v58 = vpop.f32.mrf.mxu1 }
 0x17c   : > { %v9316_v6 = vpop.f32.mrf.mxu0 }
 0x17d   : > { %v11486_v7 = vadd.f32 %v1397_v58, %v1213_v59  ;;  %v9352_v9 = vpop.f32.mrf.mxu1 }
 0x17e   : > { %v1199_v10 = vpop.f32.mrf.mxu0 }
 0x17f   : > { %v1214_v0 = vadd.f32 %v1199_v10, %v1041_v19  ;;  %v1402_v13 = vpop.f32.mrf.mxu1 }
 0x180   : > { %v9319_v14 = vpop.f32.mrf.mxu0 }
 0x181   : > { %v11488_v16 = vadd.f32 %v1402_v13, %v1214_v0  ;;  %v9355_v17 = vpop.f32.mrf.mxu1 }
 0x182   : > { %v1202_v5 = vpop.f32.mrf.mxu0 }
 0x183   : > { %v1215_v21 = vadd.f32 %v1202_v5, %v1044_v26  ;;  %v1405_v4 = vpop.f32.mrf.mxu1 }
 0x184   : > { %v9320_v22 = vpop.f32.mrf.mxu0 }
 0x185   : > { %v11490_v24 = vadd.f32 %v1405_v4, %v1215_v21  ;;  %v9356_v27 = vpop.f32.mrf.mxu1 }
 0x186   : > { %v1581_v11 = vpop.f32.mrf.mxu0 }
 0x187   : > { %v1620_v8 = vadd.f32 %v1581_v11, %v1409_v25  ;;  %v1750_v28 = vpop.f32.mrf.mxu1 }
 0x188   : > { %v9375_v29 = vpop.f32.mrf.mxu0 }
 0x189   : > { %v11492_v30 = vadd.f32 %v1750_v28, %v1620_v8  ;;  %v9411_v31 = vpop.f32.mrf.mxu1 }
 0x18a   : > { %v1584_v19 = vpop.f32.mrf.mxu0 }
 0x18b   : > { %v1621_v12 = vadd.f32 %v1584_v19, %v1410_v23  ;;  %v1753_v15 = vpop.f32.mrf.mxu1 }
 0x18c   : > { %v9376_v18 = vpop.f32.mrf.mxu0 }
 0x18d   : > { %v11494_v32 = vadd.f32 %v1753_v15, %v1621_v12  ;;  %v9412_v20 = vpop.f32.mrf.mxu1 }
 0x18e   : > { %v1589_v26 = vpop.f32.mrf.mxu0 }
 0x18f   : > { %v1622_v34 = vadd.f32 %v1589_v26, %v1411_v40  ;;  %v1758_v35 = vpop.f32.mrf.mxu1 }
 0x190   : > { %v9379_v37 = vpop.f32.mrf.mxu0 }
 0x191   : > { %v11496_v38 = vadd.f32 %v1758_v35, %v1622_v34  ;;  %v9415_v39 = vpop.f32.mrf.mxu1 }
 0x192   : > { %v1592_v25 = vpop.f32.mrf.mxu0 }
 0x193   : > { %v1623_v41 = vadd.f32 %v1592_v25, %v1412_v46  ;;  %v1761_v43 = vpop.f32.mrf.mxu1 }
 0x194   : > { %v9380_v44 = vpop.f32.mrf.mxu0 }
 0x195   : > { %v11498_v45 = vadd.f32 %v1761_v43, %v1623_v41  ;;  %v9416_v36 = vpop.f32.mrf.mxu1 }
 0x196   : > { %v1597_v23 = vpop.f32.mrf.mxu0 }
 0x197   : > { %v1624_v48 = vadd.f32 %v1597_v23, %v1413_v53  ;;  %v1766_v49 = vpop.f32.mrf.mxu1 }
 0x198   : > { %v9383_v47 = vpop.f32.mrf.mxu0 }
 0x199   : > { %v11500_v52 = vadd.f32 %v1766_v49, %v1624_v48  ;;  %v9419_v42 = vpop.f32.mrf.mxu1 }
 0x19a   : > { %v1600_v40 = vpop.f32.mrf.mxu0 }
 0x19b   : > { %v1625_v33 = vadd.f32 %v1600_v40, %v1414_v57  ;;  %v1769_v51 = vpop.f32.mrf.mxu1 }
 0x19c   : > { %v9384_v55 = vpop.f32.mrf.mxu0 }
 0x19d   : > { %v11502_v56 = vadd.f32 %v1769_v51, %v1625_v33  ;;  %v9420_v50 = vpop.f32.mrf.mxu1 }
 0x19e   : > { %v1605_v46 = vpop.f32.mrf.mxu0 }
 0x19f   : > { %v1774_v60 = vpop.f32.mrf.mxu1  ;;  %v1626_v49 = vadd.f32 %v1605_v46, %v11484_v1 }
 0x1a0   : > { %v9387_v61 = vpop.f32.mrf.mxu0 }
 0x1a1   : > { %v9423_v62 = vpop.f32.mrf.mxu1  ;;  %v1795_v51 = vadd.f32 %v1774_v60, %v1626_v49  ;;  %v2390_v49 = vld [vmem:[%s11532_s19 + $0x10] sm:$0xff] }
 0x1a2   : > { %v1608_v63 = vpop.f32.mrf.mxu0 }
 0x1a3   : > { %v1777_v54 = vpop.f32.mrf.mxu1  ;;  %v1627_v55 = vadd.f32 %v1608_v63, %v11486_v7  ;;  %v2388_v7 = vld [vmem:[%s11532_s19] sm:$0xff] }
 0x1a4   : > { %v9388_v2 = vpop.f32.mrf.mxu0 }
 0x1a5   : > { %v9424_v53 = vpop.f32.mrf.mxu1 }
 0x1a6   : > { %v1613_v3 = vpop.f32.mrf.mxu0 }
 0x1a7   : > { %v11504_v59 = vpop.f32.mrf.mxu1 }
 0x1a8   : > { %v9391_v58 = vpop.f32.mrf.mxu0 }
 0x1a9   : > { %v9427_v6 = vpop.f32.mrf.mxu1 }
 0x1aa   : > { %v11506_v9 = vpop.f32.mrf.mxu0  ;;  %v1796_v6 = vadd.f32 %v1777_v54, %v1627_v55  ;;  %v2394_v54 = vld [vmem:[%s11532_s19 + $0x30] sm:$0xff] }
 0x1ab   : > { %v11508_v57 = vpop.f32.mrf.mxu1 }
 0x1ac   : > { %v9392_v10 = vpop.f32.mrf.mxu0 }
 0x1ad   : > { %v9428_v0 = vpop.f32.mrf.mxu1  ;;  %v1628_v10 = vadd.f32 %v1613_v3, %v11488_v16 }
 0x1ae   : > { %v1953_v13 = vpop.f32.mrf.mxu0 }
 0x1af   : > { %v2164_v14 = vpop.f32.mrf.mxu1  ;;  %v1992_v61 = vadd.f32 %v1953_v13, %v11492_v30  ;;  %v1797_v16 = vadd.f32 %v11504_v59, %v1628_v10 }
 0x1b0   : > { %v9447_v17 = vpop.f32.mrf.mxu0 }
 0x1b1   : > { %v9483_v5 = vpop.f32.mrf.mxu1  ;;  %v2203_v1 = vadd.f32 %v2164_v14, %v1992_v61 }
 0x1b2   : > { %v1956_v21 = vpop.f32.mrf.mxu0 }
 0x1b3   : > { %v2167_v4 = vpop.f32.mrf.mxu1  ;;  %v1993_v46 = vadd.f32 %v1956_v21, %v11494_v32  ;;  %v1629_v32 = vadd.f32 %v11506_v9, %v11490_v24 }
 0x1b4   : > { %v9448_v22 = vpop.f32.mrf.mxu0 }
 0x1b5   : > { %v9484_v27 = vpop.f32.mrf.mxu1  ;;  %v2204_v14 = vadd.f32 %v2167_v4, %v1993_v46  ;;  %v1798_v24 = vadd.f32 %v11508_v57, %v1629_v32 }
 0x1b6   : > { %v1961_v11 = vpop.f32.mrf.mxu0 }
 0x1b7   : > { %v11510_v8 = vpop.f32.mrf.mxu1  ;;  %v1994_v21 = vadd.f32 %v1961_v11, %v11496_v38 }
 0x1b8   : > { %v9451_v28 = vpop.f32.mrf.mxu0 }
 0x1b9   : > { %v9487_v29 = vpop.f32.mrf.mxu1  ;;  %v2205_v4 = vadd.f32 %v11510_v8, %v1994_v21 }
 0x1ba   : > { %v11512_v31 = vpop.f32.mrf.mxu0 }
 0x1bb   : > { %v11514_v19 = vpop.f32.mrf.mxu1  ;;  %v1995_v11 = vadd.f32 %v11512_v31, %v11498_v45 }
 0x1bc   : > { %v9452_v12 = vpop.f32.mrf.mxu0 }
 0x1bd   : > { %v9488_v15 = vpop.f32.mrf.mxu1  ;;  %v2206_v45 = vadd.f32 %v11514_v19, %v1995_v11 }
 0x1be   : > { %v11516_v18 = vpop.f32.mrf.mxu0 }
 0x1bf   : > { %v11518_v20 = vpop.f32.mrf.mxu1  ;;  %v1996_v31 = vadd.f32 %v11516_v18, %v11500_v52 }
 0x1c0   : > { %v9455_v26 = vpop.f32.mrf.mxu0 }
 0x1c1   : > { %v9491_v34 = vpop.f32.mrf.mxu1  ;;  %v2207_v52 = vadd.f32 %v11518_v20, %v1996_v31 }
 0x1c2   : > { %v11520_v35 = vpop.f32.mrf.mxu0  ;;  %v2389_v34 = vld [vmem:[%s11532_s19 + $0x8] sm:$0xff] }
 0x1c3   : > { %v11523_v37 = vpop.f32.mrf.mxu1  ;;  %v1997_v18 = vadd.f32 %v11520_v35, %v11502_v56 }
 0x1c4   : > { %v9456_v39 = vpop.f32.mrf.mxu0 }
 0x1c5   : > { %v9492_v25 = vpop.f32.mrf.mxu1 }
 0x1c6   : > { %v1977_v41 = vpop.f32.mrf.mxu0  ;;  %v2395_v25 = vld [vmem:[%s11532_s19 + $0x38] sm:$0xff] }
 0x1c7   : > { %v2188_v43 = vpop.f32.mrf.mxu1  ;;  %v1998_v2 = vadd.f32 %v1977_v41, %v1795_v51 }
 0x1c8   : > { %v9459_v44 = vpop.f32.mrf.mxu0 }
 0x1c9   : > { %v9495_v36 = vpop.f32.mrf.mxu1  ;;  %v2209_v5 = vadd.f32 %v2188_v43, %v1998_v2 }
 0x1ca   : > { %v1980_v23 = vpop.f32.mrf.mxu0 }
 0x1cb   : > { %v2191_v48 = vpop.f32.mrf.mxu1  ;;  %v1999_v22 = vadd.f32 %v1980_v23, %v1796_v6  ;;  %v2397_v6 = vld [vmem:[%s11532_s19 + $0x48] sm:$0xff] }
 0x1cc   : > { %v9460_v47 = vpop.f32.mrf.mxu0 }
 0x1cd   : > { %v9496_v42 = vpop.f32.mrf.mxu1  ;;  %v2210_v29 = vadd.f32 %v2191_v48, %v1999_v22 }
 0x1ce   : > { %v1985_v40 = vpop.f32.mrf.mxu0  ;;  %v2396_v42 = vld [vmem:[%s11532_s19 + $0x40] sm:$0xff] }
 0x1cf   : > { %v2196_v33 = vpop.f32.mrf.mxu1  ;;  %v2000_v12 = vadd.f32 %v1985_v40, %v1797_v16 }
 0x1d0   : > { %v9463_v50 = vpop.f32.mrf.mxu0 }
 0x1d1   : > { %v9499_v62 = vpop.f32.mrf.mxu1  ;;  %v2211_v44 = vadd.f32 %v2196_v33, %v2000_v12 }
 0x1d2   : > { %v1988_v53 = vpop.f32.mrf.mxu0  ;;  %v2391_v62 = vld [vmem:[%s11532_s19 + $0x18] sm:$0xff] }
 0x1d3   : > { %v2199_v58 = vpop.f32.mrf.mxu1  ;;  %v2001_v36 = vadd.f32 %v1988_v53, %v1798_v24 }
 0x1d4   : > { %v9464_v0 = vpop.f32.mrf.mxu0 }
 0x1d5   : > { %v9500_v17 = vpop.f32.mrf.mxu1  ;;  %v2212_v55 = vadd.f32 %v2199_v58, %v2001_v36 }
 0x1d6   : > { %v2333_v60 = vpop.f32.mrf.mxu0  ;;  %v2392_v17 = vld [vmem:[%s11532_s19 + $0x20] sm:$0xff] }
 0x1d7   : > { %v2372_v30 = vadd.f32 %v2333_v60, %v2203_v1  ;;  %v2357_v63 = vpop.f32.mrf.mxu1  ;;  %v2208_v60 = vadd.f32 %v11523_v37, %v1997_v18 }
 0x1d8   : > { %v2378_v3 = vadd.f32 %v2357_v63, %v2209_v5  ;;  %v9519_v13 = vpop.f32.mrf.mxu0  ;;  %v2393_v63 = vld [vmem:[%s11532_s19 + $0x28] sm:$0xff] }
 0x1d9   : > { %v2398_v27 = vadd.f32 %v2388_v7, %v2372_v30  ;;  %v9531_v28 = vpop.f32.mrf.mxu1 }
 0x1da   : > { %v2404_v15 = vadd.f32 %v2394_v54, %v2378_v3  ;;  %v2336_v26 = vpop.f32.mrf.mxu0 }
 0x1db   : > { %2408 = vst [vmem:[%s11532_s19] sm:$0xff] %v2398_v27  ;;  %v2373_v59 = vadd.f32 %v2336_v26, %v2204_v14  ;;  %v2360_v39 = vpop.f32.mrf.mxu1 }
 0x1dc   : > { %2414 = vst [vmem:[%s11532_s19 + $0x30] sm:$0xff] %v2404_v15  ;;  %v2379_v9 = vadd.f32 %v2360_v39, %v2210_v29  ;;  %v9520_v38 = vpop.f32.mrf.mxu0 }
 0x1dd   : > { %v2399_v41 = vadd.f32 %v2389_v34, %v2373_v59  ;;  %v9532_v43 = vpop.f32.mrf.mxu1 }
 0x1de   : > { %v2405_v23 = vadd.f32 %v2395_v25, %v2379_v9  ;;  %v2341_v48 = vpop.f32.mrf.mxu0 }
 0x1df   : > { %2409 = vst [vmem:[%s11532_s19 + $0x8] sm:$0xff] %v2399_v41  ;;  %v2374_v57 = vadd.f32 %v2341_v48, %v2205_v4  ;;  %v2365_v47 = vpop.f32.mrf.mxu1 }
 0x1e0   : > { %2415 = vst [vmem:[%s11532_s19 + $0x38] sm:$0xff] %v2405_v23  ;;  %v2380_v8 = vadd.f32 %v2365_v47, %v2211_v44  ;;  %v9523_v40 = vpop.f32.mrf.mxu0 }
 0x1e1   : > { %v2400_v33 = vadd.f32 %v2390_v49, %v2374_v57  ;;  %v9535_v51 = vpop.f32.mrf.mxu1 }
 0x1e2   : > { %v2406_v50 = vadd.f32 %v2396_v42, %v2380_v8  ;;  %v2344_v61 = vpop.f32.mrf.mxu0 }
 0x1e3   : > { %2410 = vst [vmem:[%s11532_s19 + $0x10] sm:$0xff] %v2400_v33  ;;  %v2375_v2 = vadd.f32 %v2344_v61, %v2206_v45  ;;  %v2368_v53 = vpop.f32.mrf.mxu1 }
 0x1e4   : > { %2416 = vst [vmem:[%s11532_s19 + $0x40] sm:$0xff] %v2406_v50  ;;  %v2381_v10 = vadd.f32 %v2368_v53, %v2212_v55  ;;  %v9524_v19 = vpop.f32.mrf.mxu0 }
 0x1e5   : > { %v2401_v58 = vadd.f32 %v2391_v62, %v2375_v2  ;;  %v9536_v0 = vpop.f32.mrf.mxu1 }
 0x1e6   : > { %v2407_v1 = vadd.f32 %v2397_v6, %v2381_v10  ;;  %v2349_v46 = vpop.f32.mrf.mxu0 }
 0x1e7   : > { %2411 = vst [vmem:[%s11532_s19 + $0x18] sm:$0xff] %v2401_v58  ;;  %v2376_v5 = vadd.f32 %v2349_v46, %v2207_v52 }
 0x1e8   : > { %2417 = vst [vmem:[%s11532_s19 + $0x48] sm:$0xff] %v2407_v1  ;;  %v9527_v22 = vpop.f32.mrf.mxu0 }
 0x1e9   : > { %v2402_v7 = vadd.f32 %v2392_v17, %v2376_v5 }
 0x1ea   : > { %v2352_v30 = vpop.f32.mrf.mxu0 }
 0x1eb   : > { %2412 = vst [vmem:[%s11532_s19 + $0x20] sm:$0xff] %v2402_v7  ;;  %v2377_v20 = vadd.f32 %v2352_v30, %v2208_v60 }
 0x1ec   : > { %v9528_v54 = vpop.f32.mrf.mxu0 }
 0x1ed   : > { %v2403_v16 = vadd.f32 %v2393_v63, %v2377_v20 }
 0x1ef   : > { %2413 = vst [vmem:[%s11532_s19 + $0x28] sm:$0xff] %v2403_v16 }
 0x1f0 PF: > { %p2420_p4 = scmp.lt.s32.totalorder %s10836_s12, 4 }
 0x1f2   : > { %p2421_p5 = pnand %p2420_p4, %p444_p9 }
 0x1f3   : > { %s4134_s25 = smul.u32 (!%p2421_p5), 80, %s13339_s13 }
 0x1f4   : > { %2424 = sbr.rel (%p2421_p5) target bundleno = 916 (0x394), region = 68 }
 0x1f5   : > { %s12142_s13 = scalar_lea.vmem (!%p2421_p5), [#allocation3], %s4134_s25 }
 0x1f9   : > { %v10472_v56 = vld [vmem:[%s13292_s1 + $0x2b8] sm:$0xff]   ;;  %v10754_v35 = vmov 0.0   ;;  %v10474_v32 = vld [vmem:[%s13292_s1 + $0x2b0] sm:$0xff]   ;;  %vm10755_vm14 = vmmov 0   ;;  %v10476_v13 = vld [vmem:[%s13292_s1 + $0x2a8] sm:$0xff]   ;;  %vm2816_vm0 = vcmask 1046528  }
 0x1fa   : > { %9537 = vmatprep.subr.bf16.mxu0 %v10754_v35  ;;  %9573 = vmatprep.subr.bf16.mxu1 %v10754_v35  ;;  %v10473_v37 = vld [vmem:[%s13292_s1 + $0x278] sm:$0xff]   ;;  %v10475_v3 = vld [vmem:[%s13292_s1 + $0x270] sm:$0xff]   ;;  %v10477_v14 = vld [vmem:[%s13292_s1 + $0x268] sm:$0xff]   ;;  %vm2498_vm15 = vsmask.f32 7424  ;;  %vm3399_vm2 = vcmask 1045504  }
 0x1fb   : > { %9538 = vmatpush3.bf16.msra.mxu0 %v10472_v56  ;;  %9553 = vmatprep.mubr.msk.bf16.mxu0 %vm10755_vm14, %v10754_v35  ;;  %v10478_v21 = vld [vmem:[%s13292_s1 + $0x2a0] sm:$0xff]   ;;  %v10480_v28 = vld [vmem:[%s13292_s1 + $0x298] sm:$0xff]   ;;  %v10482_v26 = vld [vmem:[%s13292_s1 + $0x290] sm:$0xff]   ;;  %vm3188_vm1 = vsmask.f32 6400  ;;  %vm3982_vm4 = vcmask 1044480  }
 0x1fc   : > { %9574 = vmatpush3.bf16.msra.mxu1 %v10473_v37  ;;  %9539 = vmatprep.subr.bf16.mxu0 %v10754_v35  ;;  %v10479_v27 = vld [vmem:[%s13292_s1 + $0x260] sm:$0xff]   ;;  %v10481_v29 = vld [vmem:[%s13292_s1 + $0x258] sm:$0xff]   ;;  %v11622_v59 = vld [vmem:[#allocation2 + $0x8] sm:$0xff]   ;;  %vm3771_vm3 = vsmask.f32 5376 }
 0x1fd   : > { %9575 = vmatprep.subr.bf16.mxu1 %v10754_v35  ;;  %9589 = vmatprep.mubr.msk.bf16.mxu1 %vm10755_vm14, %v10754_v35  ;;  %v2425_v12 = vld [vmem:[#allocation2] sm:$0xf]  ;;  %v11616_v15 = vld [vmem:[#allocation2 + $0x4] sm:$0xf]  ;;  %v10483_v39 = vld [vmem:[%s13292_s1 + $0x250] sm:$0xff]   ;;  %v2507_v4 = vshll.u32 %v11622_v59, 16 }
 0x1fe   : > { %v7894_v34 = vcombine.low %v2425_v12, %v11616_v15  ;;  %v10484_v24 = vld [vmem:[%s13292_s1 + $0x288] sm:$0xff]   ;;  %v10486_v41 = vld [vmem:[%s13292_s1 + $0x280] sm:$0xff]   ;;  %v11644_v23 = vld [vmem:[#allocation2 + $0x10] sm:$0xff]   ;;  %v2511_v57 = vshrl.u32 %v11622_v59, 16 }
 0x1ff   : > { %9540 = vmatpush3.bf16.msra.mxu0 %v10474_v32  ;;  %v10485_v11 = vld [vmem:[%s13292_s1 + $0x248] sm:$0xff]   ;;  %v10487_v43 = vld [vmem:[%s13292_s1 + $0x240] sm:$0xff]   ;;  %v2509_v36 = vrot.slane %v2507_v4, 1  ;;  %v10490_v48 = vld [vmem:[%s13292_s1 + $0x2f8] sm:$0xff]   ;;  %v2515_v47 = vshll.u32 %v11644_v23, 16  ;;  %v2519_v61 = vshrl.u32 %v11644_v23, 16 }
 0x200   : > { %9576 = vmatpush3.bf16.msra.mxu1 %v10475_v3  ;;  %9541 = vmatprep.subr.bf16.mxu0 %v10754_v35  ;;  %v2502_v25 = vshll.u32 %v7894_v34, 16  ;;  %v2500_v9 = vshrl.u32 %v7894_v34, 16  ;;  %v10493_v42 = vld [vmem:[%s13292_s1 + $0x338] sm:$0xff]   ;;  %v10491_v40 = vld [vmem:[%s13292_s1 + $0x2f0] sm:$0xff]   ;;  %v10494_v50 = vld [vmem:[%s13292_s1 + $0x2e8] sm:$0xff]   ;;  %v2820_v4 = vrot.slane %v11644_v23, 1 }
 0x201   : > { %9577 = vmatprep.subr.bf16.mxu1 %v10754_v35  ;;  %v11659_v8 = vld [vmem:[#allocation2 + $0x18] sm:$0xff]   ;;  %v2513_v45 = vor.u32 %v2511_v57, %v2509_v36  ;;  %v2517_v31 = vrot.slane %v2515_v47, 1  ;;  %v10495_v33 = vld [vmem:[%s13292_s1 + $0x330] sm:$0xff]   ;;  %v10498_v62 = vld [vmem:[%s13292_s1 + $0x328] sm:$0xff]  }
 0x202   : > { %v2504_v38 = vrot.slane %v2502_v25, 1  ;;  %v2523_v51 = vshll.u32 %v11659_v8, 16  ;;  %v10497_v53 = vld [vmem:[%s13292_s1 + $0x2e0] sm:$0xff]   ;;  %v10499_v52 = vld [vmem:[%s13292_s1 + $0x2d8] sm:$0xff]   ;;  %v2527_v58 = vshrl.u32 %v11659_v8, 16  ;;  %v10503_v22 = vld [vmem:[%s13292_s1 + $0x2d0] sm:$0xff]  }
 0x203   : > { %9542 = vmatpush3.bf16.msra.mxu0 %v10476_v13  ;;  %v2518_v55 = vsel %vm2498_vm15, %v2513_v45, %v2517_v31  ;;  %v11687_v6 = vld [vmem:[#allocation2 + $0x20] sm:$0xff]   ;;  %v2521_v10 = vor.u32 %v2519_v61, %v2517_v31  ;;  %v10502_v1 = vld [vmem:[%s13292_s1 + $0x318] sm:$0xff]   ;;  %v11709_v46 = vld [vmem:[#allocation2 + $0x28] ss:$0 sps:$4 sm:$0x11]  }
 0x204   : > { %9578 = vmatpush3.bf16.msra.mxu1 %v10477_v14  ;;  %9543 = vmatprep.subr.bf16.mxu0 %v10754_v35  ;;  %v2505_v44 = vor.u32 %v2504_v38, %v2500_v9  ;;  %v2525_v2 = vrot.slane %v2523_v51, 1  ;;  %v10500_v19 = vld [vmem:[%s13292_s1 + $0x320] sm:$0xff]   ;;  %v2531_v0 = vshll.u32 %v11687_v6, 16  ;;  %v10504_v60 = vld [vmem:[%s13292_s1 + $0x310] sm:$0xff]   ;;  %v2535_v30 = vshrl.u32 %v11687_v6, 16  ;;  %v10505_v20 = vld [vmem:[%s13292_s1 + $0x2c8] sm:$0xff]  }
 0x205   : > { %9579 = vmatprep.subr.bf16.mxu1 %v10754_v35  ;;  %v2539_v63 = vshll.u32 %v11709_v46, 16  ;;  %v10507_v54 = vld [vmem:[%s13292_s1 + $0x308] sm:$0xff]   ;;  %v10508_v16 = vld [vmem:[%s13292_s1 + $0x2c0] sm:$0xff]   ;;  %v10513_v25 = vld [vmem:[%s13292_s1 + $0x378] sm:$0xff]   ;;  %v2824_v51 = vrot.slane %v11687_v6, 1 }
 0x206   : > { %v2510_v49 = vsel %vm2498_vm15, %v2505_v44, %v2509_v36  ;;  %v2526_v18 = vsel %vm2498_vm15, %v2521_v10, %v2525_v2  ;;  %v2529_v17 = vor.u32 %v2527_v58, %v2525_v2  ;;  %v2533_v5 = vrot.slane %v2531_v0, 1  ;;  %v10509_v32 = vld [vmem:[%s13292_s1 + $0x300] sm:$0xff]   ;;  %v11748_v14 = vld [vmem:[#allocation2 + $0x8] sm:$0xf]  ;;  %v11773_v9 = vld [vmem:[#allocation2 + $0x14] sm:$0xff]  }
 0x207   : > { %9544 = vmatpush3.bf16.msra.mxu0 %v10478_v21  ;;  %v2541_v37 = vrot.slane %v2539_v63, 1  ;;  %v2795_v3 = vld [vmem:[#allocation2] sm:$0xe]  ;;  %v2964_v13 = vld [vmem:[#allocation2 + $0x4] sm:$0xe]  ;;  %v10514_v38 = vld [vmem:[%s13292_s1 + $0x370] sm:$0xff]  }
 0x208   : > { %9580 = vmatpush3.bf16.msra.mxu1 %v10479_v27  ;;  %9545 = vmatprep.subr.bf16.mxu0 %v10754_v35  ;;  %v2534_v7 = vsel %vm2498_vm15, %v2529_v17, %v2533_v5  ;;  %v2537_v56 = vor.u32 %v2535_v30, %v2533_v5  ;;  %v7932_v27 = vcombine.low %v2795_v3, %v11616_v15  ;;  %v2818_v15 = vrot.slane %v11622_v59, 1  ;;  %v10517_v44 = vld [vmem:[%s13292_s1 + $0x368] sm:$0xff]   ;;  %v10520_v57 = vld [vmem:[%s13292_s1 + $0x360] sm:$0xff]   ;;  %v10527_v61 = vld [vmem:[%s13292_s1 + $0x390] sm:$0xff]  }
 0x209   : > { %9581 = vmatprep.subr.bf16.mxu1 %v10754_v35  ;;  %v11824_v31 = vld [vmem:[#allocation2 + $0x24] sm:$0xff]   ;;  %v10529_v2 = vld [vmem:[#allocation2 + $0x2c] ss:$0 sps:$4 sm:$0x11]  }
 0x20a   : > { %v2542_v21 = vsel %vm2498_vm15, %v2537_v56, %v2541_v37  ;;  %v2817_v12 = vrot.slane %v7932_v27, 1  ;;  %v10530_v10 = vld [vmem:[%s13292_s1 + $0x388] sm:$0xff]   ;;  %v10532_v17 = vld [vmem:[%s13292_s1 + $0x380] sm:$0xff]   ;;  %v3207_v37 = vshrl.u32 %v11773_v9, 16 }
 0x20b   : > { %9546 = vmatpush3.bf16.msra.mxu0 %v10480_v28  ;;  %v11754_v28 = vcombine.low %v2964_v13, %v11748_v14  ;;  %v3378_v5 = vld [vmem:[#allocation2 + $0x4] sm:$0xc] }
 0x20c   : > { %9582 = vmatpush3.bf16.msra.mxu1 %v10481_v29  ;;  %9547 = vmatprep.subr.bf16.mxu0 %v10754_v35  ;;  %v11756_v29 = vld [vmem:[#allocation2 + $0xc] sm:$0xff]   ;;  %v3209_v27 = vrot.slane %v3207_v37, 1 }
 0x20d   : > { %9583 = vmatprep.subr.bf16.mxu1 %v10754_v35  ;;  %v3198_v58 = vshrl.u32 %v11756_v29, 16  ;;  %v3201_v0 = vshll.u32 %v11756_v29, 16  ;;  %v3401_v13 = vrot.slane %v11756_v29, 2 }
 0x20f   : > { %9548 = vmatpush3.bf16.msra.mxu0 %v10482_v26  ;;  %v3020_v26 = vrot.slane %v11754_v28, 1  ;;  %v3200_v30 = vrot.slane %v3198_v58, 1  ;;  %v3203_v63 = vrot.slane %v3201_v0, 2  ;;  %v11963_v0 = vld [vmem:[#allocation2 + $0x10] sm:$0xff]  }
 0x210   : > { %9584 = vmatpush3.bf16.msra.mxu1 %v10483_v39  ;;  %9549 = vmatprep.subr.bf16.mxu0 %v10754_v35  ;;  %v2819_v39 = vsel %vm2816_vm0, %v2817_v12, %v2818_v15 }
 0x211   : > { %9585 = vmatprep.subr.bf16.mxu1 %v10754_v35  ;;  %v3204_v56 = vor.u32 %v3203_v63, %v3200_v30  ;;  %v3784_v30 = vshll.u32 %v11963_v0, 16  ;;  %v10550_v63 = vld [vmem:[%s13292_s1 + $0x400] sm:$0xff]  }
 0x213   : > { %9550 = vmatpush3.bf16.msra.mxu0 %v10484_v24 }
 0x214   : > { %9586 = vmatpush3.bf16.msra.mxu1 %v10485_v11  ;;  %9551 = vmatprep.subr.bf16.mxu0 %v10754_v35  ;;  %v3023_v11 = vrot.slane %v11773_v9, 1 }
 0x215   : > { %9587 = vmatprep.subr.bf16.mxu1 %v10754_v35 }
 0x217   : > { %9552 = vmatpush3.bf16.msra.mxu0 %v10486_v41  ;;  %v10518_v41 = vld [vmem:[%s13292_s1 + $0x3b0] sm:$0xff]  }
 0x218   : > { %9588 = vmatpush3.bf16.msra.mxu1 %v10487_v43  ;;  %9609 = vmatprep.subr.bf16.mxu0 %v10754_v35  ;;  %v2821_v43 = vsel %vm2816_vm0, %v2818_v15, %v2820_v4  ;;  %v10536_v15 = vld [vmem:[%s13292_s1 + $0x438] sm:$0xff]  }
 0x219   : > { %9645 = vmatprep.subr.bf16.mxu1 %v10754_v35 }
 0x21a   : > { %9554 = vmatmul.mubr.bf16.vlgmr.msra.gmra.mxu0 %v2510_v49  ;;  %v2822_v49 = vrot.slane %v11659_v8, 1 }
 0x21b   : > { %9590 = vmatmul.mubr.bf16.vlgmr.msra.gmra.mxu1 %v7894_v34  ;;  %9610 = vmatpush3.bf16.msra.mxu0 %v10490_v48  ;;  %v3021_v34 = vrot.slane %v11756_v29, 1  ;;  %v10521_v48 = vld [vmem:[%s13292_s1 + $0x3a8] sm:$0xff]   ;;  %v10535_v29 = vld [vmem:[%s13292_s1 + $0x3f0] sm:$0xff]  }
 0x21c   : > { %9611 = vmatprep.subr.bf16.mxu0 %v10754_v35  ;;  %9557 = vmatprep.mubr.msk.bf16.mxu0 %vm10755_vm14, %v10754_v35 }
 0x21d   : > { %9593 = vmatprep.mubr.msk.bf16.mxu1 %vm10755_vm14, %v10754_v35  ;;  %9646 = vmatpush3.bf16.msra.mxu1 %v10493_v42  ;;  %v3022_v24 = vsel %vm2816_vm0, %v3020_v26, %v3021_v34  ;;  %v3024_v36 = vsel %vm2816_vm0, %v3021_v34, %v3023_v11  ;;  %v10523_v42 = vld [vmem:[%s13292_s1 + $0x3a0] sm:$0xff]  }
 0x21e   : > { %9647 = vmatprep.subr.bf16.mxu1 %v10754_v35 }
 0x21f   : > { %9612 = vmatpush3.bf16.msra.mxu0 %v10491_v40  ;;  %v10522_v40 = vld [vmem:[%s13292_s1 + $0x358] sm:$0xff]  }
 0x220   : > { %9613 = vmatprep.subr.bf16.mxu0 %v10754_v35 }
 0x221   : > { %9648 = vmatpush3.bf16.msra.mxu1 %v10495_v33  ;;  %v10525_v33 = vld [vmem:[%s13292_s1 + $0x398] sm:$0xff]  }
 0x222   : > { %9558 = vmatmul.mubr.bf16.gmra.mxu0 %v2518_v55  ;;  %9649 = vmatprep.subr.bf16.mxu1 %v10754_v35  ;;  %v10526_v55 = vld [vmem:[%s13292_s1 + $0x350] sm:$0xff]  }
 0x223   : > { %9594 = vmatmul.mubr.bf16.gmra.mxu1 %v11622_v59  ;;  %9614 = vmatpush3.bf16.msra.mxu0 %v10494_v50  ;;  %v10516_v59 = vld [vmem:[%s13292_s1 + $0x3b8] sm:$0xff]   ;;  %v3027_v50 = vrot.slane %v11824_v31, 1 }
 0x224   : > { %9561 = vmatprep.mubr.msk.bf16.mxu0 %vm10755_vm14, %v10754_v35  ;;  %9597 = vmatprep.mubr.msk.bf16.mxu1 %vm10755_vm14, %v10754_v35 }
 0x225   : > { %9615 = vmatprep.subr.bf16.mxu0 %v10754_v35  ;;  %9650 = vmatpush3.bf16.msra.mxu1 %v10498_v62  ;;  %v2825_v62 = vsel %vm2816_vm0, %v2822_v49, %v2824_v51 }
 0x226   : > { %9651 = vmatprep.subr.bf16.mxu1 %v10754_v35 }
 0x227   : > { %9616 = vmatpush3.bf16.msra.mxu0 %v10497_v53 }
 0x228   : > { %9617 = vmatprep.subr.bf16.mxu0 %v10754_v35 }
 0x229   : > { %9652 = vmatpush3.bf16.msra.mxu1 %v10500_v19  ;;  %v2826_v19 = vrot.slane %v11709_v46, 1  ;;  %v10531_v46 = vld [vmem:[%s13292_s1 + $0x340] sm:$0xff]  }
 0x22a   : > { %9562 = vmatmul.mubr.bf16.gmra.mxu0 %v2526_v18  ;;  %9653 = vmatprep.subr.bf16.mxu1 %v10754_v35  ;;  %v3193_v18 = vshll.u32 %v11754_v28, 16 }
 0x22b   : > { %9598 = vmatmul.mubr.bf16.gmra.mxu1 %v11644_v23  ;;  %9618 = vmatpush3.bf16.msra.mxu0 %v10499_v52  ;;  %v11798_v23 = vld [vmem:[#allocation2 + $0x1c] sm:$0xff]   ;;  %v3190_v52 = vshrl.u32 %v11754_v28, 16 }
 0x22c   : > { %9565 = vmatprep.mubr.msk.bf16.mxu0 %vm10755_vm14, %v10754_v35  ;;  %9601 = vmatprep.mubr.msk.bf16.mxu1 %vm10755_vm14, %v10754_v35  ;;  %v3025_v47 = vrot.slane %v11798_v23, 1  ;;  %v3216_v34 = vshrl.u32 %v11798_v23, 16 }
 0x22d   : > { %9619 = vmatprep.subr.bf16.mxu0 %v10754_v35  ;;  %9654 = vmatpush3.bf16.msra.mxu1 %v10502_v1  ;;  %v3029_v1 = vrot.slane %v10529_v2, 1  ;;  %v10545_v2 = vld [vmem:[%s13292_s1 + $0x410] sm:$0xff]  }
 0x22e   : > { %9655 = vmatprep.subr.bf16.mxu1 %v10754_v35  ;;  %v3026_v45 = vsel %vm2816_vm0, %v3023_v11, %v3025_v47  ;;  %v3028_v53 = vsel %vm2816_vm0, %v3025_v47, %v3027_v50 }
 0x22f   : > { %9620 = vmatpush3.bf16.msra.mxu0 %v10503_v22  ;;  %v2827_v22 = vsel %vm2816_vm0, %v2824_v51, %v2826_v19 }
 0x230   : > { %9621 = vmatprep.subr.bf16.mxu0 %v10754_v35 }
 0x231   : > { %9656 = vmatpush3.bf16.msra.mxu1 %v10504_v60  ;;  %v3192_v60 = vrot.slane %v3190_v52, 1 }
 0x232   : > { %9566 = vmatmul.mubr.bf16.gmra.mxu0 %v2534_v7  ;;  %9657 = vmatprep.subr.bf16.mxu1 %v10754_v35  ;;  %v3195_v7 = vrot.slane %v3193_v18, 2 }
 0x233   : > { %9602 = vmatmul.mubr.bf16.gmra.mxu1 %v11659_v8  ;;  %9569 = vmatprep.mubr.msk.bf16.mxu0 %vm10755_vm14, %v10754_v35  ;;  %v2823_v8 = vsel %vm2816_vm0, %v2820_v4, %v2822_v49  ;;  %v3218_v4 = vrot.slane %v3216_v34, 1  ;;  %v3405_v49 = vrot.slane %v11798_v23, 2 }
 0x234   : > { %9605 = vmatprep.mubr.msk.bf16.mxu1 %vm10755_vm14, %v10754_v35  ;;  %9622 = vmatpush3.bf16.msra.mxu0 %v10505_v20  ;;  %v3030_v20 = vsel %vm2816_vm0, %v3027_v50, %v3029_v1  ;;  %v10548_v1 = vld [vmem:[%s13292_s1 + $0x408] sm:$0xff]  }
 0x235   : > { %9658 = vmatpush3.bf16.msra.mxu1 %v10507_v54  ;;  %9623 = vmatprep.subr.bf16.mxu0 %v10754_v35  ;;  %v8012_v54 = vcombine.low %v3378_v5, %v11748_v14  ;;  %v10549_v5 = vld [vmem:[%s13292_s1 + $0x3c0] sm:$0xff]  }
 0x236   : > { %9659 = vmatprep.subr.bf16.mxu1 %v10754_v35 }
 0x237   : > { %v3400_v3 = vrot.slane %v8012_v54, 2 }
 0x238   : > { %9624 = vmatpush3.bf16.msra.mxu0 %v10508_v16  ;;  %v3196_v16 = vor.u32 %v3195_v7, %v3192_v60  ;;  %v3781_v7 = vshrl.u32 %v11963_v0, 16 }
 0x239   : > { %9660 = vmatpush3.bf16.msra.mxu1 %v10509_v32  ;;  %9681 = vmatprep.subr.bf16.mxu0 %v10754_v35  ;;  %v3210_v32 = vshll.u32 %v11773_v9, 16  ;;  %v3402_v12 = vsel %vm3399_vm2, %v3400_v3, %v3401_v13  ;;  %v11985_v3 = vld [vmem:[#allocation2 + $0x18] sm:$0xff]  }
 0x23a   : > { %9570 = vmatmul.mubr.bf16.gmra.mxu0 %v2542_v21  ;;  %9717 = vmatprep.subr.bf16.mxu1 %v10754_v35  ;;  %v3205_v14 = vsel %vm3188_vm1, %v3196_v16, %v3204_v56  ;;  %v10534_v21 = vld [vmem:[%s13292_s1 + $0x3f8] sm:$0xff]   ;;  %v3783_v37 = vrot.slane %v3781_v7, 2 }
 0x23b   : > { %9606 = vmatmul.mubr.bf16.gmra.mxu1 %v11687_v6  ;;  %9625 = vmatprep.mubr.msk.bf16.mxu0 %vm10755_vm14, %v10754_v35  ;;  %v10528_v6 = vld [vmem:[%s13292_s1 + $0x348] sm:$0xff]   ;;  %v3212_v28 = vrot.slane %v3210_v32, 2  ;;  %v3786_v32 = vrot.slane %v3784_v30, 3 }
 0x23c   : > { %9661 = vmatprep.mubr.msk.bf16.mxu1 %vm10755_vm14, %v10754_v35 }
 0x23d   : > { %v3213_v26 = vor.u32 %v3212_v28, %v3209_v27  ;;  %v3787_v27 = vor.u32 %v3786_v32, %v3783_v37  ;;  %v3790_v28 = vshrl.u32 %v11985_v3, 16 }
 0x23f   : > { %v3792_v34 = vrot.slane %v3790_v28, 2 }
 0x242   : > { %9626 = vmatmul.mubr.bf16.vlgmr.msra.gmra.mxu0 %v2819_v39  ;;  %v3219_v39 = vshll.u32 %v11798_v23, 16 }
 0x243   : > { %9662 = vmatmul.mubr.bf16.vlgmr.msra.gmra.mxu1 %v3022_v24  ;;  %9682 = vmatpush3.bf16.msra.mxu0 %v10513_v25  ;;  %v3403_v25 = vrot.slane %v11773_v9, 2  ;;  %v10538_v24 = vld [vmem:[%s13292_s1 + $0x430] sm:$0xff]  }
 0x244   : > { %9683 = vmatprep.subr.bf16.mxu0 %v10754_v35  ;;  %9629 = vmatprep.mubr.msk.bf16.mxu0 %vm10755_vm14, %v10754_v35  ;;  %v3221_v11 = vrot.slane %v3219_v39, 2 }
 0x245   : > { %9665 = vmatprep.mubr.msk.bf16.mxu1 %vm10755_vm14, %v10754_v35  ;;  %9718 = vmatpush3.bf16.msra.mxu1 %v10516_v59  ;;  %v3214_v59 = vsel %vm3188_vm1, %v3204_v56, %v3213_v26  ;;  %v3404_v9 = vsel %vm3399_vm2, %v3401_v13, %v3403_v25  ;;  %v3406_v23 = vsel %vm3399_vm2, %v3403_v25, %v3405_v49  ;;  %v12001_v25 = vld [vmem:[#allocation2 + $0x20] sm:$0xff]  }
 0x246   : > { %9719 = vmatprep.subr.bf16.mxu1 %v10754_v35 }
 0x247   : > { %9684 = vmatpush3.bf16.msra.mxu0 %v10514_v38  ;;  %v10537_v38 = vld [vmem:[%s13292_s1 + $0x3e8] sm:$0xff]  }
 0x248   : > { %9685 = vmatprep.subr.bf16.mxu0 %v10754_v35 }
 0x249   : > { %9720 = vmatpush3.bf16.msra.mxu1 %v10518_v41  ;;  %v10540_v41 = vld [vmem:[%s13292_s1 + $0x428] sm:$0xff]  }
 0x24a   : > { %9630 = vmatmul.mubr.bf16.gmra.mxu0 %v2821_v43  ;;  %9721 = vmatprep.subr.bf16.mxu1 %v10754_v35  ;;  %v3222_v43 = vor.u32 %v3221_v11, %v3218_v4  ;;  %v3799_v4 = vshrl.u32 %v12001_v25, 16  ;;  %v3802_v11 = vshll.u32 %v12001_v25, 16 }
 0x24b   : > { %9666 = vmatmul.mubr.bf16.gmra.mxu1 %v3024_v36  ;;  %9686 = vmatpush3.bf16.msra.mxu0 %v10517_v44  ;;  %v10539_v44 = vld [vmem:[%s13292_s1 + $0x3e0] sm:$0xff]   ;;  %v3225_v36 = vshrl.u32 %v11824_v31, 16 }
 0x24c   : > { %9633 = vmatprep.mubr.msk.bf16.mxu0 %vm10755_vm14, %v10754_v35  ;;  %9669 = vmatprep.mubr.msk.bf16.mxu1 %vm10755_vm14, %v10754_v35  ;;  %v3223_v47 = vsel %vm3188_vm1, %v3213_v26, %v3222_v43 }
 0x24d   : > { %9687 = vmatprep.subr.bf16.mxu0 %v10754_v35  ;;  %9722 = vmatpush3.bf16.msra.mxu1 %v10521_v48  ;;  %v3228_v48 = vshll.u32 %v11824_v31, 16 }
 0x24e   : > { %9723 = vmatprep.subr.bf16.mxu1 %v10754_v35 }
 0x24f   : > { %9688 = vmatpush3.bf16.msra.mxu0 %v10520_v57  ;;  %v10542_v57 = vld [vmem:[%s13292_s1 + $0x420] sm:$0xff]  }
 0x250   : > { %9689 = vmatprep.subr.bf16.mxu0 %v10754_v35 }
 0x251   : > { %9724 = vmatpush3.bf16.msra.mxu1 %v10523_v42  ;;  %v10541_v42 = vld [vmem:[%s13292_s1 + $0x3d8] sm:$0xff]  }
 0x252   : > { %9634 = vmatmul.mubr.bf16.gmra.mxu0 %v2823_v8  ;;  %9725 = vmatprep.subr.bf16.mxu1 %v10754_v35  ;;  %v3227_v8 = vrot.slane %v3225_v36, 1  ;;  %v3804_v36 = vrot.slane %v3802_v11, 3 }
 0x253   : > { %9670 = vmatmul.mubr.bf16.gmra.mxu1 %v3026_v45  ;;  %9690 = vmatpush3.bf16.msra.mxu0 %v10522_v40  ;;  %v3230_v40 = vrot.slane %v3228_v48, 2  ;;  %v10547_v45 = vld [vmem:[#allocation2 + $0x2c] ss:$0 sps:$4 sm:$0x33]  }
 0x254   : > { %9637 = vmatprep.mubr.msk.bf16.mxu0 %vm10755_vm14, %v10754_v35  ;;  %9673 = vmatprep.mubr.msk.bf16.mxu1 %vm10755_vm14, %v10754_v35  ;;  %v3234_v50 = vshrl.u32 %v10547_v45, 16  ;;  %v12021_v48 = vld [vmem:[#allocation2 + $0x28] sm:$0xff]  }
 0x255   : > { %9691 = vmatprep.subr.bf16.mxu0 %v10754_v35  ;;  %9726 = vmatpush3.bf16.msra.mxu1 %v10525_v33  ;;  %v10543_v33 = vld [vmem:[%s13292_s1 + $0x418] sm:$0xff]   ;;  %v3231_v51 = vor.u32 %v3230_v40, %v3227_v8  ;;  %v3811_v8 = vshll.u32 %v12021_v48, 16 }
 0x256   : > { %9727 = vmatprep.subr.bf16.mxu1 %v10754_v35  ;;  %v3236_v19 = vrot.slane %v3234_v50, 1  ;;  %v3610_v50 = vrot.slane %v12021_v48, 2 }
 0x257   : > { %9692 = vmatpush3.bf16.msra.mxu0 %v10526_v55  ;;  %v10544_v55 = vld [vmem:[%s13292_s1 + $0x3d0] sm:$0xff]  }
 0x258   : > { %9693 = vmatprep.subr.bf16.mxu0 %v10754_v35 }
 0x259   : > { %9728 = vmatpush3.bf16.msra.mxu1 %v10527_v61  ;;  %v3237_v61 = vshll.u32 %v10547_v45, 16 }
 0x25a   : > { %9638 = vmatmul.mubr.bf16.gmra.mxu0 %v2825_v62  ;;  %9729 = vmatprep.subr.bf16.mxu1 %v10754_v35  ;;  %v3407_v62 = vrot.slane %v11824_v31, 2  ;;  %v10546_v31 = vld [vmem:[%s13292_s1 + $0x3c8] sm:$0xff]  }
 0x25b   : > { %9674 = vmatmul.mubr.bf16.gmra.mxu1 %v3028_v53  ;;  %9641 = vmatprep.mubr.msk.bf16.mxu0 %vm10755_vm14, %v10754_v35  ;;  %v3547_v53 = vld [vmem:[#allocation2 + $0x8] sm:$0xc]  ;;  %v3239_v52 = vrot.slane %v3237_v61, 2  ;;  %v10561_v61 = vld [vmem:[%s13292_s1 + $0x450] sm:$0xff]  }
 0x25c   : > { %9677 = vmatprep.mubr.msk.bf16.mxu1 %vm10755_vm14, %v10754_v35  ;;  %9694 = vmatpush3.bf16.msra.mxu0 %v10528_v6  ;;  %v11953_v6 = vld [vmem:[#allocation2 + $0xc] sm:$0xf]  ;;  %v3408_v18 = vsel %vm3399_vm2, %v3405_v49, %v3407_v62  ;;  %v3608_v49 = vrot.slane %v12001_v25, 2 }
 0x25d   : > { %9730 = vmatpush3.bf16.msra.mxu1 %v10530_v10  ;;  %9695 = vmatprep.subr.bf16.mxu0 %v10754_v35  ;;  %v3232_v10 = vsel %vm3188_vm1, %v3222_v43, %v3231_v51  ;;  %v8037_v58 = vcombine.low %v3547_v53, %v11953_v6 }
 0x25e   : > { %9731 = vmatprep.subr.bf16.mxu1 %v10754_v35 }
 0x25f   : > { %v3776_v60 = vshll.u32 %v8037_v58, 16  ;;  %v3603_v13 = vrot.slane %v8037_v58, 2 }
 0x260   : > { %9696 = vmatpush3.bf16.msra.mxu0 %v10531_v46  ;;  %v3240_v46 = vor.u32 %v3239_v52, %v3236_v19  ;;  %v10563_v19 = vld [vmem:[#allocation2 + $0x30] ss:$0 sps:$4 sm:$0x33]  }
 0x261   : > { %9732 = vmatpush3.bf16.msra.mxu1 %v10532_v17  ;;  %9753 = vmatprep.subr.bf16.mxu0 %v10754_v35  ;;  %v3409_v17 = vrot.slane %v10547_v45, 2  ;;  %v3778_v56 = vrot.slane %v3776_v60, 3  ;;  %v10559_v45 = vld [vmem:[%s13292_s1 + $0x458] sm:$0xff]  }
 0x262   : > { %9642 = vmatmul.mubr.bf16.gmra.mxu0 %v2827_v22  ;;  %9789 = vmatprep.subr.bf16.mxu1 %v10754_v35  ;;  %v3773_v22 = vshrl.u32 %v8037_v58, 16 }
 0x263   : > { %9678 = vmatmul.mubr.bf16.gmra.mxu1 %v3030_v20  ;;  %9697 = vmatprep.mubr.msk.bf16.mxu0 %vm10755_vm14, %v10754_v35  ;;  %v3241_v20 = vsel %vm3188_vm1, %v3231_v51, %v3240_v46  ;;  %v3410_v54 = vsel %vm3399_vm2, %v3407_v62, %v3409_v17  ;;  %v3813_v51 = vrot.slane %v3811_v8, 3  ;;  %v10565_v17 = vld [vmem:[%s13292_s1 + $0x440] sm:$0xff]  }
 0x264   : > { %9733 = vmatprep.mubr.msk.bf16.mxu1 %vm10755_vm14, %v10754_v35  ;;  %v3775_v16 = vrot.slane %v3773_v22, 2 }
 0x26a   : > { %9698 = vmatmul.mubr.bf16.vlgmr.msra.gmra.mxu0 %v3205_v14  ;;  %v3604_v14 = vrot.slane %v11963_v0, 2 }
 0x26b   : > { %9734 = vmatmul.mubr.bf16.vlgmr.msra.gmra.mxu1 %v3402_v12  ;;  %9754 = vmatpush3.bf16.msra.mxu0 %v10534_v21  ;;  %v3779_v21 = vor.u32 %v3778_v56, %v3775_v16  ;;  %v3793_v12 = vshll.u32 %v11985_v3, 16  ;;  %v3986_v56 = vrot.slane %v11985_v3, 3 }
 0x26c   : > { %9755 = vmatprep.subr.bf16.mxu0 %v10754_v35  ;;  %9701 = vmatprep.mubr.msk.bf16.mxu0 %vm10755_vm14, %v10754_v35 }
 0x26d   : > { %9737 = vmatprep.mubr.msk.bf16.mxu1 %vm10755_vm14, %v10754_v35  ;;  %9790 = vmatpush3.bf16.msra.mxu1 %v10536_v15  ;;  %v3605_v15 = vsel %vm3399_vm2, %v3603_v13, %v3604_v14  ;;  %v3788_v26 = vsel %vm3771_vm3, %v3779_v21, %v3787_v27  ;;  %v3795_v39 = vrot.slane %v3793_v12, 3 }
 0x26e   : > { %9791 = vmatprep.subr.bf16.mxu1 %v10754_v35 }
 0x26f   : > { %9756 = vmatpush3.bf16.msra.mxu0 %v10535_v29  ;;  %v10553_v29 = vld [vmem:[%s13292_s1 + $0x478] sm:$0xff]  }
 0x270   : > { %9757 = vmatprep.subr.bf16.mxu0 %v10754_v35 }
 0x271   : > { %9792 = vmatpush3.bf16.msra.mxu1 %v10538_v24  ;;  %v10554_v24 = vld [vmem:[%s13292_s1 + $0x470] sm:$0xff]  }
 0x272   : > { %9702 = vmatmul.mubr.bf16.gmra.mxu0 %v3214_v59  ;;  %9793 = vmatprep.subr.bf16.mxu1 %v10754_v35  ;;  %v3606_v59 = vrot.slane %v11985_v3, 2 }
 0x273   : > { %9738 = vmatmul.mubr.bf16.gmra.mxu1 %v3404_v9  ;;  %9758 = vmatpush3.bf16.msra.mxu0 %v10537_v38  ;;  %v3796_v38 = vor.u32 %v3795_v39, %v3792_v34 }
 0x274   : > { %9705 = vmatprep.mubr.msk.bf16.mxu0 %vm10755_vm14, %v10754_v35  ;;  %9741 = vmatprep.mubr.msk.bf16.mxu1 %vm10755_vm14, %v10754_v35  ;;  %v3607_v9 = vsel %vm3399_vm2, %v3604_v14, %v3606_v59  ;;  %v3609_v40 = vsel %vm3399_vm2, %v3606_v59, %v3608_v49 }
 0x275   : > { %9759 = vmatprep.subr.bf16.mxu0 %v10754_v35  ;;  %9794 = vmatpush3.bf16.msra.mxu1 %v10540_v41  ;;  %v10556_v41 = vld [vmem:[%s13292_s1 + $0x468] sm:$0xff]   ;;  %v3797_v43 = vsel %vm3771_vm3, %v3787_v27, %v3796_v38 }
 0x276   : > { %9795 = vmatprep.subr.bf16.mxu1 %v10754_v35 }
 0x277   : > { %9760 = vmatpush3.bf16.msra.mxu0 %v10539_v44  ;;  %v3801_v44 = vrot.slane %v3799_v4, 2 }
 0x278   : > { %9761 = vmatprep.subr.bf16.mxu0 %v10754_v35 }
 0x279   : > { %9796 = vmatpush3.bf16.msra.mxu1 %v10542_v57  ;;  %v10558_v57 = vld [vmem:[%s13292_s1 + $0x460] sm:$0xff]  }
 0x27a   : > { %9706 = vmatmul.mubr.bf16.gmra.mxu0 %v3223_v47  ;;  %9797 = vmatprep.subr.bf16.mxu1 %v10754_v35  ;;  %v3805_v47 = vor.u32 %v3804_v36, %v3801_v44 }
 0x27b   : > { %9742 = vmatmul.mubr.bf16.gmra.mxu1 %v3406_v23  ;;  %9762 = vmatpush3.bf16.msra.mxu0 %v10541_v42  ;;  %v3808_v42 = vshrl.u32 %v12021_v48, 16 }
 0x27c   : > { %9709 = vmatprep.mubr.msk.bf16.mxu0 %vm10755_vm14, %v10754_v35  ;;  %9745 = vmatprep.mubr.msk.bf16.mxu1 %vm10755_vm14, %v10754_v35  ;;  %v3806_v23 = vsel %vm3771_vm3, %v3796_v38, %v3805_v47 }
 0x27d   : > { %9763 = vmatprep.subr.bf16.mxu0 %v10754_v35  ;;  %9798 = vmatpush3.bf16.msra.mxu1 %v10543_v33  ;;  %v3810_v33 = vrot.slane %v3808_v42, 2 }
 0x27e   : > { %9799 = vmatprep.subr.bf16.mxu1 %v10754_v35 }
 0x27f   : > { %9764 = vmatpush3.bf16.msra.mxu0 %v10544_v55  ;;  %v12042_v55 = vld [vmem:[#allocation2 + $0x30] ss:$0 sps:$4 sm:$0x77]   ;;  %v3814_v62 = vor.u32 %v3813_v51, %v3810_v33 }
 0x280   : > { %9765 = vmatprep.subr.bf16.mxu0 %v10754_v35  ;;  %v3820_v53 = vshll.u32 %v12042_v55, 16 }
 0x281   : > { %9800 = vmatpush3.bf16.msra.mxu1 %v10545_v2  ;;  %v3817_v2 = vshrl.u32 %v12042_v55, 16  ;;  %v3815_v52 = vsel %vm3771_vm3, %v3805_v47, %v3814_v62 }
 0x282   : > { %9710 = vmatmul.mubr.bf16.gmra.mxu0 %v3232_v10  ;;  %9801 = vmatprep.subr.bf16.mxu1 %v10754_v35  ;;  %v3611_v10 = vsel %vm3399_vm2, %v3608_v49, %v3610_v50  ;;  %v3822_v58 = vrot.slane %v3820_v53, 3 }
 0x283   : > { %9746 = vmatmul.mubr.bf16.gmra.mxu1 %v3408_v18  ;;  %9713 = vmatprep.mubr.msk.bf16.mxu0 %vm10755_vm14, %v10754_v35  ;;  %v10562_v18 = vld [vmem:[%s13292_s1 + $0x448] sm:$0xff]  }
 0x284   : > { %9749 = vmatprep.mubr.msk.bf16.mxu1 %vm10755_vm14, %v10754_v35  ;;  %9766 = vmatpush3.bf16.msra.mxu0 %v10546_v31  ;;  %v3819_v31 = vrot.slane %v3817_v2, 2 }
 0x285   : > { %9802 = vmatpush3.bf16.msra.mxu1 %v10548_v1  ;;  %9767 = vmatprep.subr.bf16.mxu0 %v10754_v35  ;;  %v3612_v1 = vrot.slane %v10563_v19, 2 }
 0x286   : > { %9803 = vmatprep.subr.bf16.mxu1 %v10754_v35  ;;  %v3823_v46 = vor.u32 %v3822_v58, %v3819_v31 }
 0x287   : > { %v3613_v22 = vsel %vm3399_vm2, %v3610_v50, %v3612_v1 }
 0x288   : > { %9768 = vmatpush3.bf16.msra.mxu0 %v10549_v5  ;;  %v3961_v5 = vld [vmem:[#allocation2 + $0x8] sm:$0x8]  ;;  %v3824_v7 = vsel %vm3771_vm3, %v3814_v62, %v3823_v46 }
 0x289   : > { %9804 = vmatpush3.bf16.msra.mxu1 %v10550_v63  ;;  %9825 = vmatprep.subr.bf16.mxu0 %v10754_v35  ;;  %v8092_v60 = vcombine.low %v3961_v5, %v11953_v6  ;;  %v3984_v63 = vrot.slane %v11963_v0, 3  ;;  %v3990_v6 = vrot.slane %v12021_v48, 3  ;;  %v3992_v0 = vrot.slane %v12042_v55, 3 }
 0x28a   : > { %9714 = vmatmul.mubr.bf16.gmra.mxu0 %v3241_v20  ;;  %10297 = vmatprep.subr.bf16.mxu1 %v10754_v35  ;;  %v3988_v20 = vrot.slane %v12001_v25, 3 }
 0x28b   : > { %9750 = vmatmul.mubr.bf16.gmra.mxu1 %v3410_v54  ;;  %9769 = vmatprep.mubr.msk.bf16.mxu0 %vm10755_vm14, %v10754_v35  ;;  %v3983_v30 = vrot.slane %v8092_v60, 3  ;;  %v3987_v37 = vsel %vm3982_vm4, %v3984_v63, %v3986_v56  ;;  %v3993_v32 = vsel %vm3982_vm4, %v3990_v6, %v3992_v0 }
 0x28c   : > { %9805 = vmatprep.mubr.msk.bf16.mxu1 %vm10755_vm14, %v10754_v35  ;;  %v3991_v16 = vsel %vm3982_vm4, %v3988_v20, %v3990_v6  ;;  %v3989_v13 = vsel %vm3982_vm4, %v3986_v56, %v3988_v20 }
 0x28d   : > { %v3985_v54 = vsel %vm3982_vm4, %v3983_v30, %v3984_v63 }
 0x292   : > { %9770 = vmatmul.mubr.bf16.vlgmr.msra.gmra.mxu0 %v3605_v15 }
 0x293   : > { %9806 = vmatmul.mubr.bf16.vlgmr.msra.gmra.mxu1 %v3788_v26  ;;  %9826 = vmatpush3.bf16.msra.mxu0 %v10553_v29 }
 0x294   : > { %9827 = vmatprep.subr.bf16.mxu0 %v10754_v35  ;;  %9773 = vmatprep.mubr.msk.bf16.mxu0 %vm10755_vm14, %v10754_v35 }
 0x295   : > { %9809 = vmatprep.mubr.msk.bf16.mxu1 %vm10755_vm14, %v10754_v35  ;;  %10305 = vmatpush3.bf16.msra.mxu1 %v10553_v29 }
 0x296   : > { %10298 = vmatprep.subr.bf16.mxu1 %v10754_v35 }
 0x297   : > { %9828 = vmatpush3.bf16.msra.mxu0 %v10554_v24 }
 0x298   : > { %9829 = vmatprep.subr.bf16.mxu0 %v10754_v35 }
 0x299   : > { %10306 = vmatpush3.bf16.msra.mxu1 %v10554_v24 }
 0x29a   : > { %9774 = vmatmul.mubr.bf16.gmra.mxu0 %v3607_v9  ;;  %10299 = vmatprep.subr.bf16.mxu1 %v10754_v35 }
 0x29b   : > { %9810 = vmatmul.mubr.bf16.gmra.mxu1 %v3797_v43  ;;  %9830 = vmatpush3.bf16.msra.mxu0 %v10556_v41 }
 0x29c   : > { %9777 = vmatprep.mubr.msk.bf16.mxu0 %vm10755_vm14, %v10754_v35  ;;  %9813 = vmatprep.mubr.msk.bf16.mxu1 %vm10755_vm14, %v10754_v35 }
 0x29d   : > { %9831 = vmatprep.subr.bf16.mxu0 %v10754_v35  ;;  %10307 = vmatpush3.bf16.msra.mxu1 %v10556_v41 }
 0x29e   : > { %10300 = vmatprep.subr.bf16.mxu1 %v10754_v35 }
 0x29f   : > { %9832 = vmatpush3.bf16.msra.mxu0 %v10558_v57 }
 0x2a0   : > { %9833 = vmatprep.subr.bf16.mxu0 %v10754_v35 }
 0x2a1   : > { %10308 = vmatpush3.bf16.msra.mxu1 %v10558_v57 }
 0x2a2   : > { %9778 = vmatmul.mubr.bf16.gmra.mxu0 %v3609_v40  ;;  %10301 = vmatprep.subr.bf16.mxu1 %v10754_v35 }
 0x2a3   : > { %9814 = vmatmul.mubr.bf16.gmra.mxu1 %v3806_v23  ;;  %9834 = vmatpush3.bf16.msra.mxu0 %v10559_v45 }
 0x2a4   : > { %9781 = vmatprep.mubr.msk.bf16.mxu0 %vm10755_vm14, %v10754_v35  ;;  %9817 = vmatprep.mubr.msk.bf16.mxu1 %vm10755_vm14, %v10754_v35 }
 0x2a5   : > { %10309 = vmatpush3.bf16.msra.mxu1 %v10559_v45  ;;  %9835 = vmatprep.subr.bf16.mxu0 %v10754_v35 }
 0x2a6   : > { %10302 = vmatprep.subr.bf16.mxu1 %v10754_v35 }
 0x2a7   : > { %9836 = vmatpush3.bf16.msra.mxu0 %v10561_v61 }
 0x2a8   : > { %9837 = vmatprep.subr.bf16.mxu0 %v10754_v35 }
 0x2a9   : > { %10310 = vmatpush3.bf16.msra.mxu1 %v10561_v61 }
 0x2aa   : > { %9782 = vmatmul.mubr.bf16.gmra.mxu0 %v3611_v10  ;;  %10303 = vmatprep.subr.bf16.mxu1 %v10754_v35 }
 0x2ab   : > { %9818 = vmatmul.mubr.bf16.gmra.mxu1 %v3815_v52  ;;  %9785 = vmatprep.mubr.msk.bf16.mxu0 %vm10755_vm14, %v10754_v35 }
 0x2ac   : > { %9821 = vmatprep.mubr.msk.bf16.mxu1 %vm10755_vm14, %v10754_v35  ;;  %9838 = vmatpush3.bf16.msra.mxu0 %v10562_v18 }
 0x2ad   : > { %10311 = vmatpush3.bf16.msra.mxu1 %v10562_v18  ;;  %9839 = vmatprep.subr.bf16.mxu0 %v10754_v35 }
 0x2ae   : > { %10304 = vmatprep.subr.bf16.mxu1 %v10754_v35 }
 0x2b0   : > { %9840 = vmatpush3.bf16.msra.mxu0 %v10565_v17 }
 0x2b1   : > { %10312 = vmatpush3.bf16.msra.mxu1 %v10565_v17 }
 0x2b2   : > { %9786 = vmatmul.mubr.bf16.gmra.mxu0 %v3613_v22 }
 0x2b3   : > { %9822 = vmatmul.mubr.bf16.gmra.mxu1 %v3824_v7  ;;  %9841 = vmatprep.mubr.msk.bf16.mxu0 %vm10755_vm14, %v10754_v35 }
 0x2b4   : > { %9853 = vmatprep.mubr.msk.bf16.mxu1 %vm10755_vm14, %v10754_v35 }
 0x2ba   : > { %9842 = vmatmul.mubr.bf16.vlgmr.msra.gmra.mxu0 %v3985_v54 }
 0x2bb   : > { %9854 = vmatmul.mubr.bf16.vlgmr.msra.gmra.mxu1 %v3991_v16  ;;  %9845 = vmatprep.mubr.msk.bf16.mxu0 %vm10755_vm14, %v10754_v35 }
 0x2bc   : > { %9857 = vmatprep.mubr.msk.bf16.mxu1 %vm10755_vm14, %v10754_v35 }
 0x2c2   : > { %9846 = vmatmul.mubr.bf16.gmra.mxu0 %v3987_v37 }
 0x2c3   : > { %9858 = vmatmul.mubr.bf16.gmra.mxu1 %v3993_v32  ;;  %9849 = vmatprep.mubr.msk.bf16.mxu0 %vm10755_vm14, %v10754_v35 }
 0x2ca   : > { %9850 = vmatmul.mubr.bf16.gmra.mxu0 %v3989_v13 }
 0x2da   : > { %v2630_v14 = vpop.f32.mrf.mxu0 }
 0x2db   : > { %v2756_v21 = vpop.f32.mrf.mxu1 }
 0x2dc   : > { %v2757_v3 = vadd.f32 %v2756_v21, %v2630_v14  ;;  %v9555_v27 = vpop.f32.mrf.mxu0 }
 0x2dd   : > { %v9591_v28 = vpop.f32.mrf.mxu1 }
 0x2de   : > { %v2633_v12 = vpop.f32.mrf.mxu0 }
 0x2df   : > { %v2759_v15 = vpop.f32.mrf.mxu1 }
 0x2e0   : > { %v2760_v29 = vadd.f32 %v2759_v15, %v2633_v12  ;;  %v9556_v26 = vpop.f32.mrf.mxu0 }
 0x2e1   : > { %v9592_v34 = vpop.f32.mrf.mxu1 }
 0x2e2   : > { %v2638_v39 = vpop.f32.mrf.mxu0 }
 0x2e3   : > { %v2764_v25 = vpop.f32.mrf.mxu1 }
 0x2e4   : > { %v2765_v24 = vadd.f32 %v2764_v25, %v2638_v39  ;;  %v9559_v59 = vpop.f32.mrf.mxu0 }
 0x2e5   : > { %v9595_v38 = vpop.f32.mrf.mxu1 }
 0x2e6   : > { %v2641_v4 = vpop.f32.mrf.mxu0 }
 0x2e7   : > { %v2767_v35 = vpop.f32.mrf.mxu1 }
 0x2e8   : > { %v2768_v11 = vadd.f32 %v2767_v35, %v2641_v4  ;;  %v9560_v9 = vpop.f32.mrf.mxu0 }
 0x2e9   : > { %v9596_v41 = vpop.f32.mrf.mxu1 }
 0x2ea   : > { %v2646_v43 = vpop.f32.mrf.mxu0 }
 0x2eb   : > { %v2772_v44 = vpop.f32.mrf.mxu1 }
 0x2ec   : > { %v2773_v36 = vadd.f32 %v2772_v44, %v2646_v43  ;;  %v9563_v48 = vpop.f32.mrf.mxu0 }
 0x2ed   : > { %v9599_v49 = vpop.f32.mrf.mxu1 }
 0x2ee   : > { %v2649_v57 = vpop.f32.mrf.mxu0 }
 0x2ef   : > { %v2775_v47 = vpop.f32.mrf.mxu1 }
 0x2f0   : > { %v2776_v42 = vadd.f32 %v2775_v47, %v2649_v57  ;;  %v9564_v8 = vpop.f32.mrf.mxu0 }
 0x2f1   : > { %v9600_v40 = vpop.f32.mrf.mxu1 }
 0x2f2   : > { %v2654_v45 = vpop.f32.mrf.mxu0 }
 0x2f3   : > { %v2780_v23 = vpop.f32.mrf.mxu1 }
 0x2f4   : > { %v2781_v33 = vadd.f32 %v2780_v23, %v2654_v45  ;;  %v9567_v51 = vpop.f32.mrf.mxu0 }
 0x2f5   : > { %v9603_v55 = vpop.f32.mrf.mxu1 }
 0x2f6   : > { %v2657_v50 = vpop.f32.mrf.mxu0 }
 0x2f7   : > { %v2783_v61 = vpop.f32.mrf.mxu1 }
 0x2f8   : > { %v2784_v62 = vadd.f32 %v2783_v61, %v2657_v50  ;;  %v9568_v2 = vpop.f32.mrf.mxu0 }
 0x2f9   : > { %v9604_v53 = vpop.f32.mrf.mxu1 }
 0x2fa   : > { %v2662_v10 = vpop.f32.mrf.mxu0 }
 0x2fb   : > { %v2788_v19 = vpop.f32.mrf.mxu1 }
 0x2fc   : > { %v2789_v52 = vadd.f32 %v2788_v19, %v2662_v10  ;;  %v9571_v18 = vpop.f32.mrf.mxu0 }
 0x2fd   : > { %v9607_v31 = vpop.f32.mrf.mxu1 }
 0x2fe   : > { %v2665_v58 = vpop.f32.mrf.mxu0 }
 0x2ff   : > { %v2791_v1 = vpop.f32.mrf.mxu1 }
 0x300   : > { %v2792_v46 = vadd.f32 %v2791_v1, %v2665_v58  ;;  %v9572_v17 = vpop.f32.mrf.mxu0 }
 0x301   : > { %v9608_v5 = vpop.f32.mrf.mxu1 }
 0x302   : > { %v2915_v22 = vpop.f32.mrf.mxu0 }
 0x303   : > { %v2954_v60 = vadd.f32 %v2915_v22, %v2757_v3  ;;  %v3118_v7 = vpop.f32.mrf.mxu1 }
 0x304   : > { %v9627_v30 = vpop.f32.mrf.mxu0 }
 0x305   : > { %v3157_v63 = vadd.f32 %v3118_v7, %v2954_v60  ;;  %v9663_v20 = vpop.f32.mrf.mxu1 }
 0x306   : > { %v2918_v6 = vpop.f32.mrf.mxu0 }
 0x307   : > { %v2955_v54 = vadd.f32 %v2918_v6, %v2760_v29  ;;  %v3121_v16 = vpop.f32.mrf.mxu1 }
 0x308   : > { %v9628_v56 = vpop.f32.mrf.mxu0 }
 0x309   : > { %v3158_v0 = vadd.f32 %v3121_v16, %v2955_v54  ;;  %v9664_v37 = vpop.f32.mrf.mxu1 }
 0x30a   : > { %v2923_v32 = vpop.f32.mrf.mxu0 }
 0x30b   : > { %v2956_v13 = vadd.f32 %v2923_v32, %v2765_v24  ;;  %v3126_v14 = vpop.f32.mrf.mxu1 }
 0x30c   : > { %v9631_v21 = vpop.f32.mrf.mxu0 }
 0x30d   : > { %v3159_v27 = vadd.f32 %v3126_v14, %v2956_v13  ;;  %v9667_v28 = vpop.f32.mrf.mxu1 }
 0x30e   : > { %v2926_v12 = vpop.f32.mrf.mxu0 }
 0x30f   : > { %v2957_v15 = vadd.f32 %v2926_v12, %v2768_v11  ;;  %v3129_v26 = vpop.f32.mrf.mxu1 }
 0x310   : > { %v9632_v3 = vpop.f32.mrf.mxu0 }
 0x311   : > { %v3160_v34 = vadd.f32 %v3129_v26, %v2957_v15  ;;  %v9668_v39 = vpop.f32.mrf.mxu1 }
 0x312   : > { %v2931_v25 = vpop.f32.mrf.mxu0 }
 0x313   : > { %v2958_v59 = vadd.f32 %v2931_v25, %v2773_v36  ;;  %v3134_v38 = vpop.f32.mrf.mxu1 }
 0x314   : > { %v9635_v29 = vpop.f32.mrf.mxu0 }
 0x315   : > { %v3161_v4 = vadd.f32 %v3134_v38, %v2958_v59  ;;  %v9671_v35 = vpop.f32.mrf.mxu1 }
 0x316   : > { %v2934_v9 = vpop.f32.mrf.mxu0 }
 0x317   : > { %v2959_v41 = vadd.f32 %v2934_v9, %v2776_v42  ;;  %v3137_v43 = vpop.f32.mrf.mxu1 }
 0x318   : > { %v9636_v24 = vpop.f32.mrf.mxu0 }
 0x319   : > { %v3162_v44 = vadd.f32 %v3137_v43, %v2959_v41  ;;  %v9672_v48 = vpop.f32.mrf.mxu1 }
 0x31a   : > { %v2939_v49 = vpop.f32.mrf.mxu0 }
 0x31b   : > { %v2960_v57 = vadd.f32 %v2939_v49, %v2781_v33  ;;  %v3142_v47 = vpop.f32.mrf.mxu1 }
 0x31c   : > { %v9639_v11 = vpop.f32.mrf.mxu0 }
 0x31d   : > { %v12096_v8 = vadd.f32 %v3142_v47, %v2960_v57  ;;  %v9675_v40 = vpop.f32.mrf.mxu1 }
 0x31e   : > { %v2942_v45 = vpop.f32.mrf.mxu0 }
 0x31f   : > { %v2961_v23 = vadd.f32 %v2942_v45, %v2784_v62  ;;  %v3145_v36 = vpop.f32.mrf.mxu1 }
 0x320   : > { %v9640_v51 = vpop.f32.mrf.mxu0 }
 0x321   : > { %v12098_v55 = vadd.f32 %v3145_v36, %v2961_v23  ;;  %v9676_v50 = vpop.f32.mrf.mxu1 }
 0x322   : > { %v2947_v61 = vpop.f32.mrf.mxu0 }
 0x323   : > { %v2962_v42 = vadd.f32 %v2947_v61, %v2789_v52  ;;  %v3150_v2 = vpop.f32.mrf.mxu1 }
 0x324   : > { %v9643_v53 = vpop.f32.mrf.mxu0 }
 0x325   : > { %v12100_v10 = vadd.f32 %v3150_v2, %v2962_v42  ;;  %v9679_v19 = vpop.f32.mrf.mxu1 }
 0x326   : > { %v2950_v33 = vpop.f32.mrf.mxu0 }
 0x327   : > { %v2963_v18 = vadd.f32 %v2950_v33, %v2792_v46  ;;  %v3153_v31 = vpop.f32.mrf.mxu1 }
 0x328   : > { %v9644_v58 = vpop.f32.mrf.mxu0 }
 0x329   : > { %v12102_v1 = vadd.f32 %v3153_v31, %v2963_v18  ;;  %v9680_v17 = vpop.f32.mrf.mxu1 }
 0x32a   : > { %v3329_v62 = vpop.f32.mrf.mxu0 }
 0x32b   : > { %v3368_v5 = vadd.f32 %v3329_v62, %v3157_v63  ;;  %v3498_v22 = vpop.f32.mrf.mxu1 }
 0x32c   : > { %v9699_v60 = vpop.f32.mrf.mxu0 }
 0x32d   : > { %v12104_v7 = vadd.f32 %v3498_v22, %v3368_v5  ;;  %v9735_v30 = vpop.f32.mrf.mxu1 }
 0x32e   : > { %v3332_v52 = vpop.f32.mrf.mxu0 }
 0x32f   : > { %v3369_v20 = vadd.f32 %v3332_v52, %v3158_v0  ;;  %v3501_v6 = vpop.f32.mrf.mxu1 }
 0x330   : > { %v9700_v54 = vpop.f32.mrf.mxu0 }
 0x331   : > { %v12106_v16 = vadd.f32 %v3501_v6, %v3369_v20  ;;  %v9736_v56 = vpop.f32.mrf.mxu1 }
 0x332   : > { %v3337_v46 = vpop.f32.mrf.mxu0 }
 0x333   : > { %v3370_v37 = vadd.f32 %v3337_v46, %v3159_v27  ;;  %v3506_v32 = vpop.f32.mrf.mxu1 }
 0x334   : > { %v9703_v13 = vpop.f32.mrf.mxu0 }
 0x335   : > { %v12108_v14 = vadd.f32 %v3506_v32, %v3370_v37  ;;  %v9739_v21 = vpop.f32.mrf.mxu1 }
 0x336   : > { %v3340_v63 = vpop.f32.mrf.mxu0 }
 0x337   : > { %v3371_v28 = vadd.f32 %v3340_v63, %v3160_v34  ;;  %v3509_v12 = vpop.f32.mrf.mxu1 }
 0x338   : > { %v9704_v15 = vpop.f32.mrf.mxu0 }
 0x339   : > { %v12110_v26 = vadd.f32 %v3509_v12, %v3371_v28  ;;  %v9740_v3 = vpop.f32.mrf.mxu1 }
 0x33a   : > { %v3345_v0 = vpop.f32.mrf.mxu0 }
 0x33b   : > { %v3372_v39 = vadd.f32 %v3345_v0, %v3161_v4  ;;  %v3514_v25 = vpop.f32.mrf.mxu1 }
 0x33c   : > { %v9707_v59 = vpop.f32.mrf.mxu0 }
 0x33d   : > { %v12112_v38 = vadd.f32 %v3514_v25, %v3372_v39  ;;  %v9743_v29 = vpop.f32.mrf.mxu1 }
 0x33e   : > { %v3348_v27 = vpop.f32.mrf.mxu0 }
 0x33f   : > { %v3373_v35 = vadd.f32 %v3348_v27, %v3162_v44  ;;  %v3517_v9 = vpop.f32.mrf.mxu1 }
 0x340   : > { %v9708_v41 = vpop.f32.mrf.mxu0 }
 0x341   : > { %v12114_v43 = vadd.f32 %v3517_v9, %v3373_v35  ;;  %v9744_v24 = vpop.f32.mrf.mxu1 }
 0x342   : > { %v3353_v34 = vpop.f32.mrf.mxu0 }
 0x343   : > { %v3522_v48 = vpop.f32.mrf.mxu1  ;;  %v3374_v25 = vadd.f32 %v3353_v34, %v12096_v8 }
 0x344   : > { %v9711_v49 = vpop.f32.mrf.mxu0 }
 0x345   : > { %v9747_v57 = vpop.f32.mrf.mxu1  ;;  %v3543_v9 = vadd.f32 %v3522_v48, %v3374_v25  ;;  %v4138_v25 = vld [vmem:[%s12142_s13 + $0x10] sm:$0xff] }
 0x346   : > { %v3356_v47 = vpop.f32.mrf.mxu0 }
 0x347   : > { %v3525_v11 = vpop.f32.mrf.mxu1  ;;  %v3375_v41 = vadd.f32 %v3356_v47, %v12098_v55  ;;  %v4136_v55 = vld [vmem:[%s12142_s13] sm:$0xff] }
 0x348   : > { %v9712_v40 = vpop.f32.mrf.mxu0 }
 0x349   : > { %v9748_v4 = vpop.f32.mrf.mxu1 }
 0x34a   : > { %v3361_v45 = vpop.f32.mrf.mxu0 }
 0x34b   : > { %v12116_v23 = vpop.f32.mrf.mxu1 }
 0x34c   : > { %v9715_v36 = vpop.f32.mrf.mxu0 }
 0x34d   : > { %v9751_v51 = vpop.f32.mrf.mxu1 }
 0x34e   : > { %v12118_v50 = vpop.f32.mrf.mxu0  ;;  %v3544_v51 = vadd.f32 %v3525_v11, %v3375_v41  ;;  %v4142_v11 = vld [vmem:[%s12142_s13 + $0x30] sm:$0xff] }
 0x34f   : > { %v12120_v44 = vpop.f32.mrf.mxu1 }
 0x350   : > { %v9716_v61 = vpop.f32.mrf.mxu0 }
 0x351   : > { %v9752_v42 = vpop.f32.mrf.mxu1  ;;  %v3376_v61 = vadd.f32 %v3361_v45, %v12100_v10 }
 0x352   : > { %v3701_v2 = vpop.f32.mrf.mxu0 }
 0x353   : > { %v3912_v53 = vpop.f32.mrf.mxu1  ;;  %v3740_v49 = vadd.f32 %v3701_v2, %v12104_v7  ;;  %v3545_v10 = vadd.f32 %v12116_v23, %v3376_v61 }
 0x354   : > { %v9771_v19 = vpop.f32.mrf.mxu0 }
 0x355   : > { %v9807_v33 = vpop.f32.mrf.mxu1  ;;  %v3951_v8 = vadd.f32 %v3912_v53, %v3740_v49 }
 0x356   : > { %v3704_v18 = vpop.f32.mrf.mxu0 }
 0x357   : > { %v3915_v31 = vpop.f32.mrf.mxu1  ;;  %v3741_v34 = vadd.f32 %v3704_v18, %v12106_v16  ;;  %v3377_v16 = vadd.f32 %v12118_v50, %v12102_v1 }
 0x358   : > { %v9772_v58 = vpop.f32.mrf.mxu0 }
 0x359   : > { %v9808_v17 = vpop.f32.mrf.mxu1  ;;  %v3952_v53 = vadd.f32 %v3915_v31, %v3741_v34  ;;  %v3546_v1 = vadd.f32 %v12120_v44, %v3377_v16 }
 0x35a   : > { %v3709_v62 = vpop.f32.mrf.mxu0 }
 0x35b   : > { %v12122_v5 = vpop.f32.mrf.mxu1  ;;  %v3742_v18 = vadd.f32 %v3709_v62, %v12108_v14 }
 0x35c   : > { %v9775_v22 = vpop.f32.mrf.mxu0 }
 0x35d   : > { %v9811_v60 = vpop.f32.mrf.mxu1  ;;  %v3953_v31 = vadd.f32 %v12122_v5, %v3742_v18 }
 0x35e   : > { %v12124_v30 = vpop.f32.mrf.mxu0 }
 0x35f   : > { %v12126_v52 = vpop.f32.mrf.mxu1  ;;  %v3743_v62 = vadd.f32 %v12124_v30, %v12110_v26 }
 0x360   : > { %v9776_v20 = vpop.f32.mrf.mxu0 }
 0x361   : > { %v9812_v6 = vpop.f32.mrf.mxu1  ;;  %v3954_v26 = vadd.f32 %v12126_v52, %v3743_v62 }
 0x362   : > { %v12128_v54 = vpop.f32.mrf.mxu0 }
 0x363   : > { %v12130_v56 = vpop.f32.mrf.mxu1  ;;  %v3744_v30 = vadd.f32 %v12128_v54, %v12112_v38 }
 0x364   : > { %v9779_v46 = vpop.f32.mrf.mxu0 }
 0x365   : > { %v9815_v37 = vpop.f32.mrf.mxu1  ;;  %v3955_v38 = vadd.f32 %v12130_v56, %v3744_v30 }
 0x366   : > { %v12132_v32 = vpop.f32.mrf.mxu0  ;;  %v4137_v37 = vld [vmem:[%s12142_s13 + $0x8] sm:$0xff] }
 0x367   : > { %v12134_v13 = vpop.f32.mrf.mxu1  ;;  %v3745_v54 = vadd.f32 %v12132_v32, %v12114_v43 }
 0x368   : > { %v9780_v21 = vpop.f32.mrf.mxu0 }
 0x369   : > { %v9816_v63 = vpop.f32.mrf.mxu1 }
 0x36a   : > { %v3725_v28 = vpop.f32.mrf.mxu0  ;;  %v4143_v63 = vld [vmem:[%s12142_s13 + $0x38] sm:$0xff] }
 0x36b   : > { %v3936_v12 = vpop.f32.mrf.mxu1  ;;  %v3746_v40 = vadd.f32 %v3725_v28, %v3543_v9 }
 0x36c   : > { %v9783_v15 = vpop.f32.mrf.mxu0 }
 0x36d   : > { %v9819_v3 = vpop.f32.mrf.mxu1  ;;  %v3957_v33 = vadd.f32 %v3936_v12, %v3746_v40 }
 0x36e   : > { %v3728_v0 = vpop.f32.mrf.mxu0 }
 0x36f   : > { %v3939_v39 = vpop.f32.mrf.mxu1  ;;  %v3747_v58 = vadd.f32 %v3728_v0, %v3544_v51  ;;  %v4145_v51 = vld [vmem:[%s12142_s13 + $0x48] sm:$0xff] }
 0x370   : > { %v9784_v59 = vpop.f32.mrf.mxu0 }
 0x371   : > { %v9820_v29 = vpop.f32.mrf.mxu1  ;;  %v3958_v60 = vadd.f32 %v3939_v39, %v3747_v58 }
 0x372   : > { %v3733_v27 = vpop.f32.mrf.mxu0  ;;  %v4144_v29 = vld [vmem:[%s12142_s13 + $0x40] sm:$0xff] }
 0x373   : > { %v3944_v35 = vpop.f32.mrf.mxu1  ;;  %v3748_v20 = vadd.f32 %v3733_v27, %v3545_v10 }
 0x374   : > { %v9787_v24 = vpop.f32.mrf.mxu0 }
 0x375   : > { %v9823_v57 = vpop.f32.mrf.mxu1  ;;  %v3959_v15 = vadd.f32 %v3944_v35, %v3748_v20 }
 0x376   : > { %v3736_v4 = vpop.f32.mrf.mxu0  ;;  %v4139_v57 = vld [vmem:[%s12142_s13 + $0x18] sm:$0xff] }
 0x377   : > { %v3947_v36 = vpop.f32.mrf.mxu1  ;;  %v3749_v3 = vadd.f32 %v3736_v4, %v3546_v1 }
 0x378   : > { %v9788_v42 = vpop.f32.mrf.mxu0 }
 0x379   : > { %v9824_v19 = vpop.f32.mrf.mxu1  ;;  %v3960_v41 = vadd.f32 %v3947_v36, %v3749_v3 }
 0x37a   : > { %v4081_v48 = vpop.f32.mrf.mxu0  ;;  %v4140_v19 = vld [vmem:[%s12142_s13 + $0x20] sm:$0xff] }
 0x37b   : > { %v4120_v7 = vadd.f32 %v4081_v48, %v3951_v8  ;;  %v4105_v47 = vpop.f32.mrf.mxu1  ;;  %v3956_v48 = vadd.f32 %v12134_v13, %v3745_v54 }
 0x37c   : > { %v4126_v45 = vadd.f32 %v4105_v47, %v3957_v33  ;;  %v9843_v2 = vpop.f32.mrf.mxu0  ;;  %v4141_v47 = vld [vmem:[%s12142_s13 + $0x28] sm:$0xff] }
 0x37d   : > { %v4146_v17 = vadd.f32 %v4136_v55, %v4120_v7  ;;  %v9855_v22 = vpop.f32.mrf.mxu1 }
 0x37e   : > { %v4152_v6 = vadd.f32 %v4142_v11, %v4126_v45  ;;  %v4084_v46 = vpop.f32.mrf.mxu0 }
 0x37f   : > { %4156 = vst [vmem:[%s12142_s13] sm:$0xff] %v4146_v17  ;;  %v4121_v23 = vadd.f32 %v4084_v46, %v3952_v53  ;;  %v4108_v21 = vpop.f32.mrf.mxu1 }
 0x380   : > { %4162 = vst [vmem:[%s12142_s13 + $0x30] sm:$0xff] %v4152_v6  ;;  %v4127_v50 = vadd.f32 %v4108_v21, %v3958_v60  ;;  %v9844_v14 = vpop.f32.mrf.mxu0 }
 0x381   : > { %v4147_v28 = vadd.f32 %v4137_v37, %v4121_v23  ;;  %v9856_v12 = vpop.f32.mrf.mxu1 }
 0x382   : > { %v4153_v0 = vadd.f32 %v4143_v63, %v4127_v50  ;;  %v4089_v39 = vpop.f32.mrf.mxu0 }
 0x383   : > { %4157 = vst [vmem:[%s12142_s13 + $0x8] sm:$0xff] %v4147_v28  ;;  %v4122_v44 = vadd.f32 %v4089_v39, %v3953_v31  ;;  %v4113_v59 = vpop.f32.mrf.mxu1 }
 0x384   : > { %4163 = vst [vmem:[%s12142_s13 + $0x38] sm:$0xff] %v4153_v0  ;;  %v4128_v5 = vadd.f32 %v4113_v59, %v3959_v15  ;;  %v9847_v27 = vpop.f32.mrf.mxu0 }
 0x385   : > { %v4148_v35 = vadd.f32 %v4138_v25, %v4122_v44  ;;  %v9859_v9 = vpop.f32.mrf.mxu1 }
 0x386   : > { %v4154_v24 = vadd.f32 %v4144_v29, %v4128_v5  ;;  %v4092_v49 = vpop.f32.mrf.mxu0 }
 0x387   : > { %4158 = vst [vmem:[%s12142_s13 + $0x10] sm:$0xff] %v4148_v35  ;;  %v4123_v40 = vadd.f32 %v4092_v49, %v3954_v26  ;;  %v4116_v4 = vpop.f32.mrf.mxu1 }
 0x388   : > { %4164 = vst [vmem:[%s12142_s13 + $0x40] sm:$0xff] %v4154_v24  ;;  %v4129_v61 = vadd.f32 %v4116_v4, %v3960_v41  ;;  %v9848_v52 = vpop.f32.mrf.mxu0 }
 0x389   : > { %v4149_v36 = vadd.f32 %v4139_v57, %v4123_v40  ;;  %v9860_v42 = vpop.f32.mrf.mxu1 }
 0x38a   : > { %v4155_v8 = vadd.f32 %v4145_v51, %v4129_v61  ;;  %v4097_v34 = vpop.f32.mrf.mxu0 }
 0x38b   : > { %4159 = vst [vmem:[%s12142_s13 + $0x18] sm:$0xff] %v4149_v36  ;;  %v4124_v33 = vadd.f32 %v4097_v34, %v3955_v38 }
 0x38c   : > { %4165 = vst [vmem:[%s12142_s13 + $0x48] sm:$0xff] %v4155_v8  ;;  %v9851_v58 = vpop.f32.mrf.mxu0 }
 0x38d   : > { %v4150_v55 = vadd.f32 %v4140_v19, %v4124_v33 }
 0x38e   : > { %v4100_v7 = vpop.f32.mrf.mxu0 }
 0x38f   : > { %4160 = vst [vmem:[%s12142_s13 + $0x20] sm:$0xff] %v4150_v55  ;;  %v4125_v56 = vadd.f32 %v4100_v7, %v3956_v48 }
 0x390   : > { %v9852_v11 = vpop.f32.mrf.mxu0 }
 0x391   : > { %v4151_v10 = vadd.f32 %v4141_v47, %v4125_v56 }
 0x393   : > { %4161 = vst [vmem:[%s12142_s13 + $0x28] sm:$0xff] %v4151_v10 }
 0x394 PF: > { %s12180_s26 = sadd.s32 4294967294, %s10732_s27 }
 0x395   : > { %p4167_p6 = scmp.ge.s32.totalorder %s12180_s26, 0  ;;  %p4168_p7 = scmp.lt.s32.totalorder %s12180_s26, 4 }
 0x397   : > { %p4169_p8 = pnand %p4168_p7, %p4167_p6 }
 0x398   : > { %p5878_p9 = scmp.gt.s32.totalorder (!%p4169_p8), %s12180_s26, 0  ;;  %p8346_p10 = scmp.lt.s32.totalorder (!%p4169_p8), %s12180_s26, 3 }
 0x399   : > { %4172 = sbr.rel (%p4169_p8) target bundleno = 1337 (0x539), region = 72 }
 0x39e   : > { %v10567_v43 = vld [vmem:[%s13292_s1 + $0x4f8] sm:$0xff]   ;;  %v10756_v32 = vmov 0.0   ;;  %v10569_v16 = vld [vmem:[%s13292_s1 + $0x4f0] sm:$0xff]   ;;  %vm10757_vm5 = vmmov 0   ;;  %v10571_v2 = vld [vmem:[%s13292_s1 + $0x4e8] sm:$0xff]   ;;  %vm4564_vm6 = vcmask 1046528  }
 0x39f   : > { %9861 = vmatprep.subr.bf16.mxu0 %v10756_v32  ;;  %9897 = vmatprep.subr.bf16.mxu1 %v10756_v32  ;;  %v10568_v13 = vld [vmem:[%s13292_s1 + $0x4b8] sm:$0xff]   ;;  %v10570_v45 = vld [vmem:[%s13292_s1 + $0x4b0] sm:$0xff]   ;;  %v10572_v53 = vld [vmem:[%s13292_s1 + $0x4a8] sm:$0xff]   ;;  %vm4246_vm8 = vsmask.f32 7424  ;;  %vm5147_vm9 = vcmask 1045504  }
 0x3a0   : > { %9862 = vmatpush3.bf16.msra.mxu0 %v10567_v43  ;;  %9877 = vmatprep.mubr.msk.bf16.mxu0 %vm10757_vm5, %v10756_v32  ;;  %v10573_v18 = vld [vmem:[%s13292_s1 + $0x4e0] sm:$0xff]   ;;  %v10575_v22 = vld [vmem:[%s13292_s1 + $0x4d8] sm:$0xff]   ;;  %v10577_v46 = vld [vmem:[%s13292_s1 + $0x4d0] sm:$0xff]   ;;  %vm4936_vm7 = vsmask.f32 6400  ;;  %vm5730_vm11 = vcmask 1044480  }
 0x3a1   : > { %9898 = vmatpush3.bf16.msra.mxu1 %v10568_v13  ;;  %9863 = vmatprep.subr.bf16.mxu0 %v10756_v32  ;;  %v10574_v17 = vld [vmem:[%s13292_s1 + $0x4a0] sm:$0xff]   ;;  %v10576_v60 = vld [vmem:[%s13292_s1 + $0x498] sm:$0xff]   ;;  %v12234_v23 = vld [vmem:[#allocation2 + $0x8] sm:$0xff]   ;;  %vm5519_vm10 = vsmask.f32 5376  ;;  %s5879_s7 = scalar_select %p5878_p9, %s12180_s26, 0 }
 0x3a2   : > { %9899 = vmatprep.subr.bf16.mxu1 %v10756_v32  ;;  %9913 = vmatprep.mubr.msk.bf16.mxu1 %vm10757_vm5, %v10756_v32  ;;  %v4173_v20 = vld [vmem:[#allocation2] sm:$0xf]  ;;  %v12228_v6 = vld [vmem:[#allocation2 + $0x4] sm:$0xf]  ;;  %v10578_v21 = vld [vmem:[%s13292_s1 + $0x490] sm:$0xff]   ;;  %v4255_v31 = vshll.u32 %v12234_v23, 16 }
 0x3a3   : > { %v8139_v37 = vcombine.low %v4173_v20, %v12228_v6  ;;  %v10579_v1 = vld [vmem:[%s13292_s1 + $0x4c8] sm:$0xff]   ;;  %v10581_v28 = vld [vmem:[%s13292_s1 + $0x4c0] sm:$0xff]   ;;  %v12256_v0 = vld [vmem:[#allocation2 + $0x10] sm:$0xff]   ;;  %v4259_v44 = vshrl.u32 %v12234_v23, 16  ;;  %s13343_s7 = smov (!%p8346_p10, %s5879_s7), 3 }
 0x3a4   : > { %9864 = vmatpush3.bf16.msra.mxu0 %v10569_v16  ;;  %v10580_v62 = vld [vmem:[%s13292_s1 + $0x488] sm:$0xff]   ;;  %v10582_v12 = vld [vmem:[%s13292_s1 + $0x480] sm:$0xff]   ;;  %v4257_v3 = vrot.slane %v4255_v31, 1  ;;  %v10585_v39 = vld [vmem:[%s13292_s1 + $0x538] sm:$0xff]   ;;  %v4263_v59 = vshll.u32 %v12256_v0, 16  ;;  %v4267_v49 = vshrl.u32 %v12256_v0, 16 }
 0x3a5   : > { %9900 = vmatpush3.bf16.msra.mxu1 %v10570_v45  ;;  %9865 = vmatprep.subr.bf16.mxu0 %v10756_v32  ;;  %v4250_v63 = vshll.u32 %v8139_v37, 16  ;;  %v4248_v50 = vshrl.u32 %v8139_v37, 16  ;;  %v10588_v29 = vld [vmem:[%s13292_s1 + $0x578] sm:$0xff]   ;;  %v10586_v27 = vld [vmem:[%s13292_s1 + $0x530] sm:$0xff]   ;;  %v10589_v24 = vld [vmem:[%s13292_s1 + $0x528] sm:$0xff]   ;;  %v4568_v31 = vrot.slane %v12256_v0, 1 }
 0x3a6   : > { %9901 = vmatprep.subr.bf16.mxu1 %v10756_v32  ;;  %v12271_v5 = vld [vmem:[#allocation2 + $0x18] sm:$0xff]   ;;  %v4261_v26 = vor.u32 %v4259_v44, %v4257_v3  ;;  %v4265_v30 = vrot.slane %v4263_v59, 1  ;;  %v10590_v35 = vld [vmem:[%s13292_s1 + $0x570] sm:$0xff]   ;;  %v10593_v57 = vld [vmem:[%s13292_s1 + $0x568] sm:$0xff]   ;;  %s5882_s14 = smul.u32 80, %s13343_s7 }
 0x3a7   : > { %v4252_v14 = vrot.slane %v4250_v63, 1  ;;  %v4271_v9 = vshll.u32 %v12271_v5, 16  ;;  %v10592_v4 = vld [vmem:[%s13292_s1 + $0x520] sm:$0xff]   ;;  %v10594_v38 = vld [vmem:[%s13292_s1 + $0x518] sm:$0xff]   ;;  %v4275_v36 = vshrl.u32 %v12271_v5, 16  ;;  %v10598_v58 = vld [vmem:[%s13292_s1 + $0x510] sm:$0xff]  }
 0x3a8   : > { %9866 = vmatpush3.bf16.msra.mxu0 %v10571_v2  ;;  %v4266_v41 = vsel %vm4246_vm8, %v4261_v26, %v4265_v30  ;;  %v12299_v51 = vld [vmem:[#allocation2 + $0x20] sm:$0xff]   ;;  %v4269_v61 = vor.u32 %v4267_v49, %v4265_v30  ;;  %v10597_v8 = vld [vmem:[%s13292_s1 + $0x558] sm:$0xff]   ;;  %v12321_v34 = vld [vmem:[#allocation2 + $0x28] ss:$0 sps:$4 sm:$0x11]   ;;  %s12756_s26 = scalar_lea.vmem [#allocation3], %s5882_s14 }
 0x3a9   : > { %9902 = vmatpush3.bf16.msra.mxu1 %v10572_v53  ;;  %9867 = vmatprep.subr.bf16.mxu0 %v10756_v32  ;;  %v4253_v15 = vor.u32 %v4252_v14, %v4248_v50  ;;  %v4273_v40 = vrot.slane %v4271_v9, 1  ;;  %v10595_v52 = vld [vmem:[%s13292_s1 + $0x560] sm:$0xff]   ;;  %v4279_v42 = vshll.u32 %v12299_v51, 16  ;;  %v10599_v48 = vld [vmem:[%s13292_s1 + $0x550] sm:$0xff]   ;;  %v4283_v7 = vshrl.u32 %v12299_v51, 16  ;;  %v10600_v56 = vld [vmem:[%s13292_s1 + $0x508] sm:$0xff]  }
 0x3aa   : > { %9903 = vmatprep.subr.bf16.mxu1 %v10756_v32  ;;  %v4287_v47 = vshll.u32 %v12321_v34, 16  ;;  %v10602_v11 = vld [vmem:[%s13292_s1 + $0x548] sm:$0xff]   ;;  %v10603_v10 = vld [vmem:[%s13292_s1 + $0x500] sm:$0xff]   ;;  %v10608_v63 = vld [vmem:[%s13292_s1 + $0x5b8] sm:$0xff]   ;;  %v4572_v9 = vrot.slane %v12299_v51, 1 }
 0x3ab   : > { %v4258_v25 = vsel %vm4246_vm8, %v4253_v15, %v4257_v3  ;;  %v4274_v54 = vsel %vm4246_vm8, %v4269_v61, %v4273_v40  ;;  %v4277_v19 = vor.u32 %v4275_v36, %v4273_v40  ;;  %v4281_v33 = vrot.slane %v4279_v42, 1  ;;  %v10604_v16 = vld [vmem:[%s13292_s1 + $0x540] sm:$0xff]   ;;  %v12360_v53 = vld [vmem:[#allocation2 + $0x8] sm:$0xf]  ;;  %v12385_v50 = vld [vmem:[#allocation2 + $0x14] sm:$0xff]  }
 0x3ac   : > { %9868 = vmatpush3.bf16.msra.mxu0 %v10573_v18  ;;  %v4289_v13 = vrot.slane %v4287_v47, 1  ;;  %v4543_v45 = vld [vmem:[#allocation2] sm:$0xe]  ;;  %v4712_v2 = vld [vmem:[#allocation2 + $0x4] sm:$0xe]  ;;  %v10609_v14 = vld [vmem:[%s13292_s1 + $0x5b0] sm:$0xff]  }
 0x3ad   : > { %9904 = vmatpush3.bf16.msra.mxu1 %v10574_v17  ;;  %9869 = vmatprep.subr.bf16.mxu0 %v10756_v32  ;;  %v4282_v55 = vsel %vm4246_vm8, %v4277_v19, %v4281_v33  ;;  %v4285_v43 = vor.u32 %v4283_v7, %v4281_v33  ;;  %v8177_v17 = vcombine.low %v4543_v45, %v12228_v6  ;;  %v4566_v6 = vrot.slane %v12234_v23, 1  ;;  %v10612_v15 = vld [vmem:[%s13292_s1 + $0x5a8] sm:$0xff]   ;;  %v10615_v44 = vld [vmem:[%s13292_s1 + $0x5a0] sm:$0xff]   ;;  %v10622_v49 = vld [vmem:[%s13292_s1 + $0x5d0] sm:$0xff]  }
 0x3ae   : > { %9905 = vmatprep.subr.bf16.mxu1 %v10756_v32  ;;  %v12436_v30 = vld [vmem:[#allocation2 + $0x24] sm:$0xff]   ;;  %v10624_v40 = vld [vmem:[#allocation2 + $0x2c] ss:$0 sps:$4 sm:$0x11]  }
 0x3af   : > { %v4290_v18 = vsel %vm4246_vm8, %v4285_v43, %v4289_v13  ;;  %v4565_v20 = vrot.slane %v8177_v17, 1  ;;  %v10625_v61 = vld [vmem:[%s13292_s1 + $0x5c8] sm:$0xff]   ;;  %v10627_v19 = vld [vmem:[%s13292_s1 + $0x5c0] sm:$0xff]   ;;  %v4955_v13 = vshrl.u32 %v12385_v50, 16 }
 0x3b0   : > { %9870 = vmatpush3.bf16.msra.mxu0 %v10575_v22  ;;  %v12366_v22 = vcombine.low %v4712_v2, %v12360_v53  ;;  %v5126_v33 = vld [vmem:[#allocation2 + $0x4] sm:$0xc] }
 0x3b1   : > { %9906 = vmatpush3.bf16.msra.mxu1 %v10576_v60  ;;  %9871 = vmatprep.subr.bf16.mxu0 %v10756_v32  ;;  %v12368_v60 = vld [vmem:[#allocation2 + $0xc] sm:$0xff]   ;;  %v4957_v17 = vrot.slane %v4955_v13, 1 }
 0x3b2   : > { %9907 = vmatprep.subr.bf16.mxu1 %v10756_v32  ;;  %v4946_v36 = vshrl.u32 %v12368_v60, 16  ;;  %v4949_v42 = vshll.u32 %v12368_v60, 16  ;;  %v5149_v2 = vrot.slane %v12368_v60, 2 }
 0x3b4   : > { %9872 = vmatpush3.bf16.msra.mxu0 %v10577_v46  ;;  %v4768_v46 = vrot.slane %v12366_v22, 1  ;;  %v4948_v7 = vrot.slane %v4946_v36, 1  ;;  %v4951_v47 = vrot.slane %v4949_v42, 2  ;;  %v12575_v42 = vld [vmem:[#allocation2 + $0x10] sm:$0xff]  }
 0x3b5   : > { %9908 = vmatpush3.bf16.msra.mxu1 %v10578_v21  ;;  %9873 = vmatprep.subr.bf16.mxu0 %v10756_v32  ;;  %v4567_v21 = vsel %vm4564_vm6, %v4565_v20, %v4566_v6 }
 0x3b6   : > { %9909 = vmatprep.subr.bf16.mxu1 %v10756_v32  ;;  %v4952_v43 = vor.u32 %v4951_v47, %v4948_v7  ;;  %v5532_v7 = vshll.u32 %v12575_v42, 16  ;;  %v10645_v47 = vld [vmem:[%s13292_s1 + $0x640] sm:$0xff]  }
 0x3b8   : > { %9874 = vmatpush3.bf16.msra.mxu0 %v10579_v1 }
 0x3b9   : > { %9910 = vmatpush3.bf16.msra.mxu1 %v10580_v62  ;;  %9875 = vmatprep.subr.bf16.mxu0 %v10756_v32  ;;  %v4771_v62 = vrot.slane %v12385_v50, 1 }
 0x3ba   : > { %9911 = vmatprep.subr.bf16.mxu1 %v10756_v32 }
 0x3bc   : > { %9876 = vmatpush3.bf16.msra.mxu0 %v10581_v28  ;;  %v10613_v28 = vld [vmem:[%s13292_s1 + $0x5f0] sm:$0xff]  }
 0x3bd   : > { %9912 = vmatpush3.bf16.msra.mxu1 %v10582_v12  ;;  %9933 = vmatprep.subr.bf16.mxu0 %v10756_v32  ;;  %v4569_v12 = vsel %vm4564_vm6, %v4566_v6, %v4568_v31  ;;  %v10631_v6 = vld [vmem:[%s13292_s1 + $0x678] sm:$0xff]  }
 0x3be   : > { %9969 = vmatprep.subr.bf16.mxu1 %v10756_v32 }
 0x3bf   : > { %9878 = vmatmul.mubr.bf16.vlgmr.msra.gmra.mxu0 %v4258_v25  ;;  %v4570_v25 = vrot.slane %v12271_v5, 1 }
 0x3c0   : > { %9914 = vmatmul.mubr.bf16.vlgmr.msra.gmra.mxu1 %v8139_v37  ;;  %9934 = vmatpush3.bf16.msra.mxu0 %v10585_v39  ;;  %v4769_v37 = vrot.slane %v12368_v60, 1  ;;  %v10616_v39 = vld [vmem:[%s13292_s1 + $0x5e8] sm:$0xff]   ;;  %v10630_v60 = vld [vmem:[%s13292_s1 + $0x630] sm:$0xff]  }
 0x3c1   : > { %9935 = vmatprep.subr.bf16.mxu0 %v10756_v32  ;;  %9881 = vmatprep.mubr.msk.bf16.mxu0 %vm10757_vm5, %v10756_v32 }
 0x3c2   : > { %9917 = vmatprep.mubr.msk.bf16.mxu1 %vm10757_vm5, %v10756_v32  ;;  %9970 = vmatpush3.bf16.msra.mxu1 %v10588_v29  ;;  %v4770_v1 = vsel %vm4564_vm6, %v4768_v46, %v4769_v37  ;;  %v4772_v3 = vsel %vm4564_vm6, %v4769_v37, %v4771_v62  ;;  %v10618_v29 = vld [vmem:[%s13292_s1 + $0x5e0] sm:$0xff]  }
 0x3c3   : > { %9971 = vmatprep.subr.bf16.mxu1 %v10756_v32 }
 0x3c4   : > { %9936 = vmatpush3.bf16.msra.mxu0 %v10586_v27  ;;  %v10617_v27 = vld [vmem:[%s13292_s1 + $0x598] sm:$0xff]  }
 0x3c5   : > { %9937 = vmatprep.subr.bf16.mxu0 %v10756_v32 }
 0x3c6   : > { %9972 = vmatpush3.bf16.msra.mxu1 %v10590_v35  ;;  %v10620_v35 = vld [vmem:[%s13292_s1 + $0x5d8] sm:$0xff]  }
 0x3c7   : > { %9882 = vmatmul.mubr.bf16.gmra.mxu0 %v4266_v41  ;;  %9973 = vmatprep.subr.bf16.mxu1 %v10756_v32  ;;  %v10621_v41 = vld [vmem:[%s13292_s1 + $0x590] sm:$0xff]  }
 0x3c8   : > { %9918 = vmatmul.mubr.bf16.gmra.mxu1 %v12234_v23  ;;  %9938 = vmatpush3.bf16.msra.mxu0 %v10589_v24  ;;  %v10611_v23 = vld [vmem:[%s13292_s1 + $0x5f8] sm:$0xff]   ;;  %v4775_v24 = vrot.slane %v12436_v30, 1 }
 0x3c9   : > { %9885 = vmatprep.mubr.msk.bf16.mxu0 %vm10757_vm5, %v10756_v32  ;;  %9921 = vmatprep.mubr.msk.bf16.mxu1 %vm10757_vm5, %v10756_v32 }
 0x3ca   : > { %9939 = vmatprep.subr.bf16.mxu0 %v10756_v32  ;;  %9974 = vmatpush3.bf16.msra.mxu1 %v10593_v57  ;;  %v4573_v57 = vsel %vm4564_vm6, %v4570_v25, %v4572_v9 }
 0x3cb   : > { %9975 = vmatprep.subr.bf16.mxu1 %v10756_v32 }
 0x3cc   : > { %9940 = vmatpush3.bf16.msra.mxu0 %v10592_v4 }
 0x3cd   : > { %9941 = vmatprep.subr.bf16.mxu0 %v10756_v32 }
 0x3ce   : > { %9976 = vmatpush3.bf16.msra.mxu1 %v10595_v52  ;;  %v4574_v52 = vrot.slane %v12321_v34, 1  ;;  %v10626_v34 = vld [vmem:[%s13292_s1 + $0x580] sm:$0xff]  }
 0x3cf   : > { %9886 = vmatmul.mubr.bf16.gmra.mxu0 %v4274_v54  ;;  %9977 = vmatprep.subr.bf16.mxu1 %v10756_v32  ;;  %v4941_v54 = vshll.u32 %v12366_v22, 16 }
 0x3d0   : > { %9922 = vmatmul.mubr.bf16.gmra.mxu1 %v12256_v0  ;;  %9942 = vmatpush3.bf16.msra.mxu0 %v10594_v38  ;;  %v12410_v0 = vld [vmem:[#allocation2 + $0x1c] sm:$0xff]   ;;  %v4938_v38 = vshrl.u32 %v12366_v22, 16 }
 0x3d1   : > { %9889 = vmatprep.mubr.msk.bf16.mxu0 %vm10757_vm5, %v10756_v32  ;;  %9925 = vmatprep.mubr.msk.bf16.mxu1 %vm10757_vm5, %v10756_v32  ;;  %v4773_v59 = vrot.slane %v12410_v0, 1  ;;  %v4964_v37 = vshrl.u32 %v12410_v0, 16 }
 0x3d2   : > { %9943 = vmatprep.subr.bf16.mxu0 %v10756_v32  ;;  %9978 = vmatpush3.bf16.msra.mxu1 %v10597_v8  ;;  %v4777_v8 = vrot.slane %v10624_v40, 1  ;;  %v10640_v40 = vld [vmem:[%s13292_s1 + $0x650] sm:$0xff]  }
 0x3d3   : > { %9979 = vmatprep.subr.bf16.mxu1 %v10756_v32  ;;  %v4774_v26 = vsel %vm4564_vm6, %v4771_v62, %v4773_v59  ;;  %v4776_v4 = vsel %vm4564_vm6, %v4773_v59, %v4775_v24 }
 0x3d4   : > { %9944 = vmatpush3.bf16.msra.mxu0 %v10598_v58  ;;  %v4575_v58 = vsel %vm4564_vm6, %v4572_v9, %v4574_v52 }
 0x3d5   : > { %9945 = vmatprep.subr.bf16.mxu0 %v10756_v32 }
 0x3d6   : > { %9980 = vmatpush3.bf16.msra.mxu1 %v10599_v48  ;;  %v4940_v48 = vrot.slane %v4938_v38, 1 }
 0x3d7   : > { %9890 = vmatmul.mubr.bf16.gmra.mxu0 %v4282_v55  ;;  %9981 = vmatprep.subr.bf16.mxu1 %v10756_v32  ;;  %v4943_v55 = vrot.slane %v4941_v54, 2 }
 0x3d8   : > { %9926 = vmatmul.mubr.bf16.gmra.mxu1 %v12271_v5  ;;  %9893 = vmatprep.mubr.msk.bf16.mxu0 %vm10757_vm5, %v10756_v32  ;;  %v4571_v5 = vsel %vm4564_vm6, %v4568_v31, %v4570_v25  ;;  %v4966_v31 = vrot.slane %v4964_v37, 1  ;;  %v5153_v25 = vrot.slane %v12410_v0, 2 }
 0x3d9   : > { %9929 = vmatprep.mubr.msk.bf16.mxu1 %vm10757_vm5, %v10756_v32  ;;  %9946 = vmatpush3.bf16.msra.mxu0 %v10600_v56  ;;  %v4778_v56 = vsel %vm4564_vm6, %v4775_v24, %v4777_v8  ;;  %v10643_v8 = vld [vmem:[%s13292_s1 + $0x648] sm:$0xff]  }
 0x3da   : > { %9982 = vmatpush3.bf16.msra.mxu1 %v10602_v11  ;;  %9947 = vmatprep.subr.bf16.mxu0 %v10756_v32  ;;  %v8257_v11 = vcombine.low %v5126_v33, %v12360_v53  ;;  %v10644_v33 = vld [vmem:[%s13292_s1 + $0x600] sm:$0xff]  }
 0x3db   : > { %9983 = vmatprep.subr.bf16.mxu1 %v10756_v32 }
 0x3dc   : > { %v5148_v45 = vrot.slane %v8257_v11, 2 }
 0x3dd   : > { %9948 = vmatpush3.bf16.msra.mxu0 %v10603_v10  ;;  %v4944_v10 = vor.u32 %v4943_v55, %v4940_v48  ;;  %v5529_v55 = vshrl.u32 %v12575_v42, 16 }
 0x3de   : > { %9984 = vmatpush3.bf16.msra.mxu1 %v10604_v16  ;;  %10005 = vmatprep.subr.bf16.mxu0 %v10756_v32  ;;  %v4958_v16 = vshll.u32 %v12385_v50, 16  ;;  %v5150_v20 = vsel %vm5147_vm9, %v5148_v45, %v5149_v2  ;;  %v12597_v45 = vld [vmem:[#allocation2 + $0x18] sm:$0xff]  }
 0x3df   : > { %9894 = vmatmul.mubr.bf16.gmra.mxu0 %v4290_v18  ;;  %10041 = vmatprep.subr.bf16.mxu1 %v10756_v32  ;;  %v4953_v53 = vsel %vm4936_vm7, %v4944_v10, %v4952_v43  ;;  %v10629_v18 = vld [vmem:[%s13292_s1 + $0x638] sm:$0xff]   ;;  %v5531_v13 = vrot.slane %v5529_v55, 2 }
 0x3e0   : > { %9930 = vmatmul.mubr.bf16.gmra.mxu1 %v12299_v51  ;;  %9949 = vmatprep.mubr.msk.bf16.mxu0 %vm10757_vm5, %v10756_v32  ;;  %v10623_v51 = vld [vmem:[%s13292_s1 + $0x588] sm:$0xff]   ;;  %v4960_v22 = vrot.slane %v4958_v16, 2  ;;  %v5534_v16 = vrot.slane %v5532_v7, 3 }
 0x3e1   : > { %9985 = vmatprep.mubr.msk.bf16.mxu1 %vm10757_vm5, %v10756_v32 }
 0x3e2   : > { %v4961_v46 = vor.u32 %v4960_v22, %v4957_v17  ;;  %v5535_v17 = vor.u32 %v5534_v16, %v5531_v13  ;;  %v5538_v22 = vshrl.u32 %v12597_v45, 16 }
 0x3e4   : > { %v5540_v37 = vrot.slane %v5538_v22, 2 }
 0x3e7   : > { %9950 = vmatmul.mubr.bf16.vlgmr.msra.gmra.mxu0 %v4567_v21  ;;  %v4967_v21 = vshll.u32 %v12410_v0, 16 }
 0x3e8   : > { %9986 = vmatmul.mubr.bf16.vlgmr.msra.gmra.mxu1 %v4770_v1  ;;  %10006 = vmatpush3.bf16.msra.mxu0 %v10608_v63  ;;  %v5151_v63 = vrot.slane %v12385_v50, 2  ;;  %v10633_v1 = vld [vmem:[%s13292_s1 + $0x670] sm:$0xff]  }
 0x3e9   : > { %10007 = vmatprep.subr.bf16.mxu0 %v10756_v32  ;;  %9953 = vmatprep.mubr.msk.bf16.mxu0 %vm10757_vm5, %v10756_v32  ;;  %v4969_v62 = vrot.slane %v4967_v21, 2 }
 0x3ea   : > { %9989 = vmatprep.mubr.msk.bf16.mxu1 %vm10757_vm5, %v10756_v32  ;;  %10042 = vmatpush3.bf16.msra.mxu1 %v10611_v23  ;;  %v4962_v23 = vsel %vm4936_vm7, %v4952_v43, %v4961_v46  ;;  %v5152_v50 = vsel %vm5147_vm9, %v5149_v2, %v5151_v63  ;;  %v5154_v0 = vsel %vm5147_vm9, %v5151_v63, %v5153_v25  ;;  %v12613_v63 = vld [vmem:[#allocation2 + $0x20] sm:$0xff]  }
 0x3eb   : > { %10043 = vmatprep.subr.bf16.mxu1 %v10756_v32 }
 0x3ec   : > { %10008 = vmatpush3.bf16.msra.mxu0 %v10609_v14  ;;  %v10632_v14 = vld [vmem:[%s13292_s1 + $0x628] sm:$0xff]  }
 0x3ed   : > { %10009 = vmatprep.subr.bf16.mxu0 %v10756_v32 }
 0x3ee   : > { %10044 = vmatpush3.bf16.msra.mxu1 %v10613_v28  ;;  %v10635_v28 = vld [vmem:[%s13292_s1 + $0x668] sm:$0xff]  }
 0x3ef   : > { %9954 = vmatmul.mubr.bf16.gmra.mxu0 %v4569_v12  ;;  %10045 = vmatprep.subr.bf16.mxu1 %v10756_v32  ;;  %v4970_v12 = vor.u32 %v4969_v62, %v4966_v31  ;;  %v5547_v31 = vshrl.u32 %v12613_v63, 16  ;;  %v5550_v62 = vshll.u32 %v12613_v63, 16 }
 0x3f0   : > { %9990 = vmatmul.mubr.bf16.gmra.mxu1 %v4772_v3  ;;  %10010 = vmatpush3.bf16.msra.mxu0 %v10612_v15  ;;  %v10634_v15 = vld [vmem:[%s13292_s1 + $0x620] sm:$0xff]   ;;  %v4973_v3 = vshrl.u32 %v12436_v30, 16 }
 0x3f1   : > { %9957 = vmatprep.mubr.msk.bf16.mxu0 %vm10757_vm5, %v10756_v32  ;;  %9993 = vmatprep.mubr.msk.bf16.mxu1 %vm10757_vm5, %v10756_v32  ;;  %v4971_v59 = vsel %vm4936_vm7, %v4961_v46, %v4970_v12 }
 0x3f2   : > { %10011 = vmatprep.subr.bf16.mxu0 %v10756_v32  ;;  %10046 = vmatpush3.bf16.msra.mxu1 %v10616_v39  ;;  %v4976_v39 = vshll.u32 %v12436_v30, 16 }
 0x3f3   : > { %10047 = vmatprep.subr.bf16.mxu1 %v10756_v32 }
 0x3f4   : > { %10012 = vmatpush3.bf16.msra.mxu0 %v10615_v44  ;;  %v10637_v44 = vld [vmem:[%s13292_s1 + $0x660] sm:$0xff]  }
 0x3f5   : > { %10013 = vmatprep.subr.bf16.mxu0 %v10756_v32 }
 0x3f6   : > { %10048 = vmatpush3.bf16.msra.mxu1 %v10618_v29  ;;  %v10636_v29 = vld [vmem:[%s13292_s1 + $0x618] sm:$0xff]  }
 0x3f7   : > { %9958 = vmatmul.mubr.bf16.gmra.mxu0 %v4571_v5  ;;  %10049 = vmatprep.subr.bf16.mxu1 %v10756_v32  ;;  %v4975_v5 = vrot.slane %v4973_v3, 1  ;;  %v5552_v3 = vrot.slane %v5550_v62, 3 }
 0x3f8   : > { %9994 = vmatmul.mubr.bf16.gmra.mxu1 %v4774_v26  ;;  %10014 = vmatpush3.bf16.msra.mxu0 %v10617_v27  ;;  %v4978_v27 = vrot.slane %v4976_v39, 2  ;;  %v10642_v26 = vld [vmem:[#allocation2 + $0x2c] ss:$0 sps:$4 sm:$0x33]  }
 0x3f9   : > { %9961 = vmatprep.mubr.msk.bf16.mxu0 %vm10757_vm5, %v10756_v32  ;;  %9997 = vmatprep.mubr.msk.bf16.mxu1 %vm10757_vm5, %v10756_v32  ;;  %v4982_v24 = vshrl.u32 %v10642_v26, 16  ;;  %v12633_v39 = vld [vmem:[#allocation2 + $0x28] sm:$0xff]  }
 0x3fa   : > { %10015 = vmatprep.subr.bf16.mxu0 %v10756_v32  ;;  %10050 = vmatpush3.bf16.msra.mxu1 %v10620_v35  ;;  %v10638_v35 = vld [vmem:[%s13292_s1 + $0x658] sm:$0xff]   ;;  %v4979_v9 = vor.u32 %v4978_v27, %v4975_v5  ;;  %v5559_v5 = vshll.u32 %v12633_v39, 16 }
 0x3fb   : > { %10051 = vmatprep.subr.bf16.mxu1 %v10756_v32  ;;  %v4984_v52 = vrot.slane %v4982_v24, 1  ;;  %v5358_v24 = vrot.slane %v12633_v39, 2 }
 0x3fc   : > { %10016 = vmatpush3.bf16.msra.mxu0 %v10621_v41  ;;  %v10639_v41 = vld [vmem:[%s13292_s1 + $0x610] sm:$0xff]  }
 0x3fd   : > { %10017 = vmatprep.subr.bf16.mxu0 %v10756_v32 }
 0x3fe   : > { %10052 = vmatpush3.bf16.msra.mxu1 %v10622_v49  ;;  %v4985_v49 = vshll.u32 %v10642_v26, 16 }
 0x3ff   : > { %9962 = vmatmul.mubr.bf16.gmra.mxu0 %v4573_v57  ;;  %10053 = vmatprep.subr.bf16.mxu1 %v10756_v32  ;;  %v5155_v57 = vrot.slane %v12436_v30, 2  ;;  %v10641_v30 = vld [vmem:[%s13292_s1 + $0x608] sm:$0xff]  }
 0x400   : > { %9998 = vmatmul.mubr.bf16.gmra.mxu1 %v4776_v4  ;;  %9965 = vmatprep.mubr.msk.bf16.mxu0 %vm10757_vm5, %v10756_v32  ;;  %v5295_v4 = vld [vmem:[#allocation2 + $0x8] sm:$0xc]  ;;  %v4987_v38 = vrot.slane %v4985_v49, 2  ;;  %v10656_v49 = vld [vmem:[%s13292_s1 + $0x690] sm:$0xff]  }
 0x401   : > { %10001 = vmatprep.mubr.msk.bf16.mxu1 %vm10757_vm5, %v10756_v32  ;;  %10018 = vmatpush3.bf16.msra.mxu0 %v10623_v51  ;;  %v12565_v51 = vld [vmem:[#allocation2 + $0xc] sm:$0xf]  ;;  %v5156_v54 = vsel %vm5147_vm9, %v5153_v25, %v5155_v57  ;;  %v5356_v25 = vrot.slane %v12613_v63, 2 }
 0x402   : > { %10054 = vmatpush3.bf16.msra.mxu1 %v10625_v61  ;;  %10019 = vmatprep.subr.bf16.mxu0 %v10756_v32  ;;  %v4980_v61 = vsel %vm4936_vm7, %v4970_v12, %v4979_v9  ;;  %v8282_v36 = vcombine.low %v5295_v4, %v12565_v51 }
 0x403   : > { %10055 = vmatprep.subr.bf16.mxu1 %v10756_v32 }
 0x404   : > { %v5524_v48 = vshll.u32 %v8282_v36, 16  ;;  %v5351_v2 = vrot.slane %v8282_v36, 2 }
 0x405   : > { %10020 = vmatpush3.bf16.msra.mxu0 %v10626_v34  ;;  %v4988_v34 = vor.u32 %v4987_v38, %v4984_v52  ;;  %v10658_v52 = vld [vmem:[#allocation2 + $0x30] ss:$0 sps:$4 sm:$0x33]  }
 0x406   : > { %10056 = vmatpush3.bf16.msra.mxu1 %v10627_v19  ;;  %10077 = vmatprep.subr.bf16.mxu0 %v10756_v32  ;;  %v5157_v19 = vrot.slane %v10642_v26, 2  ;;  %v5526_v43 = vrot.slane %v5524_v48, 3  ;;  %v10654_v26 = vld [vmem:[%s13292_s1 + $0x698] sm:$0xff]  }
 0x407   : > { %9966 = vmatmul.mubr.bf16.gmra.mxu0 %v4575_v58  ;;  %10113 = vmatprep.subr.bf16.mxu1 %v10756_v32  ;;  %v5521_v58 = vshrl.u32 %v8282_v36, 16 }
 0x408   : > { %10002 = vmatmul.mubr.bf16.gmra.mxu1 %v4778_v56  ;;  %10021 = vmatprep.mubr.msk.bf16.mxu0 %vm10757_vm5, %v10756_v32  ;;  %v4989_v56 = vsel %vm4936_vm7, %v4979_v9, %v4988_v34  ;;  %v5158_v11 = vsel %vm5147_vm9, %v5155_v57, %v5157_v19  ;;  %v5561_v9 = vrot.slane %v5559_v5, 3  ;;  %v10660_v19 = vld [vmem:[%s13292_s1 + $0x680] sm:$0xff]  }
 0x409   : > { %10057 = vmatprep.mubr.msk.bf16.mxu1 %vm10757_vm5, %v10756_v32  ;;  %v5523_v10 = vrot.slane %v5521_v58, 2 }
 0x40f   : > { %10022 = vmatmul.mubr.bf16.vlgmr.msra.gmra.mxu0 %v4953_v53  ;;  %v5352_v53 = vrot.slane %v12575_v42, 2 }
 0x410   : > { %10058 = vmatmul.mubr.bf16.vlgmr.msra.gmra.mxu1 %v5150_v20  ;;  %10078 = vmatpush3.bf16.msra.mxu0 %v10629_v18  ;;  %v5527_v18 = vor.u32 %v5526_v43, %v5523_v10  ;;  %v5541_v20 = vshll.u32 %v12597_v45, 16  ;;  %v5734_v43 = vrot.slane %v12597_v45, 3 }
 0x411   : > { %10079 = vmatprep.subr.bf16.mxu0 %v10756_v32  ;;  %10025 = vmatprep.mubr.msk.bf16.mxu0 %vm10757_vm5, %v10756_v32 }
 0x412   : > { %10061 = vmatprep.mubr.msk.bf16.mxu1 %vm10757_vm5, %v10756_v32  ;;  %10114 = vmatpush3.bf16.msra.mxu1 %v10631_v6  ;;  %v5353_v6 = vsel %vm5147_vm9, %v5351_v2, %v5352_v53  ;;  %v5536_v46 = vsel %vm5519_vm10, %v5527_v18, %v5535_v17  ;;  %v5543_v21 = vrot.slane %v5541_v20, 3 }
 0x413   : > { %10115 = vmatprep.subr.bf16.mxu1 %v10756_v32 }
 0x414   : > { %10080 = vmatpush3.bf16.msra.mxu0 %v10630_v60  ;;  %v10648_v60 = vld [vmem:[%s13292_s1 + $0x6b8] sm:$0xff]  }
 0x415   : > { %10081 = vmatprep.subr.bf16.mxu0 %v10756_v32 }
 0x416   : > { %10116 = vmatpush3.bf16.msra.mxu1 %v10633_v1  ;;  %v10649_v1 = vld [vmem:[%s13292_s1 + $0x6b0] sm:$0xff]  }
 0x417   : > { %10026 = vmatmul.mubr.bf16.gmra.mxu0 %v4962_v23  ;;  %10117 = vmatprep.subr.bf16.mxu1 %v10756_v32  ;;  %v5354_v23 = vrot.slane %v12597_v45, 2 }
 0x418   : > { %10062 = vmatmul.mubr.bf16.gmra.mxu1 %v5152_v50  ;;  %10082 = vmatpush3.bf16.msra.mxu0 %v10632_v14  ;;  %v5544_v14 = vor.u32 %v5543_v21, %v5540_v37 }
 0x419   : > { %10029 = vmatprep.mubr.msk.bf16.mxu0 %vm10757_vm5, %v10756_v32  ;;  %10065 = vmatprep.mubr.msk.bf16.mxu1 %vm10757_vm5, %v10756_v32  ;;  %v5355_v50 = vsel %vm5147_vm9, %v5352_v53, %v5354_v23  ;;  %v5357_v27 = vsel %vm5147_vm9, %v5354_v23, %v5356_v25 }
 0x41a   : > { %10083 = vmatprep.subr.bf16.mxu0 %v10756_v32  ;;  %10118 = vmatpush3.bf16.msra.mxu1 %v10635_v28  ;;  %v10651_v28 = vld [vmem:[%s13292_s1 + $0x6a8] sm:$0xff]   ;;  %v5545_v12 = vsel %vm5519_vm10, %v5535_v17, %v5544_v14 }
 0x41b   : > { %10119 = vmatprep.subr.bf16.mxu1 %v10756_v32 }
 0x41c   : > { %10084 = vmatpush3.bf16.msra.mxu0 %v10634_v15  ;;  %v5549_v15 = vrot.slane %v5547_v31, 2 }
 0x41d   : > { %10085 = vmatprep.subr.bf16.mxu0 %v10756_v32 }
 0x41e   : > { %10120 = vmatpush3.bf16.msra.mxu1 %v10637_v44  ;;  %v10653_v44 = vld [vmem:[%s13292_s1 + $0x6a0] sm:$0xff]  }
 0x41f   : > { %10030 = vmatmul.mubr.bf16.gmra.mxu0 %v4971_v59  ;;  %10121 = vmatprep.subr.bf16.mxu1 %v10756_v32  ;;  %v5553_v59 = vor.u32 %v5552_v3, %v5549_v15 }
 0x420   : > { %10066 = vmatmul.mubr.bf16.gmra.mxu1 %v5154_v0  ;;  %10086 = vmatpush3.bf16.msra.mxu0 %v10636_v29  ;;  %v5556_v29 = vshrl.u32 %v12633_v39, 16 }
 0x421   : > { %10033 = vmatprep.mubr.msk.bf16.mxu0 %vm10757_vm5, %v10756_v32  ;;  %10069 = vmatprep.mubr.msk.bf16.mxu1 %vm10757_vm5, %v10756_v32  ;;  %v5554_v0 = vsel %vm5519_vm10, %v5544_v14, %v5553_v59 }
 0x422   : > { %10087 = vmatprep.subr.bf16.mxu0 %v10756_v32  ;;  %10122 = vmatpush3.bf16.msra.mxu1 %v10638_v35  ;;  %v5558_v35 = vrot.slane %v5556_v29, 2 }
 0x423   : > { %10123 = vmatprep.subr.bf16.mxu1 %v10756_v32 }
 0x424   : > { %10088 = vmatpush3.bf16.msra.mxu0 %v10639_v41  ;;  %v12654_v41 = vld [vmem:[#allocation2 + $0x30] ss:$0 sps:$4 sm:$0x77]   ;;  %v5562_v57 = vor.u32 %v5561_v9, %v5558_v35 }
 0x425   : > { %10089 = vmatprep.subr.bf16.mxu0 %v10756_v32  ;;  %v5568_v4 = vshll.u32 %v12654_v41, 16 }
 0x426   : > { %10124 = vmatpush3.bf16.msra.mxu1 %v10640_v40  ;;  %v5565_v40 = vshrl.u32 %v12654_v41, 16  ;;  %v5563_v38 = vsel %vm5519_vm10, %v5553_v59, %v5562_v57 }
 0x427   : > { %10034 = vmatmul.mubr.bf16.gmra.mxu0 %v4980_v61  ;;  %10125 = vmatprep.subr.bf16.mxu1 %v10756_v32  ;;  %v5359_v61 = vsel %vm5147_vm9, %v5356_v25, %v5358_v24  ;;  %v5570_v36 = vrot.slane %v5568_v4, 3 }
 0x428   : > { %10070 = vmatmul.mubr.bf16.gmra.mxu1 %v5156_v54  ;;  %10037 = vmatprep.mubr.msk.bf16.mxu0 %vm10757_vm5, %v10756_v32  ;;  %v10657_v54 = vld [vmem:[%s13292_s1 + $0x688] sm:$0xff]  }
 0x429   : > { %10073 = vmatprep.mubr.msk.bf16.mxu1 %vm10757_vm5, %v10756_v32  ;;  %10090 = vmatpush3.bf16.msra.mxu0 %v10641_v30  ;;  %v5567_v30 = vrot.slane %v5565_v40, 2 }
 0x42a   : > { %10126 = vmatpush3.bf16.msra.mxu1 %v10643_v8  ;;  %10091 = vmatprep.subr.bf16.mxu0 %v10756_v32  ;;  %v5360_v8 = vrot.slane %v10658_v52, 2 }
 0x42b   : > { %10127 = vmatprep.subr.bf16.mxu1 %v10756_v32  ;;  %v5571_v34 = vor.u32 %v5570_v36, %v5567_v30 }
 0x42c   : > { %v5361_v58 = vsel %vm5147_vm9, %v5358_v24, %v5360_v8 }
 0x42d   : > { %10092 = vmatpush3.bf16.msra.mxu0 %v10644_v33  ;;  %v5709_v33 = vld [vmem:[#allocation2 + $0x8] sm:$0x8]  ;;  %v5572_v55 = vsel %vm5519_vm10, %v5562_v57, %v5571_v34 }
 0x42e   : > { %10128 = vmatpush3.bf16.msra.mxu1 %v10645_v47  ;;  %10149 = vmatprep.subr.bf16.mxu0 %v10756_v32  ;;  %v8337_v48 = vcombine.low %v5709_v33, %v12565_v51  ;;  %v5732_v47 = vrot.slane %v12575_v42, 3  ;;  %v5738_v51 = vrot.slane %v12633_v39, 3  ;;  %v5740_v42 = vrot.slane %v12654_v41, 3 }
 0x42f   : > { %10038 = vmatmul.mubr.bf16.gmra.mxu0 %v4989_v56  ;;  %10313 = vmatprep.subr.bf16.mxu1 %v10756_v32  ;;  %v5736_v56 = vrot.slane %v12613_v63, 3 }
 0x430   : > { %10074 = vmatmul.mubr.bf16.gmra.mxu1 %v5158_v11  ;;  %10093 = vmatprep.mubr.msk.bf16.mxu0 %vm10757_vm5, %v10756_v32  ;;  %v5731_v7 = vrot.slane %v8337_v48, 3  ;;  %v5735_v13 = vsel %vm5730_vm11, %v5732_v47, %v5734_v43  ;;  %v5741_v16 = vsel %vm5730_vm11, %v5738_v51, %v5740_v42 }
 0x431   : > { %10129 = vmatprep.mubr.msk.bf16.mxu1 %vm10757_vm5, %v10756_v32  ;;  %v5739_v10 = vsel %vm5730_vm11, %v5736_v56, %v5738_v51  ;;  %v5737_v2 = vsel %vm5730_vm11, %v5734_v43, %v5736_v56 }
 0x432   : > { %v5733_v11 = vsel %vm5730_vm11, %v5731_v7, %v5732_v47 }
 0x437   : > { %10094 = vmatmul.mubr.bf16.vlgmr.msra.gmra.mxu0 %v5353_v6 }
 0x438   : > { %10130 = vmatmul.mubr.bf16.vlgmr.msra.gmra.mxu1 %v5536_v46  ;;  %10150 = vmatpush3.bf16.msra.mxu0 %v10648_v60 }
 0x439   : > { %10151 = vmatprep.subr.bf16.mxu0 %v10756_v32  ;;  %10097 = vmatprep.mubr.msk.bf16.mxu0 %vm10757_vm5, %v10756_v32 }
 0x43a   : > { %10133 = vmatprep.mubr.msk.bf16.mxu1 %vm10757_vm5, %v10756_v32  ;;  %10321 = vmatpush3.bf16.msra.mxu1 %v10648_v60 }
 0x43b   : > { %10314 = vmatprep.subr.bf16.mxu1 %v10756_v32 }
 0x43c   : > { %10152 = vmatpush3.bf16.msra.mxu0 %v10649_v1 }
 0x43d   : > { %10153 = vmatprep.subr.bf16.mxu0 %v10756_v32 }
 0x43e   : > { %10322 = vmatpush3.bf16.msra.mxu1 %v10649_v1 }
 0x43f   : > { %10098 = vmatmul.mubr.bf16.gmra.mxu0 %v5355_v50  ;;  %10315 = vmatprep.subr.bf16.mxu1 %v10756_v32 }
 0x440   : > { %10134 = vmatmul.mubr.bf16.gmra.mxu1 %v5545_v12  ;;  %10154 = vmatpush3.bf16.msra.mxu0 %v10651_v28 }
 0x441   : > { %10101 = vmatprep.mubr.msk.bf16.mxu0 %vm10757_vm5, %v10756_v32  ;;  %10137 = vmatprep.mubr.msk.bf16.mxu1 %vm10757_vm5, %v10756_v32 }
 0x442   : > { %10155 = vmatprep.subr.bf16.mxu0 %v10756_v32  ;;  %10323 = vmatpush3.bf16.msra.mxu1 %v10651_v28 }
 0x443   : > { %10316 = vmatprep.subr.bf16.mxu1 %v10756_v32 }
 0x444   : > { %10156 = vmatpush3.bf16.msra.mxu0 %v10653_v44 }
 0x445   : > { %10157 = vmatprep.subr.bf16.mxu0 %v10756_v32 }
 0x446   : > { %10324 = vmatpush3.bf16.msra.mxu1 %v10653_v44 }
 0x447   : > { %10102 = vmatmul.mubr.bf16.gmra.mxu0 %v5357_v27  ;;  %10317 = vmatprep.subr.bf16.mxu1 %v10756_v32 }
 0x448   : > { %10138 = vmatmul.mubr.bf16.gmra.mxu1 %v5554_v0  ;;  %10158 = vmatpush3.bf16.msra.mxu0 %v10654_v26 }
 0x449   : > { %10105 = vmatprep.mubr.msk.bf16.mxu0 %vm10757_vm5, %v10756_v32  ;;  %10141 = vmatprep.mubr.msk.bf16.mxu1 %vm10757_vm5, %v10756_v32 }
 0x44a   : > { %10325 = vmatpush3.bf16.msra.mxu1 %v10654_v26  ;;  %10159 = vmatprep.subr.bf16.mxu0 %v10756_v32 }
 0x44b   : > { %10318 = vmatprep.subr.bf16.mxu1 %v10756_v32 }
 0x44c   : > { %10160 = vmatpush3.bf16.msra.mxu0 %v10656_v49 }
 0x44d   : > { %10161 = vmatprep.subr.bf16.mxu0 %v10756_v32 }
 0x44e   : > { %10326 = vmatpush3.bf16.msra.mxu1 %v10656_v49 }
 0x44f   : > { %10106 = vmatmul.mubr.bf16.gmra.mxu0 %v5359_v61  ;;  %10319 = vmatprep.subr.bf16.mxu1 %v10756_v32 }
 0x450   : > { %10142 = vmatmul.mubr.bf16.gmra.mxu1 %v5563_v38  ;;  %10109 = vmatprep.mubr.msk.bf16.mxu0 %vm10757_vm5, %v10756_v32 }
 0x451   : > { %10145 = vmatprep.mubr.msk.bf16.mxu1 %vm10757_vm5, %v10756_v32  ;;  %10162 = vmatpush3.bf16.msra.mxu0 %v10657_v54 }
 0x452   : > { %10327 = vmatpush3.bf16.msra.mxu1 %v10657_v54  ;;  %10163 = vmatprep.subr.bf16.mxu0 %v10756_v32 }
 0x453   : > { %10320 = vmatprep.subr.bf16.mxu1 %v10756_v32 }
 0x455   : > { %10164 = vmatpush3.bf16.msra.mxu0 %v10660_v19 }
 0x456   : > { %10328 = vmatpush3.bf16.msra.mxu1 %v10660_v19 }
 0x457   : > { %10110 = vmatmul.mubr.bf16.gmra.mxu0 %v5361_v58 }
 0x458   : > { %10146 = vmatmul.mubr.bf16.gmra.mxu1 %v5572_v55  ;;  %10165 = vmatprep.mubr.msk.bf16.mxu0 %vm10757_vm5, %v10756_v32 }
 0x459   : > { %10177 = vmatprep.mubr.msk.bf16.mxu1 %vm10757_vm5, %v10756_v32 }
 0x45f   : > { %10166 = vmatmul.mubr.bf16.vlgmr.msra.gmra.mxu0 %v5733_v11 }
 0x460   : > { %10178 = vmatmul.mubr.bf16.vlgmr.msra.gmra.mxu1 %v5739_v10  ;;  %10169 = vmatprep.mubr.msk.bf16.mxu0 %vm10757_vm5, %v10756_v32 }
 0x461   : > { %10181 = vmatprep.mubr.msk.bf16.mxu1 %vm10757_vm5, %v10756_v32 }
 0x467   : > { %10170 = vmatmul.mubr.bf16.gmra.mxu0 %v5735_v13 }
 0x468   : > { %10182 = vmatmul.mubr.bf16.gmra.mxu1 %v5741_v16  ;;  %10173 = vmatprep.mubr.msk.bf16.mxu0 %vm10757_vm5, %v10756_v32 }
 0x46f   : > { %10174 = vmatmul.mubr.bf16.gmra.mxu0 %v5737_v2 }
 0x47f   : > { %v4378_v53 = vpop.f32.mrf.mxu0 }
 0x480   : > { %v4504_v18 = vpop.f32.mrf.mxu1 }
 0x481   : > { %v4505_v45 = vadd.f32 %v4504_v18, %v4378_v53  ;;  %v9879_v17 = vpop.f32.mrf.mxu0 }
 0x482   : > { %v9915_v22 = vpop.f32.mrf.mxu1 }
 0x483   : > { %v4381_v20 = vpop.f32.mrf.mxu0 }
 0x484   : > { %v4507_v6 = vpop.f32.mrf.mxu1 }
 0x485   : > { %v4508_v60 = vadd.f32 %v4507_v6, %v4381_v20  ;;  %v9880_v46 = vpop.f32.mrf.mxu0 }
 0x486   : > { %v9916_v37 = vpop.f32.mrf.mxu1 }
 0x487   : > { %v4386_v21 = vpop.f32.mrf.mxu0 }
 0x488   : > { %v4512_v63 = vpop.f32.mrf.mxu1 }
 0x489   : > { %v4513_v1 = vadd.f32 %v4512_v63, %v4386_v21  ;;  %v9883_v23 = vpop.f32.mrf.mxu0 }
 0x48a   : > { %v9919_v14 = vpop.f32.mrf.mxu1 }
 0x48b   : > { %v4389_v31 = vpop.f32.mrf.mxu0 }
 0x48c   : > { %v4515_v32 = vpop.f32.mrf.mxu1 }
 0x48d   : > { %v4516_v62 = vadd.f32 %v4515_v32, %v4389_v31  ;;  %v9884_v50 = vpop.f32.mrf.mxu0 }
 0x48e   : > { %v9920_v28 = vpop.f32.mrf.mxu1 }
 0x48f   : > { %v4394_v12 = vpop.f32.mrf.mxu0 }
 0x490   : > { %v4520_v15 = vpop.f32.mrf.mxu1 }
 0x491   : > { %v4521_v3 = vadd.f32 %v4520_v15, %v4394_v12  ;;  %v9887_v39 = vpop.f32.mrf.mxu0 }
 0x492   : > { %v9923_v25 = vpop.f32.mrf.mxu1 }
 0x493   : > { %v4397_v44 = vpop.f32.mrf.mxu0 }
 0x494   : > { %v4523_v59 = vpop.f32.mrf.mxu1 }
 0x495   : > { %v4524_v29 = vadd.f32 %v4523_v59, %v4397_v44  ;;  %v9888_v5 = vpop.f32.mrf.mxu0 }
 0x496   : > { %v9924_v27 = vpop.f32.mrf.mxu1 }
 0x497   : > { %v4402_v26 = vpop.f32.mrf.mxu0 }
 0x498   : > { %v4528_v0 = vpop.f32.mrf.mxu1 }
 0x499   : > { %v4529_v35 = vadd.f32 %v4528_v0, %v4402_v26  ;;  %v9891_v9 = vpop.f32.mrf.mxu0 }
 0x49a   : > { %v9927_v41 = vpop.f32.mrf.mxu1 }
 0x49b   : > { %v4405_v24 = vpop.f32.mrf.mxu0 }
 0x49c   : > { %v4531_v49 = vpop.f32.mrf.mxu1 }
 0x49d   : > { %v4532_v57 = vadd.f32 %v4531_v49, %v4405_v24  ;;  %v9892_v40 = vpop.f32.mrf.mxu0 }
 0x49e   : > { %v9928_v4 = vpop.f32.mrf.mxu1 }
 0x49f   : > { %v4410_v61 = vpop.f32.mrf.mxu0 }
 0x4a0   : > { %v4536_v52 = vpop.f32.mrf.mxu1 }
 0x4a1   : > { %v4537_v38 = vadd.f32 %v4536_v52, %v4410_v61  ;;  %v9895_v54 = vpop.f32.mrf.mxu0 }
 0x4a2   : > { %v9931_v30 = vpop.f32.mrf.mxu1 }
 0x4a3   : > { %v4413_v36 = vpop.f32.mrf.mxu0 }
 0x4a4   : > { %v4539_v8 = vpop.f32.mrf.mxu1 }
 0x4a5   : > { %v4540_v34 = vadd.f32 %v4539_v8, %v4413_v36  ;;  %v9896_v19 = vpop.f32.mrf.mxu0 }
 0x4a6   : > { %v9932_v33 = vpop.f32.mrf.mxu1 }
 0x4a7   : > { %v4663_v58 = vpop.f32.mrf.mxu0 }
 0x4a8   : > { %v4702_v48 = vadd.f32 %v4663_v58, %v4505_v45  ;;  %v4866_v55 = vpop.f32.mrf.mxu1 }
 0x4a9   : > { %v9951_v7 = vpop.f32.mrf.mxu0 }
 0x4aa   : > { %v4905_v47 = vadd.f32 %v4866_v55, %v4702_v48  ;;  %v9987_v56 = vpop.f32.mrf.mxu1 }
 0x4ab   : > { %v4666_v51 = vpop.f32.mrf.mxu0 }
 0x4ac   : > { %v4703_v11 = vadd.f32 %v4666_v51, %v4508_v60  ;;  %v4869_v10 = vpop.f32.mrf.mxu1 }
 0x4ad   : > { %v9952_v43 = vpop.f32.mrf.mxu0 }
 0x4ae   : > { %v4906_v42 = vadd.f32 %v4869_v10, %v4703_v11  ;;  %v9988_v13 = vpop.f32.mrf.mxu1 }
 0x4af   : > { %v4671_v16 = vpop.f32.mrf.mxu0 }
 0x4b0   : > { %v4704_v2 = vadd.f32 %v4671_v16, %v4513_v1  ;;  %v4874_v53 = vpop.f32.mrf.mxu1 }
 0x4b1   : > { %v9955_v18 = vpop.f32.mrf.mxu0 }
 0x4b2   : > { %v4907_v17 = vadd.f32 %v4874_v53, %v4704_v2  ;;  %v9991_v22 = vpop.f32.mrf.mxu1 }
 0x4b3   : > { %v4674_v20 = vpop.f32.mrf.mxu0 }
 0x4b4   : > { %v4705_v6 = vadd.f32 %v4674_v20, %v4516_v62  ;;  %v4877_v46 = vpop.f32.mrf.mxu1 }
 0x4b5   : > { %v9956_v45 = vpop.f32.mrf.mxu0 }
 0x4b6   : > { %v4908_v37 = vadd.f32 %v4877_v46, %v4705_v6  ;;  %v9992_v21 = vpop.f32.mrf.mxu1 }
 0x4b7   : > { %v4679_v63 = vpop.f32.mrf.mxu0 }
 0x4b8   : > { %v4706_v23 = vadd.f32 %v4679_v63, %v4521_v3  ;;  %v4882_v14 = vpop.f32.mrf.mxu1 }
 0x4b9   : > { %v9959_v60 = vpop.f32.mrf.mxu0 }
 0x4ba   : > { %v4909_v31 = vadd.f32 %v4882_v14, %v4706_v23  ;;  %v9995_v32 = vpop.f32.mrf.mxu1 }
 0x4bb   : > { %v4682_v50 = vpop.f32.mrf.mxu0 }
 0x4bc   : > { %v4707_v28 = vadd.f32 %v4682_v50, %v4524_v29  ;;  %v4885_v12 = vpop.f32.mrf.mxu1 }
 0x4bd   : > { %v9960_v1 = vpop.f32.mrf.mxu0 }
 0x4be   : > { %v4910_v15 = vadd.f32 %v4885_v12, %v4707_v28  ;;  %v9996_v39 = vpop.f32.mrf.mxu1 }
 0x4bf   : > { %v4687_v25 = vpop.f32.mrf.mxu0 }
 0x4c0   : > { %v4708_v44 = vadd.f32 %v4687_v25, %v4529_v35  ;;  %v4890_v59 = vpop.f32.mrf.mxu1 }
 0x4c1   : > { %v9963_v62 = vpop.f32.mrf.mxu0 }
 0x4c2   : > { %v12708_v5 = vadd.f32 %v4890_v59, %v4708_v44  ;;  %v9999_v27 = vpop.f32.mrf.mxu1 }
 0x4c3   : > { %v4690_v26 = vpop.f32.mrf.mxu0 }
 0x4c4   : > { %v4709_v0 = vadd.f32 %v4690_v26, %v4532_v57  ;;  %v4893_v3 = vpop.f32.mrf.mxu1 }
 0x4c5   : > { %v9964_v9 = vpop.f32.mrf.mxu0 }
 0x4c6   : > { %v12710_v41 = vadd.f32 %v4893_v3, %v4709_v0  ;;  %v10000_v24 = vpop.f32.mrf.mxu1 }
 0x4c7   : > { %v4695_v49 = vpop.f32.mrf.mxu0 }
 0x4c8   : > { %v4710_v29 = vadd.f32 %v4695_v49, %v4537_v38  ;;  %v4898_v40 = vpop.f32.mrf.mxu1 }
 0x4c9   : > { %v9967_v4 = vpop.f32.mrf.mxu0 }
 0x4ca   : > { %v12712_v61 = vadd.f32 %v4898_v40, %v4710_v29  ;;  %v10003_v52 = vpop.f32.mrf.mxu1 }
 0x4cb   : > { %v4698_v35 = vpop.f32.mrf.mxu0 }
 0x4cc   : > { %v4711_v54 = vadd.f32 %v4698_v35, %v4540_v34  ;;  %v4901_v30 = vpop.f32.mrf.mxu1 }
 0x4cd   : > { %v9968_v36 = vpop.f32.mrf.mxu0 }
 0x4ce   : > { %v12714_v8 = vadd.f32 %v4901_v30, %v4711_v54  ;;  %v10004_v19 = vpop.f32.mrf.mxu1 }
 0x4cf   : > { %v5077_v57 = vpop.f32.mrf.mxu0 }
 0x4d0   : > { %v5116_v33 = vadd.f32 %v5077_v57, %v4905_v47  ;;  %v5246_v58 = vpop.f32.mrf.mxu1 }
 0x4d1   : > { %v10023_v48 = vpop.f32.mrf.mxu0 }
 0x4d2   : > { %v12716_v55 = vadd.f32 %v5246_v58, %v5116_v33  ;;  %v10059_v7 = vpop.f32.mrf.mxu1 }
 0x4d3   : > { %v5080_v38 = vpop.f32.mrf.mxu0 }
 0x4d4   : > { %v5117_v56 = vadd.f32 %v5080_v38, %v4906_v42  ;;  %v5249_v51 = vpop.f32.mrf.mxu1 }
 0x4d5   : > { %v10024_v11 = vpop.f32.mrf.mxu0 }
 0x4d6   : > { %v12718_v10 = vadd.f32 %v5249_v51, %v5117_v56  ;;  %v10060_v43 = vpop.f32.mrf.mxu1 }
 0x4d7   : > { %v5085_v34 = vpop.f32.mrf.mxu0 }
 0x4d8   : > { %v5118_v13 = vadd.f32 %v5085_v34, %v4907_v17  ;;  %v5254_v16 = vpop.f32.mrf.mxu1 }
 0x4d9   : > { %v10027_v2 = vpop.f32.mrf.mxu0 }
 0x4da   : > { %v12720_v53 = vadd.f32 %v5254_v16, %v5118_v13  ;;  %v10063_v18 = vpop.f32.mrf.mxu1 }
 0x4db   : > { %v5088_v47 = vpop.f32.mrf.mxu0 }
 0x4dc   : > { %v5119_v22 = vadd.f32 %v5088_v47, %v4908_v37  ;;  %v5257_v20 = vpop.f32.mrf.mxu1 }
 0x4dd   : > { %v10028_v6 = vpop.f32.mrf.mxu0 }
 0x4de   : > { %v12722_v46 = vadd.f32 %v5257_v20, %v5119_v22  ;;  %v10064_v45 = vpop.f32.mrf.mxu1 }
 0x4df   : > { %v5093_v42 = vpop.f32.mrf.mxu0 }
 0x4e0   : > { %v5120_v21 = vadd.f32 %v5093_v42, %v4909_v31  ;;  %v5262_v63 = vpop.f32.mrf.mxu1 }
 0x4e1   : > { %v10031_v23 = vpop.f32.mrf.mxu0 }
 0x4e2   : > { %v12724_v14 = vadd.f32 %v5262_v63, %v5120_v21  ;;  %v10067_v60 = vpop.f32.mrf.mxu1 }
 0x4e3   : > { %v5096_v17 = vpop.f32.mrf.mxu0 }
 0x4e4   : > { %v5121_v32 = vadd.f32 %v5096_v17, %v4910_v15  ;;  %v5265_v50 = vpop.f32.mrf.mxu1 }
 0x4e5   : > { %v10032_v28 = vpop.f32.mrf.mxu0 }
 0x4e6   : > { %v12726_v12 = vadd.f32 %v5265_v50, %v5121_v32  ;;  %v10068_v1 = vpop.f32.mrf.mxu1 }
 0x4e7   : > { %v5101_v37 = vpop.f32.mrf.mxu0 }
 0x4e8   : > { %v5270_v39 = vpop.f32.mrf.mxu1  ;;  %v5122_v63 = vadd.f32 %v5101_v37, %v12708_v5 }
 0x4e9   : > { %v10035_v25 = vpop.f32.mrf.mxu0 }
 0x4ea   : > { %v10071_v44 = vpop.f32.mrf.mxu1  ;;  %v5291_v50 = vadd.f32 %v5270_v39, %v5122_v63  ;;  %v5886_v63 = vld [vmem:[%s12756_s26 + $0x10] sm:$0xff] }
 0x4eb   : > { %v5104_v59 = vpop.f32.mrf.mxu0 }
 0x4ec   : > { %v5273_v62 = vpop.f32.mrf.mxu1  ;;  %v5123_v28 = vadd.f32 %v5104_v59, %v12710_v41  ;;  %v5884_v41 = vld [vmem:[%s12756_s26] sm:$0xff] }
 0x4ed   : > { %v10036_v27 = vpop.f32.mrf.mxu0 }
 0x4ee   : > { %v10072_v31 = vpop.f32.mrf.mxu1 }
 0x4ef   : > { %v5109_v26 = vpop.f32.mrf.mxu0 }
 0x4f0   : > { %v12728_v0 = vpop.f32.mrf.mxu1 }
 0x4f1   : > { %v10039_v3 = vpop.f32.mrf.mxu0 }
 0x4f2   : > { %v10075_v9 = vpop.f32.mrf.mxu1 }
 0x4f3   : > { %v12730_v24 = vpop.f32.mrf.mxu0  ;;  %v5292_v9 = vadd.f32 %v5273_v62, %v5123_v28  ;;  %v5890_v62 = vld [vmem:[%s12756_s26 + $0x30] sm:$0xff] }
 0x4f4   : > { %v12732_v15 = vpop.f32.mrf.mxu1 }
 0x4f5   : > { %v10040_v49 = vpop.f32.mrf.mxu0 }
 0x4f6   : > { %v10076_v29 = vpop.f32.mrf.mxu1  ;;  %v5124_v49 = vadd.f32 %v5109_v26, %v12712_v61 }
 0x4f7   : > { %v5449_v40 = vpop.f32.mrf.mxu0 }
 0x4f8   : > { %v5660_v4 = vpop.f32.mrf.mxu1  ;;  %v5488_v25 = vadd.f32 %v5449_v40, %v12716_v55  ;;  %v5293_v61 = vadd.f32 %v12728_v0, %v5124_v49 }
 0x4f9   : > { %v10095_v52 = vpop.f32.mrf.mxu0 }
 0x4fa   : > { %v10131_v35 = vpop.f32.mrf.mxu1  ;;  %v5699_v5 = vadd.f32 %v5660_v4, %v5488_v25 }
 0x4fb   : > { %v5452_v54 = vpop.f32.mrf.mxu0 }
 0x4fc   : > { %v5663_v30 = vpop.f32.mrf.mxu1  ;;  %v5489_v37 = vadd.f32 %v5452_v54, %v12718_v10  ;;  %v5125_v10 = vadd.f32 %v12730_v24, %v12714_v8 }
 0x4fd   : > { %v10096_v36 = vpop.f32.mrf.mxu0 }
 0x4fe   : > { %v10132_v19 = vpop.f32.mrf.mxu1  ;;  %v5700_v4 = vadd.f32 %v5663_v30, %v5489_v37  ;;  %v5294_v8 = vadd.f32 %v12732_v15, %v5125_v10 }
 0x4ff   : > { %v5457_v57 = vpop.f32.mrf.mxu0 }
 0x500   : > { %v12734_v33 = vpop.f32.mrf.mxu1  ;;  %v5490_v54 = vadd.f32 %v5457_v57, %v12720_v53 }
 0x501   : > { %v10099_v58 = vpop.f32.mrf.mxu0 }
 0x502   : > { %v10135_v48 = vpop.f32.mrf.mxu1  ;;  %v5701_v30 = vadd.f32 %v12734_v33, %v5490_v54 }
 0x503   : > { %v12736_v7 = vpop.f32.mrf.mxu0 }
 0x504   : > { %v12738_v38 = vpop.f32.mrf.mxu1  ;;  %v5491_v57 = vadd.f32 %v12736_v7, %v12722_v46 }
 0x505   : > { %v10100_v56 = vpop.f32.mrf.mxu0 }
 0x506   : > { %v10136_v51 = vpop.f32.mrf.mxu1  ;;  %v5702_v46 = vadd.f32 %v12738_v38, %v5491_v57 }
 0x507   : > { %v12740_v11 = vpop.f32.mrf.mxu0 }
 0x508   : > { %v12742_v43 = vpop.f32.mrf.mxu1  ;;  %v5492_v7 = vadd.f32 %v12740_v11, %v12724_v14 }
 0x509   : > { %v10103_v34 = vpop.f32.mrf.mxu0 }
 0x50a   : > { %v10139_v13 = vpop.f32.mrf.mxu1  ;;  %v5703_v14 = vadd.f32 %v12742_v43, %v5492_v7 }
 0x50b   : > { %v12744_v16 = vpop.f32.mrf.mxu0  ;;  %v5885_v13 = vld [vmem:[%s12756_s26 + $0x8] sm:$0xff] }
 0x50c   : > { %v12747_v2 = vpop.f32.mrf.mxu1  ;;  %v5493_v11 = vadd.f32 %v12744_v16, %v12726_v12 }
 0x50d   : > { %v10104_v18 = vpop.f32.mrf.mxu0 }
 0x50e   : > { %v10140_v47 = vpop.f32.mrf.mxu1 }
 0x50f   : > { %v5473_v22 = vpop.f32.mrf.mxu0  ;;  %v5891_v47 = vld [vmem:[%s12756_s26 + $0x38] sm:$0xff] }
 0x510   : > { %v5684_v20 = vpop.f32.mrf.mxu1  ;;  %v5494_v27 = vadd.f32 %v5473_v22, %v5291_v50 }
 0x511   : > { %v10107_v6 = vpop.f32.mrf.mxu0 }
 0x512   : > { %v10143_v45 = vpop.f32.mrf.mxu1  ;;  %v5705_v35 = vadd.f32 %v5684_v20, %v5494_v27 }
 0x513   : > { %v5476_v42 = vpop.f32.mrf.mxu0 }
 0x514   : > { %v5687_v21 = vpop.f32.mrf.mxu1  ;;  %v5495_v36 = vadd.f32 %v5476_v42, %v5292_v9  ;;  %v5893_v9 = vld [vmem:[%s12756_s26 + $0x48] sm:$0xff] }
 0x515   : > { %v10108_v23 = vpop.f32.mrf.mxu0 }
 0x516   : > { %v10144_v60 = vpop.f32.mrf.mxu1  ;;  %v5706_v48 = vadd.f32 %v5687_v21, %v5495_v36 }
 0x517   : > { %v5481_v17 = vpop.f32.mrf.mxu0  ;;  %v5892_v60 = vld [vmem:[%s12756_s26 + $0x40] sm:$0xff] }
 0x518   : > { %v5692_v32 = vpop.f32.mrf.mxu1  ;;  %v5496_v56 = vadd.f32 %v5481_v17, %v5293_v61 }
 0x519   : > { %v10111_v1 = vpop.f32.mrf.mxu0 }
 0x51a   : > { %v10147_v44 = vpop.f32.mrf.mxu1  ;;  %v5707_v6 = vadd.f32 %v5692_v32, %v5496_v56 }
 0x51b   : > { %v5484_v31 = vpop.f32.mrf.mxu0  ;;  %v5887_v44 = vld [vmem:[%s12756_s26 + $0x18] sm:$0xff] }
 0x51c   : > { %v5695_v3 = vpop.f32.mrf.mxu1  ;;  %v5497_v45 = vadd.f32 %v5484_v31, %v5294_v8 }
 0x51d   : > { %v10112_v29 = vpop.f32.mrf.mxu0 }
 0x51e   : > { %v10148_v52 = vpop.f32.mrf.mxu1  ;;  %v5708_v28 = vadd.f32 %v5695_v3, %v5497_v45 }
 0x51f   : > { %v5829_v39 = vpop.f32.mrf.mxu0  ;;  %v5888_v52 = vld [vmem:[%s12756_s26 + $0x20] sm:$0xff] }
 0x520   : > { %v5868_v55 = vadd.f32 %v5829_v39, %v5699_v5  ;;  %v5853_v59 = vpop.f32.mrf.mxu1  ;;  %v5704_v39 = vadd.f32 %v12747_v2, %v5493_v11 }
 0x521   : > { %v5874_v26 = vadd.f32 %v5853_v59, %v5705_v35  ;;  %v10167_v40 = vpop.f32.mrf.mxu0  ;;  %v5889_v59 = vld [vmem:[%s12756_s26 + $0x28] sm:$0xff] }
 0x522   : > { %v5894_v19 = vadd.f32 %v5884_v41, %v5868_v55  ;;  %v10179_v58 = vpop.f32.mrf.mxu1 }
 0x523   : > { %v5900_v51 = vadd.f32 %v5890_v62, %v5874_v26  ;;  %v5832_v34 = vpop.f32.mrf.mxu0 }
 0x524   : > { %5904 = vst [vmem:[%s12756_s26] sm:$0xff] %v5894_v19  ;;  %v5869_v0 = vadd.f32 %v5832_v34, %v5700_v4  ;;  %v5856_v18 = vpop.f32.mrf.mxu1 }
 0x525   : > { %5910 = vst [vmem:[%s12756_s26 + $0x30] sm:$0xff] %v5900_v51  ;;  %v5875_v24 = vadd.f32 %v5856_v18, %v5706_v48  ;;  %v10168_v53 = vpop.f32.mrf.mxu0 }
 0x526   : > { %v5895_v22 = vadd.f32 %v5885_v13, %v5869_v0  ;;  %v10180_v20 = vpop.f32.mrf.mxu1 }
 0x527   : > { %v5901_v42 = vadd.f32 %v5891_v47, %v5875_v24  ;;  %v5837_v21 = vpop.f32.mrf.mxu0 }
 0x528   : > { %5905 = vst [vmem:[%s12756_s26 + $0x8] sm:$0xff] %v5895_v22  ;;  %v5870_v15 = vadd.f32 %v5837_v21, %v5701_v30  ;;  %v5861_v23 = vpop.f32.mrf.mxu1 }
 0x529   : > { %5911 = vst [vmem:[%s12756_s26 + $0x38] sm:$0xff] %v5901_v42  ;;  %v5876_v33 = vadd.f32 %v5861_v23, %v5707_v6  ;;  %v10171_v17 = vpop.f32.mrf.mxu0 }
 0x52a   : > { %v5896_v32 = vadd.f32 %v5886_v63, %v5870_v15  ;;  %v10183_v50 = vpop.f32.mrf.mxu1 }
 0x52b   : > { %v5902_v1 = vadd.f32 %v5892_v60, %v5876_v33  ;;  %v5840_v25 = vpop.f32.mrf.mxu0 }
 0x52c   : > { %5906 = vst [vmem:[%s12756_s26 + $0x10] sm:$0xff] %v5896_v32  ;;  %v5871_v27 = vadd.f32 %v5840_v25, %v5702_v46  ;;  %v5864_v31 = vpop.f32.mrf.mxu1 }
 0x52d   : > { %5912 = vst [vmem:[%s12756_s26 + $0x40] sm:$0xff] %v5902_v1  ;;  %v5877_v49 = vadd.f32 %v5864_v31, %v5708_v28  ;;  %v10172_v38 = vpop.f32.mrf.mxu0 }
 0x52e   : > { %v5897_v3 = vadd.f32 %v5887_v44, %v5871_v27  ;;  %v10184_v29 = vpop.f32.mrf.mxu1 }
 0x52f   : > { %v5903_v5 = vadd.f32 %v5893_v9, %v5877_v49  ;;  %v5845_v37 = vpop.f32.mrf.mxu0 }
 0x530   : > { %5907 = vst [vmem:[%s12756_s26 + $0x18] sm:$0xff] %v5897_v3  ;;  %v5872_v35 = vadd.f32 %v5845_v37, %v5703_v14 }
 0x531   : > { %5913 = vst [vmem:[%s12756_s26 + $0x48] sm:$0xff] %v5903_v5  ;;  %v10175_v36 = vpop.f32.mrf.mxu0 }
 0x532   : > { %v5898_v41 = vadd.f32 %v5888_v52, %v5872_v35 }
 0x533   : > { %v5848_v55 = vpop.f32.mrf.mxu0 }
 0x534   : > { %5908 = vst [vmem:[%s12756_s26 + $0x20] sm:$0xff] %v5898_v41  ;;  %v5873_v43 = vadd.f32 %v5848_v55, %v5704_v39 }
 0x535   : > { %v10176_v62 = vpop.f32.mrf.mxu0 }
 0x536   : > { %v5899_v61 = vadd.f32 %v5889_v59, %v5873_v43 }
 0x538   : > { %5909 = vst [vmem:[%s12756_s26 + $0x28] sm:$0xff] %v5899_v61 }
 0x539 PF: > { %p8351_p11 = scmp.ne.s32.totalorder %s10732_s27, 5 }
 0x53b   : > { %5917 = sbr.rel (%p8351_p11) target bundleno = 1641 (0x669), region = 76 }
 0x540   : > { %v10662_v12 = vld [vmem:[%s13295_s4 + $0x38] sm:$0xff]   ;;  %v10664_v2 = vld [vmem:[%s13295_s4 + $0x30] sm:$0xff]   ;;  %v10666_v26 = vld [vmem:[%s13295_s4 + $0x28] sm:$0xff]   ;;  %vm5984_vm12 = vcmask 1042432   ;;  %vm5985_vm13 = vcmask 1046532   ;;  %vm5995_vm15 = vcmask 1041408  }
 0x541   : > { %v10663_v16 = vld [vmem:[%s13295_s4 + $0x38] sm:$0xff]   ;;  %10185 = vmatprep.subr.bf16.mxu0 %v10662_v12  ;;  %v10665_v10 = vld [vmem:[%s13295_s4 + $0x30] sm:$0xff]   ;;  %v10667_v40 = vld [vmem:[%s13295_s4 + $0x28] sm:$0xff]   ;;  %vm5996_vm0 = vcmask 1045508   ;;  %vm6007_vm1 = vcmask 1040384   ;;  %vm6008_vm2 = vcmask 1044484  }
 0x542   : > { %10209 = vmatprep.subr.bf16.mxu1 %v10663_v16  ;;  %10186 = vmatpush3.bf16.msra.mxu0 %v10662_v12  ;;  %v10668_v4 = vld [vmem:[%s13295_s4 + $0x20] sm:$0xff]   ;;  %v10670_v19 = vld [vmem:[%s13295_s4 + $0x18] sm:$0xff]   ;;  %v10672_v48 = vld [vmem:[%s13295_s4 + $0x10] sm:$0xff]  }
 0x543   : > { %10210 = vmatpush3.bf16.msra.mxu1 %v10663_v16  ;;  %10187 = vmatprep.subr.bf16.mxu0 %v10664_v2  ;;  %v10669_v54 = vld [vmem:[%s13295_s4 + $0x20] sm:$0xff]   ;;  %v10671_v58 = vld [vmem:[%s13295_s4 + $0x18] sm:$0xff]   ;;  %v10673_v13 = vld [vmem:[%s13295_s4 + $0x10] sm:$0xff]  }
 0x544   : > { %10211 = vmatprep.subr.bf16.mxu1 %v10665_v10  ;;  %v5918_v56 = vld [vmem:[#allocation3] sm:$0xff]  ;;  %v5919_v51 = vld [vmem:[#allocation3 + $0x8] sm:$0xff]  ;;  %v5920_v34 = vld [vmem:[#allocation3 + $0x10] sm:$0xff] }
 0x545   : > { %v12833_v0 = vld [vmem:[%s13293_s2] ss:$0 sm:$0xff]  ;;  %v6312_v53 = vld [vmem:[#allocation3 + $0x50] sm:$0xff]  ;;  %v6313_v30 = vld [vmem:[#allocation3 + $0x58] sm:$0xff] }
 0x546   : > { %10188 = vmatpush3.bf16.msra.mxu0 %v10664_v2  ;;  %v12838_v18 = vld [vmem:[%s13294_s3] ss:$0 sm:$0xff]  ;;  %v5935_v47 = vmul.f32 %v12833_v0, %v5918_v56  ;;  %v5936_v8 = vmul.f32 %v12833_v0, %v5919_v51  ;;  %v5937_v24 = vmul.f32 %v12833_v0, %v5920_v34  ;;  %v6314_v57 = vld [vmem:[#allocation3 + $0x60] sm:$0xff]  ;;  %v6329_v22 = vmul.f32 %v12833_v0, %v6312_v53  ;;  %v10674_v21 = vld [vmem:[%s13295_s4 + $0x8] sm:$0xff]  }
 0x547   : > { %10212 = vmatpush3.bf16.msra.mxu1 %v10665_v10  ;;  %10189 = vmatprep.subr.bf16.mxu0 %v10666_v26  ;;  %v6330_v20 = vmul.f32 %v12833_v0, %v6313_v30  ;;  %v6331_v6 = vmul.f32 %v12833_v0, %v6314_v57  ;;  %v6699_v45 = vld [vmem:[#allocation3 + $0xa0] sm:$0xff]  ;;  %v6700_v42 = vld [vmem:[#allocation3 + $0xa8] sm:$0xff]  ;;  %v6701_v60 = vld [vmem:[#allocation3 + $0xb0] sm:$0xff] }
 0x548   : > { %10213 = vmatprep.subr.bf16.mxu1 %v10667_v40  ;;  %v5952_v63 = vadd.f32 %v12838_v18, %v5935_v47  ;;  %v5953_v15 = vadd.f32 %v12838_v18, %v5936_v8  ;;  %v5954_v23 = vadd.f32 %v12838_v18, %v5937_v24  ;;  %v10675_v33 = vld [vmem:[%s13295_s4 + $0x8] sm:$0xff]   ;;  %v6346_v17 = vadd.f32 %v12838_v18, %v6329_v22  ;;  %v10676_v50 = vld [vmem:[%s13295_s4] sm:$0xff]   ;;  %vm12868_vm14 = vmor %vm5984_vm12, %vm5985_vm13 }
 0x549   : > { %v6347_v46 = vadd.f32 %v12838_v18, %v6330_v20  ;;  %v6348_v7 = vadd.f32 %v12838_v18, %v6331_v6  ;;  %v6716_v32 = vmul.f32 %v12833_v0, %v6699_v45  ;;  %v6717_v44 = vmul.f32 %v12833_v0, %v6700_v42  ;;  %v10677_v27 = vld [vmem:[%s13295_s4] sm:$0xff]   ;;  %v5921_v14 = vld [vmem:[#allocation3 + $0x18] sm:$0xff]  ;;  %v5922_v36 = vld [vmem:[#allocation3 + $0x20] sm:$0xff] }
 0x54a   : > { %10190 = vmatpush3.bf16.msra.mxu0 %v10666_v26  ;;  %v5962_v28 = vmax.f32 %v5952_v63, 0.0  ;;  %v5963_v1 = vmax.f32 %v5953_v15, 0.0  ;;  %v5964_v25 = vmax.f32 %v5954_v23, 0.0  ;;  %v6718_v38 = vmul.f32 %v12833_v0, %v6701_v60  ;;  %v6315_v43 = vld [vmem:[#allocation3 + $0x68] sm:$0xff]  ;;  %v6316_v62 = vld [vmem:[#allocation3 + $0x70] sm:$0xff]  ;;  %v6702_v10 = vld [vmem:[#allocation3 + $0xb8] sm:$0xff] }
 0x54b   : > { %10214 = vmatpush3.bf16.msra.mxu1 %v10667_v40  ;;  %10191 = vmatprep.subr.bf16.mxu0 %v10668_v4  ;;  %v6357_v9 = vmax.f32 %v6347_v46, 0.0  ;;  %v6358_v49 = vmax.f32 %v6348_v7, 0.0  ;;  %v6356_v5 = vmax.f32 %v6346_v17, 0.0  ;;  %v6733_v35 = vadd.f32 %v12838_v18, %v6716_v32  ;;  %v12886_v26 = vld [vmem:[%s13295_s4 + $0x38] sm:$0xff]   ;;  %vm12915_vm3 = vmor %vm5995_vm15, %vm5996_vm0 }
 0x54c   : > { %10215 = vmatprep.subr.bf16.mxu1 %v10669_v54  ;;  %v5972_v11 = vpack.c.bf16 %v5963_v1, %v5962_v28  ;;  %v8572_v3 = vpack.c.bf16 %v5963_v1, %v5963_v1  ;;  %v12873_v29 = vpack.c.bf16 %v5964_v25, %v5964_v25  ;;  %v6734_v55 = vadd.f32 %v12838_v18, %v6717_v44  ;;  %v12896_v51 = vld [vmem:[%s13295_s4 + $0x38] sm:$0xff]   ;;  %vm12923_vm4 = vmor %vm6007_vm1, %vm6008_vm2 }
 0x54d   : > { %v8589_v37 = vpack.c.bf16 %v6357_v9, %v6357_v9  ;;  %v12875_v52 = vpack.c.bf16 %v6358_v49, %v6358_v49  ;;  %v6735_v59 = vadd.f32 %v12838_v18, %v6718_v38  ;;  %v6743_v16 = vmax.f32 %v6733_v35, 0.0  ;;  %v7088_v23 = vld [vmem:[#allocation3 + $0x100] sm:$0xff]  ;;  %v7089_v44 = vld [vmem:[#allocation3 + $0x108] sm:$0xff] }
 0x54e   : > { %10192 = vmatpush3.bf16.msra.mxu0 %v10668_v4  ;;  %5977 = vst [vmem:[#allocation4] sm:$0xf] %v5972_v11  ;;  %v8356_v39 = vrot.slane %v8572_v3, 9  ;;  %v5989_v41 = vrot.slane %v12873_v29, 5  ;;  %v5938_v2 = vmul.f32 %v12833_v0, %v5921_v14  ;;  %v6744_v4 = vmax.f32 %v6734_v55, 0.0  ;;  %v7090_v14 = vld [vmem:[#allocation3 + $0x110] sm:$0xff] }
 0x54f   : > { %10216 = vmatpush3.bf16.msra.mxu1 %v10669_v54  ;;  %10193 = vmatprep.subr.bf16.mxu0 %v10670_v19  ;;  %v8395_v61 = vrot.slane %v8589_v37, 9  ;;  %v6380_v12 = vrot.slane %v12875_v52, 5  ;;  %v6745_v54 = vmax.f32 %v6735_v59, 0.0  ;;  %v6332_v56 = vmul.f32 %v12833_v0, %v6315_v43 }
 0x550   : > { %10217 = vmatprep.subr.bf16.mxu1 %v10671_v58  ;;  %v5990_v40 = vsel %vm12868_vm14, %v8356_v39, %v5989_v41  ;;  %v6366_v34 = vpack.c.bf16 %v6357_v9, %v6356_v5  ;;  %v8606_v47 = vpack.c.bf16 %v6744_v4, %v6744_v4  ;;  %v8358_v53 = vrot.slane %v12873_v29, 10  ;;  %v5923_v41 = vld [vmem:[#allocation3 + $0x28] sm:$0xff] }
 0x551   : > { %5992 = vst [vmem:[#allocation4 + $0x4] sm:$0xf] %v5990_v40  ;;  %v6333_v30 = vmul.f32 %v12833_v0, %v6316_v62  ;;  %v6349_v57 = vadd.f32 %v12838_v18, %v6332_v56  ;;  %v12904_v22 = vpack.c.bf16 %v6744_v4, %v6743_v16  ;;  %v12906_v20 = vpack.c.bf16 %v6745_v54, %v6745_v54  ;;  %v5925_v40 = vld [vmem:[#allocation3 + $0x38] sm:$0xff]  ;;  %v6318_v56 = vld [vmem:[#allocation3 + $0x80] sm:$0xff] }
 0x552   : > { %10194 = vmatpush3.bf16.msra.mxu0 %v10670_v19  ;;  %v5939_v19 = vmul.f32 %v12833_v0, %v5922_v36  ;;  %v6719_v45 = vmul.f32 %v12833_v0, %v6702_v10  ;;  %v8450_v60 = vrot.slane %v8606_v47, 9  ;;  %v8397_v46 = vrot.slane %v12875_v52, 10  ;;  %v6317_v4 = vld [vmem:[#allocation3 + $0x78] sm:$0xff] }
 0x553   : > { %10218 = vmatpush3.bf16.msra.mxu1 %v10671_v58  ;;  %10195 = vmatprep.subr.bf16.mxu0 %v10672_v48  ;;  %v6703_v58 = vld [vmem:[#allocation3 + $0xc0] sm:$0xff]  ;;  %v6359_v63 = vmax.f32 %v6349_v57, 0.0  ;;  %v7105_v11 = vmul.f32 %v12833_v0, %v7088_v23  ;;  %v6767_v3 = vrot.slane %v12906_v20, 5  ;;  %v8452_v37 = vrot.slane %v12906_v20, 10  ;;  %v6319_v20 = vld [vmem:[#allocation3 + $0x88] sm:$0xff] }
 0x554   : > { %10219 = vmatprep.subr.bf16.mxu1 %v10673_v13  ;;  %v5956_v8 = vadd.f32 %v12838_v18, %v5939_v19  ;;  %v6720_v15 = vmul.f32 %v12833_v0, %v6703_v58  ;;  %v6736_v7 = vadd.f32 %v12838_v18, %v6719_v45  ;;  %v7106_v39 = vmul.f32 %v12833_v0, %v7089_v44 }
 0x555   : > { %v8591_v25 = vpack.c.bf16 %v6359_v63, %v6359_v63  ;;  %v7107_v43 = vmul.f32 %v12833_v0, %v7090_v14  ;;  %v7122_v62 = vadd.f32 %v12838_v18, %v7105_v11 }
 0x556   : > { %10196 = vmatpush3.bf16.msra.mxu0 %v10672_v48  ;;  %v5955_v48 = vadd.f32 %v12838_v18, %v5938_v2  ;;  %v5966_v6 = vmax.f32 %v5956_v8, 0.0  ;;  %v6737_v49 = vadd.f32 %v12838_v18, %v6720_v15  ;;  %v6746_v38 = vmax.f32 %v6736_v7, 0.0  ;;  %v10684_v15 = vld [vmem:[%s13295_s4 + $0x30] sm:$0xff]  }
 0x557   : > { %10220 = vmatpush3.bf16.msra.mxu1 %v10673_v13  ;;  %10197 = vmatprep.subr.bf16.mxu0 %v10674_v21  ;;  %v6381_v13 = vsel %vm12868_vm14, %v8395_v61, %v6380_v12  ;;  %v6388_v55 = vrot.slane %v8591_v25, 6  ;;  %v8399_v59 = vrot.slane %v8591_v25, 11  ;;  %v5924_v61 = vld [vmem:[#allocation3 + $0x30] sm:$0xff]  ;;  %v7123_v10 = vadd.f32 %v12838_v18, %v7106_v39 }
 0x558   : > { %10221 = vmatprep.subr.bf16.mxu1 %v10675_v33  ;;  %v5965_v24 = vmax.f32 %v5955_v48, 0.0  ;;  %v8575_v17 = vpack.c.bf16 %v5966_v6, %v5966_v6  ;;  %v6747_v35 = vmax.f32 %v6737_v49, 0.0  ;;  %v8608_v36 = vpack.c.bf16 %v6746_v38, %v6746_v38  ;;  %v6705_v25 = vld [vmem:[#allocation3 + $0xd0] sm:$0xff]  ;;  %v6706_v38 = vld [vmem:[#allocation3 + $0xd8] sm:$0xff] }
 0x559   : > { %v7124_v19 = vadd.f32 %v12838_v18, %v7107_v43  ;;  %v7132_v58 = vmax.f32 %v7122_v62, 0.0  ;;  %v5940_v48 = vmul.f32 %v12833_v0, %v5923_v41  ;;  %v7133_v47 = vmax.f32 %v7123_v10, 0.0  ;;  %v10686_v39 = vld [vmem:[%s13295_s4 + $0x28] sm:$0xff]  }
 0x55a   : > { %10198 = vmatpush3.bf16.msra.mxu0 %v10674_v21  ;;  %v8574_v42 = vpack.c.bf16 %v5965_v24, %v5965_v24  ;;  %v6350_v21 = vadd.f32 %v12838_v18, %v6333_v30  ;;  %v6012_v9 = vrot.slane %v8575_v17, 7  ;;  %v6775_v16 = vrot.slane %v8608_v36, 6 }
 0x55b   : > { %10222 = vmatpush3.bf16.msra.mxu1 %v10675_v33  ;;  %10199 = vmatprep.subr.bf16.mxu0 %v10676_v50  ;;  %v8609_v2 = vpack.c.bf16 %v6747_v35, %v6747_v35  ;;  %v8454_v54 = vrot.slane %v8608_v36, 11  ;;  %v5941_v8 = vmul.f32 %v12833_v0, %v5924_v61  ;;  %v6389_v24 = vsel %vm12915_vm3, %v8397_v46, %v6388_v55  ;;  %v6704_v46 = vld [vmem:[#allocation3 + $0xc8] sm:$0xff]  ;;  %v5926_v36 = vld [vmem:[#allocation3 + $0x40] sm:$0xff]  ;;  %v8784_v33 = vld [vmem:[%s10846_s17 + $0x8] sm:$0xff]  }
 0x55c   : > { %10223 = vmatprep.subr.bf16.mxu1 %v10677_v27  ;;  %v6000_v32 = vrot.slane %v8574_v42, 6  ;;  %v8360_v28 = vrot.slane %v8574_v42, 11  ;;  %v6360_v1 = vmax.f32 %v6350_v21, 0.0  ;;  %v5942_v30 = vmul.f32 %v12833_v0, %v5925_v40 }
 0x55d   : > { %v5957_v57 = vadd.f32 %v12838_v18, %v5940_v48  ;;  %v12950_v42 = vpack.c.bf16 %v7132_v58, %v7132_v58  ;;  %v12952_v21 = vpack.c.bf16 %v7133_v47, %v7133_v47  ;;  %v5958_v63 = vadd.f32 %v12838_v18, %v5941_v8  ;;  %v10688_v58 = vld [vmem:[%s13295_s4 + $0x20] sm:$0xff]   ;;  %v6321_v47 = vld [vmem:[#allocation3 + $0x98] sm:$0xff] }
 0x55e   : > { %10200 = vmatpush3.bf16.msra.mxu0 %v10676_v50  ;;  %v6001_v29 = vsel %vm12915_vm3, %v8358_v53, %v6000_v32  ;;  %v8592_v5 = vpack.c.bf16 %v6360_v1, %v6360_v1  ;;  %v6013_v52 = vsel %vm12923_vm4, %v8360_v28, %v6012_v9  ;;  %v7134_v53 = vmax.f32 %v7124_v19, 0.0  ;;  %v10685_v19 = vld [vmem:[%s13295_s4 + $0x30] sm:$0xff]   ;;  %v13117_v50 = vld [vmem:[%s13297_s6] ss:$0 sm:$0xff] }
 0x55f   : > { %10224 = vmatpush3.bf16.msra.mxu1 %v10677_v27  ;;  %10233 = vmatprep.subr.bf16.mxu0 %v12886_v26  ;;  %v10678_v27 = vld [vmem:[#allocation4] sm:$0xff]   ;;  %6003 = vst [vmem:[#allocation4 + $0x8] sm:$0xf] %v6001_v29  ;;  %6015 = vst [vmem:[#allocation4 + $0xc] sm:$0xf] %v6013_v52  ;;  %v5959_v23 = vadd.f32 %v12838_v18, %v5942_v30  ;;  %v6334_v17 = vmul.f32 %v12833_v0, %v6317_v4  ;;  %v8507_v14 = vrot.slane %v12950_v42, 10 }
 0x560   : > { %10257 = vmatprep.subr.bf16.mxu1 %v12896_v51  ;;  %6371 = vst [vmem:[#allocation4] sm:$0xf] %v6366_v34  ;;  %6383 = vst [vmem:[#allocation4 + $0x4] sm:$0xf] %v6381_v13  ;;  %10201 = vmatprep.mubr.bf16.mxu0 %v10678_v27  ;;  %v6397_v12 = vrot.slane %v8592_v5, 7  ;;  %v6768_v34 = vsel %vm12868_vm14, %v8450_v60, %v6767_v3  ;;  %v6784_v13 = vrot.slane %v8609_v2, 7 }
 0x561   : > { %v5967_v60 = vmax.f32 %v5957_v57, 0.0  ;;  %v6776_v32 = vsel %vm12915_vm3, %v8452_v37, %v6775_v16  ;;  %v6335_v1 = vmul.f32 %v12833_v0, %v6318_v56  ;;  %v8626_v44 = vpack.c.bf16 %v7134_v53, %v7134_v53  ;;  %v5927_v16 = vld [vmem:[#allocation3 + $0x48] sm:$0xff]  ;;  %v6320_v2 = vld [vmem:[#allocation3 + $0x90] sm:$0xff] }
 0x562   : > { %v6398_v45 = vsel %vm12923_vm4, %v8399_v59, %v6397_v12  ;;  %v6785_v28 = vsel %vm12923_vm4, %v8454_v54, %v6784_v13  ;;  %v5969_v27 = vmax.f32 %v5959_v23, 0.0  ;;  %v6336_v49 = vmul.f32 %v12833_v0, %v6319_v20 }
 0x563   : > { %v8576_v9 = vpack.c.bf16 %v5967_v60, %v5967_v60  ;;  %v7162_v11 = vrot.slane %v12952_v21, 6  ;;  %v6352_v29 = vadd.f32 %v12838_v18, %v6335_v1  ;;  %v8509_v5 = vrot.slane %v12952_v21, 11  ;;  %v10687_v1 = vld [vmem:[%s13295_s4 + $0x28] sm:$0xff]  }
 0x564   : > { %v12972_v37 = vpack.c.bf16 %v5969_v27, %v5969_v27  ;;  %v6351_v52 = vadd.f32 %v12838_v18, %v6334_v17  ;;  %v6353_v35 = vadd.f32 %v12838_v18, %v6336_v49  ;;  %v6721_v59 = vmul.f32 %v12833_v0, %v6704_v46  ;;  %v6707_v17 = vld [vmem:[#allocation3 + $0xe0] sm:$0xff]  ;;  %v6708_v46 = vld [vmem:[#allocation3 + $0xe8] sm:$0xff] }
 0x565   : > { %6019 = vst [vmem:[#allocation4 + $0x10] sm:$0xf] %v8576_v9  ;;  %v6362_v55 = vmax.f32 %v6352_v29, 0.0  ;;  %v6722_v43 = vmul.f32 %v12833_v0, %v6705_v25  ;;  %v6723_v12 = vmul.f32 %v12833_v0, %v6706_v38  ;;  %v12985_v10 = vsel %vm12915_vm3, %v8507_v14, %v7162_v11  ;;  %v10690_v25 = vld [vmem:[%s13295_s4 + $0x18] sm:$0xff]  }
 0x566   : > { %v10680_v7 = vld [vmem:[#allocation4 + $0x8] sm:$0xff]   ;;  %v6027_v62 = vrot.slane %v12972_v37, 5  ;;  %v6363_v61 = vmax.f32 %v6353_v35, 0.0  ;;  %v5943_v54 = vmul.f32 %v12833_v0, %v5926_v36  ;;  %v6361_v56 = vmax.f32 %v6351_v52, 0.0  ;;  %v7086_v52 = vld [vmem:[#allocation3 + $0xf0] sm:$0xff] }
 0x567   : > { %v10679_v6 = vld [vmem:[#allocation4] sm:$0xff]   ;;  %6391 = vst [vmem:[#allocation4 + $0x8] sm:$0xf] %v6389_v24  ;;  %6400 = vst [vmem:[#allocation4 + $0xc] sm:$0xf] %v6398_v45  ;;  %10202 = vmatmul.mubr.bf16.vlgmr.msra.gmra.mxu0 %v10680_v7  ;;  %v8594_v40 = vpack.c.bf16 %v6362_v55, %v6362_v55  ;;  %v6739_v4 = vadd.f32 %v12838_v18, %v6722_v43  ;;  %v6740_v13 = vadd.f32 %v12838_v18, %v6723_v12 }
 0x568   : > { %6758 = vst [vmem:[#allocation4] sm:$0xf] %v12904_v22  ;;  %6770 = vst [vmem:[#allocation4 + $0x4] sm:$0xf] %v6768_v34  ;;  %10225 = vmatprep.mubr.bf16.mxu1 %v10679_v6  ;;  %v5968_v22 = vmax.f32 %v5958_v63, 0.0  ;;  %10234 = vmatpush3.bf16.msra.mxu0 %v12886_v26  ;;  %v7171_v26 = vrot.slane %v8626_v44, 7  ;;  %v12997_v34 = vpack.c.bf16 %v6363_v61, %v6363_v61 }
 0x569   : > { %10235 = vmatprep.subr.bf16.mxu0 %v10684_v15  ;;  %v13001_v24 = vadd.f32 %v12838_v18, %v6721_v59  ;;  %v5944_v53 = vmul.f32 %v12833_v0, %v5927_v16  ;;  %v5960_v30 = vadd.f32 %v12838_v18, %v5943_v54  ;;  %v6337_v57 = vmul.f32 %v12833_v0, %v6320_v2  ;;  %v7087_v59 = vld [vmem:[#allocation3 + $0xf8] sm:$0xff] }
 0x56a   : > { %v8577_v3 = vpack.c.bf16 %v5968_v22, %v5968_v22  ;;  %v8403_v20 = vrot.slane %v8594_v40, 9  ;;  %v6412_v6 = vrot.slane %v12997_v34, 5  ;;  %v6749_v45 = vmax.f32 %v6739_v4, 0.0  ;;  %v10696_v2 = vld [vmem:[%s13295_s4 + $0x10] sm:$0xff]  }
 0x56b   : > { %v6750_v21 = vmax.f32 %v6740_v13, 0.0  ;;  %v7172_v63 = vsel %vm12923_vm4, %v8509_v5, %v7171_v26  ;;  %v5970_v23 = vmax.f32 %v5960_v30, 0.0  ;;  %v6338_v60 = vmul.f32 %v12833_v0, %v6321_v47  ;;  %v10689_v26 = vld [vmem:[%s13295_s4 + $0x20] sm:$0xff]   ;;  %v10691_v30 = vld [vmem:[%s13295_s4 + $0x18] sm:$0xff]  }
 0x56c   : > { %v8364_v41 = vrot.slane %v8577_v3, 9  ;;  %10236 = vmatpush3.bf16.msra.mxu0 %v10684_v15  ;;  %v5961_v15 = vadd.f32 %v12838_v18, %v5944_v53  ;;  %v8593_v7 = vpack.c.bf16 %v6361_v56, %v6361_v56  ;;  %v8366_v22 = vrot.slane %v12972_v37, 10  ;;  %v7092_v53 = vld [vmem:[#allocation3 + $0x120] sm:$0xff] }
 0x56d   : > { %10237 = vmatprep.subr.bf16.mxu0 %v10686_v39  ;;  %v6354_v27 = vadd.f32 %v12838_v18, %v6337_v57  ;;  %v6355_v9 = vadd.f32 %v12838_v18, %v6338_v60  ;;  %v6413_v49 = vsel %vm12868_vm14, %v8403_v20, %v6412_v6  ;;  %v6748_v38 = vmax.f32 %v13001_v24, 0.0  ;;  %v7091_v24 = vld [vmem:[#allocation3 + $0x118] sm:$0xff]  ;;  %v7093_v6 = vld [vmem:[#allocation3 + $0x128] sm:$0xff] }
 0x56e   : > { %v6028_v48 = vsel %vm12868_vm14, %v8364_v41, %v6027_v62  ;;  %v10681_v8 = vld [vmem:[#allocation4 + $0x8] sm:$0xff]   ;;  %v5971_v44 = vmax.f32 %v5961_v15, 0.0  ;;  %v6724_v14 = vmul.f32 %v12833_v0, %v6707_v17  ;;  %v6725_v11 = vmul.f32 %v12833_v0, %v6708_v46 }
 0x56f   : > { %6030 = vst [vmem:[#allocation4 + $0x14] sm:$0xf] %v6028_v48  ;;  %6778 = vst [vmem:[#allocation4 + $0x8] sm:$0xf] %v6776_v32  ;;  %10226 = vmatmul.mubr.bf16.vlgmr.msra.gmra.mxu1 %v10681_v8  ;;  %v13012_v32 = vpack.c.bf16 %v6749_v45, %v6749_v45  ;;  %v6364_v37 = vmax.f32 %v6354_v27, 0.0  ;;  %v8405_v48 = vrot.slane %v12997_v34, 10  ;;  %v7104_v56 = vmul.f32 %v12833_v0, %v7087_v59 }
 0x570   : > { %6787 = vst [vmem:[#allocation4 + $0xc] sm:$0xf] %v6785_v28  ;;  %10258 = vmatpush3.bf16.msra.mxu1 %v12896_v51  ;;  %10238 = vmatpush3.bf16.msra.mxu0 %v10686_v39  ;;  %v13014_v28 = vpack.c.bf16 %v6750_v21, %v6750_v21  ;;  %v8579_v51 = vpack.c.bf16 %v5970_v23, %v5970_v23  ;;  %v6365_v39 = vmax.f32 %v6355_v9, 0.0  ;;  %v10698_v34 = vld [vmem:[%s13295_s4 + $0x8] sm:$0xff]   ;;  %v10697_v23 = vld [vmem:[%s13295_s4 + $0x10] sm:$0xff]  }
 0x571   : > { %10259 = vmatprep.subr.bf16.mxu1 %v10685_v19  ;;  %10239 = vmatprep.subr.bf16.mxu0 %v10688_v58  ;;  %v8580_v29 = vpack.c.bf16 %v5971_v44, %v5971_v44  ;;  %v8458_v36 = vrot.slane %v13012_v32, 9  ;;  %v6741_v41 = vadd.f32 %v12838_v18, %v6724_v14  ;;  %v6742_v55 = vadd.f32 %v12838_v18, %v6725_v11  ;;  %v10702_v60 = vld [vmem:[#allocation4] sm:$0xff]   ;;  %v10700_v14 = vld [vmem:[%s13295_s4] sm:$0xff]  }
 0x572   : > { %v6036_v3 = vrot.slane %v8579_v51, 6  ;;  %v8368_v5 = vrot.slane %v8579_v51, 11  ;;  %v6799_v62 = vrot.slane %v13014_v28, 5  ;;  %v8596_v16 = vpack.c.bf16 %v6364_v37, %v6364_v37 }
 0x573   : > { %v6044_v12 = vrot.slane %v8580_v29, 7  ;;  %v8597_v40 = vpack.c.bf16 %v6365_v39, %v6365_v39  ;;  %v6751_v4 = vmax.f32 %v6741_v41, 0.0  ;;  %v6752_v54 = vmax.f32 %v6742_v55, 0.0 }
 0x574   : > { %10260 = vmatpush3.bf16.msra.mxu1 %v10685_v19  ;;  %10240 = vmatpush3.bf16.msra.mxu0 %v10688_v58  ;;  %v6037_v61 = vsel %vm12915_vm3, %v8366_v22, %v6036_v3  ;;  %v7103_v19 = vmul.f32 %v12833_v0, %v7086_v52  ;;  %v6421_v13 = vrot.slane %v8596_v16, 6  ;;  %v8610_v57 = vpack.c.bf16 %v6748_v38, %v6748_v38  ;;  %v7094_v22 = vld [vmem:[#allocation3 + $0x130] sm:$0xff] }
 0x575   : > { %10261 = vmatprep.subr.bf16.mxu1 %v10687_v1  ;;  %10241 = vmatprep.subr.bf16.mxu0 %v10690_v25  ;;  %6039 = vst [vmem:[#allocation4 + $0x18] sm:$0xf] %v6037_v61  ;;  %v6045_v58 = vsel %vm12923_vm4, %v8368_v5, %v6044_v12  ;;  %v6429_v47 = vrot.slane %v8597_v40, 7  ;;  %v7121_v20 = vadd.f32 %v12838_v18, %v7104_v56  ;;  %v7154_v51 = vrot.slane %v12950_v42, 5 }
 0x576   : > { %v10692_v35 = vld [vmem:[#allocation4 + $0x10] sm:$0xff]   ;;  %6047 = vst [vmem:[#allocation4 + $0x1c] sm:$0xf] %v6045_v58  ;;  %v7120_v8 = vadd.f32 %v12838_v18, %v7103_v19  ;;  %v6800_v45 = vsel %vm12868_vm14, %v8458_v36, %v6799_v62  ;;  %v13060_v21 = vpack.c.bf16 %v6751_v4, %v6751_v4  ;;  %v13063_v15 = vpack.c.bf16 %v6752_v54, %v6752_v54 }
 0x577   : > { %v13033_v43 = vld [vmem:[#allocation4 + $0x8] sm:$0xff]   ;;  %6404 = vst [vmem:[#allocation4 + $0x10] sm:$0xf] %v8593_v7  ;;  %6415 = vst [vmem:[#allocation4 + $0x14] sm:$0xf] %v6413_v49  ;;  %10205 = vmatprep.mubr.bf16.mxu0 %v10692_v35  ;;  %v7131_v46 = vmax.f32 %v7121_v20, 0.0  ;;  %v7108_v7 = vmul.f32 %v12833_v0, %v7091_v24  ;;  %v7109_v32 = vmul.f32 %v12833_v0, %v7092_v53 }
 0x578   : > { %7165 = vst [vmem:[#allocation4 + $0x8] sm:$0xf] %v12985_v10  ;;  %7174 = vst [vmem:[#allocation4 + $0xc] sm:$0xf] %v7172_v63  ;;  %10262 = vmatpush3.bf16.msra.mxu1 %v10687_v1  ;;  %10242 = vmatpush3.bf16.msra.mxu0 %v10690_v25  ;;  %v8407_v10 = vrot.slane %v8596_v16, 11  ;;  %v8460_v63 = vrot.slane %v13014_v28, 10  ;;  %v6422_v28 = vsel %vm12915_vm3, %v8405_v48, %v6421_v13 }
 0x579   : > { %10263 = vmatprep.subr.bf16.mxu1 %v10689_v26  ;;  %10243 = vmatprep.subr.bf16.mxu0 %v10696_v2  ;;  %v7130_v17 = vmax.f32 %v7120_v8, 0.0  ;;  %v7095_v1 = vld [vmem:[#allocation3 + $0x138] sm:$0xff]  ;;  %v7110_v27 = vmul.f32 %v12833_v0, %v7093_v6  ;;  %v8623_v49 = vpack.c.bf16 %v7131_v46, %v7131_v46  ;;  %v7125_v38 = vadd.f32 %v12838_v18, %v7108_v7  ;;  %v10701_v58 = vld [vmem:[%s13295_s4] sm:$0xff]  }
 0x57a   : > { %v6430_v44 = vsel %vm12923_vm4, %v8407_v10, %v6429_v47  ;;  %v7126_v11 = vadd.f32 %v12838_v18, %v7109_v32  ;;  %v7111_v42 = vmul.f32 %v12833_v0, %v7094_v22  ;;  %v7112_v29 = vmul.f32 %v12833_v0, %v7095_v1  ;;  %v8641_v7 = vld [vmem:[%s10846_s17] sm:$0xff]  }
 0x57b   : > { %v7140_v9 = vpack.c.bf16 %v7131_v46, %v7130_v17  ;;  %v7127_v3 = vadd.f32 %v12838_v18, %v7110_v27  ;;  %v6808_v37 = vrot.slane %v13060_v21, 6  ;;  %v8505_v52 = vrot.slane %v8623_v49, 9  ;;  %v8791_v27 = vld [vmem:[%s10846_s17 + $0x28] sm:$0xff]  }
 0x57c   : > { %10264 = vmatpush3.bf16.msra.mxu1 %v10689_v26  ;;  %10244 = vmatpush3.bf16.msra.mxu0 %v10696_v2  ;;  %v7135_v35 = vmax.f32 %v7125_v38, 0.0  ;;  %v7136_v36 = vmax.f32 %v7126_v11, 0.0  ;;  %v7128_v41 = vadd.f32 %v12838_v18, %v7111_v42  ;;  %v7129_v55 = vadd.f32 %v12838_v18, %v7112_v29  ;;  %v10699_v26 = vld [vmem:[%s13295_s4 + $0x8] sm:$0xff]  }
 0x57d   : > { %10265 = vmatprep.subr.bf16.mxu1 %v10691_v30  ;;  %10245 = vmatprep.subr.bf16.mxu0 %v10698_v34  ;;  %v10694_v5 = vld [vmem:[#allocation4 + $0x18] sm:$0xff]   ;;  %7145 = vst [vmem:[#allocation4] sm:$0xf] %v7140_v9  ;;  %v7137_v39 = vmax.f32 %v7127_v3, 0.0  ;;  %v8462_v59 = vrot.slane %v13060_v21, 11  ;;  %v6816_v0 = vrot.slane %v13063_v15, 7  ;;  %v7155_v62 = vsel %vm12868_vm14, %v8505_v52, %v7154_v51 }
 0x57e   : > { %v10693_v25 = vld [vmem:[#allocation4 + $0x10] sm:$0xff]   ;;  %6424 = vst [vmem:[#allocation4 + $0x18] sm:$0xf] %v6422_v28  ;;  %6432 = vst [vmem:[#allocation4 + $0x1c] sm:$0xf] %v6430_v44  ;;  %10206 = vmatmul.mubr.bf16.gmra.mxu0 %v10694_v5  ;;  %v8627_v61 = vpack.c.bf16 %v7135_v35, %v7135_v35  ;;  %v8628_v12 = vpack.c.bf16 %v7136_v36, %v7136_v36  ;;  %v7138_v18 = vmax.f32 %v7128_v41, 0.0  ;;  %v8647_v1 = vunpack.c.h.bf16 %v8784_v33 }
 0x57f   : > { %6791 = vst [vmem:[#allocation4 + $0x10] sm:$0xf] %v8610_v57  ;;  %6802 = vst [vmem:[#allocation4 + $0x14] sm:$0xf] %v6800_v45  ;;  %10229 = vmatprep.mubr.bf16.mxu1 %v10693_v25  ;;  %10249 = vmatprep.mubr.bf16.mxu0 %v10702_v60  ;;  %v8629_v16 = vpack.c.bf16 %v7137_v39, %v7137_v39  ;;  %v7139_v2 = vmax.f32 %v7129_v55, 0.0  ;;  %v6809_v54 = vsel %vm12915_vm3, %v8460_v63, %v6808_v37  ;;  %v8790_v3 = vld [vmem:[%s10846_s17 + $0x20] sm:$0xff]  }
 0x580   : > { %10266 = vmatpush3.bf16.msra.mxu1 %v10691_v30  ;;  %10246 = vmatpush3.bf16.msra.mxu0 %v10698_v34  ;;  %7157 = vst [vmem:[#allocation4 + $0x4] sm:$0xf] %v7155_v62  ;;  %v8513_v4 = vrot.slane %v8628_v12, 9  ;;  %v6817_v19 = vsel %vm12923_vm4, %v8462_v59, %v6816_v0  ;;  %v8630_v56 = vpack.c.bf16 %v7138_v18, %v7138_v18  ;;  %v10704_v34 = vld [vmem:[#allocation4 + $0x8] sm:$0xff]   ;;  %v8642_v44 = vunpack.c.l.bf16 %v8641_v7 }
 0x581   : > { %10267 = vmatprep.subr.bf16.mxu1 %v10697_v23  ;;  %10247 = vmatprep.subr.bf16.mxu0 %v10700_v14  ;;  %v7186_v48 = vrot.slane %v8629_v16, 5  ;;  %v8631_v13 = vpack.c.bf16 %v7139_v2, %v7139_v2  ;;  %v8515_v24 = vrot.slane %v8629_v16, 10  ;;  %v13111_v21 = vld [vmem:[%s13296_s5] ss:$0 sm:$0xff]  ;;  %v8643_v38 = vunpack.c.h.bf16 %v8641_v7 }
 0x582   : > { %v7195_v53 = vrot.slane %v8630_v56, 6  ;;  %v8517_v30 = vrot.slane %v8630_v56, 11  ;;  %v8682_v37 = vunpack.c.l.bf16 %v8791_v27  ;;  %v8678_v59 = vunpack.c.l.bf16 %v8790_v3 }
 0x583   : > { %v7187_v47 = vsel %vm12868_vm14, %v8513_v4, %v7186_v48  ;;  %v7203_v57 = vrot.slane %v8631_v13, 7  ;;  %v8683_v12 = vunpack.c.h.bf16 %v8791_v27  ;;  %v13165_v27 = vld [vmem:[%s10846_s17 + $0x40] sm:$0xff]  }
 0x584   : > { %10268 = vmatpush3.bf16.msra.mxu1 %v10697_v23  ;;  %10248 = vmatpush3.bf16.msra.mxu0 %v10700_v14  ;;  %v7196_v31 = vsel %vm12915_vm3, %v8515_v24, %v7195_v53  ;;  %v8646_v23 = vunpack.c.l.bf16 %v8784_v33  ;;  %v13149_v33 = vld [vmem:[%s10846_s17 + $0x30] sm:$0xff]  }
 0x585   : > { %10269 = vmatprep.subr.bf16.mxu1 %v10699_v26  ;;  %v10695_v10 = vld [vmem:[#allocation4 + $0x18] sm:$0xff]   ;;  %v7204_v20 = vsel %vm12923_vm4, %v8517_v30, %v7203_v57 }
 0x586   : > { %v10705_v40 = vld [vmem:[#allocation4 + $0x10] sm:$0xff]   ;;  %6811 = vst [vmem:[#allocation4 + $0x18] sm:$0xf] %v6809_v54  ;;  %6819 = vst [vmem:[#allocation4 + $0x1c] sm:$0xf] %v6817_v19  ;;  %10230 = vmatmul.mubr.bf16.gmra.mxu1 %v10695_v10  ;;  %v8679_v19 = vunpack.c.h.bf16 %v8790_v3 }
 0x587   : > { %7178 = vst [vmem:[#allocation4 + $0x10] sm:$0xf] %v8627_v61  ;;  %7189 = vst [vmem:[#allocation4 + $0x14] sm:$0xf] %v7187_v47  ;;  %v10703_v8 = vld [vmem:[#allocation4] sm:$0xff]   ;;  %10250 = vmatmul.mubr.bf16.vlgmr.msra.gmra.mxu0 %v13033_v43 }
 0x588   : > { %10270 = vmatpush3.bf16.msra.mxu1 %v10699_v26  ;;  %10273 = vmatprep.mubr.bf16.mxu1 %v10703_v8 }
 0x589   : > { %10271 = vmatprep.subr.bf16.mxu1 %v10701_v58  ;;  %10253 = vmatprep.mubr.bf16.mxu0 %v10705_v40 }
 0x58c   : > { %10272 = vmatpush3.bf16.msra.mxu1 %v10701_v58 }
 0x58d   : > { %v10707_v45 = vld [vmem:[#allocation4 + $0x18] sm:$0xff]  }
 0x58e   : > { %v10706_v6 = vld [vmem:[#allocation4 + $0x10] sm:$0xff]   ;;  %7198 = vst [vmem:[#allocation4 + $0x18] sm:$0xf] %v7196_v31  ;;  %7206 = vst [vmem:[#allocation4 + $0x1c] sm:$0xf] %v7204_v20 }
 0x58f   : > { %10274 = vmatmul.mubr.bf16.vlgmr.msra.gmra.mxu1 %v10704_v34  ;;  %10254 = vmatmul.mubr.bf16.gmra.mxu0 %v10707_v45  ;;  %v8786_v34 = vld [vmem:[%s10846_s17 + $0x18] sm:$0xff]  }
 0x590   : > { %10277 = vmatprep.mubr.bf16.mxu1 %v10706_v6  ;;  %v8654_v6 = vunpack.c.l.bf16 %v8786_v34  ;;  %v13145_v45 = vld [vmem:[%s10846_s17 + $0x38] sm:$0xff]  }
 0x595   : > { %v10708_v43 = vld [vmem:[#allocation4 + $0x18] sm:$0xff]  }
 0x597   : > { %10278 = vmatmul.mubr.bf16.gmra.mxu1 %v10708_v43  ;;  %v8785_v43 = vld [vmem:[%s10846_s17 + $0x10] sm:$0xff]  }
 0x598   : > { %v8650_v7 = vunpack.c.l.bf16 %v8785_v43 }
 0x627   : > { %v10203_v63 = vpop.f32.mrf.mxu0 }
 0x628   : > { %v6218_v15 = vmul.f32 %v10203_v63, %v13111_v21 }
 0x629   : > { %v6178_v60 = vpop.f32.mrf.mxu0 }
 0x62a   : > { %v6233_v17 = vadd.f32 %v13117_v50, %v6218_v15  ;;  %v6216_v46 = vmul.f32 %v13111_v21, %v6178_v60  ;;  %v13154_v60 = vld [vmem:[%s10846_s17 + $0x48] sm:$0xff]  }
 0x62b   : > { %v10204_v32 = vpop.f32.mrf.mxu0 }
 0x62c   : > { %v6219_v22 = vmul.f32 %v10204_v32, %v13111_v21  ;;  %v6257_v25 = vadd.f32 %v8646_v23, %v6233_v17  ;;  %v6231_v28 = vadd.f32 %v13117_v50, %v6216_v46  ;;  %v13157_v17 = vld [vmem:[%s10846_s17 + $0x68] sm:$0xff]   ;;  %v8690_v46 = vunpack.c.l.bf16 %v13145_v45 }
 0x62d   : > { %v6181_v51 = vpop.f32.mrf.mxu0  ;;  %v8686_v32 = vunpack.c.l.bf16 %v13149_v33  ;;  %v8754_v3 = vunpack.c.l.bf16 %v13157_v17 }
 0x62e   : > { %v6234_v9 = vadd.f32 %v13117_v50, %v6219_v22  ;;  %v6217_v49 = vmul.f32 %v13111_v21, %v6181_v51  ;;  %v6265_v5 = vmax.f32 %v6257_v25, 0.0  ;;  %v6255_v52 = vadd.f32 %v8642_v44, %v6231_v28 }
 0x62f   : > { %v10227_v14 = vpop.f32.mrf.mxu1  ;;  %v8691_v51 = vunpack.c.h.bf16 %v13145_v45 }
 0x630   : > { %v6603_v11 = vmul.f32 %v10227_v14, %v13111_v21  ;;  %v6258_v42 = vadd.f32 %v8647_v1, %v6234_v9  ;;  %v6232_v29 = vadd.f32 %v13117_v50, %v6217_v49  ;;  %v6263_v16 = vmax.f32 %v6255_v52, 0.0  ;;  %v13168_v9 = vld [vmem:[%s10846_s17 + $0x60] sm:$0xff]   ;;  %v13178_v52 = vld [vmem:[%s10846_s17 + $0x58] sm:$0xff]  }
 0x631   : > { %v6563_v35 = vpop.f32.mrf.mxu1  ;;  %v8655_v1 = vunpack.c.h.bf16 %v8786_v34  ;;  %v8687_v14 = vunpack.c.h.bf16 %v13149_v33 }
 0x632   : > { %v6618_v36 = vadd.f32 %v13117_v50, %v6603_v11  ;;  %v6601_v39 = vmul.f32 %v13111_v21, %v6563_v35  ;;  %v6266_v41 = vmax.f32 %v6258_v42, 0.0  ;;  %v6256_v55 = vadd.f32 %v8643_v38, %v6232_v29  ;;  %v13181_v35 = vld [vmem:[%s10846_s17 + $0x78] sm:$0xff]  }
 0x633   : > { %v10228_v0 = vpop.f32.mrf.mxu1  ;;  %v8651_v38 = vunpack.c.h.bf16 %v8785_v43  ;;  %v8718_v11 = vunpack.c.l.bf16 %v13154_v60  ;;  %v8763_v33 = vunpack.c.h.bf16 %v13181_v35 }
 0x634   : > { %v6616_v26 = vadd.f32 %v13117_v50, %v6601_v39  ;;  %v8664_v62 = vpack.c.bf16 %v6266_v41, %v6265_v5  ;;  %v6604_v61 = vmul.f32 %v10228_v0, %v13111_v21  ;;  %v6264_v18 = vmax.f32 %v6256_v55, 0.0 }
 0x635   : > { %v6566_v2 = vpop.f32.mrf.mxu1  ;;  %v6643_v40 = vadd.f32 %v8682_v37, %v6618_v36  ;;  %v8719_v5 = vunpack.c.h.bf16 %v13154_v60  ;;  %v8755_v37 = vunpack.c.h.bf16 %v13157_v17  ;;  %v8714_v41 = vunpack.c.l.bf16 %v13165_v27 }
 0x636   : > { %8787 = vst [vmem:[%s10851_s20 + $0x8] sm:$0xff] %v8664_v62   ;;  %v6619_v4 = vadd.f32 %v13117_v50, %v6604_v61  ;;  %v6602_v54 = vmul.f32 %v13111_v21, %v6566_v2  ;;  %v8659_v58 = vpack.c.bf16 %v6264_v18, %v6263_v16  ;;  %v6641_v48 = vadd.f32 %v8678_v59, %v6616_v26  ;;  %v13189_v16 = vld [vmem:[%s10846_s17 + $0x50] sm:$0xff]  }
 0x637   : > { %v6651_v10 = vmax.f32 %v6643_v40, 0.0  ;;  %v8750_v55 = vunpack.c.l.bf16 %v13168_v9  ;;  %v8715_v59 = vunpack.c.h.bf16 %v13165_v27  ;;  %v8751_v40 = vunpack.c.h.bf16 %v13168_v9 }
 0x638   : > { %v6644_v56 = vadd.f32 %v8683_v12, %v6619_v4  ;;  %v6617_v13 = vadd.f32 %v13117_v50, %v6602_v54  ;;  %8660 = vst [vmem:[%s10851_s20] sm:$0xff] %v8659_v58   ;;  %v6649_v24 = vmax.f32 %v6641_v48, 0.0  ;;  %v8726_v4 = vunpack.c.l.bf16 %v13178_v52 }
 0x639   : > { %v8762_v54 = vunpack.c.l.bf16 %v13181_v35 }
 0x63a   : > { %v6652_v47 = vmax.f32 %v6644_v56, 0.0  ;;  %v6642_v8 = vadd.f32 %v8679_v19, %v6617_v13 }
 0x63c   : > { %v8700_v53 = vpack.c.bf16 %v6652_v47, %v6651_v10  ;;  %v6650_v30 = vmax.f32 %v6642_v8, 0.0 }
 0x63e   : > { %8795 = vst [vmem:[%s10851_s20 + $0x28] sm:$0xff] %v8700_v53   ;;  %v8695_v57 = vpack.c.bf16 %v6650_v30, %v6649_v24  ;;  %v10207_v31 = vpop.f32.mrf.mxu0  ;;  %v8722_v53 = vunpack.c.l.bf16 %v13189_v16  ;;  %v13201_v30 = vld [vmem:[%s10846_s17 + $0x70] sm:$0xff]  }
 0x63f   : > { %v6222_v20 = vmul.f32 %v10207_v31, %v13111_v21 }
 0x640   : > { %8794 = vst [vmem:[%s10851_s20 + $0x20] sm:$0xff] %v8695_v57   ;;  %v6194_v63 = vpop.f32.mrf.mxu0 }
 0x641   : > { %v6237_v15 = vadd.f32 %v13117_v50, %v6222_v20  ;;  %v6220_v23 = vmul.f32 %v13111_v21, %v6194_v63 }
 0x642   : > { %v10208_v22 = vpop.f32.mrf.mxu0 }
 0x643   : > { %v6261_v25 = vadd.f32 %v8654_v6, %v6237_v15  ;;  %v6235_v28 = vadd.f32 %v13117_v50, %v6220_v23  ;;  %v6223_v44 = vmul.f32 %v10208_v22, %v13111_v21 }
 0x644   : > { %v6197_v49 = vpop.f32.mrf.mxu0 }
 0x645   : > { %v6238_v42 = vadd.f32 %v13117_v50, %v6223_v44  ;;  %v6221_v29 = vmul.f32 %v13111_v21, %v6197_v49  ;;  %v6259_v39 = vadd.f32 %v8650_v7, %v6235_v28  ;;  %v6269_v0 = vmax.f32 %v6261_v25, 0.0 }
 0x646   : > { %v10231_v36 = vpop.f32.mrf.mxu1 }
 0x647   : > { %v6607_v26 = vmul.f32 %v10231_v36, %v13111_v21  ;;  %v6262_v62 = vadd.f32 %v8655_v1, %v6238_v42  ;;  %v6236_v61 = vadd.f32 %v13117_v50, %v6221_v29  ;;  %v10251_v12 = vpop.f32.mrf.mxu0  ;;  %v6267_v10 = vmax.f32 %v6259_v39, 0.0 }
 0x648   : > { %v6579_v18 = vpop.f32.mrf.mxu1  ;;  %v6990_v2 = vmul.f32 %v10251_v12, %v13111_v21  ;;  %v8758_v1 = vunpack.c.l.bf16 %v13201_v30 }
 0x649   : > { %v6622_v19 = vadd.f32 %v13117_v50, %v6607_v26  ;;  %v6605_v58 = vmul.f32 %v13111_v21, %v6579_v18  ;;  %v6270_v48 = vmax.f32 %v6262_v62, 0.0  ;;  %v6260_v56 = vadd.f32 %v8651_v38, %v6236_v61  ;;  %v6950_v13 = vpop.f32.mrf.mxu0 }
 0x64a   : > { %v10232_v47 = vpop.f32.mrf.mxu1  ;;  %v7005_v8 = vadd.f32 %v13117_v50, %v6990_v2  ;;  %v6988_v24 = vmul.f32 %v13111_v21, %v6950_v13  ;;  %v8727_v38 = vunpack.c.h.bf16 %v13178_v52 }
 0x64b   : > { %v6647_v57 = vadd.f32 %v8690_v46, %v6622_v19  ;;  %v6620_v34 = vadd.f32 %v13117_v50, %v6605_v58  ;;  %v8674_v31 = vpack.c.bf16 %v6270_v48, %v6269_v0  ;;  %v6608_v20 = vmul.f32 %v10232_v47, %v13111_v21  ;;  %v10252_v6 = vpop.f32.mrf.mxu0 }
 0x64c   : > { %v6268_v45 = vmax.f32 %v6260_v56, 0.0  ;;  %v6582_v43 = vpop.f32.mrf.mxu1  ;;  %v7030_v63 = vadd.f32 %v8718_v11, %v7005_v8  ;;  %v7003_v15 = vadd.f32 %v13117_v50, %v6988_v24  ;;  %v6991_v23 = vmul.f32 %v10252_v6, %v13111_v21 }
 0x64d   : > { %v6645_v60 = vadd.f32 %v8686_v32, %v6620_v34  ;;  %8789 = vst [vmem:[%s10851_s20 + $0x18] sm:$0xff] %v8674_v31   ;;  %v6623_v7 = vadd.f32 %v13117_v50, %v6608_v20  ;;  %v6606_v46 = vmul.f32 %v13111_v21, %v6582_v43  ;;  %v6953_v22 = vpop.f32.mrf.mxu0  ;;  %v6655_v25 = vmax.f32 %v6647_v57, 0.0 }
 0x64e   : > { %v8669_v28 = vpack.c.bf16 %v6268_v45, %v6267_v10  ;;  %v7006_v49 = vadd.f32 %v13117_v50, %v6991_v23  ;;  %v7038_v32 = vmax.f32 %v7030_v63, 0.0  ;;  %v7028_v39 = vadd.f32 %v8714_v41, %v7003_v15 }
 0x64f   : > { %v10275_v44 = vpop.f32.mrf.mxu1  ;;  %v6648_v11 = vadd.f32 %v8691_v51, %v6623_v7  ;;  %v6621_v42 = vadd.f32 %v13117_v50, %v6606_v46  ;;  %v10255_v36 = vpop.f32.mrf.mxu0  ;;  %v6989_v62 = vmul.f32 %v13111_v21, %v6953_v22  ;;  %v6653_v12 = vmax.f32 %v6645_v60, 0.0 }
 0x650   : > { %v7377_v29 = vmul.f32 %v10275_v44, %v13111_v21  ;;  %8788 = vst [vmem:[%s10851_s20 + $0x10] sm:$0xff] %v8669_v28   ;;  %v7031_v26 = vadd.f32 %v8719_v5, %v7006_v49  ;;  %v6994_v61 = vmul.f32 %v10255_v36, %v13111_v21  ;;  %v7036_v6 = vmax.f32 %v7028_v39, 0.0 }
 0x651   : > { %v7337_v0 = vpop.f32.mrf.mxu1  ;;  %v6656_v18 = vmax.f32 %v6648_v11, 0.0  ;;  %v6646_v2 = vadd.f32 %v8687_v14, %v6621_v42  ;;  %v6966_v19 = vpop.f32.mrf.mxu0  ;;  %v7004_v41 = vadd.f32 %v13117_v50, %v6989_v62  ;;  %v8723_v63 = vunpack.c.h.bf16 %v13189_v16 }
 0x652   : > { %v7375_v51 = vmul.f32 %v13111_v21, %v7337_v0  ;;  %v7392_v58 = vadd.f32 %v13117_v50, %v7377_v29  ;;  %v7039_v48 = vmax.f32 %v7031_v26, 0.0  ;;  %v6992_v5 = vmul.f32 %v13111_v21, %v6966_v19 }
 0x653   : > { %v10276_v56 = vpop.f32.mrf.mxu1  ;;  %v8710_v13 = vpack.c.bf16 %v6656_v18, %v6655_v25  ;;  %v6654_v10 = vmax.f32 %v6646_v2, 0.0  ;;  %v10256_v8 = vpop.f32.mrf.mxu0  ;;  %v7029_v57 = vadd.f32 %v8715_v59, %v7004_v41  ;;  %v7009_v31 = vadd.f32 %v13117_v50, %v6994_v61 }
 0x654   : > { %v7390_v47 = vadd.f32 %v13117_v50, %v7375_v51  ;;  %v8736_v14 = vpack.c.bf16 %v7039_v48, %v7038_v32  ;;  %v7378_v24 = vmul.f32 %v10276_v56, %v13111_v21  ;;  %v7417_v15 = vadd.f32 %v8754_v3, %v7392_v58 }
 0x655   : > { %v7340_v34 = vpop.f32.mrf.mxu1  ;;  %8797 = vst [vmem:[%s10851_s20 + $0x38] sm:$0xff] %v8710_v13   ;;  %v8705_v20 = vpack.c.bf16 %v6654_v10, %v6653_v12  ;;  %v6969_v43 = vpop.f32.mrf.mxu0  ;;  %v7037_v60 = vmax.f32 %v7029_v57, 0.0  ;;  %v7007_v27 = vadd.f32 %v13117_v50, %v6992_v5  ;;  %v6995_v22 = vmul.f32 %v10256_v8, %v13111_v21 }
 0x656   : > { %v7376_v45 = vmul.f32 %v13111_v21, %v7340_v34  ;;  %8803 = vst [vmem:[%s10851_s20 + $0x48] sm:$0xff] %v8736_v14   ;;  %v7393_v23 = vadd.f32 %v13117_v50, %v7378_v24  ;;  %v7415_v59 = vadd.f32 %v8750_v55, %v7390_v47  ;;  %v6993_v25 = vmul.f32 %v13111_v21, %v6969_v43 }
 0x657   : > { %8796 = vst [vmem:[%s10851_s20 + $0x30] sm:$0xff] %v8705_v20   ;;  %v10279_v46 = vpop.f32.mrf.mxu1  ;;  %v8731_v28 = vpack.c.bf16 %v7037_v60, %v7036_v6  ;;  %v7034_v44 = vadd.f32 %v8726_v4, %v7009_v31  ;;  %v7032_v11 = vadd.f32 %v8722_v53, %v7007_v27  ;;  %v7010_v32 = vadd.f32 %v13117_v50, %v6995_v22 }
 0x658   : > { %v7391_v7 = vadd.f32 %v13117_v50, %v7376_v45  ;;  %v7418_v3 = vadd.f32 %v8755_v37, %v7393_v23  ;;  %v7381_v49 = vmul.f32 %v10279_v46, %v13111_v21  ;;  %v7008_v29 = vadd.f32 %v13117_v50, %v6993_v25 }
 0x659   : > { %v7353_v42 = vpop.f32.mrf.mxu1  ;;  %v7425_v36 = vmax.f32 %v7417_v15, 0.0  ;;  %8802 = vst [vmem:[%s10851_s20 + $0x40] sm:$0xff] %v8731_v28   ;;  %v7423_v39 = vmax.f32 %v7415_v59, 0.0  ;;  %v7035_v9 = vadd.f32 %v8727_v38, %v7010_v32  ;;  %v7042_v26 = vmax.f32 %v7034_v44, 0.0 }
 0x65a   : > { %v7416_v55 = vadd.f32 %v8751_v40, %v7391_v7  ;;  %v7426_v17 = vmax.f32 %v7418_v3, 0.0  ;;  %v7396_v37 = vadd.f32 %v13117_v50, %v7381_v49  ;;  %v7379_v4 = vmul.f32 %v13111_v21, %v7353_v42 }
 0x65b   : > { %v10280_v16 = vpop.f32.mrf.mxu1  ;;  %v7033_v40 = vadd.f32 %v8723_v63, %v7008_v29  ;;  %v7040_v18 = vmax.f32 %v7032_v11, 0.0  ;;  %v7043_v2 = vmax.f32 %v7035_v9, 0.0  ;;  %v8759_v48 = vunpack.c.h.bf16 %v13201_v30 }
 0x65c   : > { %v7424_v0 = vmax.f32 %v7416_v55, 0.0  ;;  %v8772_v53 = vpack.c.bf16 %v7426_v17, %v7425_v36  ;;  %v7394_v62 = vadd.f32 %v13117_v50, %v7379_v4  ;;  %v7382_v61 = vmul.f32 %v10280_v16, %v13111_v21 }
 0x65d   : > { %v7041_v51 = vmax.f32 %v7033_v40, 0.0  ;;  %v7356_v19 = vpop.f32.mrf.mxu1  ;;  %v7421_v52 = vadd.f32 %v8762_v54, %v7396_v37  ;;  %v8746_v56 = vpack.c.bf16 %v7043_v2, %v7042_v26 }
 0x65e   : > { %v8767_v12 = vpack.c.bf16 %v7424_v0, %v7423_v39  ;;  %8811 = vst [vmem:[%s10851_s20 + $0x68] sm:$0xff] %v8772_v53   ;;  %v7397_v38 = vadd.f32 %v13117_v50, %v7382_v61  ;;  %v7380_v58 = vmul.f32 %v13111_v21, %v7356_v19  ;;  %v7419_v5 = vadd.f32 %v8758_v1, %v7394_v62 }
 0x65f   : > { %v8741_v41 = vpack.c.bf16 %v7041_v51, %v7040_v18  ;;  %8805 = vst [vmem:[%s10851_s20 + $0x58] sm:$0xff] %v8746_v56   ;;  %v7429_v35 = vmax.f32 %v7421_v52, 0.0 }
 0x660   : > { %8810 = vst [vmem:[%s10851_s20 + $0x60] sm:$0xff] %v8767_v12   ;;  %v7422_v13 = vadd.f32 %v8763_v33, %v7397_v38  ;;  %v7395_v10 = vadd.f32 %v13117_v50, %v7380_v58  ;;  %v7427_v8 = vmax.f32 %v7419_v5, 0.0 }
 0x661   : > { %8804 = vst [vmem:[%s10851_s20 + $0x50] sm:$0xff] %v8741_v41  }
 0x662   : > { %v7430_v54 = vmax.f32 %v7422_v13, 0.0  ;;  %v7420_v47 = vadd.f32 %v8759_v48, %v7395_v10 }
 0x664   : > { %v8782_v21 = vpack.c.bf16 %v7430_v54, %v7429_v35  ;;  %v7428_v14 = vmax.f32 %v7420_v47, 0.0 }
 0x666   : > { %8813 = vst [vmem:[%s10851_s20 + $0x78] sm:$0xff] %v8782_v21   ;;  %v8777_v24 = vpack.c.bf16 %v7428_v14, %v7427_v8 }
 0x668   : > { %8812 = vst [vmem:[%s10851_s20 + $0x70] sm:$0xff] %v8777_v24  }
 0x669 PF: > { %s18_s9 = sadd.s32 1, %s10748_s9   ;;  %s13326_s27 = smov %s10740_s29 }
 0x66a   : > { %p15_p12 = scmp.ge.s32.totalorder %s18_s9, 14   ;;  %s13327_s28 = smov %s10744_s30 }
 0x66b   : > { %s13328_s29 = smov %s13331_s10  ;;  %s13329_s30 = smov %s13335_s11 }
 0x66c   :  { %17 = sbr.rel (!%p15_p12) target bundleno = 3 (0x3), region = 147 }

</bundles_post_ra>
